<compile_context>
chip_gen: v7x
topology: tpu7x:2x2x1
jax: 0.10.0
libtpu: 0.0.40
codegen_flags: <defaults>
</compile_context>

<pallas_src>
import jax
import jax.numpy as jnp
from jax.experimental import pallas as pl
from jax.experimental.pallas import tpu as pltpu


# ----------------------------- fused kernel ----------------------------------

def down_fused_kernel(x_ref, w1_ref, s1_ref, b1_ref, w2_ref, s2_ref, b2_ref,
                      o_ref, xp1_ref, col1_ref, xp2_ref, col2_ref):
    # x_ref  : (1, Hp, 2, Wp, 2*Cin) bf16   input, W-pixel parity on lanes
    # w*_ref : (9*C_in, C_out)       bf16   im2col-packed weights
    # s*/b*  : (1, C_out)            f32    folded BN scale / bias
    # o_ref  : (1, Cout, Hp*Wp)      f32    NCHW-flat, lane-dense store
    # xp*_ref: VMEM (Hp+2, Wp+2, C)  bf16   zero-bordered activation
    # col*   : VMEM (Hp, Wp, 9*C)    bf16   im2col patch matrix
    Hp, Wp = col1_ref.shape[0], col1_ref.shape[1]
    Cin = xp1_ref.shape[-1]
    Cmid = xp2_ref.shape[-1]
    M = Hp * Wp

    # ---- 2x2 max pool (VPU); lane slices + one middle-dim index, no reshape ----
    xw = x_ref[0]                                         # (Hp, 2, Wp, 2*Cin)
    wmax = jnp.maximum(xw[..., :Cin], xw[..., Cin:])      # max over W parity
    pooled = jnp.maximum(wmax[:, 0], wmax[:, 1])          # (Hp, Wp, Cin)

    def pad_into(xp_ref, interior):
        # Zero ONLY the 1-pixel border strips; the interior is fully rewritten.
        c = xp_ref.shape[-1]
        zrow = jnp.zeros((Wp + 2, c), xp_ref.dtype)
        zcol = jnp.zeros((Hp + 2, 1, c), xp_ref.dtype)
        xp_ref[0, :, :] = zrow
        xp_ref[Hp + 1, :, :] = zrow
        xp_ref[:, 0:1, :] = zcol
        xp_ref[:, Wp + 1:Wp + 2, :] = zcol
        xp_ref[1:Hp + 1, 1:Wp + 1, :] = interior

    def im2col(xp_ref, col_ref):
        # 9 shifted tap copies -> (Hp, Wp, 9*C) patch matrix in VMEM.
        c = xp_ref.shape[-1]
        for dy in range(3):                               # static unroll
            for dx in range(3):
                t = dy * 3 + dx
                col_ref[:, :, t * c:(t + 1) * c] = xp_ref[dy:dy + Hp, dx:dx + Wp, :]

    # ---- conv1 (single MXU matmul, K=9*Cin) + fused BN + ReLU ----
    pad_into(xp1_ref, pooled)
    im2col(xp1_ref, col1_ref)
    # (Hp, Wp, 9Cin) -> (M, 9Cin): leading-dim merge, layout-preserving (Wp%16==0)
    m1 = jnp.dot(col1_ref[...].reshape(M, 9 * Cin), w1_ref[...],
                 preferred_element_type=jnp.float32)      # (M, Cmid) f32
    y1 = jnp.maximum(m1 * s1_ref[...] + b1_ref[...], 0.0)

    # ---- conv2 (single MXU matmul, K=9*Cmid) + fused BN + ReLU ----
    pad_into(xp2_ref, y1.reshape(Hp, Wp, Cmid).astype(xp2_ref.dtype))
    im2col(xp2_ref, col2_ref)
    m2 = jnp.dot(col2_ref[...].reshape(M, 9 * Cmid), w2_ref[...],
                 preferred_element_type=jnp.float32)      # (M, Cout) f32
    y2 = jnp.maximum(m2 * s2_ref[...] + b2_ref[...], 0.0)

    # ---- lane-dense NCHW-flat store: (Cout, Hp*Wp), Hp*Wp >= 128 lanes ----
    o_ref[0] = y2.T.astype(o_ref.dtype)


# ----------------------------- wrapper ----------------------------------------

def down_forward(x_nchw, p1, p2):
    N, Cin, H, W = x_nchw.shape
    assert H % 2 == 0 and W % 2 == 0, "MaxPool2d(2) expects even H and W"
    Hp, Wp = H // 2, W // 2
    Cmid = p1["w"].shape[-1]
    Cout = p2["w"].shape[-1]
    M = Hp * Wp

    # Single boundary pass over x: NCHW -> NHWC, fold W-pixel parity into lanes,
    # cast to bf16.  (XLA fuses transpose+reshape+convert into one copy.)
    # TODO(synk): keep the model NHWC+bf16 end-to-end to remove this pass.
    x5 = (jnp.transpose(x_nchw, (0, 2, 3, 1))
          .reshape(N, Hp, 2, Wp, 2 * Cin)
          .astype(jnp.bfloat16))

    # One-time im2col weight packing (would be pre-packed with the params in a
    # real model): HWIO (3,3,Ci,Co) -> (9*Ci, Co), bf16 operands.
    w1p = p1["w"].reshape(9 * Cin, Cmid).astype(jnp.bfloat16)
    w2p = p2["w"].reshape(9 * Cmid, Cout).astype(jnp.bfloat16)

    out_flat = pl.pallas_call(
        down_fused_kernel,
        out_shape=jax.ShapeDtypeStruct((N, Cout, M), jnp.float32),
        grid=(N,),
        in_specs=[
            pl.BlockSpec((1, Hp, 2, Wp, 2 * Cin), lambda n: (n, 0, 0, 0, 0)),
            pl.BlockSpec((9 * Cin, Cmid), lambda n: (0, 0)),
            pl.BlockSpec((1, Cmid), lambda n: (0, 0)),
            pl.BlockSpec((1, Cmid), lambda n: (0, 0)),
            pl.BlockSpec((9 * Cmid, Cout), lambda n: (0, 0)),
            pl.BlockSpec((1, Cout), lambda n: (0, 0)),
            pl.BlockSpec((1, Cout), lambda n: (0, 0)),
        ],
        out_specs=pl.BlockSpec((1, Cout, M), lambda n: (n, 0, 0)),
        scratch_shapes=[
            pltpu.VMEM((Hp + 2, Wp + 2, Cin), jnp.bfloat16),   # padded pooled act
            pltpu.VMEM((Hp, Wp, 9 * Cin), jnp.bfloat16),       # im2col for conv1
            pltpu.VMEM((Hp + 2, Wp + 2, Cmid), jnp.bfloat16),  # padded conv1 act
            pltpu.VMEM((Hp, Wp, 9 * Cmid), jnp.bfloat16),      # im2col for conv2
        ],
        compiler_params=pltpu.CompilerParams(
            dimension_semantics=("parallel",),       # batch across TCs on v7x
            vmem_limit_bytes=64 * 1024 * 1024,
        ),
    )(x5, w1p, p1["scale"], p1["bias"], w2p, p2["scale"], p2["bias"])

    # Only a minor-dim split remains at the output boundary (no transpose).
    return out_flat.reshape(N, Cout, Hp, Wp)


# ----------------------------- params / reference -----------------------------

_EPS = 1e-5


def make_conv_bn_params(key, cin, cout):
    k = jax.random.split(key, 6)
    w = jax.random.normal(k[0], (3, 3, cin, cout), jnp.float32) / jnp.sqrt(9.0 * cin)
    b = 0.1 * jax.random.normal(k[1], (cout,), jnp.float32)
    gamma = 1.0 + 0.1 * jax.random.normal(k[2], (cout,), jnp.float32)
    beta = 0.1 * jax.random.normal(k[3], (cout,), jnp.float32)
    mean = 0.05 * jax.random.normal(k[4], (cout,), jnp.float32)
    var = 1.0 + 0.1 * jnp.abs(jax.random.normal(k[5], (cout,), jnp.float32))
    scale = gamma / jnp.sqrt(var + _EPS)
    bias = (b - mean) * scale + beta
    return dict(w=w, scale=scale.reshape(1, cout), bias=bias.reshape(1, cout),
                raw=(w, b, gamma, beta, mean, var))


def ref_down(x_nchw, params_list):
    # f32 reference computed from the SAME bf16-rounded activations / weights
    # the kernel consumes, so the check isolates kernel correctness from the
    # intentional bf16 operand quantization (accumulation is f32 in both).
    x = jnp.transpose(x_nchw, (0, 2, 3, 1)).astype(jnp.bfloat16).astype(jnp.float32)
    N, H, W, C = x.shape
    x = x.reshape(N, H // 2, 2, W // 2, 2, C).max(axis=(2, 4))
    for p in params_list:
        w, b, gamma, beta, mean, var = p["raw"]
        w = w.astype(jnp.bfloat16).astype(jnp.float32)
        y = jax.lax.conv_general_dilated(
            x, w, window_strides=(1, 1), padding=[(1, 1), (1, 1)],
            dimension_numbers=("NHWC", "HWIO", "NHWC")) + b
        y = (y - mean) / jnp.sqrt(var + _EPS) * gamma + beta
        x = jnp.maximum(y, 0.0)
    return jnp.transpose(x, (0, 3, 1, 2))


# ----------------------------- main --------------------------------------------

if __name__ == "__main__":
    key = jax.random.PRNGKey(0)
    kx, k1, k2 = jax.random.split(key, 3)

    # Down(in_channels=4, out_channels=8); spatial 32 so Hp*Wp = 256 >= 128
    # (fills the MXU M dim and keeps bf16 sublane tiling clean).
    N, Cin, H, W = 2, 4, 32, 32
    Cout = 8

    x = jax.random.normal(kx, (N, Cin, H, W), jnp.float32)
    p1 = make_conv_bn_params(k1, Cin, Cout)    # conv1: Cin -> mid(=Cout)
    p2 = make_conv_bn_params(k2, Cout, Cout)   # conv2: mid -> Cout

    out = jax.block_until_ready(down_forward(x, p1, p2))

    ref = ref_down(x, [p1, p2])
    assert out.shape == (N, Cout, H // 2, W // 2), out.shape
    max_err = float(jnp.max(jnp.abs(out - ref)))
    # bf16 rounding of the conv1 activation before conv2 is the only extra
    # rounding point vs. the reference -> a few e-3 worst case.
    assert jnp.allclose(out, ref, atol=2e-2, rtol=2e-2), max_err

    print("KERNEL_OK")
</pallas_src>

<mosaic_0001>
module attributes {stable_mosaic.version = 11 : i64} {
  func.func @down_fused_kernel(%arg0: i32, %arg1: memref<1x16x2x16x8xbf16, #tpu.memory_space<vmem>>, %arg2: memref<36x8xbf16, #tpu.memory_space<vmem>>, %arg3: memref<1x8xf32, #tpu.memory_space<vmem>>, %arg4: memref<1x8xf32, #tpu.memory_space<vmem>>, %arg5: memref<72x8xbf16, #tpu.memory_space<vmem>>, %arg6: memref<1x8xf32, #tpu.memory_space<vmem>>, %arg7: memref<1x8xf32, #tpu.memory_space<vmem>>, %arg8: memref<1x8x256xf32, #tpu.memory_space<vmem>>, %arg9: memref<18x18x4xbf16, #tpu.memory_space<vmem>>, %arg10: memref<16x16x36xbf16, #tpu.memory_space<vmem>>, %arg11: memref<18x18x8xbf16, #tpu.memory_space<vmem>>, %arg12: memref<16x16x72xbf16, #tpu.memory_space<vmem>>) attributes {dimension_semantics = [#tpu.dimension_semantics<parallel>], iteration_bounds = array<i64: 2>, scalar_prefetch = 0 : i64, scratch_operands = 4 : i64, tpu.core_type = #tpu.core_type<tc>, window_params = [{transform_indices = @transform_0, window_bounds = array<i64: 1, 16, 2, 16, 8>}, {pipeline_mode = #tpu.pipeline_mode<synchronous>, transform_indices = @transform_1, window_bounds = array<i64: 36, 8>}, {pipeline_mode = #tpu.pipeline_mode<synchronous>, transform_indices = @transform_2, window_bounds = array<i64: 1, 8>}, {pipeline_mode = #tpu.pipeline_mode<synchronous>, transform_indices = @transform_3, window_bounds = array<i64: 1, 8>}, {pipeline_mode = #tpu.pipeline_mode<synchronous>, transform_indices = @transform_4, window_bounds = array<i64: 72, 8>}, {pipeline_mode = #tpu.pipeline_mode<synchronous>, transform_indices = @transform_5, window_bounds = array<i64: 1, 8>}, {pipeline_mode = #tpu.pipeline_mode<synchronous>, transform_indices = @transform_6, window_bounds = array<i64: 1, 8>}, {transform_indices = @transform_7, window_bounds = array<i64: 1, 8, 256>}]} {
    %c0 = arith.constant 0 : index
    %c0_0 = arith.constant 0 : index
    %c0_1 = arith.constant 0 : index
    %c0_2 = arith.constant 0 : index
    %c0_3 = arith.constant 0 : index
    %0 = vector.load %arg1[%c0, %c0_0, %c0_1, %c0_2, %c0_3] : memref<1x16x2x16x8xbf16, #tpu.memory_space<vmem>>, vector<1x16x2x16x8xbf16>
    %1 = vector.shape_cast %0 : vector<1x16x2x16x8xbf16> to vector<16x2x16x8xbf16>
    %2 = vector.extract_strided_slice %1 {offsets = [0, 0, 0, 0], sizes = [16, 2, 16, 4], strides = [1, 1, 1, 1]} : vector<16x2x16x8xbf16> to vector<16x2x16x4xbf16>
    %3 = vector.extract_strided_slice %1 {offsets = [0, 0, 0, 4], sizes = [16, 2, 16, 4], strides = [1, 1, 1, 1]} : vector<16x2x16x8xbf16> to vector<16x2x16x4xbf16>
    %4 = arith.maximumf %2, %3 : vector<16x2x16x4xbf16>
    %5 = vector.extract_strided_slice %4 {offsets = [0, 0, 0, 0], sizes = [16, 1, 16, 4], strides = [1, 1, 1, 1]} : vector<16x2x16x4xbf16> to vector<16x1x16x4xbf16>
    %6 = vector.shape_cast %5 : vector<16x1x16x4xbf16> to vector<16x16x4xbf16>
    %7 = vector.extract_strided_slice %4 {offsets = [0, 1, 0, 0], sizes = [16, 1, 16, 4], strides = [1, 1, 1, 1]} : vector<16x2x16x4xbf16> to vector<16x1x16x4xbf16>
    %8 = vector.shape_cast %7 : vector<16x1x16x4xbf16> to vector<16x16x4xbf16>
    %9 = arith.maximumf %6, %8 : vector<16x16x4xbf16>
    %cst = arith.constant 0.000000e+00 : bf16
    %10 = vector.broadcast %cst : bf16 to vector<18x4xbf16>
    %cst_4 = arith.constant 0.000000e+00 : bf16
    %11 = vector.broadcast %cst_4 : bf16 to vector<18x1x4xbf16>
    %c0_5 = arith.constant 0 : index
    %c0_6 = arith.constant 0 : index
    %c0_7 = arith.constant 0 : index
    %12 = vector.load %arg9[%c0_5, %c0_6, %c0_7] : memref<18x18x4xbf16, #tpu.memory_space<vmem>>, vector<1x18x4xbf16>
    %13 = vector.shape_cast %12 : vector<1x18x4xbf16> to vector<18x4xbf16>
    %14 = vector.shape_cast %10 : vector<18x4xbf16> to vector<1x18x4xbf16>
    tpu.vector_store %arg9[%c0_5, %c0_6, %c0_7], %14 {strides = array<i32>} : memref<18x18x4xbf16, #tpu.memory_space<vmem>>, vector<1x18x4xbf16>,
    %c17 = arith.constant 17 : index
    %c0_8 = arith.constant 0 : index
    %c0_9 = arith.constant 0 : index
    %15 = vector.load %arg9[%c17, %c0_8, %c0_9] : memref<18x18x4xbf16, #tpu.memory_space<vmem>>, vector<1x18x4xbf16>
    %16 = vector.shape_cast %15 : vector<1x18x4xbf16> to vector<18x4xbf16>
    %17 = vector.shape_cast %10 : vector<18x4xbf16> to vector<1x18x4xbf16>
    tpu.vector_store %arg9[%c17, %c0_8, %c0_9], %17 {strides = array<i32>} : memref<18x18x4xbf16, #tpu.memory_space<vmem>>, vector<1x18x4xbf16>,
    %c0_10 = arith.constant 0 : index
    %c0_11 = arith.constant 0 : index
    %c0_12 = arith.constant 0 : index
    %18 = vector.load %arg9[%c0_10, %c0_11, %c0_12] : memref<18x18x4xbf16, #tpu.memory_space<vmem>>, vector<18x1x4xbf16>
    tpu.vector_store %arg9[%c0_10, %c0_11, %c0_12], %11 {strides = array<i32>} : memref<18x18x4xbf16, #tpu.memory_space<vmem>>, vector<18x1x4xbf16>,
    %c0_13 = arith.constant 0 : index
    %c17_14 = arith.constant 17 : index
    %c0_15 = arith.constant 0 : index
    %19 = vector.load %arg9[%c0_13, %c17_14, %c0_15] : memref<18x18x4xbf16, #tpu.memory_space<vmem>>, vector<18x1x4xbf16>
    tpu.vector_store %arg9[%c0_13, %c17_14, %c0_15], %11 {strides = array<i32>} : memref<18x18x4xbf16, #tpu.memory_space<vmem>>, vector<18x1x4xbf16>,
    %c1 = arith.constant 1 : index
    %c1_16 = arith.constant 1 : index
    %c0_17 = arith.constant 0 : index
    %20 = vector.load %arg9[%c1, %c1_16, %c0_17] : memref<18x18x4xbf16, #tpu.memory_space<vmem>>, vector<16x16x4xbf16>
    tpu.vector_store %arg9[%c1, %c1_16, %c0_17], %9 {strides = array<i32>} : memref<18x18x4xbf16, #tpu.memory_space<vmem>>, vector<16x16x4xbf16>,
    %c0_18 = arith.constant 0 : index
    %c0_19 = arith.constant 0 : index
    %c0_20 = arith.constant 0 : index
    %21 = vector.load %arg9[%c0_18, %c0_19, %c0_20] : memref<18x18x4xbf16, #tpu.memory_space<vmem>>, vector<16x16x4xbf16>
    %c0_21 = arith.constant 0 : index
    %c0_22 = arith.constant 0 : index
    %c0_23 = arith.constant 0 : index
    %22 = vector.load %arg10[%c0_21, %c0_22, %c0_23] : memref<16x16x36xbf16, #tpu.memory_space<vmem>>, vector<16x16x4xbf16>
    tpu.vector_store %arg10[%c0_21, %c0_22, %c0_23], %21 {strides = array<i32>} : memref<16x16x36xbf16, #tpu.memory_space<vmem>>, vector<16x16x4xbf16>,
    %c0_24 = arith.constant 0 : index
    %c1_25 = arith.constant 1 : index
    %c0_26 = arith.constant 0 : index
    %23 = vector.load %arg9[%c0_24, %c1_25, %c0_26] : memref<18x18x4xbf16, #tpu.memory_space<vmem>>, vector<16x16x4xbf16>
    %c0_27 = arith.constant 0 : index
    %c0_28 = arith.constant 0 : index
    %c4 = arith.constant 4 : index
    %24 = vector.load %arg10[%c0_27, %c0_28, %c4] : memref<16x16x36xbf16, #tpu.memory_space<vmem>>, vector<16x16x4xbf16>
    tpu.vector_store %arg10[%c0_27, %c0_28, %c4], %23 {strides = array<i32>} : memref<16x16x36xbf16, #tpu.memory_space<vmem>>, vector<16x16x4xbf16>,
    %c0_29 = arith.constant 0 : index
    %c2 = arith.constant 2 : index
    %c0_30 = arith.constant 0 : index
    %25 = vector.load %arg9[%c0_29, %c2, %c0_30] : memref<18x18x4xbf16, #tpu.memory_space<vmem>>, vector<16x16x4xbf16>
    %c0_31 = arith.constant 0 : index
    %c0_32 = arith.constant 0 : index
    %c8 = arith.constant 8 : index
    %26 = vector.load %arg10[%c0_31, %c0_32, %c8] : memref<16x16x36xbf16, #tpu.memory_space<vmem>>, vector<16x16x4xbf16>
    tpu.vector_store %arg10[%c0_31, %c0_32, %c8], %25 {strides = array<i32>} : memref<16x16x36xbf16, #tpu.memory_space<vmem>>, vector<16x16x4xbf16>,
    %c1_33 = arith.constant 1 : index
    %c0_34 = arith.constant 0 : index
    %c0_35 = arith.constant 0 : index
    %27 = vector.load %arg9[%c1_33, %c0_34, %c0_35] : memref<18x18x4xbf16, #tpu.memory_space<vmem>>, vector<16x16x4xbf16>
    %c0_36 = arith.constant 0 : index
    %c0_37 = arith.constant 0 : index
    %c12 = arith.constant 12 : index
    %28 = vector.load %arg10[%c0_36, %c0_37, %c12] : memref<16x16x36xbf16, #tpu.memory_space<vmem>>, vector<16x16x4xbf16>
    tpu.vector_store %arg10[%c0_36, %c0_37, %c12], %27 {strides = array<i32>} : memref<16x16x36xbf16, #tpu.memory_space<vmem>>, vector<16x16x4xbf16>,
    %c1_38 = arith.constant 1 : index
    %c1_39 = arith.constant 1 : index
    %c0_40 = arith.constant 0 : index
    %29 = vector.load %arg9[%c1_38, %c1_39, %c0_40] : memref<18x18x4xbf16, #tpu.memory_space<vmem>>, vector<16x16x4xbf16>
    %c0_41 = arith.constant 0 : index
    %c0_42 = arith.constant 0 : index
    %c16 = arith.constant 16 : index
    %30 = vector.load %arg10[%c0_41, %c0_42, %c16] : memref<16x16x36xbf16, #tpu.memory_space<vmem>>, vector<16x16x4xbf16>
    tpu.vector_store %arg10[%c0_41, %c0_42, %c16], %29 {strides = array<i32>} : memref<16x16x36xbf16, #tpu.memory_space<vmem>>, vector<16x16x4xbf16>,
    %c1_43 = arith.constant 1 : index
    %c2_44 = arith.constant 2 : index
    %c0_45 = arith.constant 0 : index
    %31 = vector.load %arg9[%c1_43, %c2_44, %c0_45] : memref<18x18x4xbf16, #tpu.memory_space<vmem>>, vector<16x16x4xbf16>
    %c0_46 = arith.constant 0 : index
    %c0_47 = arith.constant 0 : index
    %c20 = arith.constant 20 : index
    %32 = vector.load %arg10[%c0_46, %c0_47, %c20] : memref<16x16x36xbf16, #tpu.memory_space<vmem>>, vector<16x16x4xbf16>
    tpu.vector_store %arg10[%c0_46, %c0_47, %c20], %31 {strides = array<i32>} : memref<16x16x36xbf16, #tpu.memory_space<vmem>>, vector<16x16x4xbf16>,
    %c2_48 = arith.constant 2 : index
    %c0_49 = arith.constant 0 : index
    %c0_50 = arith.constant 0 : index
    %33 = vector.load %arg9[%c2_48, %c0_49, %c0_50] : memref<18x18x4xbf16, #tpu.memory_space<vmem>>, vector<16x16x4xbf16>
    %c0_51 = arith.constant 0 : index
    %c0_52 = arith.constant 0 : index
    %c24 = arith.constant 24 : index
    %34 = vector.load %arg10[%c0_51, %c0_52, %c24] : memref<16x16x36xbf16, #tpu.memory_space<vmem>>, vector<16x16x4xbf16>
    tpu.vector_store %arg10[%c0_51, %c0_52, %c24], %33 {strides = array<i32>} : memref<16x16x36xbf16, #tpu.memory_space<vmem>>, vector<16x16x4xbf16>,
    %c2_53 = arith.constant 2 : index
    %c1_54 = arith.constant 1 : index
    %c0_55 = arith.constant 0 : index
    %35 = vector.load %arg9[%c2_53, %c1_54, %c0_55] : memref<18x18x4xbf16, #tpu.memory_space<vmem>>, vector<16x16x4xbf16>
    %c0_56 = arith.constant 0 : index
    %c0_57 = arith.constant 0 : index
    %c28 = arith.constant 28 : index
    %36 = vector.load %arg10[%c0_56, %c0_57, %c28] : memref<16x16x36xbf16, #tpu.memory_space<vmem>>, vector<16x16x4xbf16>
    tpu.vector_store %arg10[%c0_56, %c0_57, %c28], %35 {strides = array<i32>} : memref<16x16x36xbf16, #tpu.memory_space<vmem>>, vector<16x16x4xbf16>,
    %c2_58 = arith.constant 2 : index
    %c2_59 = arith.constant 2 : index
    %c0_60 = arith.constant 0 : index
    %37 = vector.load %arg9[%c2_58, %c2_59, %c0_60] : memref<18x18x4xbf16, #tpu.memory_space<vmem>>, vector<16x16x4xbf16>
    %c0_61 = arith.constant 0 : index
    %c0_62 = arith.constant 0 : index
    %c32 = arith.constant 32 : index
    %38 = vector.load %arg10[%c0_61, %c0_62, %c32] : memref<16x16x36xbf16, #tpu.memory_space<vmem>>, vector<16x16x4xbf16>
    tpu.vector_store %arg10[%c0_61, %c0_62, %c32], %37 {strides = array<i32>} : memref<16x16x36xbf16, #tpu.memory_space<vmem>>, vector<16x16x4xbf16>,
    %c0_63 = arith.constant 0 : index
    %c0_64 = arith.constant 0 : index
    %c0_65 = arith.constant 0 : index
    %39 = vector.load %arg10[%c0_63, %c0_64, %c0_65] : memref<16x16x36xbf16, #tpu.memory_space<vmem>>, vector<16x16x36xbf16>
    %40 = vector.shape_cast %39 : vector<16x16x36xbf16> to vector<256x36xbf16>
    %c0_66 = arith.constant 0 : index
    %c0_67 = arith.constant 0 : index
    %41 = vector.load %arg2[%c0_66, %c0_67] : memref<36x8xbf16, #tpu.memory_space<vmem>>, vector<36x8xbf16>
    %cst_68 = arith.constant dense<0.000000e+00> : vector<256x8xf32>
    %42 = tpu.matmul %40, %41, %cst_68 {dimension_numbers = #tpu.dot_dimension_numbers<[1], [0], [0], [1], [0, 0, 1, 1], [], []>} : vector<256x36xbf16>, vector<36x8xbf16>, vector<256x8xf32> -> vector<256x8xf32>
    %c0_69 = arith.constant 0 : index
    %c0_70 = arith.constant 0 : index
    %43 = vector.load %arg3[%c0_69, %c0_70] : memref<1x8xf32, #tpu.memory_space<vmem>>, vector<1x8xf32>
    %44 = vector.broadcast %43 : vector<1x8xf32> to vector<256x8xf32>
    %45 = arith.mulf %42, %44 : vector<256x8xf32>
    %c0_71 = arith.constant 0 : index
    %c0_72 = arith.constant 0 : index
    %46 = vector.load %arg4[%c0_71, %c0_72] : memref<1x8xf32, #tpu.memory_space<vmem>>, vector<1x8xf32>
    %47 = vector.broadcast %46 : vector<1x8xf32> to vector<256x8xf32>
    %48 = arith.addf %45, %47 : vector<256x8xf32>
    %cst_73 = arith.constant 0.000000e+00 : f32
    %49 = vector.broadcast %cst_73 : f32 to vector<256x8xf32>
    %50 = arith.maximumf %48, %49 : vector<256x8xf32>
    %51 = vector.shape_cast %50 : vector<256x8xf32> to vector<16x16x8xf32>
    %52 = arith.truncf %51 : vector<16x16x8xf32> to vector<16x16x8xbf16>
    %cst_74 = arith.constant 0.000000e+00 : bf16
    %53 = vector.broadcast %cst_74 : bf16 to vector<18x8xbf16>
    %cst_75 = arith.constant 0.000000e+00 : bf16
    %54 = vector.broadcast %cst_75 : bf16 to vector<18x1x8xbf16>
    %c0_76 = arith.constant 0 : index
    %c0_77 = arith.constant 0 : index
    %c0_78 = arith.constant 0 : index
    %55 = vector.load %arg11[%c0_76, %c0_77, %c0_78] : memref<18x18x8xbf16, #tpu.memory_space<vmem>>, vector<1x18x8xbf16>
    %56 = vector.shape_cast %55 : vector<1x18x8xbf16> to vector<18x8xbf16>
    %57 = vector.shape_cast %53 : vector<18x8xbf16> to vector<1x18x8xbf16>
    tpu.vector_store %arg11[%c0_76, %c0_77, %c0_78], %57 {strides = array<i32>} : memref<18x18x8xbf16, #tpu.memory_space<vmem>>, vector<1x18x8xbf16>,
    %c17_79 = arith.constant 17 : index
    %c0_80 = arith.constant 0 : index
    %c0_81 = arith.constant 0 : index
    %58 = vector.load %arg11[%c17_79, %c0_80, %c0_81] : memref<18x18x8xbf16, #tpu.memory_space<vmem>>, vector<1x18x8xbf16>
    %59 = vector.shape_cast %58 : vector<1x18x8xbf16> to vector<18x8xbf16>
    %60 = vector.shape_cast %53 : vector<18x8xbf16> to vector<1x18x8xbf16>
    tpu.vector_store %arg11[%c17_79, %c0_80, %c0_81], %60 {strides = array<i32>} : memref<18x18x8xbf16, #tpu.memory_space<vmem>>, vector<1x18x8xbf16>,
    %c0_82 = arith.constant 0 : index
    %c0_83 = arith.constant 0 : index
    %c0_84 = arith.constant 0 : index
    %61 = vector.load %arg11[%c0_82, %c0_83, %c0_84] : memref<18x18x8xbf16, #tpu.memory_space<vmem>>, vector<18x1x8xbf16>
    tpu.vector_store %arg11[%c0_82, %c0_83, %c0_84], %54 {strides = array<i32>} : memref<18x18x8xbf16, #tpu.memory_space<vmem>>, vector<18x1x8xbf16>,
    %c0_85 = arith.constant 0 : index
    %c17_86 = arith.constant 17 : index
    %c0_87 = arith.constant 0 : index
    %62 = vector.load %arg11[%c0_85, %c17_86, %c0_87] : memref<18x18x8xbf16, #tpu.memory_space<vmem>>, vector<18x1x8xbf16>
    tpu.vector_store %arg11[%c0_85, %c17_86, %c0_87], %54 {strides = array<i32>} : memref<18x18x8xbf16, #tpu.memory_space<vmem>>, vector<18x1x8xbf16>,
    %c1_88 = arith.constant 1 : index
    %c1_89 = arith.constant 1 : index
    %c0_90 = arith.constant 0 : index
    %63 = vector.load %arg11[%c1_88, %c1_89, %c0_90] : memref<18x18x8xbf16, #tpu.memory_space<vmem>>, vector<16x16x8xbf16>
    tpu.vector_store %arg11[%c1_88, %c1_89, %c0_90], %52 {strides = array<i32>} : memref<18x18x8xbf16, #tpu.memory_space<vmem>>, vector<16x16x8xbf16>,
    %c0_91 = arith.constant 0 : index
    %c0_92 = arith.constant 0 : index
    %c0_93 = arith.constant 0 : index
    %64 = vector.load %arg11[%c0_91, %c0_92, %c0_93] : memref<18x18x8xbf16, #tpu.memory_space<vmem>>, vector<16x16x8xbf16>
    %c0_94 = arith.constant 0 : index
    %c0_95 = arith.constant 0 : index
    %c0_96 = arith.constant 0 : index
    %65 = vector.load %arg12[%c0_94, %c0_95, %c0_96] : memref<16x16x72xbf16, #tpu.memory_space<vmem>>, vector<16x16x8xbf16>
    tpu.vector_store %arg12[%c0_94, %c0_95, %c0_96], %64 {strides = array<i32>} : memref<16x16x72xbf16, #tpu.memory_space<vmem>>, vector<16x16x8xbf16>,
    %c0_97 = arith.constant 0 : index
    %c1_98 = arith.constant 1 : index
    %c0_99 = arith.constant 0 : index
    %66 = vector.load %arg11[%c0_97, %c1_98, %c0_99] : memref<18x18x8xbf16, #tpu.memory_space<vmem>>, vector<16x16x8xbf16>
    %c0_100 = arith.constant 0 : index
    %c0_101 = arith.constant 0 : index
    %c8_102 = arith.constant 8 : index
    %67 = vector.load %arg12[%c0_100, %c0_101, %c8_102] : memref<16x16x72xbf16, #tpu.memory_space<vmem>>, vector<16x16x8xbf16>
    tpu.vector_store %arg12[%c0_100, %c0_101, %c8_102], %66 {strides = array<i32>} : memref<16x16x72xbf16, #tpu.memory_space<vmem>>, vector<16x16x8xbf16>,
    %c0_103 = arith.constant 0 : index
    %c2_104 = arith.constant 2 : index
    %c0_105 = arith.constant 0 : index
    %68 = vector.load %arg11[%c0_103, %c2_104, %c0_105] : memref<18x18x8xbf16, #tpu.memory_space<vmem>>, vector<16x16x8xbf16>
    %c0_106 = arith.constant 0 : index
    %c0_107 = arith.constant 0 : index
    %c16_108 = arith.constant 16 : index
    %69 = vector.load %arg12[%c0_106, %c0_107, %c16_108] : memref<16x16x72xbf16, #tpu.memory_space<vmem>>, vector<16x16x8xbf16>
    tpu.vector_store %arg12[%c0_106, %c0_107, %c16_108], %68 {strides = array<i32>} : memref<16x16x72xbf16, #tpu.memory_space<vmem>>, vector<16x16x8xbf16>,
    %c1_109 = arith.constant 1 : index
    %c0_110 = arith.constant 0 : index
    %c0_111 = arith.constant 0 : index
    %70 = vector.load %arg11[%c1_109, %c0_110, %c0_111] : memref<18x18x8xbf16, #tpu.memory_space<vmem>>, vector<16x16x8xbf16>
    %c0_112 = arith.constant 0 : index
    %c0_113 = arith.constant 0 : index
    %c24_114 = arith.constant 24 : index
    %71 = vector.load %arg12[%c0_112, %c0_113, %c24_114] : memref<16x16x72xbf16, #tpu.memory_space<vmem>>, vector<16x16x8xbf16>
    tpu.vector_store %arg12[%c0_112, %c0_113, %c24_114], %70 {strides = array<i32>} : memref<16x16x72xbf16, #tpu.memory_space<vmem>>, vector<16x16x8xbf16>,
    %c1_115 = arith.constant 1 : index
    %c1_116 = arith.constant 1 : index
    %c0_117 = arith.constant 0 : index
    %72 = vector.load %arg11[%c1_115, %c1_116, %c0_117] : memref<18x18x8xbf16, #tpu.memory_space<vmem>>, vector<16x16x8xbf16>
    %c0_118 = arith.constant 0 : index
    %c0_119 = arith.constant 0 : index
    %c32_120 = arith.constant 32 : index
    %73 = vector.load %arg12[%c0_118, %c0_119, %c32_120] : memref<16x16x72xbf16, #tpu.memory_space<vmem>>, vector<16x16x8xbf16>
    tpu.vector_store %arg12[%c0_118, %c0_119, %c32_120], %72 {strides = array<i32>} : memref<16x16x72xbf16, #tpu.memory_space<vmem>>, vector<16x16x8xbf16>,
    %c1_121 = arith.constant 1 : index
    %c2_122 = arith.constant 2 : index
    %c0_123 = arith.constant 0 : index
    %74 = vector.load %arg11[%c1_121, %c2_122, %c0_123] : memref<18x18x8xbf16, #tpu.memory_space<vmem>>, vector<16x16x8xbf16>
    %c0_124 = arith.constant 0 : index
    %c0_125 = arith.constant 0 : index
    %c40 = arith.constant 40 : index
    %75 = vector.load %arg12[%c0_124, %c0_125, %c40] : memref<16x16x72xbf16, #tpu.memory_space<vmem>>, vector<16x16x8xbf16>
    tpu.vector_store %arg12[%c0_124, %c0_125, %c40], %74 {strides = array<i32>} : memref<16x16x72xbf16, #tpu.memory_space<vmem>>, vector<16x16x8xbf16>,
    %c2_126 = arith.constant 2 : index
    %c0_127 = arith.constant 0 : index
    %c0_128 = arith.constant 0 : index
    %76 = vector.load %arg11[%c2_126, %c0_127, %c0_128] : memref<18x18x8xbf16, #tpu.memory_space<vmem>>, vector<16x16x8xbf16>
    %c0_129 = arith.constant 0 : index
    %c0_130 = arith.constant 0 : index
    %c48 = arith.constant 48 : index
    %77 = vector.load %arg12[%c0_129, %c0_130, %c48] : memref<16x16x72xbf16, #tpu.memory_space<vmem>>, vector<16x16x8xbf16>
    tpu.vector_store %arg12[%c0_129, %c0_130, %c48], %76 {strides = array<i32>} : memref<16x16x72xbf16, #tpu.memory_space<vmem>>, vector<16x16x8xbf16>,
    %c2_131 = arith.constant 2 : index
    %c1_132 = arith.constant 1 : index
    %c0_133 = arith.constant 0 : index
    %78 = vector.load %arg11[%c2_131, %c1_132, %c0_133] : memref<18x18x8xbf16, #tpu.memory_space<vmem>>, vector<16x16x8xbf16>
    %c0_134 = arith.constant 0 : index
    %c0_135 = arith.constant 0 : index
    %c56 = arith.constant 56 : index
    %79 = vector.load %arg12[%c0_134, %c0_135, %c56] : memref<16x16x72xbf16, #tpu.memory_space<vmem>>, vector<16x16x8xbf16>
    tpu.vector_store %arg12[%c0_134, %c0_135, %c56], %78 {strides = array<i32>} : memref<16x16x72xbf16, #tpu.memory_space<vmem>>, vector<16x16x8xbf16>,
    %c2_136 = arith.constant 2 : index
    %c2_137 = arith.constant 2 : index
    %c0_138 = arith.constant 0 : index
    %80 = vector.load %arg11[%c2_136, %c2_137, %c0_138] : memref<18x18x8xbf16, #tpu.memory_space<vmem>>, vector<16x16x8xbf16>
    %c0_139 = arith.constant 0 : index
    %c0_140 = arith.constant 0 : index
    %c64 = arith.constant 64 : index
    %81 = vector.load %arg12[%c0_139, %c0_140, %c64] : memref<16x16x72xbf16, #tpu.memory_space<vmem>>, vector<16x16x8xbf16>
    tpu.vector_store %arg12[%c0_139, %c0_140, %c64], %80 {strides = array<i32>} : memref<16x16x72xbf16, #tpu.memory_space<vmem>>, vector<16x16x8xbf16>,
    %c0_141 = arith.constant 0 : index
    %c0_142 = arith.constant 0 : index
    %c0_143 = arith.constant 0 : index
    %82 = vector.load %arg12[%c0_141, %c0_142, %c0_143] : memref<16x16x72xbf16, #tpu.memory_space<vmem>>, vector<16x16x72xbf16>
    %83 = vector.shape_cast %82 : vector<16x16x72xbf16> to vector<256x72xbf16>
    %c0_144 = arith.constant 0 : index
    %c0_145 = arith.constant 0 : index
    %84 = vector.load %arg5[%c0_144, %c0_145] : memref<72x8xbf16, #tpu.memory_space<vmem>>, vector<72x8xbf16>
    %cst_146 = arith.constant dense<0.000000e+00> : vector<256x8xf32>
    %85 = tpu.matmul %83, %84, %cst_146 {dimension_numbers = #tpu.dot_dimension_numbers<[1], [0], [0], [1], [0, 0, 1, 1], [], []>} : vector<256x72xbf16>, vector<72x8xbf16>, vector<256x8xf32> -> vector<256x8xf32>
    %c0_147 = arith.constant 0 : index
    %c0_148 = arith.constant 0 : index
    %86 = vector.load %arg6[%c0_147, %c0_148] : memref<1x8xf32, #tpu.memory_space<vmem>>, vector<1x8xf32>
    %87 = vector.broadcast %86 : vector<1x8xf32> to vector<256x8xf32>
    %88 = arith.mulf %85, %87 : vector<256x8xf32>
    %c0_149 = arith.constant 0 : index
    %c0_150 = arith.constant 0 : index
    %89 = vector.load %arg7[%c0_149, %c0_150] : memref<1x8xf32, #tpu.memory_space<vmem>>, vector<1x8xf32>
    %90 = vector.broadcast %89 : vector<1x8xf32> to vector<256x8xf32>
    %91 = arith.addf %88, %90 : vector<256x8xf32>
    %cst_151 = arith.constant 0.000000e+00 : f32
    %92 = vector.broadcast %cst_151 : f32 to vector<256x8xf32>
    %93 = arith.maximumf %91, %92 : vector<256x8xf32>
    %94 = tpu.transpose %93, [1, 0] : vector<256x8xf32> -> vector<8x256xf32>
    %c0_152 = arith.constant 0 : index
    %c0_153 = arith.constant 0 : index
    %c0_154 = arith.constant 0 : index
    %95 = vector.load %arg8[%c0_152, %c0_153, %c0_154] : memref<1x8x256xf32, #tpu.memory_space<vmem>>, vector<1x8x256xf32>
    %96 = vector.shape_cast %95 : vector<1x8x256xf32> to vector<8x256xf32>
    %97 = vector.shape_cast %94 : vector<8x256xf32> to vector<1x8x256xf32>
    tpu.vector_store %arg8[%c0_152, %c0_153, %c0_154], %97 {strides = array<i32>} : memref<1x8x256xf32, #tpu.memory_space<vmem>>, vector<1x8x256xf32>,
    return
  }
  func.func @transform_0(%arg0: i32) -> (i32, i32, i32, i32, i32) {
    %c0_i32 = arith.constant 0 : i32
    %c0_i32_0 = arith.constant 0 : i32
    %c0_i32_1 = arith.constant 0 : i32
    %c0_i32_2 = arith.constant 0 : i32
    %c0_i32_3 = arith.constant 0 : i32
    return %arg0, %c0_i32, %c0_i32_0, %c0_i32_1, %c0_i32_2 : i32, i32, i32, i32, i32
  }
  func.func @transform_1(%arg0: i32) -> (i32, i32) {
    %c0_i32 = arith.constant 0 : i32
    %c0_i32_0 = arith.constant 0 : i32
    %c0_i32_1 = arith.constant 0 : i32
    return %c0_i32, %c0_i32_0 : i32, i32
  }
  func.func @transform_2(%arg0: i32) -> (i32, i32) {
    %c0_i32 = arith.constant 0 : i32
    %c0_i32_0 = arith.constant 0 : i32
    %c0_i32_1 = arith.constant 0 : i32
    return %c0_i32, %c0_i32_0 : i32, i32
  }
  func.func @transform_3(%arg0: i32) -> (i32, i32) {
    %c0_i32 = arith.constant 0 : i32
    %c0_i32_0 = arith.constant 0 : i32
    %c0_i32_1 = arith.constant 0 : i32
    return %c0_i32, %c0_i32_0 : i32, i32
  }
  func.func @transform_4(%arg0: i32) -> (i32, i32) {
    %c0_i32 = arith.constant 0 : i32
    %c0_i32_0 = arith.constant 0 : i32
    %c0_i32_1 = arith.constant 0 : i32
    return %c0_i32, %c0_i32_0 : i32, i32
  }
  func.func @transform_5(%arg0: i32) -> (i32, i32) {
    %c0_i32 = arith.constant 0 : i32
    %c0_i32_0 = arith.constant 0 : i32
    %c0_i32_1 = arith.constant 0 : i32
    return %c0_i32, %c0_i32_0 : i32, i32
  }
  func.func @transform_6(%arg0: i32) -> (i32, i32) {
    %c0_i32 = arith.constant 0 : i32
    %c0_i32_0 = arith.constant 0 : i32
    %c0_i32_1 = arith.constant 0 : i32
    return %c0_i32, %c0_i32_0 : i32, i32
  }
  func.func @transform_7(%arg0: i32) -> (i32, i32, i32) {
    %c0_i32 = arith.constant 0 : i32
    %c0_i32_0 = arith.constant 0 : i32
    %c0_i32_1 = arith.constant 0 : i32
    return %arg0, %c0_i32, %c0_i32_0 : i32, i32, i32
  }
}

</mosaic_0001>

<bundles_post_ra>
// kernel: tpu_custom_call.1
= control target key start
LH: loop header
LB: loop body
LE: loop exit
PB: predicated region body
PF: predicated region fallthrough
CT: control target
= control target key end

     0   :  { %12 = vsyncpa [#allocation7], 0  ;;  %s12292_s0 = inlined_call_operand.hbm [shape: bf16[2,16,2,16,8], index: 0, kind: input, shape index: {}]   ;;  %s12293_s1 = inlined_call_operand.hbm [shape: bf16[36,8], index: 1, kind: input, shape index: {}]   ;;  %s12294_s2 = inlined_call_operand.hbm [shape: f32[1,8], index: 2, kind: input, shape index: {}]   ;;  %s12295_s3 = inlined_call_operand.hbm [shape: f32[1,8], index: 3, kind: input, shape index: {}]   ;;  %s12296_s4 = inlined_call_operand.hbm [shape: bf16[72,8], index: 4, kind: input, shape index: {}]   ;;  %s12297_s5 = inlined_call_operand.hbm [shape: f32[1,8], index: 5, kind: input, shape index: {}]   ;;  %s12298_s6 = inlined_call_operand.hbm [shape: f32[1,8], index: 6, kind: input, shape index: {}]   ;;  %s12299_s7 = inlined_call_operand.hbm [shape: f32[2,8,256], index: 7, kind: output, shape index: {}]  }
   0x1   :  { %14 = vsyncpa [#allocation7 + $0x1], 0 }
   0x2   :  { %15 = vsyncpa [#allocation10], 0 }
   0x3   :  { %16 = vsyncpa [#allocation13], 0 }
   0x4   :  { %17 = vsyncpa [#allocation16], 0 }
   0x5   :  { %18 = vsyncpa [#allocation8], 0 }
   0x6   :  { %20 = vsyncpa [#allocation8 + $0x1], 0  ;;  %s10009_s24 = smov 0   ;;  %s10011_s25 = smov 0  }
   0x7   :  { %s10013_s26 = smov 0   ;;  %s10015_s27 = smov 0  }
   0x8 LB: > { %s9945_s28 = smov [#allocation9]   ;;  %s10030_s30 = sadd.s32 4294967295, %s9943_s27   ;;  %s9943_s27 = sphi %s10015_s27, %s12395_s27   ;;  %s9939_s26 = sphi %s10013_s26, %s12394_s26   ;;  %s9935_s25 = sphi %s10011_s25, %s12393_s25   ;;  %s9931_s24 = sphi %s10009_s24, %s12392_s24  }
   0x9   : > { %s221_s29 = sshll.u32 %s9945_s28, 4  ;;  %p8282_p0 = scmp.ge.s32.totalorder %s9943_s27, 1  ;;  %s10035_s29 = int_to_ptr.vmem [resolvable:$true] %s221_s29 }
   0xa   : > { %p12300_p1 = scmp.eq.s32.totalorder %s10030_s30, 0  ;;  %p209_p2 = scmp.lt.s32.totalorder %s9943_s27, 3 }
   0xb   : > { %s9946_s9 = smov [#allocation12]   ;;  %s9947_s12 = smov [#allocation15]  }
   0xc   : > { %p10037_p3 = pnand %p8282_p0, %p209_p2  ;;  %s246_s10 = sshll.u32 %s9946_s9, 4  ;;  %s10050_s10 = int_to_ptr.vmem [resolvable:$true] %s246_s10 }
   0xd   : > { %s270_s13 = sshll.u32 %s9947_s12, 4  ;;  %s9667_s16 = scalar_lea.hbm %s12293_s1, 320  ;;  %s10052_s13 = int_to_ptr.vmem [resolvable:$true] %s270_s13 }
   0xe   : > { %s12310_s8 = scalar_select %p10037_p3, 1, 0 }
   0xf   : > { %p9047_p5 = pneg %p10037_p3  ;;  %p9668_p7 = scmp.ne.s32.totalorder %s12293_s1, %s9667_s16 }
  0x10   : > { %p9674_p11 = scmp.lt.u32.totalorder %s9667_s16, %s12293_s1 }
  0x11   : > { %p10046_p6 = pnand %p9047_p5, %p12300_p1 }
  0x13   : > { %p10062_p8 = pneg %p10046_p6 }
  0x15   : > { %p9670_p9 = pnand %p10062_p8, %p9668_p7 }
  0x17   : > { %p9671_p10 = pneg %p9670_p9 }
  0x19   : > { %p9676_p12 = pnand %p9674_p11, %p9671_p10 }
  0x1b   : > { %9679 = shalt.err (!%p9676_p12)
}
  0x1c   : > { %s9680_s22 = scalar_lea.vmem %s10035_s29, 320  ;;  %p9688_p5 = scmp.lt.s32.totalorder %s10035_s29, %s10035_s29 }
  0x1d   : > { %p9681_p13 = scmp.ne.s32.totalorder %s10035_s29, %s9680_s22  ;;  %p9689_p4 = scmp.lt.s32.totalorder %s9680_s22, %s9680_s22 }
  0x1f   : > { %p9683_p0 = pnand %p9681_p13, %p10062_p8  ;;  %p9690_p7 = por %p9689_p4, %p9688_p5 }
  0x21   : > { %p9684_p2 = pneg %p9683_p0 }
  0x23   : > { %p9691_p9 = pnand %p9690_p7, %p9684_p2 }
  0x25   : > { %9694 = shalt.err (!%p9691_p9)
}
  0x26   : > { %s12302_s23 = smov 64   ;;  %s9949_s28 = smov 4  }
  0x27   : > { %9050 = dma.hbm_to_vmem [thread:$0]  (!%p10046_p6), %s12293_s1, 320, %s10035_s29, [#allocation10], %s12302_s23, %s12302_s23, %s9949_s28  }
  0x28   : > { %s9695_s16 = scalar_lea.hbm %s12295_s3, 16 }
  0x29   : > { %p9696_p4 = scmp.ne.s32.totalorder %s12295_s3, %s9695_s16  ;;  %p9702_p12 = scmp.lt.u32.totalorder %s9695_s16, %s12295_s3 }
  0x2b   : > { %p9698_p10 = pnand %p9696_p4, %p10062_p8 }
  0x2d   : > { %p9699_p11 = pneg %p9698_p10 }
  0x2f   : > { %p9704_p13 = pnand %p9702_p12, %p9699_p11 }
  0x31   : > { %9707 = shalt.err (!%p9704_p13)
}
  0x32   : > { %s9708_s29 = scalar_lea.vmem %s10050_s10, 16  ;;  %s9715_s22 = scalar_lea.vmem %s10050_s10, 32 }
  0x33   : > { %p9709_p0 = scmp.ne.s32.totalorder %s10050_s10, %s9708_s29  ;;  %p9716_p7 = scmp.lt.s32.totalorder %s10050_s10, %s10050_s10 }
  0x34   : > { %p9717_p9 = scmp.lt.s32.totalorder %s9715_s22, %s9708_s29 }
  0x35   : > { %p9711_p2 = pnand %p9709_p0, %p10062_p8 }
  0x36   : > { %p9718_p4 = por %p9717_p9, %p9716_p7 }
  0x37   : > { %p9712_p5 = pneg %p9711_p2 }
  0x39   : > { %p9719_p10 = pnand %p9718_p4, %p9712_p5 }
  0x3b   : > { %9722 = shalt.err (!%p9719_p10)
}
  0x3c   : > { %9056 = dma.hbm_to_vmem [thread:$0]  (!%p10046_p6), %s12295_s3, 16, %s10050_s10, [#allocation13]  }
  0x3d   : > { %s9723_s16 = scalar_lea.hbm %s12297_s5, 16 }
  0x3e   : > { %p9724_p11 = scmp.ne.s32.totalorder %s12297_s5, %s9723_s16  ;;  %p9730_p0 = scmp.lt.u32.totalorder %s9723_s16, %s12297_s5 }
  0x40   : > { %p9726_p12 = pnand %p9724_p11, %p10062_p8 }
  0x42   : > { %p9727_p13 = pneg %p9726_p12 }
  0x44   : > { %p9732_p2 = pnand %p9730_p0, %p9727_p13 }
  0x46   : > { %9735 = shalt.err (!%p9732_p2)
}
  0x47   : > { %s9736_s10 = scalar_lea.vmem %s10052_s13, 16  ;;  %s9743_s29 = scalar_lea.vmem %s10052_s13, 32 }
  0x48   : > { %p9737_p5 = scmp.ne.s32.totalorder %s10052_s13, %s9736_s10  ;;  %p9744_p4 = scmp.lt.s32.totalorder %s10052_s13, %s10052_s13 }
  0x49   : > { %p9745_p10 = scmp.lt.s32.totalorder %s9743_s29, %s9736_s10 }
  0x4a   : > { %p9739_p7 = pnand %p9737_p5, %p10062_p8 }
  0x4b   : > { %p9746_p11 = por %p9745_p10, %p9744_p4 }
  0x4c   : > { %p9740_p9 = pneg %p9739_p7 }
  0x4e   : > { %p9747_p12 = pnand %p9746_p11, %p9740_p9 }
  0x50   : > { %9750 = shalt.err (!%p9747_p12)
}
  0x51   : > { %9062 = dma.hbm_to_vmem [thread:$0]  (!%p10046_p6), %s12297_s5, 16, %s10052_s13, [#allocation16]  }
  0x52   : > { %s9950_s12 = smov [#allocation11]   ;;  %s9951_s15 = smov [#allocation14]  }
  0x53   : > { %s235_s14 = sshll.u32 %s9950_s12, 4  ;;  %s256_s16 = sshll.u32 %s9951_s15, 4  ;;  %s236_s14 = int_to_ptr.vmem [resolvable:$true] %s235_s14  ;;  %s257_s16 = int_to_ptr.vmem [resolvable:$true] %s256_s16 }
  0x54   : > { %s9751_s20 = scalar_lea.hbm %s12294_s2, 16 }
  0x55   : > { %p9752_p13 = scmp.ne.s32.totalorder %s12294_s2, %s9751_s20  ;;  %p9758_p5 = scmp.lt.u32.totalorder %s9751_s20, %s12294_s2 }
  0x57   : > { %p9754_p0 = pnand %p9752_p13, %p10062_p8 }
  0x59   : > { %p9755_p2 = pneg %p9754_p0 }
  0x5b   : > { %p9760_p7 = pnand %p9758_p5, %p9755_p2 }
  0x5d   : > { %9763 = shalt.err (!%p9760_p7)
}
  0x5e   : > { %s9764_s13 = scalar_lea.vmem %s236_s14, 16  ;;  %s9771_s9 = scalar_lea.vmem %s236_s14, 32 }
  0x5f   : > { %p9765_p9 = scmp.ne.s32.totalorder %s236_s14, %s9764_s13  ;;  %p9772_p11 = scmp.lt.s32.totalorder %s236_s14, %s236_s14 }
  0x60   : > { %p9773_p12 = scmp.lt.s32.totalorder %s9771_s9, %s9764_s13 }
  0x61   : > { %p9767_p4 = pnand %p9765_p9, %p10062_p8 }
  0x62   : > { %p9774_p1 = por %p9773_p12, %p9772_p11 }
  0x63   : > { %p9768_p10 = pneg %p9767_p4 }
  0x65   : > { %p9775_p3 = pnand %p9774_p1, %p9768_p10 }
  0x67   : > { %9778 = shalt.err (!%p9775_p3)
}
  0x68   : > { %9053 = dma.hbm_to_vmem [thread:$0]  (!%p10046_p6), %s12294_s2, 16, %s236_s14, [#allocation10]  }
  0x69   : > { %s9779_s20 = scalar_lea.hbm %s12296_s4, 576 }
  0x6a   : > { %p9780_p13 = scmp.ne.s32.totalorder %s12296_s4, %s9779_s20  ;;  %p9786_p3 = scmp.lt.u32.totalorder %s9779_s20, %s12296_s4 }
  0x6c   : > { %p9782_p0 = pnand %p9780_p13, %p10062_p8 }
  0x6e   : > { %p9783_p1 = pneg %p9782_p0 }
  0x70   : > { %p9788_p2 = pnand %p9786_p3, %p9783_p1 }
  0x72   : > { %9791 = shalt.err (!%p9788_p2)
}
  0x73   : > { %s9792_s13 = scalar_lea.vmem %s257_s16, 576  ;;  %p9800_p4 = scmp.lt.s32.totalorder %s257_s16, %s257_s16 }
  0x74   : > { %p9793_p5 = scmp.ne.s32.totalorder %s257_s16, %s9792_s13  ;;  %p9801_p10 = scmp.lt.s32.totalorder %s9792_s13, %s9792_s13 }
  0x76   : > { %p9795_p7 = pnand %p9793_p5, %p10062_p8  ;;  %p9802_p11 = por %p9801_p10, %p9800_p4 }
  0x78   : > { %p9796_p9 = pneg %p9795_p7 }
  0x7a   : > { %p9803_p12 = pnand %p9802_p11, %p9796_p9 }
  0x7c   : > { %9806 = shalt.err (!%p9803_p12)
}
  0x7d   : > { %9059 = dma.hbm_to_vmem [thread:$0]  (!%p10046_p6), %s12296_s4, 576, %s257_s16, [#allocation13], %s12302_s23, %s12302_s23, %s9949_s28  }
  0x7e   : > { %s9952_s12 = smov [#allocation17]   ;;  %s9807_s20 = scalar_lea.hbm %s12298_s6, 16 }
  0x7f   : > { %s281_s15 = sshll.u32 %s9952_s12, 4  ;;  %p9808_p13 = scmp.ne.s32.totalorder %s12298_s6, %s9807_s20  ;;  %s282_s15 = int_to_ptr.vmem [resolvable:$true] %s281_s15 }
  0x80   : > { %p9814_p3 = scmp.lt.u32.totalorder %s9807_s20, %s12298_s6 }
  0x81   : > { %p9810_p0 = pnand %p9808_p13, %p10062_p8 }
  0x83   : > { %p9811_p1 = pneg %p9810_p0 }
  0x85   : > { %p9816_p2 = pnand %p9814_p3, %p9811_p1 }
  0x87   : > { %9819 = shalt.err (!%p9816_p2)
}
  0x88   : > { %s9820_s16 = scalar_lea.vmem %s282_s15, 16  ;;  %s9827_s13 = scalar_lea.vmem %s282_s15, 32 }
  0x89   : > { %p9821_p5 = scmp.ne.s32.totalorder %s282_s15, %s9820_s16  ;;  %p9828_p4 = scmp.lt.s32.totalorder %s282_s15, %s282_s15 }
  0x8a   : > { %p9829_p10 = scmp.lt.s32.totalorder %s9827_s13, %s9820_s16 }
  0x8b   : > { %p9823_p7 = pnand %p9821_p5, %p10062_p8 }
  0x8c   : > { %p9830_p11 = por %p9829_p10, %p9828_p4 }
  0x8d   : > { %p9824_p9 = pneg %p9823_p7 }
  0x8f   : > { %p9831_p12 = pnand %p9830_p11, %p9824_p9 }
  0x91   : > { %9834 = shalt.err (!%p9831_p12)
}
  0x92   : > { %9065 = dma.hbm_to_vmem [thread:$0]  (!%p10046_p6), %s12298_s6, 16, %s282_s15, [#allocation16]  }
  0x93   : > { %s8281_s19 = sadd.s32 4294967294, %s9943_s27   ;;  %s10193_s11 = sadd.s32 1, %s9943_s27  }
  0x94   : > { %s30_s12 = ssub.s32 %s9943_s27, %s10193_s11  ;;  %s33_s17 = sadd.s32 1, %s9939_s26 }
  0x95   : > { %p31_p8 = scmp.eq.s32.totalorder %s30_s12, 0  ;;  %p40_p13 = scmp.ne.s32.totalorder %s9939_s26, %s9935_s25 }
  0x96   : > { %p41_p0 = scmp.eq.s32.totalorder %s9943_s27, 0  ;;  %p46_p1 = scmp.ne.s32.totalorder %s9935_s25, %s9931_s24 }
  0x97   : > { %s10204_s18 = scalar_select %p31_p8, %s9939_s26, %s33_s17  }
  0x98   : > { %p10206_p3 = por %p41_p0, %p40_p13  ;;  %p12314_p2 = scmp.eq.s32.totalorder %s10030_s30, 0 }
  0x99   : > { %p196_p5 = scmp.eq.s32.totalorder %s10030_s30, 1  ;;  %p202_p7 = scmp.eq.s32.totalorder %s8281_s19, 1 }
  0x9a   : > { %p10212_p6 = por %p12314_p2, %p46_p1  ;;  %p9080_p9 = scmp.lt.s32.totalorder %s9943_s27, 2 }
  0x9b   : > { %s292_s21 = sand.u32 1, %s9939_s26   ;;  %p10219_p4 = por %p196_p5, %p40_p13 }
  0x9c   : > { %p10223_p10 = por %p202_p7, %p46_p1  ;;  %s8290_s22 = sshll.u32 %s292_s21, 8 }
  0x9d   : > { %s12316_s10 = scalar_select %p10219_p4, 1, 0 }
  0x9e   : > { %s12317_s29 = scalar_select %p10223_p10, 1, 0 }
  0x9f   : > { %s8863_s16 = sshll.u32 %s9943_s27, 12  ;;  %s296_s19 = scalar_lea.vmem [#allocation6], %s8290_s22 }
  0xa0   : > { %s10231_s9 = scalar_lea.hbm %s12292_s0, %s8863_s16  ;;  %s303_s12 = sshll.u32 %s296_s19, 4  ;;  %s10233_s12 = int_to_ptr.vmem [resolvable:$true] %s303_s12 }
  0xa1   : > { %p10237_p11 = pnand %p9080_p9, %p10206_p3  ;;  %s10241_s23 = scalar_lea.sflag [#allocation7], %s292_s21 }
  0xa2   : > { %s9835_s13 = scalar_lea.hbm %s10231_s9, 4096  ;;  %s9840_s20 = scalar_lea.hbm %s12292_s0, 8192 }
  0xa3   : > { %p9836_p12 = scmp.ne.s32.totalorder %s10231_s9, %s9835_s13  ;;  %p9837_p8 = pneg %p10237_p11 }
  0xa4   : > { %p9841_p1 = scmp.lt.u32.totalorder %s10231_s9, %s12292_s0  ;;  %p9842_p3 = scmp.lt.u32.totalorder %s9840_s20, %s9835_s13 }
  0xa5   : > { %p9838_p13 = pnand %p9837_p8, %p9836_p12  ;;  %p9844_p5 = scmp.lt.u32.totalorder %s9835_s13, %s10231_s9 }
  0xa6   : > { %p9843_p2 = por %p9842_p3, %p9841_p1 }
  0xa7   : > { %p9839_p0 = pneg %p9838_p13 }
  0xa8   : > { %p9845_p7 = por %p9844_p5, %p9843_p2 }
  0xaa   : > { %p9846_p9 = pnand %p9845_p7, %p9839_p0 }
  0xac   : > { %9849 = shalt.err (!%p9846_p9)
}
  0xad   : > { %s9850_s21 = scalar_lea.vmem %s10233_s12, 4096  ;;  %s9953_s22 = smov [#allocation6]  }
  0xae   : > { %p9851_p12 = scmp.ne.s32.totalorder %s10233_s12, %s9850_s21  ;;  %s9855_s16 = sshll.u32 %s9953_s22, 4  ;;  %s9856_s16 = int_to_ptr.vmem [resolvable:$false] %s9855_s16 }
  0xaf   : > { %s9857_s14 = scalar_lea.vmem %s9856_s16, 8192  ;;  %p9858_p4 = scmp.lt.s32.totalorder %s10233_s12, %s9856_s16 }
  0xb0   : > { %p9853_p13 = pnand %p9851_p12, %p9837_p8  ;;  %p9859_p1 = scmp.lt.s32.totalorder %s9857_s14, %s9850_s21 }
  0xb2   : > { %p9854_p10 = pneg %p9853_p13  ;;  %p9860_p3 = por %p9859_p1, %p9858_p4 }
  0xb4   : > { %p9861_p2 = pnand %p9860_p3, %p9854_p10 }
  0xb6   : > { %9864 = shalt.err (!%p9861_p2)
}
  0xb7   : > { %s12319_s13 = smov 64   ;;  %p12320_p8 = scmp.ne.s32.totalorder %s12310_s8, 0 }
  0xb8   : > { %9069 = dma.hbm_to_vmem [thread:$0]  (!%p10237_p11), %s10231_s9, 4096, %s10233_s12, %s10241_s23, %s12319_s13, %s12319_s13, %s9949_s28  }
  0xb9   : > { %315 = sbr.rel (%p12320_p8) target bundleno = 1481 (0x5c9), region = 48  ;;  %s10275_s20 = sand.u32 (!%p12320_p8), 1, %s9935_s25  }
  0xba   : > { %s8294_s19 = sshll.u32 (!%p12320_p8), %s10275_s20, 8  ;;  %s318_s21 = scalar_lea.sflag (!%p12320_p8), [#allocation7], %s10275_s20 }
  0xbb   : > { %s10279_s22 = scalar_lea.vmem (!%p12320_p8), [#allocation6], %s8294_s19 }
  0xc0   : > { %9910 = dma.done.wait (%p10212_p6), %s318_s21, 4096  }
  0xc1   : > { %9912 = vsyncadd (%p10212_p6), %s318_s21, 4294963200  ;;  %p12321_p4 = scmp.eq.s32.totalorder %s10030_s30, 0 }
  0xc3   : > { %9914 = dma.done.wait (%p12321_p4), [#allocation10], 336   ;;  %p12322_p10 = pmov %p12321_p4 }
  0xc4   : > { %p12323_p11 = pmov %p12321_p4 }
  0xc5   : > { %9916 = vsyncadd (%p12322_p10), [#allocation10], 4294966960 }
  0xc6   : > { %9918 = dma.done.wait (%p12323_p11), [#allocation13], 592   ;;  %p12324_p0 = pmov %p12321_p4 }
  0xc8   : > { %9920 = vsyncadd (%p12324_p0), [#allocation13], 4294966704  ;;  %p12325_p5 = pmov %p12324_p0 }
  0xc9   : > { %p12326_p7 = pmov %p12324_p0 }
  0xca   : > { %9922 = dma.done.wait (%p12325_p5), [#allocation16], 32  }
  0xcb   : > { %9924 = vsyncadd (%p12326_p7), [#allocation16], 4294967264  ;;  %vm793_vm0 = vcmask 27648   ;;  %vm796_vm1 = vcmask 24576   ;;  %v9954_v0 = vmov 0   ;;  %s9955_s8 = smov 124  }
  0xcc   : > { %794 = vst.msk [vmem:[#allocation2] sm:$0xf] %vm793_vm0, %v9954_v0  ;;  %795 = vst.msk [vmem:[#allocation2 + $0x4] sm:$0xf] %vm793_vm0, %v9954_v0  ;;  %v10310_v1 = vld [vmem:[%s10279_s22 + $0x8] sm:$0xf] }
  0xcd   : > { %797 = vst.msk [vmem:[#allocation2 + $0x8] sm:$0x1] %vm796_vm1, %v9954_v0  ;;  %801 = vst.msk [vmem:[#allocation2 + $0xd4] sm:$0x1] %vm796_vm1, %v9954_v0  ;;  %v10313_v2 = vld [vmem:[%s10279_s22] sm:$0xf]  ;;  %509 = vrot.lane.b32.xlu1 %v10310_v1, %s9955_s8 }
  0xce   : > { %799 = vst.msk [vmem:[#allocation2 + $0xcc] sm:$0xf] %vm793_vm0, %v9954_v0  ;;  %800 = vst.msk [vmem:[#allocation2 + $0xd0] sm:$0xf] %vm793_vm0, %v9954_v0  ;;  %505 = vrot.lane.b32.xlu0 %v10313_v2, %s9955_s8  ;;  %vm12305_vm2 = vsmask.f32 256 }
  0xcf   : > { %v10320_v3 = vld [vmem:[%s10279_s22 + $0xc] sm:$0xf]  ;;  %v10323_v4 = vld [vmem:[%s10279_s22 + $0x4] sm:$0xf]  ;;  %v808_v5 = vld [vmem:[#allocation2 + $0xc] sm:$0x1] }
  0xd0   : > { %vm10327_vm3 = vmand %vm796_vm1, %vm12305_vm2  ;;  %v10338_v8 = vld [vmem:[%s10279_s22 + $0x14] sm:$0xf]  ;;  %v10341_v9 = vld [vmem:[%s10279_s22 + $0x10] sm:$0xf]  ;;  %vm12304_vm4 = vsmask.f32 7938 }
  0xd1   : > { %511 = vrot.lane.b32.xlu1 %v10320_v3, %s9955_s8  ;;  %v809_v7 = vsel %vm10327_vm3, 0, %v808_v5  ;;  %v10348_v10 = vld [vmem:[%s10279_s22 + $0x1c] sm:$0xf]  ;;  %v10351_v11 = vld [vmem:[%s10279_s22 + $0x18] sm:$0xf]  ;;  %vm10365_vm5 = vmand %vm796_vm1, %vm12304_vm4  ;;  %vm2107_vm9 = vcmask 1046528  }
  0xd2   : > { %507 = vrot.lane.b32.xlu0 %v10323_v4, %s9955_s8  ;;  %810 = vst [vmem:[#allocation2 + $0xc] sm:$0x1] %v809_v7  ;;  %v10358_v12 = vld [vmem:[%s10279_s22 + $0x24] sm:$0xf]  ;;  %v10361_v13 = vld [vmem:[%s10279_s22 + $0x20] sm:$0xf]  ;;  %vm10608_vm6 = vmand %vm793_vm0, %vm12304_vm4 }
  0xd3   : > { %v864_v14 = vld [vmem:[#allocation2 + $0x14] sm:$0x1]  ;;  %v10376_v17 = vld [vmem:[%s10279_s22 + $0x2c] sm:$0xf]  ;;  %v10379_v18 = vld [vmem:[%s10279_s22 + $0x28] sm:$0xf] }
  0xd4   : > { %v865_v16 = vsel %vm10365_vm5, 0, %v864_v14  ;;  %v867_v19 = vld [vmem:[#allocation2 + $0x20] sm:$0x1]  ;;  %v811_v20 = vld [vmem:[#allocation2 + $0x18] sm:$0x1]  ;;  %s9956_s23 = smov 4  }
  0xd5   : > { %515 = vrot.lane.b32.xlu1 %v10338_v8, %s9955_s8  ;;  %866 = vst [vmem:[#allocation2 + $0x14] sm:$0x1] %v865_v16  ;;  %v10386_v21 = vld [vmem:[%s10279_s22 + $0x30] sm:$0xf]  ;;  %v10389_v22 = vld [vmem:[%s10279_s22 + $0x34] sm:$0xf] }
  0xd6   : > { %513 = vrot.lane.b32.xlu0 %v10341_v9, %s9955_s8  ;;  %v868_v23 = vsel %vm10365_vm5, 0, %v867_v19  ;;  %v812_v24 = vsel %vm10327_vm3, 0, %v811_v20  ;;  %v805_v25 = vld [vmem:[#allocation2] sm:$0x1]  ;;  %v861_v26 = vld [vmem:[#allocation2 + $0x8] sm:$0x1] }
  0xd7   : > { %869 = vst [vmem:[#allocation2 + $0x20] sm:$0x1] %v868_v23  ;;  %813 = vst [vmem:[#allocation2 + $0x18] sm:$0x1] %v812_v24  ;;  %v806_v27 = vsel %vm10327_vm3, 0, %v805_v25  ;;  %v862_v28 = vsel %vm10365_vm5, 0, %v861_v26 }
  0xd8   : > { %v10402_v29 = vld [vmem:[%s10279_s22 + $0x38] sm:$0xf]  ;;  %807 = vst [vmem:[#allocation2] sm:$0x1] %v806_v27  ;;  %863 = vst [vmem:[#allocation2 + $0x8] sm:$0x1] %v862_v28 }
  0xd9   : > { %519 = vrot.lane.b32.xlu1 %v10348_v10, %s9955_s8  ;;  %v870_v30 = vld [vmem:[#allocation2 + $0x2c] sm:$0x1]  ;;  %v814_v31 = vld [vmem:[#allocation2 + $0x24] sm:$0x1]  ;;  %v817_v35 = vld [vmem:[#allocation2 + $0x30] sm:$0x1] }
  0xda   : > { %517 = vrot.lane.b32.xlu0 %v10351_v11, %s9955_s8  ;;  %v10407_v32 = vld [vmem:[%s10279_s22 + $0x3c] sm:$0xf]  ;;  %v871_v33 = vsel %vm10365_vm5, 0, %v870_v30  ;;  %v815_v34 = vsel %vm10327_vm3, 0, %v814_v31  ;;  %v818_v36 = vsel %vm10327_vm3, 0, %v817_v35  ;;  %vm1480_vm11 = vcmask 31744  }
  0xdb   : > { %872 = vst [vmem:[#allocation2 + $0x2c] sm:$0x1] %v871_v33  ;;  %816 = vst [vmem:[#allocation2 + $0x24] sm:$0x1] %v815_v34  ;;  %v820_v37 = vld [vmem:[#allocation2 + $0x3c] sm:$0x1] }
  0xdc   : > { %v10420_v38 = vld [vmem:[%s10279_s22 + $0x40] sm:$0xf]  ;;  %v10423_v39 = vld [vmem:[%s10279_s22 + $0x44] sm:$0xf]  ;;  %819 = vst [vmem:[#allocation2 + $0x30] sm:$0x1] %v818_v36 }
  0xdd   : > { %523 = vrot.lane.b32.xlu1 %v10358_v12, %s9955_s8  ;;  %v821_v40 = vsel %vm10327_vm3, 0, %v820_v37  ;;  %v10432_v41 = vld [vmem:[%s10279_s22 + $0x48] sm:$0xf]  ;;  %v10435_v42 = vld [vmem:[%s10279_s22 + $0x4c] sm:$0xf]  ;;  %s9957_s28 = smov 8  }
  0xde   : > { %521 = vrot.lane.b32.xlu0 %v10361_v13, %s9955_s8  ;;  %822 = vst [vmem:[#allocation2 + $0x3c] sm:$0x1] %v821_v40  ;;  %v873_v43 = vld [vmem:[#allocation2 + $0x38] sm:$0x1]  ;;  %v823_v45 = vld [vmem:[#allocation2 + $0x48] sm:$0x1] }
  0xdf   : > { %v874_v44 = vsel %vm10365_vm5, 0, %v873_v43  ;;  %v10442_v46 = vld [vmem:[%s10279_s22 + $0x50] sm:$0xf]  ;;  %v824_v47 = vsel %vm10327_vm3, 0, %v823_v45  ;;  %v10449_v48 = vld [vmem:[%s10279_s22 + $0x54] sm:$0xf] }
  0xe0   : > { %875 = vst [vmem:[#allocation2 + $0x38] sm:$0x1] %v874_v44  ;;  %825 = vst [vmem:[#allocation2 + $0x48] sm:$0x1] %v824_v47  ;;  %v10452_v49 = vld [vmem:[%s10279_s22 + $0x58] sm:$0xf] }
  0xe1   : > { %527 = vrot.lane.b32.xlu1 %v10376_v17, %s9955_s8  ;;  %v10455_v50 = vld [vmem:[%s10279_s22 + $0x5c] sm:$0xf]  ;;  %v876_v51 = vld [vmem:[#allocation2 + $0x44] sm:$0x1]  ;;  %v826_v52 = vld [vmem:[#allocation2 + $0x54] sm:$0x1] }
  0xe2   : > { %525 = vrot.lane.b32.xlu0 %v10379_v18, %s9955_s8  ;;  %v877_v53 = vsel %vm10365_vm5, 0, %v876_v51  ;;  %v827_v54 = vsel %vm10327_vm3, 0, %v826_v52  ;;  %v10470_v55 = vld [vmem:[%s10279_s22 + $0x60] sm:$0xf]  ;;  %v10473_v56 = vld [vmem:[%s10279_s22 + $0x64] sm:$0xf] }
  0xe3   : > { %878 = vst [vmem:[#allocation2 + $0x44] sm:$0x1] %v877_v53  ;;  %828 = vst [vmem:[#allocation2 + $0x54] sm:$0x1] %v827_v54  ;;  %v10480_v57 = vld [vmem:[%s10279_s22 + $0x68] sm:$0xf] }
  0xe4   : > { %v10483_v58 = vld [vmem:[%s10279_s22 + $0x6c] sm:$0xf]  ;;  %v879_v59 = vld [vmem:[#allocation2 + $0x50] sm:$0x1]  ;;  %v829_v60 = vld [vmem:[#allocation2 + $0x60] sm:$0x1] }
  0xe5   : > { %531 = vrot.lane.b32.xlu1 %v10389_v22, %s9955_s8  ;;  %v880_v61 = vsel %vm10365_vm5, 0, %v879_v59  ;;  %v830_v62 = vsel %vm10327_vm3, 0, %v829_v60  ;;  %v10494_v63 = vld [vmem:[%s10279_s22 + $0x70] sm:$0xf]  ;;  %v10497_v5 = vld [vmem:[%s10279_s22 + $0x74] sm:$0xf] }
  0xe6   : > { %529 = vrot.lane.b32.xlu0 %v10386_v21, %s9955_s8  ;;  %881 = vst [vmem:[#allocation2 + $0x50] sm:$0x1] %v880_v61  ;;  %831 = vst [vmem:[#allocation2 + $0x60] sm:$0x1] %v830_v62  ;;  %v10504_v7 = vld [vmem:[%s10279_s22 + $0x78] sm:$0xf] }
  0xe7   : > { %v408_v14 = vld [vmem:[%s10279_s22 + $0x7c] sm:$0xf]  ;;  %v882_v16 = vld [vmem:[#allocation2 + $0x5c] sm:$0x1]  ;;  %v409_v20 = vld [vmem:[%s10279_s22 + $0x80] sm:$0xf] }
  0xe8   : > { %v883_v19 = vsel %vm10365_vm5, 0, %v882_v16  ;;  %v410_v23 = vld [vmem:[%s10279_s22 + $0x84] sm:$0xf]  ;;  %v832_v24 = vld [vmem:[#allocation2 + $0x6c] sm:$0x1]  ;;  %s9958_s15 = smov 12  }
  0xe9   : > { %535 = vrot.lane.b32.xlu1 %v10407_v32, %s9955_s8  ;;  %884 = vst [vmem:[#allocation2 + $0x5c] sm:$0x1] %v883_v19  ;;  %v833_v25 = vsel %vm10327_vm3, 0, %v832_v24  ;;  %v411_v26 = vld [vmem:[%s10279_s22 + $0x88] sm:$0xf]  ;;  %s9959_s9 = smov 24  }
  0xea   : > { %533 = vrot.lane.b32.xlu0 %v10402_v29, %s9955_s8  ;;  %834 = vst [vmem:[#allocation2 + $0x6c] sm:$0x1] %v833_v25  ;;  %v412_v27 = vld [vmem:[%s10279_s22 + $0x8c] sm:$0xf]  ;;  %v885_v28 = vld [vmem:[#allocation2 + $0x68] sm:$0x1] }
  0xeb   : > { %v886_v30 = vsel %vm10365_vm5, 0, %v885_v28  ;;  %v413_v31 = vld [vmem:[%s10279_s22 + $0x90] sm:$0xf]  ;;  %v414_v33 = vld [vmem:[%s10279_s22 + $0x94] sm:$0xf]  ;;  %s9960_s12 = smov 20  }
  0xec   : > { %887 = vst [vmem:[#allocation2 + $0x68] sm:$0x1] %v886_v30  ;;  %v835_v34 = vld [vmem:[#allocation2 + $0x78] sm:$0x1]  ;;  %v415_v36 = vld [vmem:[%s10279_s22 + $0x98] sm:$0xf] }
  0xed   : > { %539 = vrot.lane.b32.xlu1 %v10423_v39, %s9955_s8  ;;  %v836_v35 = vsel %vm10327_vm3, 0, %v835_v34  ;;  %v416_v37 = vld [vmem:[%s10279_s22 + $0x9c] sm:$0xf]  ;;  %v888_v40 = vld [vmem:[#allocation2 + $0x74] sm:$0x1]  ;;  %s9961_s17 = smov 16  }
  0xee   : > { %537 = vrot.lane.b32.xlu0 %v10420_v38, %s9955_s8  ;;  %837 = vst [vmem:[#allocation2 + $0x78] sm:$0x1] %v836_v35  ;;  %v889_v43 = vsel %vm10365_vm5, 0, %v888_v40  ;;  %v417_v44 = vld [vmem:[%s10279_s22 + $0xa0] sm:$0xf]  ;;  %s9962_s16 = smov 28  }
  0xef   : > { %v418_v45 = vld [vmem:[%s10279_s22 + $0xa4] sm:$0xf]  ;;  %890 = vst [vmem:[#allocation2 + $0x74] sm:$0x1] %v889_v43  ;;  %v838_v47 = vld [vmem:[#allocation2 + $0x84] sm:$0x1] }
  0xf0   : > { %v839_v51 = vsel %vm10327_vm3, 0, %v838_v47  ;;  %v419_v52 = vld [vmem:[%s10279_s22 + $0xa8] sm:$0xf]  ;;  %v420_v53 = vld [vmem:[%s10279_s22 + $0xac] sm:$0xf]  ;;  %v9142_v47 = vld [vmem:[#allocation2] sm:$0xff]  }
  0xf1   : > { %543 = vrot.lane.b32.xlu1 %v10435_v42, %s9955_s8  ;;  %840 = vst [vmem:[#allocation2 + $0x84] sm:$0x1] %v839_v51  ;;  %v891_v54 = vld [vmem:[#allocation2 + $0x80] sm:$0x1]  ;;  %v422_v61 = vld [vmem:[%s10279_s22 + $0xb4] sm:$0xf] }
  0xf2   : > { %541 = vrot.lane.b32.xlu0 %v10432_v41, %s9955_s8  ;;  %v892_v59 = vsel %vm10365_vm5, 0, %v891_v54  ;;  %v421_v60 = vld [vmem:[%s10279_s22 + $0xb0] sm:$0xf]  ;;  %v841_v62 = vld [vmem:[#allocation2 + $0x90] sm:$0x1]  ;;  %s9963_s14 = smov 32  }
  0xf3   : > { %893 = vst [vmem:[#allocation2 + $0x80] sm:$0x1] %v892_v59  ;;  %v423_v16 = vld [vmem:[%s10279_s22 + $0xb8] sm:$0xf]  ;;  %v424_v19 = vld [vmem:[%s10279_s22 + $0xbc] sm:$0xf] }
  0xf4   : > { %v425_v24 = vld [vmem:[%s10279_s22 + $0xc0] sm:$0xf]  ;;  %v426_v25 = vld [vmem:[%s10279_s22 + $0xc4] sm:$0xf]  ;;  %v844_v28 = vld [vmem:[#allocation2 + $0x9c] sm:$0x1] }
  0xf5   : > { %547 = vrot.lane.b32.xlu1 %v10449_v48, %s9955_s8  ;;  %v845_v30 = vsel %vm10327_vm3, 0, %v844_v28  ;;  %v897_v34 = vld [vmem:[#allocation2 + $0x98] sm:$0x1]  ;;  %v847_v40 = vld [vmem:[#allocation2 + $0xa8] sm:$0x1]  ;;  %vm1914_vm12 = vcmask 64544  }
  0xf6   : > { %545 = vrot.lane.b32.xlu0 %v10442_v46, %s9955_s8  ;;  %846 = vst [vmem:[#allocation2 + $0x9c] sm:$0x1] %v845_v30  ;;  %v898_v35 = vsel %vm10365_vm5, 0, %v897_v34  ;;  %v848_v43 = vsel %vm10327_vm3, 0, %v847_v40  ;;  %v900_v51 = vld [vmem:[#allocation2 + $0xa4] sm:$0x1] }
  0xf7   : > { %899 = vst [vmem:[#allocation2 + $0x98] sm:$0x1] %v898_v35  ;;  %849 = vst [vmem:[#allocation2 + $0xa8] sm:$0x1] %v848_v43  ;;  %v435_v54 = vld [vmem:[%s10279_s22 + $0xe8] sm:$0xf] }
  0xf8   : > { %v436_v59 = vld [vmem:[%s10279_s22 + $0xec] sm:$0xf]  ;;  %v438_v28 = vld [vmem:[%s10279_s22 + $0xf4] sm:$0xf]  ;;  %vm1673_vm7 = vsmask.f32 7424 }
  0xf9   : > { %551 = vrot.lane.b32.xlu1 %v10455_v50, %s9955_s8  ;;  %v9144_v35 = vld [vmem:[#allocation2] sm:$0xfe]   ;;  %vm915_vm8 = vsmask.f32 4368  ;;  %vm2204_vm13 = vcmask 97344   ;;  %vm2381_vm14 = vcmask 130144  }
  0xfa   : > { %549 = vrot.lane.b32.xlu0 %v10452_v49, %s9955_s8  ;;  %vm10621_vm10 = vmor %vm12305_vm2, %vm915_vm8  ;;  %vm2814_vm15 = vcmask 162944   ;;  %vm3281_vm1 = vcmask 228544   ;;  %vm4003_vm8 = vcmask 294144   ;;  %vm4056_vm4 = vcmask 293888   ;;  %s9964_s13 = smov 48   ;;  %s9965_s19 = smov 40  }
  0xfb   : > { %vm4105_vm2 = vcmask 1041408   ;;  %s9966_s21 = smov 64   ;;  %p12389_p9 = scmp.ne.s32.totalorder %s12316_s10, 0 }
  0xfd   : > { %555 = vrot.lane.b32.xlu1 %v10473_v56, %s9955_s8 }
  0xfe   : > { %553 = vrot.lane.b32.xlu0 %v10470_v55, %s9955_s8 }
 0x101   : > { %559 = vrot.lane.b32.xlu1 %v10483_v58, %s9955_s8 }
 0x102   : > { %557 = vrot.lane.b32.xlu0 %v10480_v57, %s9955_s8 }
 0x105   : > { %563 = vrot.lane.b32.xlu1 %v10497_v5, %s9955_s8 }
 0x106   : > { %561 = vrot.lane.b32.xlu0 %v10494_v63, %s9955_s8 }
 0x109   : > { %567 = vrot.lane.b32.xlu1 %v408_v14, %s9955_s8  ;;  %v842_v14 = vsel %vm10327_vm3, 0, %v841_v62 }
 0x10a   : > { %565 = vrot.lane.b32.xlu0 %v10504_v7, %s9955_s8  ;;  %843 = vst [vmem:[#allocation2 + $0x90] sm:$0x1] %v842_v14  ;;  %v850_v14 = vld [vmem:[#allocation2 + $0xb4] sm:$0x1] }
 0x10d   : > { %571 = vrot.lane.b32.xlu1 %v410_v23, %s9955_s8 }
 0x10e   : > { %569 = vrot.lane.b32.xlu0 %v409_v20, %s9955_s8  ;;  %v894_v20 = vld [vmem:[#allocation2 + $0x8c] sm:$0x1] }
 0x10f   : > { %v895_v23 = vsel %vm10365_vm5, 0, %v894_v20  ;;  %v851_v20 = vsel %vm10327_vm3, 0, %v850_v14 }
 0x110   : > { %896 = vst [vmem:[#allocation2 + $0x8c] sm:$0x1] %v895_v23  ;;  %852 = vst [vmem:[#allocation2 + $0xb4] sm:$0x1] %v851_v20 }
 0x111   : > { %575 = vrot.lane.b32.xlu1 %v412_v27, %s9955_s8  ;;  %v428_v27 = vld [vmem:[%s10279_s22 + $0xcc] sm:$0xf] }
 0x112   : > { %573 = vrot.lane.b32.xlu0 %v411_v26, %s9955_s8  ;;  %v427_v26 = vld [vmem:[%s10279_s22 + $0xc8] sm:$0xf] }
 0x115   : > { %579 = vrot.lane.b32.xlu1 %v414_v33, %s9955_s8  ;;  %v430_v33 = vld [vmem:[%s10279_s22 + $0xd4] sm:$0xf] }
 0x116   : > { %577 = vrot.lane.b32.xlu0 %v413_v31, %s9955_s8  ;;  %v429_v31 = vld [vmem:[%s10279_s22 + $0xd0] sm:$0xf] }
 0x119   : > { %583 = vrot.lane.b32.xlu1 %v416_v37, %s9955_s8  ;;  %v432_v37 = vld [vmem:[%s10279_s22 + $0xdc] sm:$0xf] }
 0x11a   : > { %581 = vrot.lane.b32.xlu0 %v415_v36, %s9955_s8  ;;  %v431_v36 = vld [vmem:[%s10279_s22 + $0xd8] sm:$0xf] }
 0x11d   : > { %587 = vrot.lane.b32.xlu1 %v418_v45, %s9955_s8  ;;  %v434_v45 = vld [vmem:[%s10279_s22 + $0xe4] sm:$0xf] }
 0x11e   : > { %585 = vrot.lane.b32.xlu0 %v417_v44, %s9955_s8  ;;  %v433_v44 = vld [vmem:[%s10279_s22 + $0xe0] sm:$0xf] }
 0x121   : > { %591 = vrot.lane.b32.xlu1 %v420_v53, %s9955_s8  ;;  %v9143_v53 = vld [vmem:[#allocation2 + $0x8] ss:$0 sps:$4 sm:$0x11]  }
 0x122   : > { %589 = vrot.lane.b32.xlu0 %v419_v52, %s9955_s8  ;;  %v901_v52 = vsel %vm10365_vm5, 0, %v900_v51  ;;  %v1682_v23 = vshll.u32 %v9143_v53, 16 }
 0x123   : > { %902 = vst [vmem:[#allocation2 + $0xa4] sm:$0x1] %v901_v52  ;;  %v440_v52 = vld [vmem:[%s10279_s22 + $0xfc] sm:$0xf] }
 0x125   : > { %595 = vrot.lane.b32.xlu1 %v422_v61, %s9955_s8 }
 0x126   : > { %593 = vrot.lane.b32.xlu0 %v421_v60, %s9955_s8  ;;  %v1677_v60 = vshll.u32 %v9142_v47, 16 }
 0x129   : > { %599 = vrot.lane.b32.xlu1 %v424_v19, %s9955_s8 }
 0x12a   : > { %597 = vrot.lane.b32.xlu0 %v423_v16, %s9955_s8 }
 0x12d   : > { %603 = vrot.lane.b32.xlu1 %v426_v25, %s9955_s8  ;;  %v437_v25 = vld [vmem:[%s10279_s22 + $0xf0] sm:$0xf] }
 0x12e   : > { %601 = vrot.lane.b32.xlu0 %v425_v24, %s9955_s8 }
 0x131   : > { %607 = vrot.lane.b32.xlu1 %v428_v27, %s9955_s8  ;;  %v1679_v27 = vrot.slane %v1677_v60, 1 }
 0x132   : > { %605 = vrot.lane.b32.xlu0 %v427_v26, %s9955_s8  ;;  %v1675_v26 = vshrl.u32 %v9142_v47, 16  ;;  %v439_v47 = vld [vmem:[%s10279_s22 + $0xf8] sm:$0xf] }
 0x134   : > { %v1680_v51 = vor.u32 %v1679_v27, %v1675_v26  ;;  %v1244_v27 = vld [vmem:[#allocation2 + $0x14] sm:$0x1] }
 0x135   : > { %611 = vrot.lane.b32.xlu1 %v430_v33, %s9955_s8 }
 0x136   : > { %609 = vrot.lane.b32.xlu0 %v429_v31, %s9955_s8 }
 0x139   : > { %615 = vrot.lane.b32.xlu1 %v432_v37, %s9955_s8  ;;  %v9145_v37 = vld [vmem:[#allocation2 + $0x8] ss:$0 sps:$4 sm:$0x11]  }
 0x13a   : > { %613 = vrot.lane.b32.xlu0 %v431_v36, %s9955_s8  ;;  %v1684_v36 = vrot.slane %v1682_v23, 1  ;;  %v2109_v14 = vrot.slane %v9145_v37, 1  ;;  %v906_v37 = vld [vmem:[#allocation2 + $0xbc] sm:$0x1] }
 0x13d   : > { %619 = vrot.lane.b32.xlu1 %v434_v45, %s9955_s8 }
 0x13e   : > { %617 = vrot.lane.b32.xlu0 %v433_v44, %s9955_s8 }
 0x13f   : > { %v510_v61 = vpop.permute.xlu1 %509 }
 0x140   : > { %v506_v62 = vpop.permute.xlu0 %505  ;;  %v699_v16 = vmax.bf16 %v510_v61, %v10310_v1  ;;  %v903_v1 = vld [vmem:[#allocation2 + $0xb0] sm:$0x1] }
 0x141   : > { %v697_v19 = vmax.bf16 %v506_v62, %v10313_v2  ;;  %623 = vrot.lane.b32.xlu1 %v436_v59, %s9955_s8  ;;  %v904_v40 = vsel %vm10365_vm5, 0, %v903_v1  ;;  %v853_v59 = vld [vmem:[#allocation2 + $0xc0] sm:$0x1]  ;;  %v2108_v62 = vrot.slane %v9144_v35, 1 }
 0x142   : > { %621 = vrot.lane.b32.xlu0 %v435_v54, %s9955_s8  ;;  %905 = vst [vmem:[#allocation2 + $0xb0] sm:$0x1] %v904_v40 }
 0x143   : > { %v761_v24 = vmax.bf16 %v699_v16, %v697_v19  ;;  %v512_v30 = vpop.permute.xlu1 %511  ;;  %v854_v16 = vsel %vm10327_vm3, 0, %v853_v59 }
 0x144   : > { %v508_v31 = vpop.permute.xlu0 %507  ;;  %v700_v33 = vmax.bf16 %v512_v30, %v10320_v3  ;;  %855 = vst [vmem:[#allocation2 + $0xc0] sm:$0x1] %v854_v16 }
 0x145   : > { %v918_v2 = vshrl.u32 %v761_v24, 16  ;;  %v698_v34 = vmax.bf16 %v508_v31, %v10323_v4  ;;  %627 = vrot.lane.b32.xlu1 %v438_v28, %s9955_s8  ;;  %v921_v44 = vshll.u32 %v761_v24, 16  ;;  %v1240_v4 = vld [vmem:[#allocation2 + $0xc] sm:$0xf]  ;;  %v1685_v24 = vsel %vm1673_vm7, %v1680_v51, %v1684_v36 }
 0x146   : > { %625 = vrot.lane.b32.xlu0 %v437_v25, %s9955_s8  ;;  %v2110_v36 = vsel %vm2107_vm9, %v2108_v62, %v2109_v14 }
 0x147   : > { %v920_v43 = vrot.slane %v918_v2, 7  ;;  %v762_v45 = vmax.bf16 %v700_v33, %v698_v34  ;;  %v516_v53 = vpop.permute.xlu1 %515 }
 0x148   : > { %v514_v54 = vpop.permute.xlu0 %513  ;;  %v702_v28 = vmax.bf16 %v516_v53, %v10338_v8  ;;  %v1247_v53 = vld [vmem:[#allocation2 + $0x18] sm:$0xf] }
 0x149   : > { %v923_v60 = vor.u32 %v921_v44, %v920_v43  ;;  %v926_v61 = vshrl.u32 %v762_v45, 16  ;;  %631 = vrot.lane.b32.xlu1 %v440_v52, %s9955_s8  ;;  %v929_v23 = vshll.u32 %v762_v45, 16  ;;  %v924_v25 = vrot.slane %v920_v43, 4  ;;  %v9233_v44 = vld [vmem:[#allocation2] sm:$0xff]  }
 0x14a   : > { %629 = vrot.lane.b32.xlu0 %v439_v47, %s9955_s8  ;;  %v701_v30 = vmax.bf16 %v514_v54, %v10341_v9  ;;  %v907_v45 = vsel %vm10365_vm5, 0, %v906_v37  ;;  %1481 = vst.msk [vmem:[#allocation3] sm:$0xff] %vm1480_vm11, %v9233_v44  ;;  %v1251_v52 = vld [vmem:[#allocation2 + $0x20] sm:$0x1]  ;;  %s8301_s8 = sshll.u32 %s10275_s20, 4 }
 0x14b   : > { %v1241_v19 = vsel %vm10608_vm6, %v923_v60, %v1240_v4  ;;  %v928_v20 = vrot.slane %v926_v61, 7  ;;  %v520_v31 = vpop.permute.xlu1 %519  ;;  %908 = vst [vmem:[#allocation2 + $0xbc] sm:$0x1] %v907_v45 }
 0x14c   : > { %1242 = vst [vmem:[#allocation2 + $0xc] sm:$0xf] %v1241_v19  ;;  %v518_v1 = vpop.permute.xlu0 %517  ;;  %v704_v34 = vmax.bf16 %v520_v31, %v10348_v10 }
 0x14d   : > { %v931_v2 = vor.u32 %v929_v23, %v928_v20  ;;  %v933_v33 = vrot.slane %v928_v20, 4  ;;  %v703_v35 = vmax.bf16 %v518_v1, %v10351_v11 }
 0x14e   : > { %1866 = vrot.lane.b32.xlu0 %v1685_v24, %s9956_s23  ;;  %v764_v9 = vmax.bf16 %v704_v34, %v702_v28 }
 0x14f   : > { %v932_v40 = vsel %vm10621_vm10, %v924_v25, %v931_v2  ;;  %v1245_v8 = vsel %vm10327_vm3, %v933_v33, %v1244_v27  ;;  %v763_v43 = vmax.bf16 %v703_v35, %v701_v30  ;;  %v524_v10 = vpop.permute.xlu1 %523 }
 0x150   : > { %1243 = vst.msk [vmem:[#allocation2 + $0x10] sm:$0xf] %vm793_vm0, %v932_v40  ;;  %1246 = vst [vmem:[#allocation2 + $0x14] sm:$0x1] %v1245_v8  ;;  %v522_v11 = vpop.permute.xlu0 %521  ;;  %v943_v47 = vshrl.u32 %v764_v9, 16  ;;  %v946_v4 = vshll.u32 %v764_v9, 16  ;;  %v706_v23 = vmax.bf16 %v524_v10, %v10358_v12 }
 0x151   : > { %v935_v51 = vshrl.u32 %v763_v43, 16  ;;  %v938_v54 = vshll.u32 %v763_v43, 16  ;;  %v705_v24 = vmax.bf16 %v522_v11, %v10361_v13  ;;  %v1258_v8 = vld [vmem:[#allocation2 + $0x2c] sm:$0x1]  ;;  %v1254_v9 = vld [vmem:[#allocation2 + $0x24] sm:$0xf] }
 0x152   : > { %2156 = vrot.lane.b32.xlu0 %v2110_v36, %s9957_s28  ;;  %v945_v59 = vrot.slane %v943_v47, 7 }
 0x153   : > { %v937_v60 = vrot.slane %v935_v51, 7  ;;  %v528_v61 = vpop.permute.xlu1 %527 }
 0x154   : > { %v526_v62 = vpop.permute.xlu0 %525  ;;  %v948_v14 = vor.u32 %v946_v4, %v945_v59  ;;  %v950_v16 = vrot.slane %v945_v59, 4  ;;  %v708_v25 = vmax.bf16 %v528_v61, %v10376_v17 }
 0x155   : > { %v940_v19 = vor.u32 %v938_v54, %v937_v60  ;;  %v941_v20 = vrot.slane %v937_v60, 4  ;;  %v707_v27 = vmax.bf16 %v526_v62, %v10379_v18 }
 0x156   : > { %v1252_v28 = vsel %vm10327_vm3, %v950_v16, %v1251_v52  ;;  %v766_v12 = vmax.bf16 %v708_v25, %v706_v23 }
 0x157   : > { %v949_v30 = vsel %vm10621_vm10, %v941_v20, %v948_v14  ;;  %v1248_v31 = vsel %vm10608_vm6, %v940_v19, %v1247_v53  ;;  %v9146_v1 = vld [vmem:[#allocation2 + $0xc] sm:$0xff]   ;;  %1253 = vst [vmem:[#allocation2 + $0x20] sm:$0x1] %v1252_v28  ;;  %v765_v13 = vmax.bf16 %v707_v27, %v705_v24  ;;  %v532_v33 = vpop.permute.xlu1 %531  ;;  %v9150_v18 = vld [vmem:[#allocation2 + $0x14] ss:$0 sps:$4 sm:$0x11]  }
 0x158   : > { %1249 = vst [vmem:[#allocation2 + $0x18] sm:$0xf] %v1248_v31  ;;  %1250 = vst.msk [vmem:[#allocation2 + $0x1c] sm:$0xf] %vm793_vm0, %v949_v30  ;;  %v530_v2 = vpop.permute.xlu0 %529  ;;  %v9149_v17 = vld [vmem:[#allocation2 + $0xc] sm:$0xfe]   ;;  %2333 = vrot.lane.b32.xlu0 %v9146_v1, %s9958_s15  ;;  %v710_v11 = vmax.bf16 %v532_v33, %v10389_v22 }
 0x159   : > { %v9151_v34 = vld [vmem:[#allocation2 + $0xc] sm:$0xff]   ;;  %v960_v35 = vshrl.u32 %v766_v12, 16  ;;  %v963_v36 = vshll.u32 %v766_v12, 16  ;;  %v952_v37 = vshrl.u32 %v765_v13, 16  ;;  %v709_v40 = vmax.bf16 %v530_v2, %v10386_v21 }
 0x15a   : > { %v955_v43 = vshll.u32 %v765_v13, 16  ;;  %v3007_v44 = vrot.slane %v9149_v17, 1  ;;  %v3008_v10 = vrot.slane %v9150_v18, 1  ;;  %v9152_v45 = vld [vmem:[#allocation2 + $0x14] ss:$0 sps:$4 sm:$0x11]  }
 0x15b   : > { %v962_v47 = vrot.slane %v960_v35, 7  ;;  %v954_v51 = vrot.slane %v952_v37, 7  ;;  %v2575_v4 = vshrl.u32 %v9151_v34, 16  ;;  %v2577_v53 = vshll.u32 %v9151_v34, 16  ;;  %v536_v54 = vpop.permute.xlu1 %535  ;;  %v10656_v21 = vld [vmem:[#allocation2 + $0xc] sm:$0xfe]  }
 0x15c   : > { %v534_v52 = vpop.permute.xlu0 %533  ;;  %v2582_v60 = vshll.u32 %v9152_v45, 16  ;;  %v712_v61 = vmax.bf16 %v536_v54, %v10407_v32  ;;  %v10658_v62 = vld [vmem:[#allocation2 + $0x14] ss:$0 sps:$4 sm:$0x11]   ;;  %v10660_v14 = vld [vmem:[#allocation2 + $0xc] sm:$0xff]   ;;  %v3009_v33 = vsel %vm2107_vm9, %v3007_v44, %v3008_v10 }
 0x15d   : > { %v711_v59 = vmax.bf16 %v534_v52, %v10402_v29  ;;  %v965_v16 = vor.u32 %v963_v36, %v962_v47  ;;  %v967_v22 = vrot.slane %v962_v47, 4  ;;  %v957_v19 = vor.u32 %v955_v43, %v954_v51  ;;  %v1261_v18 = vld [vmem:[#allocation2 + $0x30] sm:$0xf] }
 0x15e   : > { %v958_v20 = vrot.slane %v954_v51, 4  ;;  %v2579_v25 = vrot.slane %v2577_v53, 1  ;;  %v768_v27 = vmax.bf16 %v712_v61, %v710_v11  ;;  %v2584_v1 = vrot.slane %v2582_v60, 1  ;;  %v9155_v43 = vld [vmem:[#allocation2 + $0x20] ss:$0 sps:$4 sm:$0x11]  }
 0x15f   : > { %v767_v23 = vmax.bf16 %v711_v59, %v709_v40  ;;  %v9147_v24 = vld [vmem:[#allocation2 + $0x18] sm:$0xff]   ;;  %v1259_v29 = vsel %vm10327_vm3, %v967_v22, %v1258_v8  ;;  %v1255_v28 = vsel %vm10608_vm6, %v957_v19, %v1254_v9  ;;  %v10668_v12 = vpop.permute.xlu1 %539  ;;  %v2111_v40 = vrot.slane %v10656_v21, 1 }
 0x160   : > { %v966_v32 = vsel %vm10621_vm10, %v958_v20, %v965_v16  ;;  %v9148_v30 = vld [vmem:[#allocation2 + $0x18] sm:$0xff]   ;;  %v538_v31 = vpop.permute.xlu0 %537  ;;  %1260 = vst [vmem:[#allocation2 + $0x2c] sm:$0x1] %v1259_v29  ;;  %1256 = vst [vmem:[#allocation2 + $0x24] sm:$0xf] %v1255_v28  ;;  %3233 = vrot.lane.b32.xlu0 %v9147_v24, %s9959_s9  ;;  %v2580_v34 = vor.u32 %v2579_v25, %v2575_v4  ;;  %v977_v35 = vshrl.u32 %v768_v27, 16 }
 0x161   : > { %1257 = vst.msk [vmem:[#allocation2 + $0x28] sm:$0xf] %vm793_vm0, %v966_v32  ;;  %v969_v13 = vshrl.u32 %v767_v23, 16  ;;  %v972_v2 = vshll.u32 %v767_v23, 16  ;;  %v713_v17 = vmax.bf16 %v538_v31, %v10420_v38  ;;  %2335 = vrot.lane.b32.xlu1 %v9148_v30, %s9958_s15  ;;  %v980_v36 = vshll.u32 %v768_v27, 16  ;;  %v9154_v37 = vld [vmem:[#allocation2 + $0x18] sm:$0xff]  }
 0x162   : > { %v1265_v9 = vld [vmem:[#allocation2 + $0x38] sm:$0x1]  ;;  %v2112_v11 = vrot.slane %v10658_v62, 1  ;;  %v714_v45 = vmax.bf16 %v10668_v12, %v10423_v39  ;;  %v1687_v38 = vshrl.u32 %v10660_v14, 16  ;;  %v979_v10 = vrot.slane %v977_v35, 7 }
 0x163   : > { %v971_v8 = vrot.slane %v969_v13, 7  ;;  %v3475_v47 = vshrl.u32 %v9154_v37, 16  ;;  %v3477_v51 = vshll.u32 %v9154_v37, 16  ;;  %v544_v52 = vpop.permute.xlu1 %543  ;;  %v1689_v4 = vshll.u32 %v10660_v14, 16  ;;  %v9158_v19 = vld [vmem:[#allocation2 + $0x18] sm:$0xfe]  }
 0x164   : > { %v542_v44 = vpop.permute.xlu0 %541  ;;  %3055 = vrot.lane.b32.xlu0 %v3009_v33, %s9960_s12  ;;  %v3482_v60 = vshll.u32 %v9155_v43, 16  ;;  %v2585_v61 = vsel %vm1673_vm7, %v2580_v34, %v2584_v1  ;;  %v982_v39 = vor.u32 %v980_v36, %v979_v10  ;;  %v984_v16 = vrot.slane %v979_v10, 4  ;;  %v9159_v25 = vld [vmem:[#allocation2 + $0x20] ss:$0 sps:$4 sm:$0x11]  }
 0x165   : > { %v974_v53 = vor.u32 %v972_v2, %v971_v8  ;;  %v975_v54 = vrot.slane %v971_v8, 4  ;;  %v715_v59 = vmax.bf16 %v542_v44, %v10432_v41  ;;  %v3479_v22 = vrot.slane %v3477_v51, 1  ;;  %v10693_v2 = vld [vmem:[#allocation2 + $0x18] sm:$0xff]   ;;  %v9161_v34 = vld [vmem:[#allocation2 + $0x20] ss:$0 sps:$4 sm:$0x11]  }
 0x166   : > { %v3484_v24 = vrot.slane %v3482_v60, 1  ;;  %v716_v27 = vmax.bf16 %v544_v52, %v10435_v42  ;;  %v1266_v32 = vsel %vm10327_vm3, %v984_v16, %v1265_v9  ;;  %v3907_v31 = vrot.slane %v9158_v19, 1  ;;  %v9165_v16 = vld [vmem:[#allocation2 + $0x14] ss:$0 sps:$4 sm:$0x11]  }
 0x167   : > { %v1262_v20 = vsel %vm10608_vm6, %v974_v53, %v1261_v18  ;;  %v769_v23 = vmax.bf16 %v715_v59, %v713_v17  ;;  %v983_v41 = vsel %vm10621_vm10, %v975_v54, %v982_v39  ;;  %v3480_v30 = vor.u32 %v3479_v22, %v3475_v47  ;;  %v548_v1 = vpop.permute.xlu1 %547  ;;  %1267 = vst [vmem:[#allocation2 + $0x38] sm:$0x1] %v1266_v32  ;;  %v1268_v17 = vld [vmem:[#allocation2 + $0x3c] sm:$0xf] }
 0x168   : > { %1263 = vst [vmem:[#allocation2 + $0x30] sm:$0xf] %v1262_v20  ;;  %v9153_v29 = vld [vmem:[#allocation2 + $0x24] sm:$0xff]   ;;  %v546_v28 = vpop.permute.xlu0 %545  ;;  %2766 = vrot.lane.b32.xlu0 %v2585_v61, %s9961_s17  ;;  %1264 = vst.msk [vmem:[#allocation2 + $0x34] sm:$0xf] %vm793_vm0, %v983_v41  ;;  %v3908_v42 = vrot.slane %v9159_v25, 1  ;;  %v770_v35 = vmax.bf16 %v716_v27, %v714_v45  ;;  %v718_v9 = vmax.bf16 %v548_v1, %v10449_v48 }
 0x169   : > { %v986_v12 = vshrl.u32 %v769_v23, 16  ;;  %v989_v13 = vshll.u32 %v769_v23, 16  ;;  %3235 = vrot.lane.b32.xlu1 %v9153_v29, %s9959_s9  ;;  %v717_v33 = vmax.bf16 %v546_v28, %v10442_v46  ;;  %v9160_v18 = vld [vmem:[#allocation2 + $0x18] sm:$0xfe]   ;;  %v1691_v36 = vrot.slane %v1689_v4, 1  ;;  %v9170_v28 = vld [vmem:[#allocation2 + $0x24] sm:$0xff]  }
 0x16a   : > { %v3485_v8 = vsel %vm1673_vm7, %v3480_v30, %v3484_v24  ;;  %v2587_v43 = vshrl.u32 %v10693_v2, 16  ;;  %v3010_v10 = vrot.slane %v9160_v18, 1  ;;  %v3011_v47 = vrot.slane %v9161_v34, 1  ;;  %v1272_v45 = vld [vmem:[#allocation2 + $0x44] sm:$0x1] }
 0x16b   : > { %v988_v37 = vrot.slane %v986_v12, 7  ;;  %v994_v51 = vshrl.u32 %v770_v35, 16  ;;  %v997_v52 = vshll.u32 %v770_v35, 16  ;;  %v552_v53 = vpop.permute.xlu1 %551  ;;  %v2113_v46 = vsel %vm2107_vm9, %v2111_v40, %v2112_v11  ;;  %v9162_v4 = vld [vmem:[#allocation2 + $0x24] sm:$0xfe]  }
 0x16c   : > { %v550_v44 = vpop.permute.xlu0 %549  ;;  %3666 = vrot.lane.b32.xlu0 %v3485_v8, %s9962_s16  ;;  %v9163_v60 = vld [vmem:[#allocation2 + $0x2c] ss:$0 sps:$4 sm:$0x11]   ;;  %v3909_v61 = vsel %vm2107_vm9, %v3907_v31, %v3908_v42  ;;  %v1692_v22 = vor.u32 %v1691_v36, %v1687_v38  ;;  %v720_v62 = vmax.bf16 %v552_v53, %v10455_v50  ;;  %v3910_v11 = vrot.slane %v9162_v4, 1  ;;  %v9166_v25 = vld [vmem:[#allocation2 + $0x18] sm:$0xfe]  }
 0x16d   : > { %v991_v54 = vor.u32 %v989_v13, %v988_v37  ;;  %v992_v59 = vrot.slane %v988_v37, 4  ;;  %v719_v48 = vmax.bf16 %v550_v44, %v10452_v49  ;;  %2158 = vrot.lane.b32.xlu1 %v2113_v46, %s9957_s28  ;;  %v996_v39 = vrot.slane %v994_v51, 7  ;;  %v9167_v32 = vld [vmem:[#allocation2 + $0x20] ss:$0 sps:$4 sm:$0x11]  }
 0x16e   : > { %v3911_v49 = vrot.slane %v9163_v60, 1  ;;  %v1694_v24 = vshll.u32 %v9165_v16, 16  ;;  %v772_v27 = vmax.bf16 %v720_v62, %v718_v9  ;;  %v3012_v50 = vsel %vm2107_vm9, %v3010_v10, %v3011_v47  ;;  %v1275_v30 = vld [vmem:[#allocation2 + $0x48] sm:$0xf] }
 0x16f   : > { %v1269_v21 = vsel %vm10608_vm6, %v991_v54, %v1268_v17  ;;  %v771_v40 = vmax.bf16 %v719_v48, %v717_v33  ;;  %v999_v19 = vor.u32 %v997_v52, %v996_v39  ;;  %v1001_v20 = vrot.slane %v996_v39, 4  ;;  %v10714_v29 = vpop.permute.xlu1 %555  ;;  %v9169_v33 = vld [vmem:[#allocation2 + $0x20] ss:$0 sps:$4 sm:$0x11]   ;;  %v1279_v52 = vld [vmem:[#allocation2 + $0x50] sm:$0x1] }
 0x170   : > { %1270 = vst [vmem:[#allocation2 + $0x3c] sm:$0xf] %v1269_v21  ;;  %v554_v23 = vpop.permute.xlu0 %553  ;;  %3955 = vrot.lane.b32.xlu0 %v3909_v61, %s9963_s14  ;;  %v1696_v12 = vrot.slane %v1694_v24, 1  ;;  %v2114_v13 = vrot.slane %v9166_v25, 1  ;;  %v3912_v17 = vsel %vm2107_vm9, %v3910_v11, %v3911_v49  ;;  %v2589_v18 = vshll.u32 %v10693_v2, 16  ;;  %v9173_v39 = vld [vmem:[#allocation2 + $0x18] sm:$0xff]  }
 0x171   : > { %v1003_v41 = vshrl.u32 %v771_v40, 16  ;;  %v1006_v14 = vshll.u32 %v771_v40, 16  ;;  %v721_v38 = vmax.bf16 %v554_v23, %v10470_v55  ;;  %3057 = vrot.lane.b32.xlu1 %v3012_v50, %s9960_s12  ;;  %v1000_v31 = vsel %vm10621_vm10, %v992_v59, %v999_v19  ;;  %v9171_v53 = vld [vmem:[#allocation2 + $0x2c] ss:$0 sps:$4 sm:$0x11]   ;;  %v9172_v23 = vld [vmem:[#allocation2 + $0x24] sm:$0xff]  }
 0x172   : > { %v1273_v1 = vsel %vm10327_vm3, %v1001_v20, %v1272_v45  ;;  %1271 = vst.msk [vmem:[#allocation2 + $0x40] sm:$0xf] %vm793_vm0, %v1000_v31  ;;  %v2115_v55 = vrot.slane %v9167_v32, 1  ;;  %v1697_v34 = vsel %vm1673_vm7, %v1692_v22, %v1696_v12  ;;  %v1011_v36 = vshrl.u32 %v772_v27, 16  ;;  %v9175_v24 = vld [vmem:[#allocation2 + $0x24] sm:$0xff]  }
 0x173   : > { %v1005_v42 = vrot.slane %v1003_v41, 7  ;;  %1274 = vst [vmem:[#allocation2 + $0x44] sm:$0x1] %v1273_v1  ;;  %v1014_v37 = vshll.u32 %v772_v27, 16  ;;  %v722_v8 = vmax.bf16 %v10714_v29, %v10473_v56  ;;  %v10730_v9 = vpop.permute.xlu1 %559  ;;  %v2591_v54 = vrot.slane %v2589_v18, 1 }
 0x174   : > { %v558_v35 = vpop.permute.xlu0 %557  ;;  %3957 = vrot.lane.b32.xlu0 %v3912_v17, %s9963_s14  ;;  %v2116_v51 = vsel %vm2107_vm9, %v2114_v13, %v2115_v55  ;;  %v2594_v59 = vshll.u32 %v9169_v33, 16  ;;  %v1013_v46 = vrot.slane %v1011_v36, 7  ;;  %v3487_v48 = vshrl.u32 %v9170_v28, 16  ;;  %v1282_v25 = vld [vmem:[#allocation2 + $0x54] sm:$0xf] }
 0x175   : > { %v1008_v44 = vor.u32 %v1006_v14, %v1005_v42  ;;  %v1009_v10 = vrot.slane %v1005_v42, 4  ;;  %v723_v47 = vmax.bf16 %v558_v35, %v10480_v57  ;;  %1868 = vrot.lane.b32.xlu1 %v1697_v34, %s9956_s23  ;;  %v3489_v60 = vshll.u32 %v9170_v28, 16  ;;  %v9174_v14 = vld [vmem:[#allocation2 + $0x20] ss:$0 sps:$4 sm:$0x11]   ;;  %v10753_v28 = vld [vmem:[#allocation2 + $0x24] sm:$0xff]  }
 0x176   : > { %v3494_v61 = vshll.u32 %v9171_v53, 16  ;;  %v2592_v57 = vor.u32 %v2591_v54, %v2587_v43  ;;  %v2596_v16 = vrot.slane %v2594_v59, 1  ;;  %v1016_v22 = vor.u32 %v1014_v37, %v1013_v46  ;;  %v9176_v1 = vld [vmem:[#allocation2 + $0x2c] ss:$0 sps:$4 sm:$0x11]  }
 0x177   : > { %v1276_v45 = vsel %vm10608_vm6, %v1008_v44, %v1275_v30  ;;  %v773_v4 = vmax.bf16 %v723_v47, %v721_v38  ;;  %v1018_v62 = vrot.slane %v1013_v46, 4  ;;  %v10740_v40 = vpop.permute.xlu1 %563  ;;  %v3491_v20 = vrot.slane %v3489_v60, 1  ;;  %v9178_v47 = vld [vmem:[#allocation2 + $0x2c] ss:$0 sps:$4 sm:$0x11]  }
 0x178   : > { %1277 = vst [vmem:[#allocation2 + $0x48] sm:$0xf] %v1276_v45  ;;  %v562_v21 = vpop.permute.xlu0 %561  ;;  %2160 = vrot.lane.b32.xlu0 %v2116_v51, %s9957_s28  ;;  %v2597_v27 = vsel %vm1673_vm7, %v2592_v57, %v2596_v16  ;;  %v1017_v2 = vsel %vm10621_vm10, %v1009_v10, %v1016_v22  ;;  %v3496_v41 = vrot.slane %v3494_v61, 1  ;;  %v1699_v38 = vshrl.u32 %v9173_v39, 16  ;;  %v9177_v10 = vld [vmem:[#allocation2 + $0x24] sm:$0xfe]  }
 0x179   : > { %v1020_v11 = vshrl.u32 %v773_v4, 16  ;;  %v1023_v49 = vshll.u32 %v773_v4, 16  ;;  %v725_v19 = vmax.bf16 %v562_v21, %v10494_v63  ;;  %v1280_v43 = vsel %vm10327_vm3, %v1018_v62, %v1279_v52  ;;  %2768 = vrot.lane.b32.xlu1 %v2597_v27, %s9961_s17  ;;  %1278 = vst.msk [vmem:[#allocation2 + $0x4c] sm:$0xf] %vm793_vm0, %v1017_v2  ;;  %v9630_v54 = vld [vmem:[%s10279_s22 + $0x7c] sm:$0xf] }
 0x17a   : > { %1281 = vst [vmem:[#allocation2 + $0x50] sm:$0x1] %v1280_v43  ;;  %v3492_v63 = vor.u32 %v3491_v20, %v3487_v48  ;;  %v1701_v32 = vshll.u32 %v9173_v39, 16  ;;  %v1706_v31 = vshll.u32 %v9174_v14, 16  ;;  %v724_v12 = vmax.bf16 %v10730_v9, %v10483_v58  ;;  %v1289_v61 = vld [vmem:[#allocation2 + $0x60] sm:$0xf] }
 0x17b   : > { %v10749_v50 = vrot.slane %v1020_v11, 7  ;;  %v726_v13 = vmax.bf16 %v10740_v40, %v10497_v5  ;;  %v568_v42 = vpop.permute.xlu1 %567  ;;  %v2599_v36 = vshrl.u32 %v9175_v24, 16  ;;  %v2601_v37 = vshll.u32 %v9175_v24, 16  ;;  %v9631_v57 = vld [vmem:[%s10279_s22 + $0x80] sm:$0xf] }
 0x17c   : > { %v566_v30 = vpop.permute.xlu0 %565  ;;  %v3497_v33 = vsel %vm1673_vm7, %v3492_v63, %v3496_v41  ;;  %2337 = vrot.lane.b32.xlu0 %v9172_v23, %s9958_s15  ;;  %v1703_v34 = vrot.slane %v1701_v32, 1  ;;  %v1708_v35 = vrot.slane %v1706_v31, 1  ;;  %v2606_v9 = vshll.u32 %v9176_v1, 16  ;;  %v9180_v22 = vld [vmem:[#allocation2 + $0x2c] ss:$0 sps:$4 sm:$0x11]  }
 0x17d   : > { %v1025_v17 = vor.u32 %v1023_v49, %v10749_v50  ;;  %v1026_v55 = vrot.slane %v10749_v50, 4  ;;  %v727_v18 = vmax.bf16 %v566_v30, %v10504_v7  ;;  %3668 = vrot.lane.b32.xlu1 %v3497_v33, %s9962_s16  ;;  %v774_v44 = vmax.bf16 %v724_v12, %v722_v8  ;;  %v1286_v8 = vld [vmem:[#allocation2 + $0x5c] sm:$0x1]  ;;  %v9181_v24 = vld [vmem:[#allocation2 + $0x24] sm:$0xfe]   ;;  %v9184_v63 = vld [vmem:[#allocation2 + $0x30] sm:$0xff]  }
 0x17e   : > { %v1704_v7 = vor.u32 %v1703_v34, %v1699_v38  ;;  %v2603_v51 = vrot.slane %v2601_v37, 1  ;;  %v1711_v53 = vshrl.u32 %v10753_v28, 16  ;;  %v728_v59 = vmax.bf16 %v9630_v54, %v568_v42  ;;  %v9182_v50 = vld [vmem:[#allocation2 + $0x2c] ss:$0 sps:$4 sm:$0x11]   ;;  %v9183_v54 = vld [vmem:[#allocation2 + $0x30] sm:$0xff]  }
 0x17f   : > { %v1283_v58 = vsel %vm10608_vm6, %v1025_v17, %v1282_v25  ;;  %v775_v5 = vmax.bf16 %v727_v18, %v725_v19  ;;  %v10772_v46 = vpop.permute.xlu1 %571  ;;  %v2608_v4 = vrot.slane %v2606_v9, 1  ;;  %v1028_v60 = vshrl.u32 %v774_v44, 16  ;;  %v9632_v30 = vld [vmem:[%s10279_s22 + $0x88] sm:$0xf] }
 0x180   : > { %1284 = vst [vmem:[#allocation2 + $0x54] sm:$0xf] %v1283_v58  ;;  %v570_v52 = vpop.permute.xlu0 %569  ;;  %v1709_v56 = vsel %vm1673_vm7, %v1704_v7, %v1708_v35  ;;  %v2604_v29 = vor.u32 %v2603_v51, %v2599_v36  ;;  %v1031_v39 = vshll.u32 %v774_v44, 16  ;;  %v3013_v40 = vrot.slane %v9177_v10, 1  ;;  %v9633_v7 = vld [vmem:[%s10279_s22 + $0x90] sm:$0xf] }
 0x181   : > { %v1037_v48 = vshrl.u32 %v775_v5, 16  ;;  %v1040_v45 = vshll.u32 %v775_v5, 16  ;;  %v729_v16 = vmax.bf16 %v9631_v57, %v570_v52  ;;  %1870 = vrot.lane.b32.xlu1 %v1709_v56, %s9956_s23  ;;  %v1030_v21 = vrot.slane %v1028_v60, 7  ;;  %v1296_v52 = vld [vmem:[#allocation2 + $0x6c] sm:$0xf] }
 0x182   : > { %v3014_v11 = vrot.slane %v9178_v47, 1  ;;  %v2609_v49 = vsel %vm1673_vm7, %v2604_v29, %v2608_v4  ;;  %v1713_v19 = vshll.u32 %v10753_v28, 16  ;;  %v1718_v20 = vshll.u32 %v9180_v22, 16  ;;  %v1293_v47 = vld [vmem:[#allocation2 + $0x68] sm:$0x1] }
 0x183   : > { %v10776_v62 = vrot.slane %v1037_v48, 7  ;;  %v776_v25 = vmax.bf16 %v728_v59, %v726_v13  ;;  %v10781_v27 = vpop.permute.xlu1 %575  ;;  %2770 = vrot.lane.b32.xlu0 %v2609_v49, %s9961_s17  ;;  %v1033_v41 = vor.u32 %v1031_v39, %v1030_v21  ;;  %v1035_v14 = vrot.slane %v1030_v21, 4  ;;  %v9634_v60 = vld [vmem:[%s10279_s22 + $0x84] sm:$0xf]  ;;  %v9635_v39 = vld [vmem:[%s10279_s22 + $0x8c] sm:$0xf] }
 0x184   : > { %v574_v23 = vpop.permute.xlu0 %573  ;;  %v3015_v38 = vsel %vm2107_vm9, %v3013_v40, %v3014_v11  ;;  %v1715_v32 = vrot.slane %v1713_v19, 1  ;;  %v1720_v28 = vrot.slane %v1718_v20, 1  ;;  %v2117_v42 = vrot.slane %v9181_v24, 1  ;;  %v9187_v29 = vld [vmem:[#allocation2 + $0x30] sm:$0xfe]  }
 0x185   : > { %v1042_v2 = vor.u32 %v1040_v45, %v10776_v62  ;;  %v1043_v43 = vrot.slane %v10776_v62, 4  ;;  %v731_v31 = vmax.bf16 %v9632_v30, %v574_v23  ;;  %v1034_v12 = vsel %vm10621_vm10, %v1026_v55, %v1033_v41  ;;  %v9185_v55 = vld [vmem:[#allocation2 + $0x38] ss:$0 sps:$4 sm:$0x11]   ;;  %v9637_v24 = vld [vmem:[%s10279_s22 + $0x98] sm:$0xf] }
 0x186   : > { %v1287_v13 = vsel %vm10327_vm3, %v1035_v14, %v1286_v8  ;;  %1285 = vst.msk [vmem:[#allocation2 + $0x58] sm:$0xf] %vm793_vm0, %v1034_v12  ;;  %v1716_v17 = vor.u32 %v1715_v32, %v1711_v53  ;;  %v2118_v18 = vrot.slane %v9182_v50, 1  ;;  %v1045_v34 = vshrl.u32 %v776_v25, 16  ;;  %v9189_v8 = vld [vmem:[#allocation2 + $0x30] sm:$0xff]  }
 0x187   : > { %v1290_v1 = vsel %vm10608_vm6, %v1042_v2, %v1289_v61  ;;  %1288 = vst [vmem:[#allocation2 + $0x5c] sm:$0x1] %v1287_v13  ;;  %v777_v33 = vmax.bf16 %v731_v31, %v729_v16  ;;  %v10795_v36 = vpop.permute.xlu1 %579  ;;  %3059 = vrot.lane.b32.xlu0 %v3015_v38, %s9960_s12  ;;  %v1048_v37 = vshll.u32 %v776_v25, 16  ;;  %v3499_v58 = vshrl.u32 %v9184_v63, 16  ;;  %v9636_v16 = vld [vmem:[%s10279_s22 + $0x94] sm:$0xf] }
 0x188   : > { %1291 = vst [vmem:[#allocation2 + $0x60] sm:$0xf] %v1290_v1  ;;  %v578_v35 = vpop.permute.xlu0 %577  ;;  %v3501_v5 = vshll.u32 %v9184_v63, 16  ;;  %v1721_v9 = vsel %vm1673_vm7, %v1716_v17, %v1720_v28  ;;  %v2119_v53 = vsel %vm2107_vm9, %v2117_v42, %v2118_v18  ;;  %v1047_v59 = vrot.slane %v1045_v34, 7  ;;  %v9186_v31 = vld [vmem:[#allocation2 + $0x30] sm:$0xff]  }
 0x189   : > { %v1054_v44 = vshrl.u32 %v777_v33, 16  ;;  %v1057_v10 = vshll.u32 %v777_v33, 16  ;;  %v733_v51 = vmax.bf16 %v9633_v7, %v578_v35  ;;  %1872 = vrot.lane.b32.xlu1 %v1721_v9, %s9956_s23  ;;  %v3506_v45 = vshll.u32 %v9185_v55, 16  ;;  %v9188_v20 = vld [vmem:[#allocation2 + $0x38] ss:$0 sps:$4 sm:$0x11]  }
 0x18a   : > { %v3503_v48 = vrot.slane %v3501_v5, 1  ;;  %v730_v61 = vmax.bf16 %v9634_v60, %v10772_v46  ;;  %v732_v57 = vmax.bf16 %v9635_v39, %v10781_v27  ;;  %v734_v22 = vmax.bf16 %v9636_v16, %v10795_v36  ;;  %v9190_v63 = vld [vmem:[#allocation2 + $0x38] ss:$0 sps:$4 sm:$0x11]   ;;  %v9638_v42 = vld [vmem:[%s10279_s22 + $0xa0] sm:$0xf] }
 0x18b   : > { %v10802_v4 = vrot.slane %v1054_v44, 7  ;;  %v584_v21 = vpop.permute.xlu1 %583  ;;  %3237 = vrot.lane.b32.xlu0 %v9183_v54, %s9959_s9  ;;  %v1050_v40 = vor.u32 %v1048_v37, %v1047_v59  ;;  %v1052_v11 = vrot.slane %v1047_v59, 4  ;;  %v3508_v19 = vrot.slane %v3506_v45, 1  ;;  %v9191_v33 = vld [vmem:[#allocation2 + $0x30] sm:$0xfe]  }
 0x18c   : > { %v582_v56 = vpop.permute.xlu0 %581  ;;  %v3504_v49 = vor.u32 %v3503_v48, %v3499_v58  ;;  %v3913_v2 = vrot.slane %v9187_v29, 1  ;;  %v3914_v50 = vrot.slane %v9188_v20, 1  ;;  %v2611_v28 = vshrl.u32 %v9189_v8, 16  ;;  %v9192_v36 = vld [vmem:[#allocation2 + $0x38] ss:$0 sps:$4 sm:$0x11]  }
 0x18d   : > { %v1059_v46 = vor.u32 %v1057_v10, %v10802_v4  ;;  %v1060_v23 = vrot.slane %v10802_v4, 4  ;;  %v735_v25 = vmax.bf16 %v9637_v24, %v582_v56  ;;  %2162 = vrot.lane.b32.xlu1 %v2119_v53, %s9957_s28  ;;  %v1051_v27 = vsel %vm10621_vm10, %v1043_v43, %v1050_v40  ;;  %v9639_v37 = vld [vmem:[%s10279_s22 + $0x9c] sm:$0xf]  ;;  %v1303_v58 = vld [vmem:[#allocation2 + $0x78] sm:$0xf] }
 0x18e   : > { %v1294_v41 = vsel %vm10327_vm3, %v1052_v11, %v1293_v47  ;;  %v3509_v14 = vsel %vm1673_vm7, %v3504_v49, %v3508_v19  ;;  %1292 = vst.msk [vmem:[#allocation2 + $0x64] sm:$0xf] %vm793_vm0, %v1051_v27  ;;  %v2613_v62 = vshll.u32 %v9189_v8, 16  ;;  %v3915_v1 = vsel %vm2107_vm9, %v3913_v2, %v3914_v50  ;;  %v9193_v45 = vld [vmem:[#allocation2 + $0x3c] sm:$0xfe]  }
 0x18f   : > { %v1297_v38 = vsel %vm10608_vm6, %v1059_v46, %v1296_v52  ;;  %1295 = vst [vmem:[#allocation2 + $0x68] sm:$0x1] %v1294_v41  ;;  %v779_v32 = vmax.bf16 %v735_v25, %v733_v51  ;;  %v588_v43 = vpop.permute.xlu1 %587  ;;  %3670 = vrot.lane.b32.xlu0 %v3509_v14, %s9962_s16  ;;  %v2618_v12 = vshll.u32 %v9190_v63, 16  ;;  %v778_v13 = vmax.bf16 %v732_v57, %v730_v61  ;;  %v1300_v51 = vld [vmem:[#allocation2 + $0x74] sm:$0x1]  ;;  %v9198_v46 = vld [vmem:[#allocation2 + $0x3c] sm:$0xff]  }
 0x190   : > { %v586_v30 = vpop.permute.xlu0 %585  ;;  %1298 = vst [vmem:[#allocation2 + $0x6c] sm:$0xf] %v1297_v38  ;;  %v2615_v35 = vrot.slane %v2613_v62, 1  ;;  %v736_v55 = vmax.bf16 %v9639_v37, %v584_v21  ;;  %v3016_v10 = vrot.slane %v9191_v33, 1  ;;  %v3017_v52 = vrot.slane %v9192_v36, 1 }
 0x191   : > { %v737_v17 = vmax.bf16 %v9638_v42, %v586_v30  ;;  %v1071_v18 = vshrl.u32 %v779_v32, 16  ;;  %v1074_v34 = vshll.u32 %v779_v32, 16  ;;  %2339 = vrot.lane.b32.xlu1 %v9186_v31, %s9958_s15  ;;  %v2620_v5 = vrot.slane %v2618_v12, 1  ;;  %v9194_v60 = vld [vmem:[#allocation2 + $0x44] ss:$0 sps:$4 sm:$0x11]  }
 0x192   : > { %v1062_v9 = vshrl.u32 %v778_v13, 16  ;;  %v1065_v44 = vshll.u32 %v778_v13, 16  ;;  %v2616_v7 = vor.u32 %v2615_v35, %v2611_v28  ;;  %v780_v54 = vmax.bf16 %v736_v55, %v734_v22  ;;  %v9640_v61 = vld [vmem:[%s10279_s22 + $0xa8] sm:$0xf]  ;;  %v9641_v29 = vld [vmem:[%s10279_s22 + $0xa4] sm:$0xf] }
 0x193   : > { %v10830_v47 = vrot.slane %v1071_v18, 7  ;;  %v592_v59 = vpop.permute.xlu1 %591  ;;  %3959 = vrot.lane.b32.xlu0 %v3915_v1, %s9963_s14  ;;  %v738_v8 = vmax.bf16 %v9641_v29, %v588_v43  ;;  %v9642_v39 = vld [vmem:[%s10279_s22 + $0xac] sm:$0xf]  ;;  %v3018_v22 = vsel %vm2107_vm9, %v3016_v10, %v3017_v52  ;;  %v3916_v19 = vrot.slane %v9193_v45, 1  ;;  %v9195_v2 = vld [vmem:[#allocation2 + $0x30] sm:$0xfe]  }
 0x194   : > { %v590_v53 = vpop.permute.xlu0 %589  ;;  %v1064_v48 = vrot.slane %v1062_v9, 7  ;;  %v740_v57 = vmax.bf16 %v9642_v39, %v592_v59  ;;  %v2621_v40 = vsel %vm1673_vm7, %v2616_v7, %v2620_v5  ;;  %v3917_v20 = vrot.slane %v9194_v60, 1  ;;  %v9196_v27 = vld [vmem:[#allocation2 + $0x38] ss:$0 sps:$4 sm:$0x11]   ;;  %v9201_v30 = vld [vmem:[#allocation2 + $0x30] sm:$0xff]  }
 0x195   : > { %v739_v56 = vmax.bf16 %v9640_v61, %v590_v53  ;;  %v1076_v16 = vor.u32 %v1074_v34, %v10830_v47  ;;  %v1077_v21 = vrot.slane %v10830_v47, 4  ;;  %2772 = vrot.lane.b32.xlu1 %v2621_v40, %s9961_s17  ;;  %v1079_v41 = vshrl.u32 %v780_v54, 16  ;;  %v1307_v12 = vld [vmem:[#allocation2 + $0x80] sm:$0x1]  ;;  %v10859_v34 = vld [vmem:[%s10279_s22 + $0xb4] sm:$0xf] }
 0x196   : > { %v1067_v11 = vor.u32 %v1065_v44, %v1064_v48  ;;  %v1069_v49 = vrot.slane %v1064_v48, 4  ;;  %v10843_v50 = vmax.bf16 %v740_v57, %v738_v8  ;;  %v3918_v28 = vsel %vm2107_vm9, %v3916_v19, %v3917_v20  ;;  %v9197_v13 = vld [vmem:[#allocation2 + $0x3c] sm:$0xff]   ;;  %v9199_v55 = vld [vmem:[#allocation2 + $0x44] ss:$0 sps:$4 sm:$0x11]  }
 0x197   : > { %v1304_v24 = vsel %vm10608_vm6, %v1076_v16, %v1303_v58  ;;  %v781_v25 = vmax.bf16 %v739_v56, %v737_v17  ;;  %v10845_v63 = vpop.permute.xlu1 %595  ;;  %v1082_v62 = vshll.u32 %v780_v54, 16  ;;  %3961 = vrot.lane.b32.xlu0 %v3918_v28, %s9963_s14  ;;  %v2120_v4 = vrot.slane %v9195_v2, 1  ;;  %v9643_v17 = vld [vmem:[%s10279_s22 + $0xb0] sm:$0xf]  ;;  %v9645_v7 = vld [vmem:[%s10279_s22 + $0xb8] sm:$0xf] }
 0x198   : > { %v594_v14 = vpop.permute.xlu0 %593  ;;  %1305 = vst [vmem:[#allocation2 + $0x78] sm:$0xf] %v1304_v24  ;;  %v1068_v38 = vsel %vm10621_vm10, %v1060_v23, %v1067_v11  ;;  %v1301_v32 = vsel %vm10327_vm3, %v1069_v49, %v1300_v51  ;;  %v2121_v1 = vrot.slane %v9196_v27, 1  ;;  %v1310_v23 = vld [vmem:[#allocation2 + $0x84] sm:$0xf]  ;;  %v1081_v42 = vrot.slane %v1079_v41, 7 }
 0x199   : > { %1299 = vst.msk [vmem:[#allocation2 + $0x70] sm:$0xf] %vm793_vm0, %v1068_v38  ;;  %1302 = vst [vmem:[#allocation2 + $0x74] sm:$0x1] %v1301_v32  ;;  %v1088_v43 = vshrl.u32 %v781_v25, 16  ;;  %v1091_v31 = vshll.u32 %v781_v25, 16  ;;  %3061 = vrot.lane.b32.xlu1 %v3018_v22, %s9960_s12  ;;  %v741_v33 = vmax.bf16 %v9643_v17, %v594_v14  ;;  %v742_v35 = vmax.bf16 %v10859_v34, %v10845_v63 }
 0x19a   : > { %v3511_v18 = vshrl.u32 %v9198_v46, 16  ;;  %v2122_v37 = vsel %vm2107_vm9, %v2120_v4, %v2121_v1  ;;  %v3513_v58 = vshll.u32 %v9198_v46, 16  ;;  %v1723_v9 = vshrl.u32 %v9201_v30, 16  ;;  %v9200_v45 = vld [vmem:[#allocation2 + $0x3c] sm:$0xff]   ;;  %v9646_v49 = vld [vmem:[%s10279_s22 + $0xbc] sm:$0xf] }
 0x19b   : > { %v10863_v36 = vrot.slane %v1088_v43, 7  ;;  %v10866_v44 = vpop.permute.xlu1 %599  ;;  %v1084_v10 = vor.u32 %v1082_v62, %v1081_v42  ;;  %v1086_v47 = vrot.slane %v1081_v42, 4  ;;  %v1725_v52 = vshll.u32 %v9201_v30, 16  ;;  %2164 = vrot.lane.b32.xlu0 %v2122_v37, %s9957_s28  ;;  %v9203_v60 = vld [vmem:[#allocation2 + $0x3c] sm:$0xff]   ;;  %v9647_v25 = vld [vmem:[%s10279_s22 + $0xc0] sm:$0xf] }
 0x19c   : > { %v598_v5 = vpop.permute.xlu0 %597  ;;  %v3515_v59 = vrot.slane %v3513_v58, 1  ;;  %v3518_v48 = vshll.u32 %v9199_v55, 16  ;;  %v10877_v39 = vld [vmem:[#allocation2 + $0x3c] sm:$0xff]   ;;  %v9202_v22 = vld [vmem:[#allocation2 + $0x38] ss:$0 sps:$4 sm:$0x11]  }
 0x19d   : > { %v743_v51 = vmax.bf16 %v9645_v7, %v598_v5  ;;  %v1093_v53 = vor.u32 %v1091_v31, %v10863_v36  ;;  %v1094_v54 = vrot.slane %v10863_v36, 4  ;;  %3239 = vrot.lane.b32.xlu1 %v9197_v13, %s9959_s9  ;;  %v1085_v61 = vsel %vm10621_vm10, %v1077_v21, %v1084_v10  ;;  %v1317_v41 = vld [vmem:[#allocation2 + $0x90] sm:$0xf]  ;;  %v9204_v38 = vld [vmem:[#allocation2 + $0x44] ss:$0 sps:$4 sm:$0x11]  }
 0x19e   : > { %v1308_v56 = vsel %vm10327_vm3, %v1086_v47, %v1307_v12  ;;  %v1727_v8 = vrot.slane %v1725_v52, 1  ;;  %1306 = vst.msk [vmem:[#allocation2 + $0x7c] sm:$0xf] %vm793_vm0, %v1085_v61  ;;  %v3516_v16 = vor.u32 %v3515_v59, %v3511_v18  ;;  %v3520_v40 = vrot.slane %v3518_v48, 1  ;;  %v9205_v55 = vld [vmem:[#allocation2 + $0x3c] sm:$0xfe]  }
 0x19f   : > { %v783_v29 = vmax.bf16 %v743_v51, %v741_v33  ;;  %v1311_v57 = vsel %vm10608_vm6, %v1093_v53, %v1310_v23  ;;  %1309 = vst [vmem:[#allocation2 + $0x80] sm:$0x1] %v1308_v56  ;;  %v744_v21 = vmax.bf16 %v9646_v49, %v10866_v44  ;;  %v10884_v19 = vpop.permute.xlu1 %603  ;;  %2341 = vrot.lane.b32.xlu0 %v9200_v45, %s9958_s15  ;;  %v1730_v14 = vshll.u32 %v9202_v22, 16  ;;  %v1314_v23 = vld [vmem:[#allocation2 + $0x8c] sm:$0x1] }
 0x1a0   : > { %v602_v11 = vpop.permute.xlu0 %601  ;;  %1312 = vst [vmem:[#allocation2 + $0x84] sm:$0xf] %v1311_v57  ;;  %v1728_v24 = vor.u32 %v1727_v8, %v1723_v9  ;;  %v3521_v27 = vsel %vm1673_vm7, %v3516_v16, %v3520_v40  ;;  %v2623_v32 = vshrl.u32 %v9203_v60, 16  ;;  %v2625_v28 = vshll.u32 %v9203_v60, 16  ;;  %v9648_v58 = vld [vmem:[%s10279_s22 + $0xc8] sm:$0xf] }
 0x1a1   : > { %v1105_v20 = vshrl.u32 %v783_v29, 16  ;;  %v1108_v46 = vshll.u32 %v783_v29, 16  ;;  %v745_v2 = vmax.bf16 %v9647_v25, %v602_v11  ;;  %3672 = vrot.lane.b32.xlu1 %v3521_v27, %s9962_s16  ;;  %v1096_v30 = vshrl.u32 %v10843_v50, 16  ;;  %v9206_v10 = vld [vmem:[#allocation2 + $0x44] ss:$0 sps:$4 sm:$0x11]  }
 0x1a2   : > { %v1099_v43 = vshll.u32 %v10843_v50, 16  ;;  %v1735_v31 = vshrl.u32 %v10877_v39, 16  ;;  %v1732_v4 = vrot.slane %v1730_v14, 1  ;;  %v2627_v1 = vrot.slane %v2625_v28, 1  ;;  %v9209_v16 = vld [vmem:[#allocation2 + $0x3c] sm:$0xfe]  }
 0x1a3   : > { %v10890_v62 = vrot.slane %v1105_v20, 7  ;;  %v2630_v12 = vshll.u32 %v9204_v38, 16  ;;  %v1737_v13 = vshll.u32 %v10877_v39, 16  ;;  %v10896_v17 = vpop.permute.xlu1 %607  ;;  %v1098_v37 = vrot.slane %v1096_v30, 7  ;;  %v1324_v40 = vld [vmem:[#allocation2 + $0x9c] sm:$0xf] }
 0x1a4   : > { %v606_v42 = vpop.permute.xlu0 %605  ;;  %v1733_v50 = vsel %vm1673_vm7, %v1728_v24, %v1732_v4  ;;  %v2628_v9 = vor.u32 %v2627_v1, %v2623_v32  ;;  %v784_v47 = vmax.bf16 %v744_v21, %v742_v35  ;;  %v3019_v53 = vrot.slane %v9205_v55, 1  ;;  %v9208_v45 = vld [vmem:[#allocation2 + $0x44] ss:$0 sps:$4 sm:$0x11]   ;;  %v10918_v35 = vld [vmem:[#allocation2 + $0x48] sm:$0xff]  }
 0x1a5   : > { %v1110_v33 = vor.u32 %v1108_v46, %v10890_v62  ;;  %v1111_v18 = vrot.slane %v10890_v62, 4  ;;  %v747_v5 = vmax.bf16 %v9648_v58, %v606_v42  ;;  %v2632_v44 = vrot.slane %v2630_v12, 1  ;;  %1874 = vrot.lane.b32.xlu1 %v1733_v50, %s9956_s23  ;;  %v9210_v11 = vld [vmem:[#allocation2 + $0x44] ss:$0 sps:$4 sm:$0x11]   ;;  %v9211_v32 = vld [vmem:[#allocation2 + $0x48] sm:$0xff]  }
 0x1a6   : > { %v1101_v51 = vor.u32 %v1099_v43, %v1098_v37  ;;  %v1103_v52 = vrot.slane %v1098_v37, 4  ;;  %v3020_v48 = vrot.slane %v9206_v10, 1  ;;  %v1739_v60 = vrot.slane %v1737_v13, 1  ;;  %v9649_v36 = vld [vmem:[%s10279_s22 + $0xd0] sm:$0xf]  ;;  %v9217_v13 = vld [vmem:[#allocation2 + $0x48] sm:$0xff]  }
 0x1a7   : > { %v1318_v7 = vsel %vm10608_vm6, %v1110_v33, %v1317_v41  ;;  %v2633_v59 = vsel %vm1673_vm7, %v2628_v9, %v2632_v44  ;;  %v785_v61 = vmax.bf16 %v747_v5, %v745_v2  ;;  %v10909_v29 = vpop.permute.xlu1 %611  ;;  %v1742_v39 = vshll.u32 %v9208_v45, 16  ;;  %v9651_v20 = vld [vmem:[%s10279_s22 + $0xcc] sm:$0xf]  ;;  %v1321_v28 = vld [vmem:[#allocation2 + $0x98] sm:$0x1] }
 0x1a8   : > { %1319 = vst [vmem:[#allocation2 + $0x90] sm:$0xf] %v1318_v7  ;;  %v610_v56 = vpop.permute.xlu0 %609  ;;  %2774 = vrot.lane.b32.xlu0 %v2633_v59, %s9961_s17  ;;  %v1102_v63 = vsel %vm10621_vm10, %v1094_v54, %v1101_v51  ;;  %v1315_v34 = vsel %vm10327_vm3, %v1103_v52, %v1314_v23  ;;  %v1740_v8 = vor.u32 %v1739_v60, %v1735_v31  ;;  %v9650_v54 = vld [vmem:[%s10279_s22 + $0xc4] sm:$0xf]  ;;  %v1113_v27 = vshrl.u32 %v784_v47, 16 }
 0x1a9   : > { %1313 = vst.msk [vmem:[#allocation2 + $0x88] sm:$0xf] %vm793_vm0, %v1102_v63  ;;  %1316 = vst [vmem:[#allocation2 + $0x8c] sm:$0x1] %v1315_v34  ;;  %v1122_v57 = vshrl.u32 %v785_v61, 16  ;;  %v1125_v22 = vshll.u32 %v785_v61, 16  ;;  %v749_v49 = vmax.bf16 %v9649_v36, %v610_v56  ;;  %v746_v21 = vmax.bf16 %v9650_v54, %v10884_v19 }
 0x1aa   : > { %v748_v46 = vmax.bf16 %v9651_v20, %v10896_v17  ;;  %v3021_v24 = vsel %vm2107_vm9, %v3019_v53, %v3020_v48  ;;  %v1744_v25 = vrot.slane %v1742_v39, 1  ;;  %v2123_v38 = vrot.slane %v9209_v16, 1  ;;  %v9652_v43 = vld [vmem:[%s10279_s22 + $0xd8] sm:$0xf]  ;;  %v9653_v34 = vld [vmem:[%s10279_s22 + $0xd4] sm:$0xf] }
 0x1ab   : > { %v10927_v2 = vrot.slane %v1122_v57, 7  ;;  %v10929_v14 = vpop.permute.xlu1 %615  ;;  %v1116_v30 = vshll.u32 %v784_v47, 16  ;;  %v2124_v1 = vrot.slane %v9210_v11, 1  ;;  %v1115_v12 = vrot.slane %v1113_v27, 7  ;;  %v1331_v45 = vld [vmem:[#allocation2 + $0xa8] sm:$0xf] }
 0x1ac   : > { %v614_v41 = vpop.permute.xlu0 %613  ;;  %3063 = vrot.lane.b32.xlu0 %v3021_v24, %s9960_s12  ;;  %v1745_v31 = vsel %vm1673_vm7, %v1740_v8, %v1744_v25  ;;  %v9213_v23 = vld [vmem:[#allocation2 + $0x50] ss:$0 sps:$4 sm:$0x11]   ;;  %v3523_v42 = vshrl.u32 %v10918_v35, 16  ;;  %v3525_v17 = vshll.u32 %v10918_v35, 16  ;;  %v786_v37 = vmax.bf16 %v748_v46, %v746_v21  ;;  %v9214_v11 = vld [vmem:[#allocation2 + $0x48] sm:$0xff]  }
 0x1ad   : > { %v751_v19 = vmax.bf16 %v9652_v43, %v614_v41  ;;  %v1127_v4 = vor.u32 %v1125_v22, %v10927_v2  ;;  %1876 = vrot.lane.b32.xlu1 %v1745_v31, %s9956_s23  ;;  %v1118_v58 = vor.u32 %v1116_v30, %v1115_v12  ;;  %v1120_v5 = vrot.slane %v1115_v12, 4  ;;  %v9215_v60 = vld [vmem:[#allocation2 + $0x48] sm:$0xfe]   ;;  %v9216_v61 = vld [vmem:[#allocation2 + $0x50] ss:$0 sps:$4 sm:$0x11]  }
 0x1ae   : > { %v3530_v50 = vshll.u32 %v9213_v23, 16  ;;  %v3527_v10 = vrot.slane %v3525_v17, 1  ;;  %v2635_v51 = vshrl.u32 %v9217_v13, 16  ;;  %v2125_v52 = vsel %vm2107_vm9, %v2123_v38, %v2124_v1  ;;  %v9654_v57 = vld [vmem:[%s10279_s22 + $0xe0] sm:$0xf] }
 0x1af   : > { %v787_v33 = vmax.bf16 %v751_v19, %v749_v49  ;;  %v1325_v55 = vsel %vm10608_vm6, %v1127_v4, %v1324_v40  ;;  %v10940_v44 = vpop.permute.xlu1 %619  ;;  %v1119_v53 = vsel %vm10621_vm10, %v1111_v18, %v1118_v58  ;;  %v1322_v59 = vsel %vm10327_vm3, %v1120_v5, %v1321_v28  ;;  %v9218_v54 = vld [vmem:[#allocation2 + $0x50] ss:$0 sps:$4 sm:$0x11]   ;;  %v1328_v20 = vld [vmem:[#allocation2 + $0xa4] sm:$0x1] }
 0x1b0   : > { %v618_v9 = vpop.permute.xlu0 %617  ;;  %1326 = vst [vmem:[#allocation2 + $0x9c] sm:$0xf] %v1325_v55  ;;  %3241 = vrot.lane.b32.xlu0 %v9211_v32, %s9959_s9  ;;  %v3532_v48 = vrot.slane %v3530_v50, 1  ;;  %1320 = vst.msk [vmem:[#allocation2 + $0x94] sm:$0xf] %vm793_vm0, %v1119_v53  ;;  %v3528_v56 = vor.u32 %v3527_v10, %v3523_v42  ;;  %v2637_v62 = vshll.u32 %v9217_v13, 16  ;;  %v750_v18 = vmax.bf16 %v9653_v34, %v10909_v29 }
 0x1b1   : > { %v1139_v47 = vshrl.u32 %v787_v33, 16  ;;  %v1142_v7 = vshll.u32 %v787_v33, 16  ;;  %2166 = vrot.lane.b32.xlu1 %v2125_v52, %s9957_s28  ;;  %1323 = vst [vmem:[#allocation2 + $0x98] sm:$0x1] %v1322_v59  ;;  %v3919_v35 = vrot.slane %v9215_v60, 1  ;;  %v1130_v8 = vshrl.u32 %v786_v37, 16 }
 0x1b2   : > { %v1133_v39 = vshll.u32 %v786_v37, 16  ;;  %v753_v16 = vmax.bf16 %v9654_v57, %v618_v9  ;;  %v3533_v22 = vsel %vm1673_vm7, %v3528_v56, %v3532_v48  ;;  %v3920_v49 = vrot.slane %v9216_v61, 1  ;;  %v9655_v24 = vld [vmem:[%s10279_s22 + $0xe8] sm:$0xf]  ;;  %v9656_v27 = vld [vmem:[%s10279_s22 + $0xdc] sm:$0xf] }
 0x1b3   : > { %v10952_v63 = vrot.slane %v1139_v47, 7  ;;  %v2639_v21 = vrot.slane %v2637_v62, 1  ;;  %v1128_v46 = vrot.slane %v10927_v2, 4  ;;  %v1132_v29 = vrot.slane %v1130_v8, 7  ;;  %v10964_v38 = vpop.permute.xlu1 %623  ;;  %v9219_v43 = vld [vmem:[#allocation2 + $0x48] sm:$0xfe]  }
 0x1b4   : > { %v622_v40 = vpop.permute.xlu0 %621  ;;  %3674 = vrot.lane.b32.xlu0 %v3533_v22, %s9962_s16  ;;  %v752_v41 = vmax.bf16 %v9656_v27, %v10929_v14  ;;  %v2642_v2 = vshll.u32 %v9218_v54, 16  ;;  %v9220_v4 = vld [vmem:[#allocation2 + $0x50] ss:$0 sps:$4 sm:$0x11]   ;;  %v3921_v14 = vsel %vm2107_vm9, %v3919_v35, %v3920_v49  ;;  %v3022_v13 = vrot.slane %v9219_v43, 1  ;;  %v9231_v43 = vld [vmem:[#allocation2 + $0x54] sm:$0xff]  }
 0x1b5   : > { %v1144_v36 = vor.u32 %v1142_v7, %v10952_v63  ;;  %v755_v25 = vmax.bf16 %v9655_v24, %v622_v40  ;;  %2343 = vrot.lane.b32.xlu1 %v9214_v11, %s9958_s15  ;;  %v1145_v32 = vrot.slane %v10952_v63, 4  ;;  %v2640_v30 = vor.u32 %v2639_v21, %v2635_v51  ;;  %v9221_v37 = vld [vmem:[#allocation2 + $0x54] sm:$0xfe]   ;;  %v9222_v55 = vld [vmem:[#allocation2 + $0x5c] ss:$0 sps:$4 sm:$0x11]  }
 0x1b6   : > { %v1135_v19 = vor.u32 %v1133_v39, %v1132_v29  ;;  %v1137_v31 = vrot.slane %v1132_v29, 4  ;;  %v2644_v23 = vrot.slane %v2642_v2, 1  ;;  %v3023_v33 = vrot.slane %v9220_v4, 1  ;;  %v9657_v10 = vld [vmem:[%s10279_s22 + $0xf0] sm:$0xf]  ;;  %v9226_v7 = vld [vmem:[#allocation2 + $0x54] sm:$0xff]  }
 0x1b7   : > { %v1332_v28 = vsel %vm10608_vm6, %v1144_v36, %v1331_v45  ;;  %v789_v1 = vmax.bf16 %v755_v25, %v753_v16  ;;  %v788_v58 = vmax.bf16 %v752_v41, %v750_v18  ;;  %v3922_v51 = vrot.slane %v9221_v37, 1  ;;  %v1338_v53 = vld [vmem:[#allocation2 + $0xb4] sm:$0xf]  ;;  %v9223_v59 = vld [vmem:[#allocation2 + $0x48] sm:$0xfe]   ;;  %v10980_v45 = vpop.permute.xlu1 %627 }
 0x1b8   : > { %1333 = vst [vmem:[#allocation2 + $0xa8] sm:$0xf] %v1332_v28  ;;  %v626_v12 = vpop.permute.xlu0 %625  ;;  %3963 = vrot.lane.b32.xlu0 %v3921_v14, %s9963_s14  ;;  %v1136_v42 = vsel %vm10621_vm10, %v1128_v46, %v1135_v19  ;;  %v1329_v17 = vsel %vm10327_vm3, %v1137_v31, %v1328_v20  ;;  %v2645_v5 = vsel %vm1673_vm7, %v2640_v30, %v2644_v23  ;;  %v3923_v52 = vrot.slane %v9222_v55, 1  ;;  %v9224_v61 = vld [vmem:[#allocation2 + $0x50] ss:$0 sps:$4 sm:$0x11]  }
 0x1b9   : > { %1327 = vst.msk [vmem:[#allocation2 + $0xa0] sm:$0xf] %vm793_vm0, %v1136_v42  ;;  %1330 = vst [vmem:[#allocation2 + $0xa4] sm:$0x1] %v1329_v17  ;;  %v1156_v50 = vshrl.u32 %v789_v1, 16  ;;  %v1159_v9 = vshll.u32 %v789_v1, 16  ;;  %v757_v47 = vmax.bf16 %v9657_v10, %v626_v12  ;;  %2776 = vrot.lane.b32.xlu1 %v2645_v5, %s9961_s17  ;;  %v3024_v22 = vsel %vm2107_vm9, %v3022_v13, %v3023_v33 }
 0x1ba   : > { %v9658_v56 = vld [vmem:[%s10279_s22 + $0xe4] sm:$0xf]  ;;  %v9659_v34 = vld [vmem:[%s10279_s22 + $0xf8] sm:$0xf]  ;;  %v9660_v35 = vld [vmem:[%s10279_s22 + $0xec] sm:$0xf]  ;;  %v3924_v39 = vsel %vm2107_vm9, %v3922_v51, %v3923_v52 }
 0x1bb   : > { %v10982_v60 = vrot.slane %v1156_v50, 7  ;;  %v754_v62 = vmax.bf16 %v9658_v56, %v10940_v44  ;;  %v756_v8 = vmax.bf16 %v9660_v35, %v10964_v38  ;;  %v2126_v57 = vrot.slane %v9223_v59, 1  ;;  %v1335_v49 = vld [vmem:[#allocation2 + $0xb0] sm:$0x1]  ;;  %v9229_v44 = vld [vmem:[#allocation2 + $0x48] sm:$0xff]   ;;  %v9225_v21 = vld [vmem:[#allocation2 + $0x54] sm:$0xff]   ;;  %v632_v19 = vpop.permute.xlu1 %631 }
 0x1bc   : > { %v630_v48 = vpop.permute.xlu0 %629  ;;  %v1147_v16 = vshrl.u32 %v788_v58, 16  ;;  %v1150_v40 = vshll.u32 %v788_v58, 16  ;;  %3965 = vrot.lane.b32.xlu0 %v3924_v39, %s9963_s14  ;;  %v2127_v36 = vrot.slane %v9224_v61, 1  ;;  %v9227_v46 = vld [vmem:[#allocation2 + $0x5c] ss:$0 sps:$4 sm:$0x11]  }
 0x1bd   : > { %v759_v18 = vmax.bf16 %v9659_v34, %v630_v48  ;;  %v1161_v11 = vor.u32 %v1159_v9, %v10982_v60  ;;  %3065 = vrot.lane.b32.xlu1 %v3024_v22, %s9960_s12  ;;  %v3535_v27 = vshrl.u32 %v9226_v7, 16  ;;  %v3537_v41 = vshll.u32 %v9226_v7, 16  ;;  %v1345_v4 = vld [vmem:[#allocation2 + $0xc0] sm:$0xf]  ;;  %v9661_v14 = vld [vmem:[%s10279_s22 + $0xf4] sm:$0xf] }
 0x1be   : > { %v1149_v20 = vrot.slane %v1147_v16, 7  ;;  %v2128_v25 = vsel %vm2107_vm9, %v2126_v57, %v2127_v36  ;;  %v3542_v30 = vshll.u32 %v9227_v46, 16  ;;  %v790_v12 = vmax.bf16 %v756_v8, %v754_v62  ;;  %v9228_v33 = vld [vmem:[#allocation2 + $0x54] sm:$0xff]   ;;  %v9230_v55 = vld [vmem:[#allocation2 + $0x50] ss:$0 sps:$4 sm:$0x11]  }
 0x1bf   : > { %v791_v54 = vmax.bf16 %v759_v18, %v757_v47  ;;  %v1339_v24 = vsel %vm10608_vm6, %v1161_v11, %v1338_v53  ;;  %v3539_v31 = vrot.slane %v3537_v41, 1  ;;  %v758_v23 = vmax.bf16 %v9661_v14, %v10980_v45  ;;  %v9662_v63 = vld [vmem:[%s10279_s22 + $0xfc] sm:$0xf]  ;;  %v9232_v59 = vld [vmem:[#allocation2 + $0x5c] ss:$0 sps:$4 sm:$0x11]  }
 0x1c0   : > { %v1867_v29 = vpop.permute.xlu0 %1866  ;;  %1340 = vst [vmem:[#allocation2 + $0xb4] sm:$0xf] %v1339_v24  ;;  %v1152_v38 = vor.u32 %v1150_v40, %v1149_v20  ;;  %v1154_v28 = vrot.slane %v1149_v20, 4  ;;  %2168 = vrot.lane.b32.xlu0 %v2128_v25, %s9957_s28  ;;  %v3544_v17 = vrot.slane %v3542_v30, 1  ;;  %v1747_v50 = vshrl.u32 %v9229_v44, 16  ;;  %v9236_v34 = vld [vmem:[#allocation2 + $0x54] sm:$0xff]  }
 0x1c1   : > { %1915 = vst.msk [vmem:[#allocation3] sm:$0xff] %vm1914_vm12, %v1867_v29  ;;  %v1173_v2 = vshrl.u32 %v791_v54, 16  ;;  %v1176_v1 = vshll.u32 %v791_v54, 16  ;;  %3243 = vrot.lane.b32.xlu1 %v9225_v21, %s9959_s9  ;;  %v3540_v5 = vor.u32 %v3539_v31, %v3535_v27  ;;  %v1749_v9 = vshll.u32 %v9229_v44, 16  ;;  %v1342_v39 = vld [vmem:[#allocation2 + $0xbc] sm:$0x1] }
 0x1c2   : > { %v1153_v13 = vsel %vm10621_vm10, %v1145_v32, %v1152_v38  ;;  %v1336_v42 = vsel %vm10327_vm3, %v1154_v28, %v1335_v49  ;;  %v760_v10 = vmax.bf16 %v9662_v63, %v632_v19  ;;  %v1162_v32 = vrot.slane %v10982_v60, 4  ;;  %v9234_v16 = vld [vmem:[#allocation2 + $0x54] sm:$0xfe]   ;;  %v9235_v54 = vld [vmem:[#allocation2 + $0x5c] ss:$0 sps:$4 sm:$0x11]  }
 0x1c3   : > { %v11008_v37 = vrot.slane %v1173_v2, 7  ;;  %1334 = vst.msk [vmem:[#allocation2 + $0xac] sm:$0xf] %vm793_vm0, %v1153_v13  ;;  %1337 = vst [vmem:[#allocation2 + $0xb0] sm:$0x1] %v1336_v42  ;;  %v1754_v7 = vshll.u32 %v9230_v55, 16  ;;  %v3545_v52 = vsel %vm1673_vm7, %v3540_v5, %v3544_v17 }
 0x1c4   : > { %v2157_v58 = vpop.permute.xlu0 %2156  ;;  %v2647_v51 = vshrl.u32 %v9231_v43, 16  ;;  %2345 = vrot.lane.b32.xlu0 %v9228_v33, %s9958_s15  ;;  %v1751_v53 = vrot.slane %v1749_v9, 1  ;;  %v2649_v48 = vshll.u32 %v9231_v43, 16  ;;  %v1164_v45 = vshrl.u32 %v790_v12, 16  ;;  %v9241_v27 = vld [vmem:[#allocation2 + $0x60] sm:$0xff]   ;;  %s9967_s22 = smov 56  }
 0x1c5   : > { %2205 = vst.msk [vmem:[#allocation3] sm:$0xff] %vm2204_vm13, %v2157_v58  ;;  %v1178_v47 = vor.u32 %v1176_v1, %v11008_v37  ;;  %3676 = vrot.lane.b32.xlu1 %v3545_v52, %s9962_s16  ;;  %v1179_v61 = vrot.slane %v11008_v37, 4  ;;  %v1756_v60 = vrot.slane %v1754_v7, 1  ;;  %v1167_v62 = vshll.u32 %v790_v12, 16  ;;  %v9238_v2 = vld [vmem:[#allocation2 + $0x54] sm:$0xfe]  }
 0x1c6   : > { %v1752_v18 = vor.u32 %v1751_v53, %v1747_v50  ;;  %v2651_v35 = vrot.slane %v2649_v48, 1  ;;  %v2654_v8 = vshll.u32 %v9232_v59, 16  ;;  %v1166_v57 = vrot.slane %v1164_v45, 7  ;;  %v9237_v25 = vld [vmem:[#allocation2 + $0x5c] ss:$0 sps:$4 sm:$0x11]  }
 0x1c7   : > { %v1346_v56 = vsel %vm10608_vm6, %v1178_v47, %v1345_v4  ;;  %v792_v40 = vmax.bf16 %v760_v10, %v758_v23  ;;  %v3025_v44 = vrot.slane %v9234_v16, 1  ;;  %v1759_v21 = vshrl.u32 %v9236_v34, 16  ;;  %v9239_v43 = vld [vmem:[#allocation2 + $0x5c] ss:$0 sps:$4 sm:$0x11]   ;;  %v9240_v9 = vld [vmem:[#allocation2 + $0x60] sm:$0xff]  }
 0x1c8   : > { %1347 = vst [vmem:[#allocation2 + $0xc0] sm:$0xf] %v1346_v56  ;;  %v1757_v22 = vsel %vm1673_vm7, %v1752_v18, %v1756_v60  ;;  %v2652_v11 = vor.u32 %v2651_v35, %v2647_v51  ;;  %v2656_v36 = vrot.slane %v2654_v8, 1  ;;  %v1169_v49 = vor.u32 %v1167_v62, %v1166_v57  ;;  %v909_v1 = vld [vmem:[#allocation2 + $0xc8] sm:$0x1]  ;;  %v9243_v56 = vld [vmem:[#allocation2 + $0x60] sm:$0xff]  }
 0x1c9   : > { %1878 = vrot.lane.b32.xlu1 %v1757_v22, %s9956_s23  ;;  %v1171_v3 = vrot.slane %v1166_v57, 4  ;;  %v1761_v20 = vshll.u32 %v9236_v34, 16  ;;  %v3026_v24 = vrot.slane %v9235_v54, 1  ;;  %v1181_v28 = vshrl.u32 %v792_v40, 16  ;;  %v9244_v51 = vld [vmem:[#allocation2 + $0x60] sm:$0xfe]  }
 0x1ca   : > { %v2657_v46 = vsel %vm1673_vm7, %v2652_v11, %v2656_v36  ;;  %v1170_v29 = vsel %vm10621_vm10, %v1162_v32, %v1169_v49  ;;  %v1766_v30 = vshll.u32 %v9237_v25, 16  ;;  %v2334_v19 = vpop.permute.xlu0 %2333  ;;  %v2129_v14 = vrot.slane %v9238_v2, 1  ;;  %v9242_v58 = vld [vmem:[#allocation2 + $0x68] ss:$0 sps:$4 sm:$0x11]   ;;  %v9246_v62 = vld [vmem:[#allocation2 + $0x60] sm:$0xff]  }
 0x1cb   : > { %2778 = vrot.lane.b32.xlu0 %v2657_v46, %s9961_s17  ;;  %1341 = vst.msk [vmem:[#allocation2 + $0xb8] sm:$0xf] %vm793_vm0, %v1170_v29  ;;  %v1343_v41 = vsel %vm10327_vm3, %v1171_v3, %v1342_v39  ;;  %v1763_v38 = vrot.slane %v1761_v20, 1  ;;  %v3027_v31 = vsel %vm2107_vm9, %v3025_v44, %v3026_v24  ;;  %v2130_v23 = vrot.slane %v9239_v43, 1  ;;  %v9250_v46 = vld [vmem:[#allocation2 + $0x6c] sm:$0xfe]  }
 0x1cc   : > { %1344 = vst [vmem:[#allocation2 + $0xbc] sm:$0x1] %v1343_v41  ;;  %v1768_v12 = vrot.slane %v1766_v30, 1  ;;  %v910_v13 = vsel %vm10365_vm5, 0, %v909_v1  ;;  %v1183_v42 = vrot.slane %v1181_v28, 7  ;;  %v1184_v17 = vshll.u32 %v792_v40, 16 }
 0x1cd   : > { %v1764_v4 = vor.u32 %v1763_v38, %v1759_v21  ;;  %911 = vst [vmem:[#allocation2 + $0xc8] sm:$0x1] %v910_v13  ;;  %v3547_v33 = vshrl.u32 %v9241_v27, 16  ;;  %2382 = vst.msk [vmem:[#allocation3] sm:$0xff] %vm2381_vm14, %v2334_v19  ;;  %v3549_v5 = vshll.u32 %v9241_v27, 16  ;;  %v3554_v47 = vshll.u32 %v9242_v58, 16 }
 0x1ce   : > { %v1186_v63 = vor.u32 %v1184_v17, %v1183_v42  ;;  %v1188_v10 = vrot.slane %v1183_v42, 4  ;;  %v2131_v52 = vsel %vm2107_vm9, %v2129_v14, %v2130_v23  ;;  %v9245_v48 = vld [vmem:[#allocation2 + $0x68] ss:$0 sps:$4 sm:$0x11]   ;;  %v3925_v60 = vrot.slane %v9244_v51, 1  ;;  %v9255_v2 = vld [vmem:[#allocation2 + $0x6c] sm:$0xff]  }
 0x1cf   : > { %3067 = vrot.lane.b32.xlu0 %v3027_v31, %s9960_s12  ;;  %v1769_v55 = vsel %vm1673_vm7, %v1764_v4, %v1768_v12  ;;  %v3551_v32 = vrot.slane %v3549_v5, 1  ;;  %v3556_v59 = vrot.slane %v3554_v47, 1  ;;  %v9247_v35 = vld [vmem:[#allocation2 + $0x68] ss:$0 sps:$4 sm:$0x11]   ;;  %v2659_v39 = vshrl.u32 %v9246_v62, 16 }
 0x1d0   : > { %1880 = vrot.lane.b32.xlu1 %v1769_v55, %s9956_s23  ;;  %v1187_v7 = vsel %vm10621_vm10, %v1179_v61, %v1186_v63  ;;  %v3926_v61 = vrot.slane %v9245_v48, 1  ;;  %v2661_v57 = vshll.u32 %v9246_v62, 16  ;;  %v2666_v16 = vshll.u32 %v9247_v35, 16  ;;  %v9248_v40 = vld [vmem:[#allocation2 + $0x60] sm:$0xfe]   ;;  %v9254_v42 = vld [vmem:[#allocation2 + $0x6c] sm:$0xff]  }
 0x1d1   : > { %1348 = vst.msk [vmem:[#allocation2 + $0xc4] sm:$0xf] %vm793_vm0, %v1187_v7  ;;  %v3552_v53 = vor.u32 %v3551_v32, %v3547_v33  ;;  %v9249_v22 = vld [vmem:[#allocation2 + $0x68] ss:$0 sps:$4 sm:$0x11]   ;;  %v3028_v44 = vrot.slane %v9248_v40, 1 }
 0x1d2   : > { %v11036_v50 = vpop.permute.xlu0 %3233  ;;  %v3927_v36 = vsel %vm2107_vm9, %v3925_v60, %v3926_v61  ;;  %v2663_v49 = vrot.slane %v2661_v57, 1  ;;  %v2668_v3 = vrot.slane %v2666_v16, 1  ;;  %v3029_v21 = vrot.slane %v9249_v22, 1  ;;  %v9251_v29 = vld [vmem:[#allocation2 + $0x74] ss:$0 sps:$4 sm:$0x11]  }
 0x1d3   : > { %3245 = vrot.lane.b32.xlu0 %v9240_v9, %s9959_s9  ;;  %v11047_v34 = vpop.permute.xlu1 %2335  ;;  %v3557_v18 = vsel %vm1673_vm7, %v3552_v53, %v3556_v59  ;;  %vm3103_vm0 = vcmask 195744   ;;  %v3928_v27 = vrot.slane %v9250_v46, 1  ;;  %v3929_v41 = vrot.slane %v9251_v29, 1  ;;  %v9252_v38 = vld [vmem:[#allocation2 + $0x60] sm:$0xfe]   ;;  %v9260_v5 = vld [vmem:[#allocation2 + $0x6c] sm:$0xff]  }
 0x1d4   : > { %2170 = vrot.lane.b32.xlu1 %v2131_v52, %s9957_s28  ;;  %v1349_v37 = vld [vmem:[#allocation2 + $0xc8] sm:$0x1]  ;;  %v2664_v20 = vor.u32 %v2663_v49, %v2659_v39  ;;  %v2132_v19 = vrot.slane %v9252_v38, 1  ;;  %v9256_v4 = vld [vmem:[#allocation2 + $0x74] ss:$0 sps:$4 sm:$0x11]   ;;  %v3030_v12 = vsel %vm2107_vm9, %v3028_v44, %v3029_v21 }
 0x1d5   : > { %v1350_v8 = vsel %vm10327_vm3, %v1188_v10, %v1349_v37  ;;  %v9253_v30 = vld [vmem:[#allocation2 + $0x68] ss:$0 sps:$4 sm:$0x11]   ;;  %v3930_v43 = vsel %vm2107_vm9, %v3928_v27, %v3929_v41  ;;  %v3559_v14 = vshrl.u32 %v9255_v2, 16  ;;  %v3561_v23 = vshll.u32 %v9255_v2, 16  ;;  %v9258_v33 = vld [vmem:[#allocation2 + $0x60] sm:$0xff]  }
 0x1d6   : > { %v3056_v45 = vpop.permute.xlu0 %3055  ;;  %1351 = vst [vmem:[#allocation2 + $0xc8] sm:$0x1] %v1350_v8  ;;  %v2669_v25 = vsel %vm1673_vm7, %v2664_v20, %v2668_v3  ;;  %v2133_v31 = vrot.slane %v9253_v30, 1  ;;  %v3566_v17 = vshll.u32 %v9256_v4, 16  ;;  %vm3714_vm6 = vcmask 261344   ;;  %v9257_v63 = vld [vmem:[#allocation2 + $0x6c] sm:$0xff]  }
 0x1d7   : > { %3678 = vrot.lane.b32.xlu0 %v3557_v18, %s9962_s16  ;;  %v3563_v58 = vrot.slane %v3561_v23, 1  ;;  %v9259_v10 = vld [vmem:[#allocation2 + $0x68] ss:$0 sps:$4 sm:$0x11]   ;;  %v1771_v32 = vshrl.u32 %v9258_v33, 16  ;;  %v1773_v47 = vshll.u32 %v9258_v33, 16 }
 0x1d8   : > { %2347 = vrot.lane.b32.xlu1 %v9243_v56, %s9958_s15  ;;  %v2134_v55 = vsel %vm2107_vm9, %v2132_v19, %v2133_v31  ;;  %v3568_v9 = vrot.slane %v3566_v17, 1  ;;  %v1778_v59 = vshll.u32 %v9259_v10, 16  ;;  %v9261_v48 = vld [vmem:[#allocation2 + $0x74] ss:$0 sps:$4 sm:$0x11]   ;;  %v9262_v62 = vld [vmem:[#allocation2 + $0x6c] sm:$0xff]  }
 0x1d9   : > { %v3564_v51 = vor.u32 %v3563_v58, %v3559_v14  ;;  %v1775_v53 = vrot.slane %v1773_v47, 1  ;;  %v2678_v60 = vshll.u32 %v9261_v48, 16  ;;  %v9266_v37 = vld [vmem:[#allocation2 + $0xc] sm:$0xff]   ;;  %v9263_v39 = vld [vmem:[#allocation2 + $0x74] ss:$0 sps:$4 sm:$0x11]  }
 0x1da   : > { %v2767_v11 = vpop.permute.xlu0 %2766  ;;  %v1780_v56 = vrot.slane %v1778_v59, 1  ;;  %v1783_v16 = vshrl.u32 %v9262_v62, 16  ;;  %v1785_v40 = vshll.u32 %v9262_v62, 16  ;;  %1482 = vst.msk [vmem:[#allocation3 + $0x8] sm:$0xff] %vm1480_vm11, %v9266_v37  ;;  %v9264_v49 = vld [vmem:[#allocation2 + $0x6c] sm:$0xfe]  }
 0x1db   : > { %v11055_v54 = vpop.permute.xlu1 %3235  ;;  %3967 = vrot.lane.b32.xlu0 %v3927_v36, %s9963_s14  ;;  %2815 = vst.msk [vmem:[#allocation3] sm:$0xff] %vm2814_vm15, %v2767_v11  ;;  %v3569_v61 = vsel %vm1673_vm7, %v3564_v51, %v3568_v9  ;;  %v1776_v35 = vor.u32 %v1775_v53, %v1771_v32  ;;  %v2680_v57 = vrot.slane %v2678_v60, 1  ;;  %v1790_v36 = vshll.u32 %v9263_v39, 16  ;;  %v9265_v44 = vld [vmem:[#allocation2 + $0x74] ss:$0 sps:$4 sm:$0x11]  }
 0x1dc   : > { %3104 = vst.msk [vmem:[#allocation3] sm:$0xff] %vm3103_vm0, %v3056_v45  ;;  %2780 = vrot.lane.b32.xlu1 %v2669_v25, %s9961_s17  ;;  %v2673_v45 = vshll.u32 %v9260_v5, 16  ;;  %v1787_v3 = vrot.slane %v1785_v40, 1  ;;  %v3031_v29 = vrot.slane %v9264_v49, 1  ;;  %v3032_v25 = vrot.slane %v9265_v44, 1  ;;  %v9270_v41 = vld [vmem:[#allocation9] sm:$0xff]  }
 0x1dd   : > { %3282 = vst.msk [vmem:[#allocation3] sm:$0xff] %vm3281_vm1, %v11036_v50  ;;  %v2671_v50 = vshrl.u32 %v9260_v5, 16  ;;  %v1781_v21 = vsel %vm1673_vm7, %v1776_v35, %v1780_v56  ;;  %v1792_v46 = vrot.slane %v1790_v36, 1  ;;  %v9267_v27 = vld [vmem:[#allocation2 + $0x6c] sm:$0xfe]   ;;  %8937 = vmatprep.subr.bf16.mxu0 %v9270_v41  ;;  %v9272_v4 = vld [vmem:[#allocation2 + $0x78] sm:$0xff]  }
 0x1de   : > { %v3667_v24 = vpop.permute.xlu0 %3666  ;;  %v2675_v8 = vrot.slane %v2673_v45, 1  ;;  %v9268_v30 = vld [vmem:[#allocation2 + $0x74] ss:$0 sps:$4 sm:$0x11]   ;;  %v3033_v19 = vsel %vm2107_vm9, %v3031_v29, %v3032_v25  ;;  %8938 = vmatpush3.bf16.msra.mxu0 %v9270_v41  ;;  %v3571_v14 = vshrl.u32 %v9272_v4, 16  ;;  %v3573_v23 = vshll.u32 %v9272_v4, 16 }
 0x1df   : > { %v11061_v28 = vpop.permute.xlu1 %2158  ;;  %3969 = vrot.lane.b32.xlu0 %v3930_v43, %s9963_s14  ;;  %3715 = vst.msk [vmem:[#allocation3] sm:$0xff] %vm3714_vm6, %v3667_v24  ;;  %v1788_v24 = vor.u32 %v1787_v3, %v1783_v16  ;;  %v2135_v43 = vrot.slane %v9267_v27, 1  ;;  %v2136_v31 = vrot.slane %v9268_v30, 1  ;;  %v9276_v5 = vld [vmem:[#allocation2 + $0x80] ss:$0 sps:$4 sm:$0x11]  }
 0x1e0   : > { %3069 = vrot.lane.b32.xlu1 %v3030_v12, %s9960_s12  ;;  %v2676_v11 = vor.u32 %v2675_v8, %v2671_v50  ;;  %v9273_v12 = vld [vmem:[#allocation2 + $0x80] ss:$0 sps:$4 sm:$0x11]   ;;  %v9279_v32 = vld [vmem:[#allocation2 + $0x18] sm:$0xff]   ;;  %v2690_v51 = vshll.u32 %v9276_v5, 16  ;;  %v9289_v41 = vld [vmem:[#allocation2 + $0x84] sm:$0xff]  }
 0x1e1   : > { %v2137_v33 = vsel %vm2107_vm9, %v2135_v43, %v2136_v31  ;;  %v3578_v58 = vshll.u32 %v9273_v12, 16  ;;  %v9278_v59 = vld [vmem:[#allocation2 + $0x80] ss:$0 sps:$4 sm:$0x11]   ;;  %1483 = vst.msk [vmem:[#allocation3 + $0x10] sm:$0xff] %vm1480_vm11, %v9279_v32  ;;  %v9383_v15 = vld [vmem:[#allocation2 + $0xa8] sm:$0xff]  }
 0x1e2   : > { %v3956_v1 = vpop.permute.xlu0 %3955  ;;  %v2681_v20 = vsel %vm1673_vm7, %v2676_v11, %v2680_v57  ;;  %v2692_v45 = vrot.slane %v2690_v51, 1  ;;  %v3932_v62 = vrot.slane %v9278_v59, 1  ;;  %v9280_v37 = vld [vmem:[#allocation9 + $0x10] ss:$0 sps:$4 sm:$0x33]   ;;  %v9296_v59 = vld [vmem:[#allocation2 + $0x84] sm:$0xff]  }
 0x1e3   : > { %v11067_v13 = vpop.permute.xlu1 %3057  ;;  %2172 = vrot.lane.b32.xlu0 %v2134_v55, %s9957_s28  ;;  %4004 = vst.msk [vmem:[#allocation3] sm:$0xff] %vm4003_vm8, %v3956_v1  ;;  %v9269_v1 = vld [vmem:[#allocation2 + $0x78] sm:$0xff]   ;;  %v3575_v55 = vrot.slane %v3573_v23, 1  ;;  %v9282_v8 = vld [vmem:[#allocation2 + $0x80] ss:$0 sps:$4 sm:$0x11]  }
 0x1e4   : > { %3247 = vrot.lane.b32.xlu1 %v9254_v42, %s9959_s9  ;;  %v9281_v35 = vld [vmem:[#allocation2 + $0x78] sm:$0xfe]   ;;  %v4107_v39 = vsel %vm4105_vm2, %v9280_v37, 0  ;;  %v9283_v11 = vld [vmem:[#allocation2 + $0x84] sm:$0xfe]   ;;  %v3035_v36 = vrot.slane %v9282_v8, 1 }
 0x1e5   : > { %v3576_v47 = vor.u32 %v3575_v55, %v3571_v14  ;;  %v9284_v49 = vld [vmem:[#allocation2 + $0x8c] ss:$0 sps:$4 sm:$0x11]   ;;  %v3934_v44 = vrot.slane %v9283_v11, 1  ;;  %v9291_v14 = vld [vmem:[#allocation2 + $0x84] sm:$0xff]   ;;  %v9292_v23 = vld [vmem:[#allocation2 + $0x78] sm:$0xff]  }
 0x1e6   : > { %v11075_v7 = vpop.permute.xlu0 %3957  ;;  %v9288_v27 = vld [vmem:[#allocation2 + $0x80] ss:$0 sps:$4 sm:$0x11]   ;;  %v9290_v43 = vld [vmem:[#allocation2 + $0x8c] ss:$0 sps:$4 sm:$0x11]  }
 0x1e7   : > { %v1869_v52 = vpop.permute.xlu1 %1868  ;;  %2349 = vrot.lane.b32.xlu0 %v9257_v63, %s9958_s15  ;;  %v9271_v63 = vld [vmem:[#allocation2 + $0x78] sm:$0xff]   ;;  %v1795_v55 = vshrl.u32 %v9292_v23, 16  ;;  %v9298_v8 = vld [vmem:[#allocation2 + $0x84] sm:$0xfe]   ;;  %1495 = vst.msk [vmem:[#allocation3 + $0x70] sm:$0xff] %vm1480_vm11, %v9383_v15 }
 0x1e8   : > { %3680 = vrot.lane.b32.xlu1 %v3569_v61, %s9962_s16  ;;  %1916 = vst.msk [vmem:[#allocation3 + $0x8] sm:$0xff] %vm1914_vm12, %v1869_v52  ;;  %v9277_v52 = vld [vmem:[#allocation2 + $0x78] sm:$0xfe]   ;;  %v4474_v15 = vld [vmem:[#allocation4 + $0x38] sm:$0x1] }
 0x1e9   : > { %2206 = vst.msk [vmem:[#allocation3 + $0x8] sm:$0xff] %vm2204_vm13, %v11061_v28  ;;  %v3931_v56 = vrot.slane %v9277_v52, 1 }
 0x1ea   : > { %v11080_v18 = vpop.permute.xlu0 %2160  ;;  %2383 = vst.msk [vmem:[#allocation3 + $0x8] sm:$0xff] %vm2381_vm14, %v11047_v34  ;;  %v4020_v2 = vld [vmem:[#allocation3] sm:$0xff]  ;;  %v1793_v34 = vsel %vm1673_vm7, %v1788_v24, %v1792_v46 }
 0x1eb   : > { %v2769_v22 = vpop.permute.xlu1 %2768  ;;  %2782 = vrot.lane.b32.xlu0 %v2681_v20, %s9961_s17  ;;  %8943 = vmatprep.mubr.msk.bf16.mxu0 %vm4056_vm4, %v4020_v2  ;;  %v3933_v40 = vsel %vm2107_vm9, %v3931_v56, %v3932_v62  ;;  %v9287_v24 = vld [vmem:[#allocation2 + $0x78] sm:$0xfe]   ;;  %v2139_v2 = vrot.slane %v9288_v27, 1  ;;  %v1809_v62 = vshll.u32 %v9296_v59, 16  ;;  %v9304_v27 = vld [vmem:[#allocation2 + $0x90] sm:$0xff]  }
 0x1ec   : > { %1882 = vrot.lane.b32.xlu1 %v1781_v21, %s9956_s23  ;;  %2816 = vst.msk [vmem:[#allocation3 + $0x8] sm:$0xff] %vm2814_vm15, %v2769_v22  ;;  %v3034_v22 = vrot.slane %v9281_v35, 1  ;;  %v3935_v21 = vrot.slane %v9284_v49, 1  ;;  %v2138_v30 = vrot.slane %v9287_v24, 1 }
 0x1ed   : > { %3105 = vst.msk [vmem:[#allocation3 + $0x8] sm:$0xff] %vm3103_vm0, %v11067_v13  ;;  %v9275_v13 = vld [vmem:[#allocation2 + $0x78] sm:$0xff]  }
 0x1ee   : > { %v2338_v28 = vpop.permute.xlu0 %2337  ;;  %3283 = vst.msk [vmem:[#allocation3 + $0x8] sm:$0xff] %vm3281_vm1, %v11055_v54  ;;  %v9274_v54 = vld [vmem:[#allocation9 + $0x8] sm:$0xff]   ;;  %v2683_v9 = vshrl.u32 %v9275_v13, 16  ;;  %v2685_v10 = vshll.u32 %v9275_v13, 16  ;;  %v3036_v29 = vsel %vm2107_vm9, %v3034_v22, %v3035_v36  ;;  %v3936_v25 = vsel %vm2107_vm9, %v3934_v44, %v3935_v21  ;;  %v9300_v44 = vld [vmem:[#allocation2 + $0x84] sm:$0xfe]  }
 0x1ef   : > { %v3669_v38 = vpop.permute.xlu1 %3668  ;;  %3071 = vrot.lane.b32.xlu0 %v3033_v19, %s9960_s12  ;;  %8939 = vmatprep.subr.bf16.mxu0 %v9274_v54  ;;  %v3585_v19 = vshll.u32 %v9289_v41, 16  ;;  %v2140_v4 = vsel %vm2107_vm9, %v2138_v30, %v2139_v2  ;;  %v9293_v13 = vld [vmem:[#allocation2 + $0x80] ss:$0 sps:$4 sm:$0x11]   ;;  %v3037_v36 = vrot.slane %v9298_v8, 1  ;;  %v2141_v24 = vrot.slane %v9300_v44, 1 }
 0x1f0   : > { %3716 = vst.msk [vmem:[#allocation3 + $0x8] sm:$0xff] %vm3714_vm6, %v3669_v38  ;;  %1884 = vrot.lane.b32.xlu1 %v1793_v34, %s9956_s23  ;;  %8940 = vmatpush3.bf16.msra.mxu0 %v9274_v54  ;;  %v2687_v53 = vrot.slane %v2685_v10, 1  ;;  %v3583_v34 = vshrl.u32 %v9289_v41, 16  ;;  %v3590_v54 = vshll.u32 %v9290_v43, 16  ;;  %v1802_v5 = vshll.u32 %v9293_v13, 16  ;;  %v9306_v43 = vld [vmem:[#allocation2 + $0x90] sm:$0xff]  }
 0x1f1   : > { %4005 = vst.msk [vmem:[#allocation3 + $0x8] sm:$0xff] %vm4003_vm8, %v11075_v7  ;;  %v3580_v7 = vrot.slane %v3578_v58, 1  ;;  %9017 = vmatprep.subr.msk.bf16.mxu0 %vm4105_vm2, %v9280_v37  ;;  %v1797_v58 = vshll.u32 %v9292_v23, 16  ;;  %v9299_v22 = vld [vmem:[#allocation2 + $0x8c] ss:$0 sps:$4 sm:$0x11]  }
 0x1f2   : > { %v2688_v60 = vor.u32 %v2687_v53, %v2683_v9  ;;  %v9295_v9 = vld [vmem:[#allocation2 + $0x8c] ss:$0 sps:$4 sm:$0x11]   ;;  %v1804_v52 = vrot.slane %v1802_v5, 1  ;;  %v3595_v30 = vshrl.u32 %v9304_v27, 16  ;;  %v3597_v2 = vshll.u32 %v9304_v27, 16 }
 0x1f3   : > { %v1871_v42 = vpop.permute.xlu1 %1870  ;;  %3249 = vrot.lane.b32.xlu0 %v9269_v1, %s9959_s9  ;;  %v3581_v50 = vsel %vm1673_vm7, %v3576_v47, %v3580_v7  ;;  %v3587_v1 = vrot.slane %v3585_v19, 1  ;;  %v1799_v51 = vrot.slane %v1797_v58, 1  ;;  %v2702_v53 = vshll.u32 %v9295_v9, 16  ;;  %v9301_v21 = vld [vmem:[#allocation2 + $0x8c] ss:$0 sps:$4 sm:$0x11]  }
 0x1f4   : > { %2174 = vrot.lane.b32.xlu1 %v2137_v33, %s9957_s28  ;;  %1917 = vst.msk [vmem:[#allocation3 + $0x10] sm:$0xff] %vm1914_vm12, %v1871_v42  ;;  %v2693_v16 = vsel %vm1673_vm7, %v2688_v60, %v2692_v45  ;;  %8942 = vmatpush3.bf16.msra.mxu0 %v4107_v39  ;;  %v9294_v33 = vld [vmem:[#allocation2 + $0x84] sm:$0xff]   ;;  %v1807_v60 = vshrl.u32 %v9296_v59, 16  ;;  %v3599_v19 = vrot.slane %v3597_v2, 1  ;;  %vm12306_vm2 = vcmask 60416  }
 0x1f5   : > { %v2771_v17 = vpop.permute.xlu0 %2770  ;;  %2207 = vst.msk [vmem:[#allocation3 + $0x10] sm:$0xff] %vm2204_vm13, %v11080_v18  ;;  %v9285_v18 = vld [vmem:[#allocation2 + $0x24] sm:$0xff]   ;;  %v3588_v42 = vor.u32 %v3587_v1, %v3583_v34  ;;  %v2695_v32 = vshrl.u32 %v9294_v33, 16  ;;  %v2697_v47 = vshll.u32 %v9294_v33, 16  ;;  %v1800_v45 = vor.u32 %v1799_v51, %v1795_v55  ;;  %v9308_v55 = vld [vmem:[#allocation2 + $0x90] sm:$0xfe]  }
 0x1f6   : > { %2384 = vst.msk [vmem:[#allocation3 + $0x10] sm:$0xff] %vm2381_vm14, %v2338_v28  ;;  %v9286_v28 = vld [vmem:[#allocation2 + $0x84] sm:$0xff]   ;;  %v2704_v56 = vrot.slane %v2702_v53, 1  ;;  %v2707_v1 = vshrl.u32 %v9306_v43, 16 }
 0x1f7   : > { %3682 = vrot.lane.b32.xlu0 %v3581_v50, %s9962_s16  ;;  %2817 = vst.msk [vmem:[#allocation3 + $0x10] sm:$0xff] %vm2814_vm15, %v2771_v17  ;;  %v3592_v17 = vrot.slane %v3590_v54, 1  ;;  %v9297_v50 = vld [vmem:[#allocation2 + $0x8c] ss:$0 sps:$4 sm:$0x11]   ;;  %v9303_v54 = vld [vmem:[#allocation2 + $0x90] sm:$0xff]  }
 0x1f8   : > { %2351 = vrot.lane.b32.xlu1 %v9271_v63, %s9958_s15  ;;  %1484 = vst.msk [vmem:[#allocation3 + $0x18] sm:$0xff] %vm1480_vm11, %v9285_v18  ;;  %v4021_v20 = vld [vmem:[#allocation3 + $0x8] sm:$0xff]  ;;  %v1814_v35 = vshll.u32 %v9297_v50, 16  ;;  %v9309_v5 = vld [vmem:[#allocation2 + $0x98] ss:$0 sps:$4 sm:$0x11]  }
 0x1f9   : > { %v3060_v48 = vpop.permute.xlu0 %3059  ;;  %8944 = vmatmul.mubr.msk.bf16.vlgmr.msra.gmra.mrb[0].mxu0 %vm4056_vm4, %v4021_v20  ;;  %v3593_v10 = vsel %vm1673_vm7, %v3588_v42, %v3592_v17  ;;  %v3600_v42 = vor.u32 %v3599_v19, %v3595_v30  ;;  %v9312_v53 = vld [vmem:[#allocation2 + $0x98] ss:$0 sps:$4 sm:$0x11]   ;;  %4397 = vst.msk [vmem:[#allocation4] sm:$0xf] %vm12306_vm2, %v9954_v0 }
 0x1fa   : > { %3106 = vst.msk [vmem:[#allocation3 + $0x10] sm:$0xff] %vm3103_vm0, %v3060_v48  ;;  %v2699_v48 = vrot.slane %v2697_v47, 1  ;;  %v1816_v18 = vrot.slane %v1814_v35, 1  ;;  %v3938_v47 = vrot.slane %v9309_v5, 1 }
 0x1fb   : > { %v1873_v61 = vpop.permute.xlu1 %1872  ;;  %3971 = vrot.lane.b32.xlu0 %v3933_v40, %s9963_s14  ;;  %v1811_v40 = vrot.slane %v1809_v62, 1  ;;  %v9314_v62 = vld [vmem:[#allocation2 + $0xa4] ss:$0 sps:$4 sm:$0x11]   ;;  %4398 = vst.msk [vmem:[#allocation4 + $0x4] sm:$0xf] %vm12306_vm2, %v9954_v0 }
 0x1fc   : > { %2784 = vrot.lane.b32.xlu1 %v2693_v16, %s9961_s17  ;;  %1918 = vst.msk [vmem:[#allocation3 + $0x18] sm:$0xff] %vm1914_vm12, %v1873_v61  ;;  %v2700_v61 = vor.u32 %v2699_v48, %v2695_v32  ;;  %v1805_v16 = vsel %vm1673_vm7, %v1800_v45, %v1804_v52  ;;  %v9311_v52 = vld [vmem:[#allocation2 + $0x90] sm:$0xfe]   ;;  %v3041_v45 = vrot.slane %v9312_v53, 1  ;;  %v3941_v8 = vrot.slane %v9314_v62, 1 }
 0x1fd   : > { %v3238_v57 = vpop.permute.xlu0 %3237  ;;  %v1812_v49 = vor.u32 %v1811_v40, %v1807_v60  ;;  %v3040_v50 = vrot.slane %v9311_v52, 1  ;;  %v9317_v40 = vld [vmem:[#allocation2 + $0x90] sm:$0xfe]   ;;  %v9328_v53 = vld [vmem:[#allocation2 + $0x9c] sm:$0xfe]  }
 0x1fe   : > { %3284 = vst.msk [vmem:[#allocation3 + $0x10] sm:$0xff] %vm3281_vm1, %v3238_v57  ;;  %v2705_v11 = vsel %vm1673_vm7, %v2700_v61, %v2704_v56  ;;  %v9313_v56 = vld [vmem:[#allocation2 + $0x9c] sm:$0xfe]  }
 0x1ff   : > { %v2163_v3 = vpop.permute.xlu1 %2162  ;;  %3973 = vrot.lane.b32.xlu0 %v3936_v25, %s9963_s14  ;;  %v2142_v25 = vrot.slane %v9301_v21, 1  ;;  %v3940_v35 = vrot.slane %v9313_v56, 1  ;;  %v3043_v56 = vrot.slane %v9328_v53, 1  ;;  %v9330_v62 = vld [vmem:[#allocation2 + $0x9c] sm:$0xfe]  }
 0x200   : > { %2208 = vst.msk [vmem:[#allocation3 + $0x18] sm:$0xff] %vm2204_vm13, %v2163_v3  ;;  %3073 = vrot.lane.b32.xlu1 %v3036_v29, %s9960_s12  ;;  %v3038_v3 = vrot.slane %v9299_v22, 1  ;;  %v1817_v29 = vsel %vm1673_vm7, %v1812_v49, %v1816_v18  ;;  %v9318_v18 = vld [vmem:[#allocation2 + $0x98] ss:$0 sps:$4 sm:$0x11]   ;;  %v2144_v49 = vrot.slane %v9317_v40, 1 }
 0x201   : > { %v3671_v46 = vpop.permute.xlu0 %3670  ;;  %v2143_v34 = vsel %vm2107_vm9, %v2141_v24, %v2142_v25  ;;  %v3942_v22 = vsel %vm2107_vm9, %v3940_v35, %v3941_v8  ;;  %v2145_v21 = vrot.slane %v9318_v18, 1  ;;  %v9322_v24 = vld [vmem:[#allocation2 + $0x90] sm:$0xff]   ;;  %v9331_v35 = vld [vmem:[#allocation2 + $0xa4] ss:$0 sps:$4 sm:$0x11]   ;;  %v9336_v40 = vld [vmem:[#allocation2 + $0xa8] sm:$0xff]  }
 0x202   : > { %3717 = vst.msk [vmem:[#allocation3 + $0x10] sm:$0xff] %vm3714_vm6, %v3671_v46  ;;  %v3039_v41 = vsel %vm2107_vm9, %v3037_v36, %v3038_v3  ;;  %v9320_v3 = vld [vmem:[#allocation2 + $0xa4] ss:$0 sps:$4 sm:$0x11]   ;;  %v1819_v30 = vshrl.u32 %v9322_v24, 16  ;;  %v1821_v2 = vshll.u32 %v9322_v24, 16 }
 0x203   : > { %v2340_v38 = vpop.permute.xlu1 %2339  ;;  %2176 = vrot.lane.b32.xlu0 %v2140_v4, %s9957_s28  ;;  %v9307_v4 = vld [vmem:[#allocation2 + $0x98] ss:$0 sps:$4 sm:$0x11]   ;;  %v2146_v25 = vsel %vm2107_vm9, %v2144_v49, %v2145_v21  ;;  %4402 = vst.msk [vmem:[#allocation4 + $0xcc] sm:$0xf] %vm12306_vm2, %v9954_v0 }
 0x204   : > { %2385 = vst.msk [vmem:[#allocation3 + $0x18] sm:$0xff] %vm2381_vm14, %v2340_v38  ;;  %3251 = vrot.lane.b32.xlu1 %v9286_v28, %s9959_s9  ;;  %v9302_v38 = vld [vmem:[#allocation2 + $0x90] sm:$0xff]   ;;  %v9305_v28 = vld [vmem:[#allocation2 + $0x98] ss:$0 sps:$4 sm:$0x11]   ;;  %v2714_v33 = vshll.u32 %v9307_v4, 16 }
 0x205   : > { %v3960_v31 = vpop.permute.xlu0 %3959  ;;  %v9326_v4 = vld [vmem:[#allocation2 + $0x9c] sm:$0xff]   ;;  %4403 = vst.msk [vmem:[#allocation4 + $0xd0] sm:$0xf] %vm12306_vm2, %v9954_v0 }
 0x206   : > { %4006 = vst.msk [vmem:[#allocation3 + $0x10] sm:$0xff] %vm4003_vm8, %v3960_v31  ;;  %v3602_v31 = vshll.u32 %v9305_v28, 16  ;;  %v2716_v9 = vrot.slane %v2714_v33, 1  ;;  %v9321_v28 = vld [vmem:[#allocation2 + $0x9c] sm:$0xff]   ;;  %v1833_v5 = vshll.u32 %v9326_v4, 16 }
 0x207   : > { %v2773_v12 = vpop.permute.xlu1 %2772  ;;  %2353 = vrot.lane.b32.xlu0 %v9291_v14, %s9958_s15  ;;  %v9310_v14 = vld [vmem:[#allocation2 + $0x30] sm:$0xff]  }
 0x208   : > { %2818 = vst.msk [vmem:[#allocation3 + $0x18] sm:$0xff] %vm2814_vm15, %v2773_v12  ;;  %3684 = vrot.lane.b32.xlu1 %v3593_v10, %s9962_s16  ;;  %v2709_v12 = vshll.u32 %v9306_v43, 16  ;;  %v3604_v17 = vrot.slane %v3602_v31, 1  ;;  %v9324_v43 = vld [vmem:[#allocation2 + $0x9c] sm:$0xff]  }
 0x209   : > { %v3962_v63 = vpop.permute.xlu0 %3961  ;;  %1485 = vst.msk [vmem:[#allocation3 + $0x20] sm:$0xff] %vm1480_vm11, %v9310_v14  ;;  %v2721_v14 = vshll.u32 %v9324_v43, 16 }
 0x20a   : > { %v2711_v58 = vrot.slane %v2709_v12, 1  ;;  %v3605_v10 = vsel %vm1673_vm7, %v3600_v42, %v3604_v17  ;;  %v2719_v12 = vshrl.u32 %v9324_v43, 16  ;;  %v1831_v17 = vshrl.u32 %v9326_v4, 16 }
 0x20b   : > { %v3062_v7 = vpop.permute.xlu1 %3061  ;;  %2786 = vrot.lane.b32.xlu0 %v2705_v11, %s9961_s17  ;;  %v9316_v11 = vld [vmem:[#allocation2 + $0x9c] sm:$0xff]  }
 0x20c   : > { %3107 = vst.msk [vmem:[#allocation3 + $0x18] sm:$0xff] %vm3103_vm0, %v3062_v7  ;;  %1886 = vrot.lane.b32.xlu1 %v1805_v16, %s9956_s23  ;;  %v2712_v32 = vor.u32 %v2711_v58, %v2707_v1  ;;  %v9315_v7 = vld [vmem:[#allocation2 + $0x3c] sm:$0xff]   ;;  %v3042_v16 = vsel %vm2107_vm9, %v3040_v50, %v3041_v45  ;;  %v1823_v1 = vrot.slane %v1821_v2, 1 }
 0x20d   : > { %v2165_v37 = vpop.permute.xlu0 %2164  ;;  %v4022_v57 = vld [vmem:[#allocation3 + $0x10] sm:$0xff]  ;;  %1486 = vst.msk [vmem:[#allocation3 + $0x28] sm:$0xff] %vm1480_vm11, %v9315_v7 }
 0x20e   : > { %8947 = vmatprep.mubr.msk.bf16.mxu0 %vm4056_vm4, %v4022_v57  ;;  %v2717_v48 = vsel %vm1673_vm7, %v2712_v32, %v2716_v9  ;;  %v9319_v57 = vld [vmem:[#allocation2 + $0x9c] sm:$0xff]   ;;  %v1824_v33 = vor.u32 %v1823_v1, %v1819_v30  ;;  %v9327_v9 = vld [vmem:[#allocation2 + $0xa4] ss:$0 sps:$4 sm:$0x11]   ;;  %v9345_v30 = vld [vmem:[#allocation2 + $0x54] sm:$0xff]  }
 0x20f   : > { %v3240_v39 = vpop.permute.xlu1 %3239  ;;  %3075 = vrot.lane.b32.xlu0 %v3039_v41, %s9960_s12  ;;  %v3607_v36 = vshrl.u32 %v9319_v57, 16  ;;  %v9323_v41 = vld [vmem:[#allocation2 + $0x98] ss:$0 sps:$4 sm:$0x11]   ;;  %v1838_v52 = vshll.u32 %v9327_v9, 16  ;;  %1488 = vst.msk [vmem:[#allocation3 + $0x38] sm:$0xff] %vm1480_vm11, %v9345_v30 }
 0x210   : > { %3285 = vst.msk [vmem:[#allocation3 + $0x18] sm:$0xff] %vm3281_vm1, %v3240_v39  ;;  %1888 = vrot.lane.b32.xlu1 %v1817_v29, %s9956_s23  ;;  %v3614_v29 = vshll.u32 %v9320_v3, 16  ;;  %v1826_v31 = vshll.u32 %v9323_v41, 16  ;;  %v2731_v3 = vshrl.u32 %v9336_v40, 16 }
 0x211   : > { %v2342_v46 = vpop.permute.xlu0 %2341  ;;  %v1840_v45 = vrot.slane %v1838_v52, 1  ;;  %v9339_v1 = vld [vmem:[#allocation2 + $0xb0] ss:$0 sps:$4 sm:$0x11]  }
 0x212   : > { %v1828_v42 = vrot.slane %v1826_v31, 1 }
 0x213   : > { %v3673_v20 = vpop.permute.xlu1 %3672  ;;  %3253 = vrot.lane.b32.xlu0 %v9302_v38, %s9959_s9  ;;  %v3616_v38 = vrot.slane %v3614_v29, 1 }
 0x214   : > { %3718 = vst.msk [vmem:[#allocation3 + $0x18] sm:$0xff] %vm3714_vm6, %v3673_v20  ;;  %2178 = vrot.lane.b32.xlu1 %v2143_v34, %s9957_s28  ;;  %v3609_v20 = vshll.u32 %v9319_v57, 16 }
 0x215   : > { %4007 = vst.msk [vmem:[#allocation3 + $0x18] sm:$0xff] %vm4003_vm8, %v3962_v63  ;;  %v3937_v63 = vrot.slane %v9308_v55, 1  ;;  %v2723_v55 = vrot.slane %v2721_v14, 1 }
 0x216   : > { %v3611_v27 = vrot.slane %v3609_v20, 1 }
 0x217   : > { %v1875_v23 = vpop.permute.xlu1 %1874  ;;  %3686 = vrot.lane.b32.xlu0 %v3605_v10, %s9962_s16  ;;  %v3939_v60 = vsel %vm2107_vm9, %v3937_v63, %v3938_v47  ;;  %v2724_v10 = vor.u32 %v2723_v55, %v2719_v12  ;;  %v1835_v47 = vrot.slane %v1833_v5, 1  ;;  %v9349_v5 = vld [vmem:[#allocation2 + $0xb4] sm:$0xff]  }
 0x218   : > { %1919 = vst.msk [vmem:[#allocation3 + $0x20] sm:$0xff] %vm1914_vm12, %v1875_v23  ;;  %2355 = vrot.lane.b32.xlu1 %v9303_v54, %s9958_s15  ;;  %v3612_v19 = vor.u32 %v3611_v27, %v3607_v36  ;;  %v9325_v54 = vld [vmem:[#allocation2 + $0xa4] ss:$0 sps:$4 sm:$0x11]   ;;  %v9332_v36 = vld [vmem:[#allocation2 + $0xa8] sm:$0xff]  }
 0x219   : > { %2209 = vst.msk [vmem:[#allocation3 + $0x20] sm:$0xff] %vm2204_vm13, %v2165_v37  ;;  %v2726_v58 = vshll.u32 %v9325_v54, 16  ;;  %v1836_v50 = vor.u32 %v1835_v47, %v1831_v17  ;;  %v9333_v27 = vld [vmem:[#allocation2 + $0xa8] sm:$0xff]   ;;  %v9342_v17 = vld [vmem:[#allocation2 + $0xb0] ss:$0 sps:$4 sm:$0x11]  }
 0x21a   : > { %v2775_v13 = vpop.permute.xlu0 %2774  ;;  %2386 = vst.msk [vmem:[#allocation3 + $0x20] sm:$0xff] %vm2381_vm14, %v2342_v46 }
 0x21b   : > { %2819 = vst.msk [vmem:[#allocation3 + $0x20] sm:$0xff] %vm2814_vm15, %v2775_v13  ;;  %3975 = vrot.lane.b32.xlu0 %v3939_v60, %s9963_s14  ;;  %v3617_v13 = vsel %vm1673_vm7, %v3612_v19, %v3616_v38  ;;  %v2728_v32 = vrot.slane %v2726_v58, 1  ;;  %v1841_v57 = vsel %vm1673_vm7, %v1836_v50, %v1840_v45  ;;  %v9337_v38 = vld [vmem:[#allocation2 + $0xb0] ss:$0 sps:$4 sm:$0x11]   ;;  %v9346_v50 = vld [vmem:[#allocation2 + $0xb4] sm:$0xff]  }
 0x21c   : > { %2788 = vrot.lane.b32.xlu1 %v2717_v48, %s9961_s17  ;;  %v4023_v37 = vld [vmem:[#allocation3 + $0x18] sm:$0xff]  ;;  %v9338_v19 = vld [vmem:[#allocation2 + $0xa8] sm:$0xfe]  }
 0x21d   : > { %8948 = vmatmul.mubr.msk.bf16.gmra.mrb[4].mxu0 %vm4056_vm4, %v4023_v37  ;;  %v2729_v48 = vsel %vm1673_vm7, %v2724_v10, %v2728_v32  ;;  %v3943_v14 = vrot.slane %v9338_v19, 1  ;;  %v9343_v10 = vld [vmem:[#allocation2 + $0xb4] sm:$0xfe]   ;;  %v9344_v32 = vld [vmem:[#allocation2 + $0xbc] ss:$0 sps:$4 sm:$0x11]  }
 0x21e   : > { %v3064_v51 = vpop.permute.xlu0 %3063  ;;  %v9348_v45 = vld [vmem:[#allocation2 + $0xb0] ss:$0 sps:$4 sm:$0x11]  }
 0x21f   : > { %v1877_v59 = vpop.permute.xlu1 %1876  ;;  %3108 = vst.msk [vmem:[#allocation3 + $0x20] sm:$0xff] %vm3103_vm0, %v3064_v51  ;;  %3977 = vrot.lane.b32.xlu0 %v3942_v22, %s9963_s14  ;;  %v1829_v51 = vsel %vm1673_vm7, %v1824_v33, %v1828_v42  ;;  %v9341_v42 = vld [vmem:[#allocation2 + $0xa8] sm:$0xfe]  }
 0x220   : > { %1920 = vst.msk [vmem:[#allocation3 + $0x28] sm:$0xff] %vm1914_vm12, %v1877_v59  ;;  %3077 = vrot.lane.b32.xlu1 %v3042_v16, %s9960_s12  ;;  %v9329_v59 = vld [vmem:[#allocation2 + $0xa4] ss:$0 sps:$4 sm:$0x11]   ;;  %v2147_v16 = vrot.slane %v9330_v62, 1  ;;  %v3046_v55 = vrot.slane %v9341_v42, 1 }
 0x221   : > { %v3044_v60 = vrot.slane %v9329_v59, 1  ;;  %v9347_v59 = vld [vmem:[#allocation2 + $0xa8] sm:$0xfe]  }
 0x222   : > { %v3242_v61 = vpop.permute.xlu0 %3241  ;;  %v2150_v62 = vrot.slane %v9347_v59, 1 }
 0x223   : > { %3286 = vst.msk [vmem:[#allocation3 + $0x20] sm:$0xff] %vm3281_vm1, %v3242_v61  ;;  %v2167_v39 = vpop.permute.xlu1 %2166  ;;  %2180 = vrot.lane.b32.xlu0 %v2146_v25, %s9957_s28  ;;  %v3045_v22 = vsel %vm2107_vm9, %v3043_v56, %v3044_v60  ;;  %v9340_v25 = vld [vmem:[#allocation2 + $0x48] sm:$0xff]   ;;  %v3631_v60 = vshrl.u32 %v9349_v5, 16 }
 0x224   : > { %2210 = vst.msk [vmem:[#allocation3 + $0x28] sm:$0xff] %vm2204_vm13, %v2167_v39  ;;  %3255 = vrot.lane.b32.xlu1 %v9316_v11, %s9959_s9  ;;  %v9334_v39 = vld [vmem:[#allocation2 + $0xa8] sm:$0xff]   ;;  %v2148_v11 = vrot.slane %v9331_v35, 1 }
 0x225   : > { %v3619_v18 = vshrl.u32 %v9334_v39, 16  ;;  %v3621_v49 = vshll.u32 %v9334_v39, 16  ;;  %1487 = vst.msk [vmem:[#allocation3 + $0x30] sm:$0xff] %vm1480_vm11, %v9340_v25 }
 0x226   : > { %v3675_v44 = vpop.permute.xlu0 %3674  ;;  %v2149_v29 = vsel %vm2107_vm9, %v2147_v16, %v2148_v11  ;;  %v9354_v11 = vld [vmem:[#allocation2 + $0xb4] sm:$0xff]  }
 0x227   : > { %v2344_v46 = vpop.permute.xlu1 %2343  ;;  %3719 = vst.msk [vmem:[#allocation3 + $0x20] sm:$0xff] %vm3714_vm6, %v3675_v44  ;;  %2357 = vrot.lane.b32.xlu0 %v9321_v28, %s9958_s15  ;;  %v9335_v44 = vld [vmem:[#allocation2 + $0xb0] ss:$0 sps:$4 sm:$0x11]   ;;  %v3623_v24 = vrot.slane %v3621_v49, 1 }
 0x228   : > { %2387 = vst.msk [vmem:[#allocation3 + $0x28] sm:$0xff] %vm2381_vm14, %v2344_v46  ;;  %3688 = vrot.lane.b32.xlu1 %v3617_v13, %s9962_s16  ;;  %v2733_v46 = vshll.u32 %v9336_v40, 16  ;;  %v3626_v41 = vshll.u32 %v9335_v44, 16  ;;  %v3944_v13 = vrot.slane %v9339_v1, 1 }
 0x229   : > { %v3624_v2 = vor.u32 %v3623_v24, %v3619_v18  ;;  %v9353_v49 = vld [vmem:[#allocation2 + $0xb0] ss:$0 sps:$4 sm:$0x11]  }
 0x22a   : > { %v3964_v34 = vpop.permute.xlu0 %3963  ;;  %v2735_v28 = vrot.slane %v2733_v46, 1  ;;  %v3628_v43 = vrot.slane %v3626_v41, 1  ;;  %v3945_v9 = vsel %vm2107_vm9, %v3943_v14, %v3944_v13  ;;  %v1850_v25 = vshll.u32 %v9353_v49, 16 }
 0x22b   : > { %4008 = vst.msk [vmem:[#allocation3 + $0x20] sm:$0xff] %vm4003_vm8, %v3964_v34  ;;  %v2777_v23 = vpop.permute.xlu1 %2776  ;;  %2790 = vrot.lane.b32.xlu0 %v2729_v48, %s9961_s17  ;;  %v2738_v34 = vshll.u32 %v9337_v38, 16 }
 0x22c   : > { %2820 = vst.msk [vmem:[#allocation3 + $0x28] sm:$0xff] %vm2814_vm15, %v2777_v23  ;;  %1890 = vrot.lane.b32.xlu1 %v1829_v51, %s9956_s23  ;;  %v2736_v4 = vor.u32 %v2735_v28, %v2731_v3  ;;  %v3629_v54 = vsel %vm1673_vm7, %v3624_v2, %v3628_v43  ;;  %v3947_v51 = vrot.slane %v9344_v32, 1  ;;  %v9355_v28 = vld [vmem:[#allocation2 + $0xbc] ss:$0 sps:$4 sm:$0x11]  }
 0x22d   : > { %v2740_v12 = vrot.slane %v2738_v34, 1  ;;  %v1852_v34 = vrot.slane %v1850_v25, 1 }
 0x22e   : > { %v3966_v63 = vpop.permute.xlu0 %3965 }
 0x22f   : > { %v3066_v7 = vpop.permute.xlu1 %3065  ;;  %3079 = vrot.lane.b32.xlu0 %v3045_v22, %s9960_s12  ;;  %v2741_v33 = vsel %vm1673_vm7, %v2736_v4, %v2740_v12  ;;  %v9357_v4 = vld [vmem:[#allocation2 + $0xbc] ss:$0 sps:$4 sm:$0x11]  }
 0x230   : > { %3109 = vst.msk [vmem:[#allocation3 + $0x28] sm:$0xff] %vm3103_vm0, %v3066_v7  ;;  %1892 = vrot.lane.b32.xlu1 %v1841_v57, %s9956_s23  ;;  %v3946_v7 = vrot.slane %v9343_v10, 1  ;;  %v9352_v57 = vld [vmem:[#allocation2 + $0xa8] sm:$0xff]   ;;  %v1862_v42 = vshll.u32 %v9357_v4, 16 }
 0x231   : > { %v1843_v3 = vshrl.u32 %v9352_v57, 16  ;;  %v1845_v44 = vshll.u32 %v9352_v57, 16  ;;  %v856_v4 = vld [vmem:[#allocation2 + $0xcc] sm:$0x1] }
 0x232   : > { %v2169_v37 = vpop.permute.xlu0 %2168  ;;  %v4024_v61 = vld [vmem:[#allocation3 + $0x20] sm:$0xff]  ;;  %v3948_v48 = vsel %vm2107_vm9, %v3946_v7, %v3947_v51 }
 0x233   : > { %v3244_v8 = vpop.permute.xlu1 %3243  ;;  %8951 = vmatprep.mubr.msk.bf16.mxu0 %vm4056_vm4, %v4024_v61  ;;  %3257 = vrot.lane.b32.xlu0 %v9332_v36, %s9959_s9  ;;  %v2151_v61 = vrot.slane %v9348_v45, 1  ;;  %v9351_v36 = vld [vmem:[#allocation2 + $0xb4] sm:$0xff]   ;;  %v1847_v24 = vrot.slane %v1845_v44, 1  ;;  %v9362_v45 = vld [vmem:[#allocation2 + $0xc0] sm:$0xff]  }
 0x234   : > { %3287 = vst.msk [vmem:[#allocation3 + $0x28] sm:$0xff] %vm3281_vm1, %v3244_v8  ;;  %2182 = vrot.lane.b32.xlu1 %v2149_v29, %s9957_s28  ;;  %v9350_v8 = vld [vmem:[#allocation2 + $0xbc] ss:$0 sps:$4 sm:$0x11]   ;;  %v2743_v29 = vshrl.u32 %v9354_v11, 16 }
 0x235   : > { %v2152_v16 = vsel %vm2107_vm9, %v2150_v62, %v2151_v61  ;;  %v3638_v40 = vshll.u32 %v9350_v8, 16  ;;  %v1848_v43 = vor.u32 %v1847_v24, %v1843_v3  ;;  %v9366_v61 = vld [vmem:[#allocation2 + $0xc0] sm:$0xff]  }
 0x236   : > { %v2346_v20 = vpop.permute.xlu0 %2345  ;;  %v9363_v8 = vld [vmem:[#allocation2 + $0xc0] sm:$0xff]  }
 0x237   : > { %v3677_v21 = vpop.permute.xlu1 %3676  ;;  %3690 = vrot.lane.b32.xlu0 %v3629_v54, %s9962_s16  ;;  %v1853_v14 = vsel %vm1673_vm7, %v1848_v43, %v1852_v34  ;;  %v9372_v43 = vld [vmem:[#allocation2 + $0xc8] ss:$0 sps:$4 sm:$0x11]   ;;  %v9379_v34 = vld [vmem:[#allocation2 + $0x78] sm:$0xff]  }
 0x238   : > { %3720 = vst.msk [vmem:[#allocation3 + $0x28] sm:$0xff] %vm3714_vm6, %v3677_v21  ;;  %2359 = vrot.lane.b32.xlu1 %v9333_v27, %s9958_s15  ;;  %v9356_v21 = vld [vmem:[#allocation2 + $0xb4] sm:$0xff]   ;;  %v2745_v27 = vshll.u32 %v9354_v11, 16  ;;  %v2757_v11 = vshll.u32 %v9366_v61, 16 }
 0x239   : > { %4009 = vst.msk [vmem:[#allocation3 + $0x28] sm:$0xff] %vm4003_vm8, %v3966_v63  ;;  %v3047_v63 = vrot.slane %v9342_v17, 1  ;;  %v1855_v41 = vshrl.u32 %v9356_v21, 16  ;;  %v1857_v2 = vshll.u32 %v9356_v21, 16  ;;  %v9358_v17 = vld [vmem:[#allocation2 + $0xb4] sm:$0xfe]  }
 0x23a   : > { %v2747_v19 = vrot.slane %v2745_v27, 1  ;;  %v9368_v21 = vld [vmem:[#allocation2 + $0xc0] sm:$0xfe]   ;;  %1491 = vst.msk [vmem:[#allocation3 + $0x50] sm:$0xff] %vm1480_vm11, %v9379_v34 }
 0x23b   : > { %v1879_v31 = vpop.permute.xlu1 %1878  ;;  %3979 = vrot.lane.b32.xlu0 %v3945_v9, %s9963_s14  ;;  %v3048_v53 = vsel %vm2107_vm9, %v3046_v55, %v3047_v63  ;;  %v1859_v1 = vrot.slane %v1857_v2, 1  ;;  %v3049_v9 = vrot.slane %v9358_v17, 1  ;;  %v9360_v63 = vld [vmem:[#allocation2 + $0xb4] sm:$0xfe]   ;;  %v3949_v24 = vrot.slane %v9368_v21, 1 }
 0x23c   : > { %1921 = vst.msk [vmem:[#allocation3 + $0x30] sm:$0xff] %vm1914_vm12, %v1879_v31  ;;  %2792 = vrot.lane.b32.xlu1 %v2741_v33, %s9961_s17  ;;  %v2750_v31 = vshll.u32 %v9355_v28, 16  ;;  %v2748_v54 = vor.u32 %v2747_v19, %v2743_v29  ;;  %v9359_v33 = vld [vmem:[#allocation2 + $0xbc] ss:$0 sps:$4 sm:$0x11]   ;;  %v2153_v51 = vrot.slane %v9360_v63, 1 }
 0x23d   : > { %2211 = vst.msk [vmem:[#allocation3 + $0x30] sm:$0xff] %vm2204_vm13, %v2169_v37  ;;  %v2779_v23 = vpop.permute.xlu0 %2778  ;;  %v3633_v37 = vshll.u32 %v9349_v5, 16  ;;  %v1860_v13 = vor.u32 %v1859_v1, %v1855_v41  ;;  %v1864_v5 = vrot.slane %v1862_v42, 1  ;;  %v3050_v10 = vrot.slane %v9359_v33, 1  ;;  %v9373_v28 = vld [vmem:[#allocation2 + $0x6c] sm:$0xff]   ;;  %v9380_v1 = vld [vmem:[#allocation2 + $0x84] sm:$0xff]  }
 0x23e   : > { %2388 = vst.msk [vmem:[#allocation3 + $0x30] sm:$0xff] %vm2381_vm14, %v2346_v20  ;;  %v3640_v20 = vrot.slane %v3638_v40, 1  ;;  %v9367_v40 = vld [vmem:[#allocation2 + $0xc8] ss:$0 sps:$4 sm:$0x11]   ;;  %v9381_v42 = vld [vmem:[#allocation2 + $0x90] sm:$0xff]  }
 0x23f   : > { %2821 = vst.msk [vmem:[#allocation3 + $0x30] sm:$0xff] %vm2814_vm15, %v2779_v23  ;;  %3981 = vrot.lane.b32.xlu0 %v3948_v48, %s9963_s14  ;;  %v3635_v39 = vrot.slane %v3633_v37, 1  ;;  %v2752_v23 = vrot.slane %v2750_v31, 1  ;;  %v1865_v7 = vsel %vm1673_vm7, %v1860_v13, %v1864_v5  ;;  %v9364_v48 = vld [vmem:[#allocation2 + $0xc0] sm:$0xff]   ;;  %v2762_v44 = vshll.u32 %v9367_v40, 16  ;;  %v9384_v63 = vld [vmem:[#allocation2 + $0xb4] sm:$0xff]  }
 0x240   : > { %v4025_v58 = vld [vmem:[#allocation3 + $0x28] sm:$0xff]  ;;  %3081 = vrot.lane.b32.xlu1 %v3048_v53, %s9960_s12  ;;  %v3643_v62 = vshrl.u32 %v9364_v48, 16  ;;  %v3645_v37 = vshll.u32 %v9364_v48, 16  ;;  %1490 = vst.msk [vmem:[#allocation3 + $0x48] sm:$0xff] %vm1480_vm11, %v9373_v28  ;;  %1492 = vst.msk [vmem:[#allocation3 + $0x58] sm:$0xff] %vm1480_vm11, %v9380_v1 }
 0x241   : > { %v3068_v47 = vpop.permute.xlu0 %3067  ;;  %8952 = vmatmul.mubr.msk.bf16.gmra.mrb[8].mxu0 %vm4056_vm4, %v4025_v58  ;;  %v3636_v18 = vor.u32 %v3635_v39, %v3631_v60  ;;  %v2753_v58 = vsel %vm1673_vm7, %v2748_v54, %v2752_v23  ;;  %v9365_v60 = vld [vmem:[#allocation2 + $0xc8] ss:$0 sps:$4 sm:$0x11]   ;;  %v2764_v29 = vrot.slane %v2762_v44, 1  ;;  %v3053_v54 = vrot.slane %v9372_v43, 1  ;;  %v9382_v33 = vld [vmem:[#allocation2 + $0x9c] sm:$0xff]  }
 0x242   : > { %3110 = vst.msk [vmem:[#allocation3 + $0x30] sm:$0xff] %vm3103_vm0, %v3068_v47  ;;  %v1881_v52 = vpop.permute.xlu1 %1880  ;;  %v9361_v47 = vld [vmem:[#allocation2 + $0xbc] ss:$0 sps:$4 sm:$0x11]   ;;  %v3647_v39 = vrot.slane %v3645_v37, 1  ;;  %v3650_v57 = vshll.u32 %v9365_v60, 16 }
 0x243   : > { %1922 = vst.msk [vmem:[#allocation3 + $0x38] sm:$0xff] %vm1914_vm12, %v1881_v52  ;;  %2184 = vrot.lane.b32.xlu0 %v2152_v16, %s9957_s28  ;;  %v3641_v38 = vsel %vm1673_vm7, %v3636_v18, %v3640_v20  ;;  %v2154_v53 = vrot.slane %v9361_v47, 1  ;;  %v9370_v18 = vld [vmem:[#allocation2 + $0x60] sm:$0xff]   ;;  %v2759_v20 = vrot.slane %v2757_v11, 1  ;;  %v4413_v47 = vld [vmem:[#allocation4 + $0x18] sm:$0x1] }
 0x244   : > { %3259 = vrot.lane.b32.xlu1 %v9346_v50, %s9959_s9  ;;  %v3051_v50 = vsel %vm2107_vm9, %v3049_v9, %v3050_v10  ;;  %v3652_v49 = vrot.slane %v3650_v57, 1  ;;  %1489 = vst.msk [vmem:[#allocation3 + $0x40] sm:$0xff] %vm1480_vm11, %v9370_v18  ;;  %1493 = vst.msk [vmem:[#allocation3 + $0x60] sm:$0xff] %vm1480_vm11, %v9381_v42  ;;  %v9377_v10 = vld [vmem:[#allocation2 + $0xcc] sm:$0xfe]  }
 0x245   : > { %v3246_v56 = vpop.permute.xlu0 %3245  ;;  %1494 = vst.msk [vmem:[#allocation3 + $0x68] sm:$0xff] %vm1480_vm11, %v9382_v33  ;;  %1496 = vst.msk [vmem:[#allocation3 + $0x78] sm:$0xff] %vm1480_vm11, %v9384_v63  ;;  %v3952_v60 = vrot.slane %v9377_v10, 1  ;;  %vm12338_vm11 = vsmask.f32 7938 }
 0x246   : > { %3288 = vst.msk [vmem:[#allocation3 + $0x30] sm:$0xff] %vm3281_vm1, %v3246_v56  ;;  %v2171_v35 = vpop.permute.xlu1 %2170 }
 0x247   : > { %2212 = vst.msk [vmem:[#allocation3 + $0x38] sm:$0xff] %vm2204_vm13, %v2171_v35  ;;  %2361 = vrot.lane.b32.xlu0 %v9351_v36, %s9958_s15  ;;  %v2155_v35 = vsel %vm2107_vm9, %v2153_v51, %v2154_v53  ;;  %v3648_v36 = vor.u32 %v3647_v39, %v3643_v62  ;;  %v4410_v62 = vld [vmem:[#allocation4 + $0xc] sm:$0x1]  ;;  %v4465_v39 = vld [vmem:[#allocation4 + $0x14] sm:$0x1] }
 0x248   : > { %3692 = vrot.lane.b32.xlu1 %v3641_v38, %s9962_s16  ;;  %v9371_v38 = vld [vmem:[#allocation2 + $0xc0] sm:$0xfe]  }
 0x249   : > { %v3679_v22 = vpop.permute.xlu0 %3678  ;;  %v3653_v25 = vsel %vm1673_vm7, %v3648_v36, %v3652_v49  ;;  %v3052_v31 = vrot.slane %v9371_v38, 1  ;;  %v4419_v38 = vld [vmem:[#allocation4 + $0x30] sm:$0x1] }
 0x24a   : > { %3721 = vst.msk [vmem:[#allocation3 + $0x30] sm:$0xff] %vm3714_vm6, %v3679_v22  ;;  %v2348_v46 = vpop.permute.xlu1 %2347  ;;  %v2755_v22 = vshrl.u32 %v9366_v61, 16 }
 0x24b   : > { %2389 = vst.msk [vmem:[#allocation3 + $0x38] sm:$0xff] %vm2381_vm14, %v2348_v46  ;;  %2794 = vrot.lane.b32.xlu0 %v2753_v58, %s9961_s17  ;;  %v9369_v46 = vld [vmem:[#allocation2 + $0xc8] ss:$0 sps:$4 sm:$0x11]  }
 0x24c   : > { %1894 = vrot.lane.b32.xlu1 %v1853_v14, %s9956_s23  ;;  %v2760_v27 = vor.u32 %v2759_v20, %v2755_v22  ;;  %v3950_v41 = vrot.slane %v9369_v46, 1  ;;  %v912_v14 = vld [vmem:[#allocation2 + $0xd4] sm:$0x1] }
 0x24d   : > { %v3968_v30 = vpop.permute.xlu0 %3967  ;;  %v913_v13 = vsel %vm10365_vm5, 0, %v912_v14  ;;  %vm12335_vm5 = vsmask.f32 256 }
 0x24e   : > { %4010 = vst.msk [vmem:[#allocation3 + $0x30] sm:$0xff] %vm4003_vm8, %v3968_v30  ;;  %v2781_v12 = vpop.permute.xlu1 %2780  ;;  %v2765_v19 = vsel %vm1673_vm7, %v2760_v27, %v2764_v29  ;;  %v3951_v23 = vsel %vm2107_vm9, %v3949_v24, %v3950_v41  ;;  %914 = vst [vmem:[#allocation2 + $0xd4] sm:$0x1] %v913_v13 }
 0x24f   : > { %2822 = vst.msk [vmem:[#allocation3 + $0x38] sm:$0xff] %vm2814_vm15, %v2781_v12  ;;  %3083 = vrot.lane.b32.xlu0 %v3051_v50, %s9960_s12  ;;  %v857_v12 = vsel %vm10327_vm3, 0, %v856_v4  ;;  %vm4399_vm3 = vcmask 57344  }
 0x250   : > { %1896 = vrot.lane.b32.xlu1 %v1865_v7, %s9956_s23  ;;  %858 = vst [vmem:[#allocation2 + $0xcc] sm:$0x1] %v857_v12  ;;  %4400 = vst.msk [vmem:[#allocation4 + $0x8] sm:$0x1] %vm4399_vm3, %v9954_v0  ;;  %s12228_s23 = scalar_lea.vmem [#allocation18], %s8301_s8 }
 0x251   : > { %v3970_v55 = vpop.permute.xlu0 %3969  ;;  %4404 = vst.msk [vmem:[#allocation4 + $0xd4] sm:$0x1] %vm4399_vm3, %v9954_v0  ;;  %vm11300_vm2 = vmand %vm4399_vm3, %vm12335_vm5 }
 0x252   : > { %v3070_v32 = vpop.permute.xlu1 %3069  ;;  %v4414_v0 = vsel %vm11300_vm2, 0, %v4413_v47  ;;  %v4411_v61 = vsel %vm11300_vm2, 0, %v4410_v62  ;;  %vm11314_vm5 = vmand %vm4399_vm3, %vm12338_vm11  ;;  %v4420_v28 = vsel %vm11300_vm2, 0, %v4419_v38  ;;  %v4471_v47 = vld [vmem:[#allocation4 + $0x2c] sm:$0x1]  ;;  %vm12309_vm3 = vcmask 195712  }
 0x253   : > { %3111 = vst.msk [vmem:[#allocation3 + $0x38] sm:$0xff] %vm3103_vm0, %v3070_v32  ;;  %3261 = vrot.lane.b32.xlu0 %v9362_v45, %s9959_s9  ;;  %4415 = vst [vmem:[#allocation4 + $0x18] sm:$0x1] %v4414_v0  ;;  %v4466_v22 = vsel %vm11314_vm5, 0, %v4465_v39  ;;  %v4475_v10 = vsel %vm11314_vm5, 0, %v4474_v15  ;;  %v4472_v0 = vsel %vm11314_vm5, 0, %v4471_v47 }
 0x254   : > { %2186 = vrot.lane.b32.xlu1 %v2155_v35, %s9957_s28  ;;  %4412 = vst [vmem:[#allocation4 + $0xc] sm:$0x1] %v4411_v61  ;;  %4467 = vst [vmem:[#allocation4 + $0x14] sm:$0x1] %v4466_v22  ;;  %v4422_v22 = vld [vmem:[#allocation4 + $0x3c] sm:$0x1] }
 0x255   : > { %v4026_v52 = vld [vmem:[#allocation3 + $0x30] sm:$0xff]  ;;  %v2173_v59 = vpop.permute.xlu0 %2172  ;;  %v9378_v48 = vld [vmem:[#allocation2 + $0xd4] ss:$0 sps:$4 sm:$0x11]   ;;  %4421 = vst [vmem:[#allocation4 + $0x30] sm:$0x1] %v4420_v28 }
 0x256   : > { %8955 = vmatprep.mubr.msk.bf16.mxu0 %vm4056_vm4, %v4026_v52  ;;  %v3248_v56 = vpop.permute.xlu1 %3247  ;;  %v9376_v52 = vld [vmem:[#allocation2 + $0xd4] ss:$0 sps:$4 sm:$0x11]   ;;  %v3953_v37 = vrot.slane %v9378_v48, 1  ;;  %4476 = vst [vmem:[#allocation4 + $0x38] sm:$0x1] %v4475_v10 }
 0x257   : > { %3289 = vst.msk [vmem:[#allocation3 + $0x38] sm:$0xff] %vm3281_vm1, %v3248_v56  ;;  %3694 = vrot.lane.b32.xlu0 %v3653_v25, %s9962_s16  ;;  %v9374_v7 = vld [vmem:[#allocation2 + $0xcc] sm:$0xff]   ;;  %v3662_v56 = vshll.u32 %v9376_v52, 16  ;;  %v4462_v44 = vld [vmem:[#allocation4 + $0x8] sm:$0x1] }
 0x258   : > { %2363 = vrot.lane.b32.xlu1 %v9363_v8, %s9958_s15  ;;  %v9375_v51 = vld [vmem:[#allocation2 + $0xcc] sm:$0xff]   ;;  %v4468_v8 = vld [vmem:[#allocation4 + $0x20] sm:$0x1]  ;;  %v4463_v46 = vsel %vm11314_vm5, 0, %v4462_v44  ;;  %v3954_v29 = vsel %vm2107_vm9, %v3952_v60, %v3953_v37  ;;  %4473 = vst [vmem:[#allocation4 + $0x2c] sm:$0x1] %v4472_v0 }
 0x259   : > { %v2350_v16 = vpop.permute.xlu0 %2349  ;;  %v3655_v50 = vshrl.u32 %v9375_v51, 16  ;;  %v3657_v45 = vshll.u32 %v9375_v51, 16  ;;  %v4469_v40 = vsel %vm11314_vm5, 0, %v4468_v8  ;;  %4464 = vst [vmem:[#allocation4 + $0x8] sm:$0x1] %v4463_v46  ;;  %s8896_s15 = sshll.u32 %s10030_s30, 8 }
 0x25a   : > { %v3681_v3 = vpop.permute.xlu1 %3680  ;;  %4470 = vst [vmem:[#allocation4 + $0x20] sm:$0x1] %v4469_v40  ;;  %v4425_v60 = vld [vmem:[#allocation4 + $0x48] sm:$0x1] }
 0x25b   : > { %3722 = vst.msk [vmem:[#allocation3 + $0x38] sm:$0xff] %vm3714_vm6, %v3681_v3  ;;  %3983 = vrot.lane.b32.xlu0 %v3951_v23, %s9963_s14  ;;  %v3659_v57 = vrot.slane %v3657_v45, 1  ;;  %v4407_v3 = vld [vmem:[#allocation4] sm:$0x1]  ;;  %v4426_v37 = vsel %vm11300_vm2, 0, %v4425_v60 }
 0x25c   : > { %4011 = vst.msk [vmem:[#allocation3 + $0x38] sm:$0xff] %vm4003_vm8, %v3970_v55  ;;  %2796 = vrot.lane.b32.xlu1 %v2765_v19, %s9961_s17  ;;  %v3054_v55 = vsel %vm2107_vm9, %v3052_v31, %v3053_v54  ;;  %v4408_v20 = vsel %vm11300_vm2, 0, %v4407_v3  ;;  %4427 = vst [vmem:[#allocation4 + $0x48] sm:$0x1] %v4426_v37 }
 0x25d   : > { %v2783_v2 = vpop.permute.xlu0 %2782  ;;  %v3660_v36 = vor.u32 %v3659_v57, %v3655_v50  ;;  %4409 = vst [vmem:[#allocation4] sm:$0x1] %v4408_v20 }
 0x25e   : > { %v1883_v30 = vpop.permute.xlu1 %1882 }
 0x25f   : > { %1923 = vst.msk [vmem:[#allocation3 + $0x40] sm:$0xff] %vm1914_vm12, %v1883_v30 }
 0x260   : > { %2213 = vst.msk [vmem:[#allocation3 + $0x40] sm:$0xff] %vm2204_vm13, %v2173_v59  ;;  %3085 = vrot.lane.b32.xlu1 %v3054_v55, %s9960_s12  ;;  %v9386_v19 = vld [vmem:[#allocation4 + $0x8] ss:$0 sps:$4 sm:$0x11]   ;;  %v4416_v55 = vld [vmem:[#allocation4 + $0x24] sm:$0x1] }
 0x261   : > { %2390 = vst.msk [vmem:[#allocation3 + $0x40] sm:$0xff] %vm2381_vm14, %v2350_v16  ;;  %v3072_v17 = vpop.permute.xlu0 %3071  ;;  %v3664_v16 = vrot.slane %v3662_v56, 1  ;;  %v9388_v1 = vld [vmem:[#allocation4 + $0x8] ss:$0 sps:$4 sm:$0x11]   ;;  %v5360_v54 = vshll.u32 %v9386_v19, 16 }
 0x262   : > { %2823 = vst.msk [vmem:[#allocation3 + $0x40] sm:$0xff] %vm2814_vm15, %v2783_v2  ;;  %v1885_v6 = vpop.permute.xlu1 %1884  ;;  %v9387_v2 = vld [vmem:[#allocation4] sm:$0xfe]  }
 0x263   : > { %1924 = vst.msk [vmem:[#allocation3 + $0x48] sm:$0xff] %vm1914_vm12, %v1885_v6  ;;  %v4027_v58 = vld [vmem:[#allocation3 + $0x38] sm:$0xff]  ;;  %v3665_v49 = vsel %vm1673_vm7, %v3660_v36, %v3664_v16  ;;  %v5362_v14 = vrot.slane %v5360_v54, 1  ;;  %v5785_v42 = vrot.slane %v9387_v2, 1  ;;  %v5786_v6 = vrot.slane %v9388_v1, 1 }
 0x264   : > { %3112 = vst.msk [vmem:[#allocation3 + $0x40] sm:$0xff] %vm3103_vm0, %v3072_v17  ;;  %8956 = vmatmul.mubr.msk.bf16.gmra.mrb[12].mxu0 %vm4056_vm4, %v4027_v58  ;;  %3263 = vrot.lane.b32.xlu1 %v9374_v7, %s9959_s9  ;;  %v9385_v30 = vld [vmem:[#allocation4] sm:$0xff]   ;;  %v4417_v58 = vsel %vm11300_vm2, 0, %v4416_v55 }
 0x265   : > { %v3250_v9 = vpop.permute.xlu0 %3249  ;;  %v5353_v31 = vshrl.u32 %v9385_v30, 16  ;;  %v5355_v4 = vshll.u32 %v9385_v30, 16  ;;  %v5787_v63 = vsel %vm2107_vm9, %v5785_v42, %v5786_v6  ;;  %4418 = vst [vmem:[#allocation4 + $0x24] sm:$0x1] %v4417_v58  ;;  %v4486_v6 = vld [vmem:[#allocation4 + $0x68] sm:$0x1] }
 0x266   : > { %v2175_v5 = vpop.permute.xlu1 %2174  ;;  %3290 = vst.msk [vmem:[#allocation3 + $0x40] sm:$0xff] %vm3281_vm1, %v3250_v9 }
 0x267   : > { %2214 = vst.msk [vmem:[#allocation3 + $0x48] sm:$0xff] %vm2204_vm13, %v2175_v5  ;;  %v5357_v12 = vrot.slane %v5355_v4, 1 }
 0x268   : > { %3696 = vrot.lane.b32.xlu1 %v3665_v49, %s9962_s16  ;;  %v4477_v49 = vld [vmem:[#allocation4 + $0x44] sm:$0x1]  ;;  %s8140_s16 = scalar_lea.sflag [#allocation8], %s10275_s20 }
 0x269   : > { %v3683_v59 = vpop.permute.xlu0 %3682  ;;  %v5358_v13 = vor.u32 %v5357_v12, %v5353_v31  ;;  %v4478_v44 = vsel %vm11314_vm5, 0, %v4477_v49 }
 0x26a   : > { %v2352_v53 = vpop.permute.xlu1 %2351  ;;  %3723 = vst.msk [vmem:[#allocation3 + $0x40] sm:$0xff] %vm3714_vm6, %v3683_v59  ;;  %4479 = vst [vmem:[#allocation4 + $0x44] sm:$0x1] %v4478_v44 }
 0x26b   : > { %2391 = vst.msk [vmem:[#allocation3 + $0x48] sm:$0xff] %vm2381_vm14, %v2352_v53  ;;  %v5363_v33 = vsel %vm1673_vm7, %v5358_v13, %v5362_v14 }
 0x26c   : > { %3985 = vrot.lane.b32.xlu1 %v3954_v29, %s9963_s14  ;;  %5544 = vrot.lane.b32.xlu0 %v5363_v33, %s9957_s28  ;;  %v4483_v33 = vld [vmem:[#allocation4 + $0x5c] sm:$0x1] }
 0x26d   : > { %v3972_v18 = vpop.permute.xlu0 %3971  ;;  %v4484_v58 = vsel %vm11314_vm5, 0, %v4483_v33 }
 0x26e   : > { %v2785_v11 = vpop.permute.xlu1 %2784  ;;  %4012 = vst.msk [vmem:[#allocation3 + $0x40] sm:$0xff] %vm4003_vm8, %v3972_v18  ;;  %v4480_v18 = vld [vmem:[#allocation4 + $0x50] sm:$0x1]  ;;  %4485 = vst [vmem:[#allocation4 + $0x5c] sm:$0x1] %v4484_v58 }
 0x26f   : > { %2824 = vst.msk [vmem:[#allocation3 + $0x48] sm:$0xff] %vm2814_vm15, %v2785_v11  ;;  %v4423_v11 = vsel %vm11300_vm2, 0, %v4422_v22  ;;  %v4481_v36 = vsel %vm11314_vm5, 0, %v4480_v18 }
 0x270   : > { %5833 = vrot.lane.b32.xlu0 %v5787_v63, %s9961_s17  ;;  %4424 = vst [vmem:[#allocation4 + $0x3c] sm:$0x1] %v4423_v11  ;;  %4482 = vst [vmem:[#allocation4 + $0x50] sm:$0x1] %v4481_v36  ;;  %v11411_v63 = vld [vmem:[#allocation11] ss:$0 sm:$0xff] }
 0x271   : > { %v3974_v24 = vpop.permute.xlu0 %3973 }
 0x272   : > { %v3074_v21 = vpop.permute.xlu1 %3073 }
 0x273   : > { %3113 = vst.msk [vmem:[#allocation3 + $0x48] sm:$0xff] %vm3103_vm0, %v3074_v21 }
 0x275   : > { %v4028_v27 = vld [vmem:[#allocation3 + $0x40] sm:$0xff]  ;;  %v2177_v41 = vpop.permute.xlu0 %2176 }
 0x276   : > { %v3252_v25 = vpop.permute.xlu1 %3251  ;;  %8959 = vmatprep.mubr.msk.bf16.mxu0 %vm4056_vm4, %v4028_v27 }
 0x277   : > { %3291 = vst.msk [vmem:[#allocation3 + $0x48] sm:$0xff] %vm3281_vm1, %v3252_v25 }
 0x279   : > { %v2354_v34 = vpop.permute.xlu0 %2353 }
 0x27a   : > { %v3685_v43 = vpop.permute.xlu1 %3684 }
 0x27b   : > { %3724 = vst.msk [vmem:[#allocation3 + $0x48] sm:$0xff] %vm3714_vm6, %v3685_v43 }
 0x27c   : > { %4013 = vst.msk [vmem:[#allocation3 + $0x48] sm:$0xff] %vm4003_vm8, %v3974_v24 }
 0x27d   : > { %v2787_v17 = vpop.permute.xlu0 %2786 }
 0x27e   : > { %v1887_v23 = vpop.permute.xlu1 %1886 }
 0x27f   : > { %1925 = vst.msk [vmem:[#allocation3 + $0x50] sm:$0xff] %vm1914_vm12, %v1887_v23  ;;  %v4428_v23 = vld [vmem:[#allocation4 + $0x54] sm:$0x1] }
 0x280   : > { %2215 = vst.msk [vmem:[#allocation3 + $0x50] sm:$0xff] %vm2204_vm13, %v2177_v41  ;;  %v4429_v42 = vsel %vm11300_vm2, 0, %v4428_v23 }
 0x281   : > { %2392 = vst.msk [vmem:[#allocation3 + $0x50] sm:$0xff] %vm2381_vm14, %v2354_v34  ;;  %v3076_v7 = vpop.permute.xlu0 %3075  ;;  %v4431_v34 = vld [vmem:[#allocation4 + $0x60] sm:$0x1]  ;;  %4430 = vst [vmem:[#allocation4 + $0x54] sm:$0x1] %v4429_v42 }
 0x282   : > { %2825 = vst.msk [vmem:[#allocation3 + $0x50] sm:$0xff] %vm2814_vm15, %v2787_v17  ;;  %v1889_v5 = vpop.permute.xlu1 %1888  ;;  %v4432_v19 = vsel %vm11300_vm2, 0, %v4431_v34  ;;  %v4487_v17 = vsel %vm11314_vm5, 0, %v4486_v6 }
 0x283   : > { %v4029_v9 = vld [vmem:[#allocation3 + $0x48] sm:$0xff]  ;;  %1926 = vst.msk [vmem:[#allocation3 + $0x58] sm:$0xff] %vm1914_vm12, %v1889_v5  ;;  %4433 = vst [vmem:[#allocation4 + $0x60] sm:$0x1] %v4432_v19 }
 0x284   : > { %8960 = vmatmul.mubr.msk.bf16.gmra.mrb[16].mxu0 %vm4056_vm4, %v4029_v9  ;;  %3114 = vst.msk [vmem:[#allocation3 + $0x50] sm:$0xff] %vm3103_vm0, %v3076_v7  ;;  %4488 = vst [vmem:[#allocation4 + $0x68] sm:$0x1] %v4487_v17  ;;  %v11414_v7 = vld [vmem:[#allocation12] ss:$0 sm:$0xff] }
 0x285   : > { %v3254_v52 = vpop.permute.xlu0 %3253 }
 0x286   : > { %v2179_v51 = vpop.permute.xlu1 %2178  ;;  %3292 = vst.msk [vmem:[#allocation3 + $0x50] sm:$0xff] %vm3281_vm1, %v3254_v52 }
 0x287   : > { %2216 = vst.msk [vmem:[#allocation3 + $0x58] sm:$0xff] %vm2204_vm13, %v2179_v51 }
 0x289   : > { %v3687_v59 = vpop.permute.xlu0 %3686 }
 0x28a   : > { %v2356_v53 = vpop.permute.xlu1 %2355  ;;  %3725 = vst.msk [vmem:[#allocation3 + $0x50] sm:$0xff] %vm3714_vm6, %v3687_v59 }
 0x28b   : > { %2393 = vst.msk [vmem:[#allocation3 + $0x58] sm:$0xff] %vm2381_vm14, %v2356_v53 }
 0x28d   : > { %v3976_v50 = vpop.permute.xlu0 %3975 }
 0x28e   : > { %v2789_v48 = vpop.permute.xlu1 %2788  ;;  %4014 = vst.msk [vmem:[#allocation3 + $0x50] sm:$0xff] %vm4003_vm8, %v3976_v50 }
 0x28f   : > { %2826 = vst.msk [vmem:[#allocation3 + $0x58] sm:$0xff] %vm2814_vm15, %v2789_v48 }
 0x291   : > { %v3978_v56 = vpop.permute.xlu0 %3977 }
 0x292   : > { %v3078_v45 = vpop.permute.xlu1 %3077 }
 0x293   : > { %3115 = vst.msk [vmem:[#allocation3 + $0x58] sm:$0xff] %vm3103_vm0, %v3078_v45 }
 0x295   : > { %v2181_v61 = vpop.permute.xlu0 %2180  ;;  %v4030_v8 = vld [vmem:[#allocation3 + $0x50] sm:$0xff] }
 0x296   : > { %v3256_v62 = vpop.permute.xlu1 %3255  ;;  %8963 = vmatprep.mubr.msk.bf16.mxu0 %vm4056_vm4, %v4030_v8 }
 0x297   : > { %3293 = vst.msk [vmem:[#allocation3 + $0x58] sm:$0xff] %vm3281_vm1, %v3256_v62 }
 0x299   : > { %v2358_v57 = vpop.permute.xlu0 %2357 }
 0x29a   : > { %v3689_v39 = vpop.permute.xlu1 %3688 }
 0x29b   : > { %3726 = vst.msk [vmem:[#allocation3 + $0x58] sm:$0xff] %vm3714_vm6, %v3689_v39 }
 0x29c   : > { %4015 = vst.msk [vmem:[#allocation3 + $0x58] sm:$0xff] %vm4003_vm8, %v3978_v56 }
 0x29d   : > { %v2791_v40 = vpop.permute.xlu0 %2790 }
 0x29e   : > { %v1891_v16 = vpop.permute.xlu1 %1890 }
 0x29f   : > { %1927 = vst.msk [vmem:[#allocation3 + $0x60] sm:$0xff] %vm1914_vm12, %v1891_v16 }
 0x2a0   : > { %2217 = vst.msk [vmem:[#allocation3 + $0x60] sm:$0xff] %vm2204_vm13, %v2181_v61 }
 0x2a1   : > { %2394 = vst.msk [vmem:[#allocation3 + $0x60] sm:$0xff] %vm2381_vm14, %v2358_v57  ;;  %v3080_v21 = vpop.permute.xlu0 %3079 }
 0x2a2   : > { %2827 = vst.msk [vmem:[#allocation3 + $0x60] sm:$0xff] %vm2814_vm15, %v2791_v40  ;;  %v1893_v3 = vpop.permute.xlu1 %1892 }
 0x2a3   : > { %1928 = vst.msk [vmem:[#allocation3 + $0x68] sm:$0xff] %vm1914_vm12, %v1893_v3  ;;  %v4031_v20 = vld [vmem:[#allocation3 + $0x58] sm:$0xff] }
 0x2a4   : > { %3116 = vst.msk [vmem:[#allocation3 + $0x60] sm:$0xff] %vm3103_vm0, %v3080_v21  ;;  %8964 = vmatmul.mubr.msk.bf16.gmra.mrb[20].mxu0 %vm4056_vm4, %v4031_v20 }
 0x2a5   : > { %v3258_v29 = vpop.permute.xlu0 %3257 }
 0x2a6   : > { %v2183_v46 = vpop.permute.xlu1 %2182  ;;  %3294 = vst.msk [vmem:[#allocation3 + $0x60] sm:$0xff] %vm3281_vm1, %v3258_v29  ;;  %v4437_v29 = vld [vmem:[#allocation4 + $0x78] sm:$0x1] }
 0x2a7   : > { %2218 = vst.msk [vmem:[#allocation3 + $0x68] sm:$0xff] %vm2204_vm13, %v2183_v46 }
 0x2a9   : > { %v3691_v25 = vpop.permute.xlu0 %3690 }
 0x2aa   : > { %v2360_v24 = vpop.permute.xlu1 %2359  ;;  %3727 = vst.msk [vmem:[#allocation3 + $0x60] sm:$0xff] %vm3714_vm6, %v3691_v25  ;;  %v4926_v25 = vld [vmem:[#allocation4 + $0x18] sm:$0xf] }
 0x2ab   : > { %2395 = vst.msk [vmem:[#allocation3 + $0x68] sm:$0xff] %vm2381_vm14, %v2360_v24 }
 0x2ad   : > { %v3980_v41 = vpop.permute.xlu0 %3979 }
 0x2ae   : > { %v2793_v27 = vpop.permute.xlu1 %2792  ;;  %4016 = vst.msk [vmem:[#allocation3 + $0x60] sm:$0xff] %vm4003_vm8, %v3980_v41 }
 0x2af   : > { %2828 = vst.msk [vmem:[#allocation3 + $0x68] sm:$0xff] %vm2814_vm15, %v2793_v27 }
 0x2b1   : > { %v3982_v28 = vpop.permute.xlu0 %3981 }
 0x2b2   : > { %v3082_v38 = vpop.permute.xlu1 %3081 }
 0x2b3   : > { %3117 = vst.msk [vmem:[#allocation3 + $0x68] sm:$0xff] %vm3103_vm0, %v3082_v38 }
 0x2b5   : > { %v2185_v2 = vpop.permute.xlu0 %2184  ;;  %v4032_v43 = vld [vmem:[#allocation3 + $0x60] sm:$0xff] }
 0x2b6   : > { %v3260_v30 = vpop.permute.xlu1 %3259  ;;  %8967 = vmatprep.mubr.msk.bf16.mxu0 %vm4056_vm4, %v4032_v43 }
 0x2b7   : > { %3295 = vst.msk [vmem:[#allocation3 + $0x68] sm:$0xff] %vm3281_vm1, %v3260_v30 }
 0x2b9   : > { %v2362_v4 = vpop.permute.xlu0 %2361 }
 0x2ba   : > { %v3693_v31 = vpop.permute.xlu1 %3692 }
 0x2bb   : > { %3728 = vst.msk [vmem:[#allocation3 + $0x68] sm:$0xff] %vm3714_vm6, %v3693_v31  ;;  %v4930_v31 = vld [vmem:[#allocation4 + $0x20] sm:$0x1] }
 0x2bc   : > { %4017 = vst.msk [vmem:[#allocation3 + $0x68] sm:$0xff] %vm4003_vm8, %v3982_v28  ;;  %v4438_v28 = vsel %vm11300_vm2, 0, %v4437_v29 }
 0x2bd   : > { %v2795_v54 = vpop.permute.xlu0 %2794  ;;  %4439 = vst [vmem:[#allocation4 + $0x78] sm:$0x1] %v4438_v28 }
 0x2be   : > { %v1895_v1 = vpop.permute.xlu1 %1894 }
 0x2bf   : > { %1929 = vst.msk [vmem:[#allocation3 + $0x70] sm:$0xff] %vm1914_vm12, %v1895_v1 }
 0x2c0   : > { %2219 = vst.msk [vmem:[#allocation3 + $0x70] sm:$0xff] %vm2204_vm13, %v2185_v2  ;;  %v4919_v2 = vld [vmem:[#allocation4 + $0xc] sm:$0xf] }
 0x2c1   : > { %2396 = vst.msk [vmem:[#allocation3 + $0x70] sm:$0xff] %vm2381_vm14, %v2362_v4  ;;  %v3084_v13 = vpop.permute.xlu0 %3083 }
 0x2c2   : > { %2829 = vst.msk [vmem:[#allocation3 + $0x70] sm:$0xff] %vm2814_vm15, %v2795_v54  ;;  %v1897_v12 = vpop.permute.xlu1 %1896 }
 0x2c3   : > { %1930 = vst.msk [vmem:[#allocation3 + $0x78] sm:$0xff] %vm1914_vm12, %v1897_v12  ;;  %v4033_v14 = vld [vmem:[#allocation3 + $0x68] sm:$0xff]  ;;  %vm12341_vm12 = vmmov %vm12338_vm11 }
 0x2c4   : > { %8968 = vmatmul.mubr.msk.bf16.gmra.mrb[24].mxu0 %vm4056_vm4, %v4033_v14  ;;  %3118 = vst.msk [vmem:[#allocation3 + $0x70] sm:$0xff] %vm3103_vm0, %v3084_v13  ;;  %v4923_v13 = vld [vmem:[#allocation4 + $0x14] sm:$0x1] }
 0x2c5   : > { %v3262_v15 = vpop.permute.xlu0 %3261 }
 0x2c6   : > { %v2187_v55 = vpop.permute.xlu1 %2186  ;;  %3296 = vst.msk [vmem:[#allocation3 + $0x70] sm:$0xff] %vm3281_vm1, %v3262_v15 }
 0x2c7   : > { %2220 = vst.msk [vmem:[#allocation3 + $0x78] sm:$0xff] %vm2204_vm13, %v2187_v55  ;;  %vm12342_vm13 = vcmask 60416  }
 0x2c9   : > { %v3695_v9 = vpop.permute.xlu0 %3694 }
 0x2ca   : > { %v2364_v5 = vpop.permute.xlu1 %2363  ;;  %3729 = vst.msk [vmem:[#allocation3 + $0x70] sm:$0xff] %vm3714_vm6, %v3695_v9 }
 0x2cb   : > { %2397 = vst.msk [vmem:[#allocation3 + $0x78] sm:$0xff] %vm2381_vm14, %v2364_v5  ;;  %vm11431_vm14 = vmand %vm12342_vm13, %vm12341_vm12 }
 0x2cc   : > { %v8945_v47 = vpop.f32.mrb[0].mxu0 }
 0x2cd   : > { %v4279_v0 = vmul.f32 %v8945_v47, %v11411_v63  ;;  %v4143_v51 = vpop.f32.mrb[1].mxu0  ;;  %v3984_v52 = vpop.permute.xlu0 %3983  ;;  %v4434_v47 = vld [vmem:[#allocation4 + $0x6c] sm:$0x1] }
 0x2ce   : > { %v2797_v10 = vpop.permute.xlu1 %2796  ;;  %v4277_v53 = vmul.f32 %v11411_v63, %v4143_v51  ;;  %v8946_v59 = vpop.f32.mrb[2].mxu0  ;;  %4018 = vst.msk [vmem:[#allocation3 + $0x70] sm:$0xff] %vm4003_vm8, %v3984_v52  ;;  %v4435_v51 = vsel %vm11300_vm2, 0, %v4434_v47  ;;  %v4940_v47 = vld [vmem:[#allocation4 + $0x30] sm:$0xf] }
 0x2cf   : > { %2830 = vst.msk [vmem:[#allocation3 + $0x78] sm:$0xff] %vm2814_vm15, %v2797_v10  ;;  %v4318_v48 = vadd.f32 %v11414_v7, %v4279_v0  ;;  %v4280_v50 = vmul.f32 %v8946_v59, %v11411_v63  ;;  %v4146_v45 = vpop.f32.mrb[3].mxu0  ;;  %vm12345_vm15 = vmmov %vm12342_vm13 }
 0x2d0   : > { %v4316_v60 = vadd.f32 %v11414_v7, %v4277_v53  ;;  %v4278_v62 = vmul.f32 %v11411_v63, %v4146_v45  ;;  %4436 = vst [vmem:[#allocation4 + $0x6c] sm:$0x1] %v4435_v51 }
 0x2d1   : > { %v4350_v37 = vmax.f32 %v4318_v48, 0.0  ;;  %v4319_v61 = vadd.f32 %v11414_v7, %v4280_v50 }
 0x2d2   : > { %v3086_v56 = vpop.permute.xlu1 %3085  ;;  %v4348_v8 = vmax.f32 %v4316_v60, 0.0  ;;  %v4317_v39 = vadd.f32 %v11414_v7, %v4278_v62 }
 0x2d3   : > { %3119 = vst.msk [vmem:[#allocation3 + $0x78] sm:$0xff] %vm3103_vm0, %v3086_v56  ;;  %v8866_v57 = vpack.c.bf16 %v4350_v37, %v4350_v37  ;;  %v4351_v16 = vmax.f32 %v4319_v61, 0.0  ;;  %vm12346_vm0 = vmmov %vm12342_vm13 }
 0x2d4   : > { %v8864_v40 = vpack.c.bf16 %v4348_v8, %v4348_v8  ;;  %v4349_v22 = vmax.f32 %v4317_v39, 0.0  ;;  %vm12349_vm11 = vmmov %vm12346_vm0 }
 0x2d5   : > { %v4614_v11 = vshrl.u32 %v8866_v57, 16  ;;  %v8867_v18 = vpack.c.bf16 %v4351_v16, %v4351_v16  ;;  %v4034_v49 = vld [vmem:[#allocation3 + $0x70] sm:$0xff]  ;;  %v4617_v20 = vshll.u32 %v8866_v57, 16  ;;  %vm12350_vm12 = vmmov %vm12346_vm0 }
 0x2d6   : > { %v3264_v36 = vpop.permute.xlu1 %3263  ;;  %v4597_v3 = vshrl.u32 %v8864_v40, 16  ;;  %v8865_v44 = vpack.c.bf16 %v4349_v22, %v4349_v22  ;;  %8971 = vmatprep.mubr.msk.bf16.mxu0 %vm4056_vm4, %v4034_v49  ;;  %v4600_v41 = vshll.u32 %v8864_v40, 16  ;;  %vm12351_vm13 = vmmov %vm12346_vm0 }
 0x2d7   : > { %3297 = vst.msk [vmem:[#allocation3 + $0x78] sm:$0xff] %vm3281_vm1, %v3264_v36  ;;  %v4616_v21 = vrot.slane %v4614_v11, 7  ;;  %v4622_v46 = vshrl.u32 %v8867_v18, 16  ;;  %v4625_v34 = vshll.u32 %v8867_v18, 16  ;;  %vm12307_vm1 = vcmask 64512  }
 0x2d8   : > { %v4599_v27 = vrot.slane %v4597_v3, 7  ;;  %v4605_v38 = vshrl.u32 %v8865_v44, 16  ;;  %v4608_v1 = vshll.u32 %v8865_v44, 16 }
 0x2d9   : > { %v4619_v30 = vor.u32 %v4617_v20, %v4616_v21  ;;  %v4624_v43 = vrot.slane %v4622_v46, 7  ;;  %v4620_v54 = vrot.slane %v4616_v21, 4 }
 0x2da   : > { %v4602_v19 = vor.u32 %v4600_v41, %v4599_v27  ;;  %v4607_v4 = vrot.slane %v4605_v38, 7  ;;  %v4603_v42 = vrot.slane %v4599_v27, 4  ;;  %v3697_v15 = vpop.permute.xlu1 %3696 }
 0x2db   : > { %v4927_v12 = vsel %vm11431_vm14, %v4619_v30, %v4926_v25  ;;  %v4627_v14 = vor.u32 %v4625_v34, %v4624_v43  ;;  %v4629_v23 = vrot.slane %v4624_v43, 4  ;;  %3730 = vst.msk [vmem:[#allocation3 + $0x78] sm:$0xff] %vm3714_vm6, %v3697_v15  ;;  %vm12348_vm6 = vmmov %vm12346_vm0 }
 0x2dc   : > { %4928 = vst [vmem:[#allocation4 + $0x18] sm:$0xf] %v4927_v12  ;;  %v4920_v6 = vsel %vm11431_vm14, %v4602_v19, %v4919_v2  ;;  %v4610_v17 = vor.u32 %v4608_v1, %v4607_v4  ;;  %v4612_v33 = vrot.slane %v4607_v4, 4 }
 0x2dd   : > { %4921 = vst [vmem:[#allocation4 + $0xc] sm:$0xf] %v4920_v6  ;;  %v4628_v55 = vsel %vm10621_vm10, %v4620_v54, %v4627_v14  ;;  %v4931_v58 = vsel %vm11300_vm2, %v4629_v23, %v4930_v31 }
 0x2de   : > { %4929 = vst.msk [vmem:[#allocation4 + $0x1c] sm:$0xf] %vm12345_vm15, %v4628_v55  ;;  %4932 = vst [vmem:[#allocation4 + $0x20] sm:$0x1] %v4931_v58  ;;  %v4611_v5 = vsel %vm10621_vm10, %v4603_v42, %v4610_v17  ;;  %v4924_v9 = vsel %vm11300_vm2, %v4612_v33, %v4923_v13  ;;  %v3986_v10 = vpop.permute.xlu1 %3985 }
 0x2df   : > { %4922 = vst.msk [vmem:[#allocation4 + $0x10] sm:$0xf] %vm12346_vm0, %v4611_v5  ;;  %4925 = vst [vmem:[#allocation4 + $0x14] sm:$0x1] %v4924_v9 }
 0x2e0   : > { %4019 = vst.msk [vmem:[#allocation3 + $0x78] sm:$0xff] %vm4003_vm8, %v3986_v10  ;;  %vm5592_vm8 = vcmask 130112   ;;  %vm12352_vm15 = vmmov %vm12346_vm0 }
 0x2e5   : > { %v9389_v0 = vld [vmem:[#allocation4 + $0x18] sm:$0xff]   ;;  %v9392_v59 = vld [vmem:[#allocation4 + $0x20] ss:$0 sps:$4 sm:$0x11]  }
 0x2e6   : > { %v9390_v52 = vld [vmem:[#allocation4 + $0x18] sm:$0xff]   ;;  %6012 = vrot.lane.b32.xlu1 %v9389_v0, %s9959_s9  ;;  %v9393_v48 = vld [vmem:[#allocation4 + $0xc] sm:$0xff]   ;;  %v6688_v45 = vrot.slane %v9392_v59, 1  ;;  %v9395_v62 = vld [vmem:[#allocation4 + $0x14] ss:$0 sps:$4 sm:$0x11]  }
 0x2e7   : > { %v9391_v53 = vld [vmem:[#allocation4 + $0x18] sm:$0xfe]   ;;  %6910 = vrot.lane.b32.xlu0 %v9390_v52, %s9964_s13  ;;  %v9394_v56 = vld [vmem:[#allocation4 + $0xc] sm:$0xfe]   ;;  %v5789_v16 = vrot.slane %v9395_v62, 1 }
 0x2e8   : > { %v6687_v50 = vrot.slane %v9391_v53, 1  ;;  %v4035_v60 = vld [vmem:[#allocation3 + $0x78] sm:$0xff]  ;;  %v5788_v61 = vrot.slane %v9394_v56, 1  ;;  %v9397_v39 = vld [vmem:[#allocation4 + $0x20] ss:$0 sps:$4 sm:$0x11]  }
 0x2e9   : > { %8972 = vmatmul.mubr.msk.bf16.gmra.mrb[28].mxu0 %vm4056_vm4, %v4035_v60  ;;  %v9396_v8 = vld [vmem:[#allocation4 + $0x18] sm:$0xfe]   ;;  %v7585_v18 = vrot.slane %v9397_v39, 1  ;;  %v9399_v21 = vld [vmem:[#allocation4 + $0x20] ss:$0 sps:$4 sm:$0x11]   ;;  %vm12347_vm4 = vmmov %vm12346_vm0 }
 0x2ea   : > { %v6689_v37 = vsel %vm2107_vm9, %v6687_v50, %v6688_v45  ;;  %v7584_v11 = vrot.slane %v9396_v8, 1  ;;  %v9398_v36 = vld [vmem:[#allocation4 + $0x18] sm:$0xff]   ;;  %v5790_v44 = vsel %vm2107_vm9, %v5788_v61, %v5789_v16  ;;  %v6271_v30 = vshll.u32 %v9399_v21, 16  ;;  %v9401_v19 = vld [vmem:[#allocation4 + $0x20] ss:$0 sps:$4 sm:$0x11]  }
 0x2eb   : > { %6734 = vrot.lane.b32.xlu1 %v6689_v37, %s9965_s19  ;;  %6010 = vrot.lane.b32.xlu0 %v9393_v48, %s9959_s9  ;;  %v6264_v27 = vshrl.u32 %v9398_v36, 16  ;;  %v6266_v28 = vshll.u32 %v9398_v36, 16  ;;  %v9400_v2 = vld [vmem:[#allocation4 + $0x18] sm:$0xfe]   ;;  %v5792_v42 = vrot.slane %v9401_v19, 1  ;;  %v9406_v16 = vld [vmem:[#allocation4 + $0xc] sm:$0xff]  }
 0x2ec   : > { %v7586_v25 = vsel %vm2107_vm9, %v7584_v11, %v7585_v18  ;;  %v6273_v54 = vrot.slane %v6271_v30, 1  ;;  %v9402_v12 = vld [vmem:[#allocation4 + $0x18] sm:$0xff]   ;;  %v5791_v13 = vrot.slane %v9400_v2, 1  ;;  %v9403_v6 = vld [vmem:[#allocation4 + $0x20] ss:$0 sps:$4 sm:$0x11]  }
 0x2ed   : > { %v6268_v1 = vrot.slane %v6266_v28, 1  ;;  %v5377_v58 = vshrl.u32 %v9402_v12, 16  ;;  %v9404_v59 = vld [vmem:[#allocation4 + $0xc] sm:$0xfe]   ;;  %v4933_v50 = vld [vmem:[#allocation4 + $0x24] sm:$0xf] }
 0x2ee   : > { %v5793_v10 = vsel %vm2107_vm9, %v5791_v13, %v5792_v42  ;;  %v5379_v60 = vshll.u32 %v9402_v12, 16  ;;  %v9405_v62 = vld [vmem:[#allocation4 + $0x14] ss:$0 sps:$4 sm:$0x11]   ;;  %v4944_v61 = vld [vmem:[#allocation4 + $0x38] sm:$0x1] }
 0x2ef   : > { %5835 = vrot.lane.b32.xlu1 %v5790_v44, %s9961_s17  ;;  %7632 = vrot.lane.b32.xlu0 %v7586_v25, %s9966_s21  ;;  %v6269_v55 = vor.u32 %v6268_v1, %v6264_v27  ;;  %v4937_v18 = vld [vmem:[#allocation4 + $0x2c] sm:$0x1]  ;;  %v9409_v1 = vld [vmem:[#allocation4 + $0x20] ss:$0 sps:$4 sm:$0x11]   ;;  %v5365_v13 = vshrl.u32 %v9406_v16, 16 }
 0x2f0   : > { %v8949_v57 = vpop.f32.mrb[4].mxu0  ;;  %v5381_v36 = vrot.slane %v5379_v60, 1  ;;  %vm12308_vm0 = vcmask 261312  }
 0x2f1   : > { %v4283_v40 = vmul.f32 %v8949_v57, %v11411_v63  ;;  %v4159_v22 = vpop.f32.mrb[5].mxu0  ;;  %v6274_v53 = vsel %vm1673_vm7, %v6269_v55, %v6273_v54  ;;  %v5384_v57 = vshll.u32 %v9403_v6, 16 }
 0x2f2   : > { %v4281_v49 = vmul.f32 %v11411_v63, %v4159_v22  ;;  %v8950_v3 = vpop.f32.mrb[6].mxu0 }
 0x2f3   : > { %v4322_v20 = vadd.f32 %v11414_v7, %v4283_v40  ;;  %v4284_v46 = vmul.f32 %v8950_v3, %v11411_v63  ;;  %v4162_v29 = vpop.f32.mrb[7].mxu0  ;;  %5837 = vrot.lane.b32.xlu0 %v5793_v10, %s9961_s17  ;;  %6445 = vrot.lane.b32.xlu1 %v6274_v53, %s9963_s14 }
 0x2f4   : > { %v4320_v41 = vadd.f32 %v11414_v7, %v4281_v49  ;;  %v4282_v38 = vmul.f32 %v11411_v63, %v4162_v29  ;;  %v9408_v49 = vld [vmem:[#allocation4 + $0x18] sm:$0xff]  }
 0x2f5   : > { %v4354_v43 = vmax.f32 %v4322_v20, 0.0  ;;  %v4323_v34 = vadd.f32 %v11414_v7, %v4284_v46  ;;  %v5386_v20 = vrot.slane %v5384_v57, 1  ;;  %v9407_v46 = vld [vmem:[#allocation4 + $0x14] ss:$0 sps:$4 sm:$0x11]   ;;  %v7154_v6 = vshll.u32 %v9408_v49, 16 }
 0x2f6   : > { %v4352_v31 = vmax.f32 %v4320_v41, 0.0  ;;  %v4321_v4 = vadd.f32 %v11414_v7, %v4282_v38  ;;  %v5382_v41 = vor.u32 %v5381_v36, %v5377_v58  ;;  %v9410_v38 = vld [vmem:[#allocation4 + $0xc] sm:$0xff]   ;;  %v5372_v42 = vshll.u32 %v9407_v46, 16 }
 0x2f7   : > { %v8870_v14 = vpack.c.bf16 %v4354_v43, %v4354_v43  ;;  %v4355_v23 = vmax.f32 %v4323_v34, 0.0  ;;  %v6684_v43 = vrot.slane %v9404_v59, 1  ;;  %v7152_v58 = vshrl.u32 %v9408_v49, 16 }
 0x2f8   : > { %v8868_v17 = vpack.c.bf16 %v4352_v31, %v4352_v31  ;;  %v4353_v33 = vmax.f32 %v4321_v4, 0.0  ;;  %v5387_v31 = vsel %vm1673_vm7, %v5382_v41, %v5386_v20  ;;  %v6685_v4 = vrot.slane %v9405_v62, 1 }
 0x2f9   : > { %v4648_v15 = vshrl.u32 %v8870_v14, 16  ;;  %v4651_v5 = vshll.u32 %v8870_v14, 16  ;;  %v8871_v9 = vpack.c.bf16 %v4355_v23, %v4355_v23  ;;  %5548 = vrot.lane.b32.xlu1 %v5387_v31, %s9957_s28  ;;  %v5367_v14 = vshll.u32 %v9406_v16, 16 }
 0x2fa   : > { %v4631_v0 = vshrl.u32 %v8868_v17, 16  ;;  %v4634_v51 = vshll.u32 %v8868_v17, 16  ;;  %v8869_v52 = vpack.c.bf16 %v4353_v33, %v4353_v33  ;;  %v6686_v23 = vsel %vm2107_vm9, %v6684_v43, %v6685_v4  ;;  %v9411_v17 = vld [vmem:[#allocation4 + $0x14] ss:$0 sps:$4 sm:$0x11]   ;;  %v5545_v33 = vpop.permute.xlu0 %5544 }
 0x2fb   : > { %v4650_v48 = vrot.slane %v4648_v15, 7  ;;  %v4656_v45 = vshrl.u32 %v8871_v9, 16  ;;  %v4659_v56 = vshll.u32 %v8871_v9, 16  ;;  %6732 = vrot.lane.b32.xlu0 %v6686_v23, %s9965_s19  ;;  %v5369_v55 = vrot.slane %v5367_v14, 1  ;;  %v4492_v9 = vld [vmem:[#allocation4 + $0x80] sm:$0x1] }
 0x2fc   : > { %v4633_v37 = vrot.slane %v4631_v0, 7  ;;  %v4639_v8 = vshrl.u32 %v8869_v52, 16  ;;  %v4642_v39 = vshll.u32 %v8869_v52, 16  ;;  %v7159_v15 = vshll.u32 %v9409_v1, 16  ;;  %v4489_v52 = vld [vmem:[#allocation4 + $0x74] sm:$0x1] }
 0x2fd   : > { %v4653_v40 = vor.u32 %v4651_v5, %v4650_v48  ;;  %v4654_v22 = vrot.slane %v4650_v48, 4  ;;  %v4658_v11 = vrot.slane %v4656_v45, 7  ;;  %v6254_v5 = vshll.u32 %v9410_v38, 16  ;;  %v9476_v45 = vld [vmem:[#allocation4] sm:$0xff]  }
 0x2fe   : > { %v4636_v3 = vor.u32 %v4634_v51, %v4633_v37  ;;  %v4637_v44 = vrot.slane %v4633_v37, 4  ;;  %v4641_v21 = vrot.slane %v4639_v8, 7  ;;  %v5374_v10 = vrot.slane %v5372_v42, 1  ;;  %5160 = vst.msk [vmem:[#allocation5] sm:$0xff] %vm12307_vm1, %v9476_v45 }
 0x2ff   : > { %v4941_v29 = vsel %vm11431_vm14, %v4653_v40, %v4940_v47  ;;  %v4661_v25 = vor.u32 %v4659_v56, %v4658_v11  ;;  %v4663_v27 = vrot.slane %v4658_v11, 4  ;;  %v7156_v47 = vrot.slane %v7154_v6, 1  ;;  %5593 = vst.msk [vmem:[#allocation5] sm:$0xff] %vm5592_vm8, %v5545_v33 }
 0x300   : > { %4942 = vst [vmem:[#allocation4 + $0x30] sm:$0xf] %v4941_v29  ;;  %v4934_v28 = vsel %vm11431_vm14, %v4636_v3, %v4933_v50  ;;  %v4644_v30 = vor.u32 %v4642_v39, %v4641_v21  ;;  %v4646_v2 = vrot.slane %v4641_v21, 4  ;;  %v6252_v0 = vshrl.u32 %v9410_v38, 16  ;;  %v5834_v39 = vpop.permute.xlu0 %5833 }
 0x301   : > { %4935 = vst [vmem:[#allocation4 + $0x24] sm:$0xf] %v4934_v28  ;;  %v4662_v34 = vsel %vm10621_vm10, %v4654_v22, %v4661_v25  ;;  %v4945_v19 = vsel %vm11300_vm2, %v4663_v27, %v4944_v61  ;;  %v4493_v51 = vsel %vm11314_vm5, 0, %v4492_v9  ;;  %v5370_v53 = vor.u32 %v5369_v55, %v5365_v13  ;;  %5882 = vst.msk [vmem:[#allocation5] sm:$0xff] %vm12309_vm3, %v5834_v39  ;;  %v4947_v39 = vld [vmem:[#allocation4 + $0x3c] sm:$0xf] }
 0x302   : > { %4943 = vst.msk [vmem:[#allocation4 + $0x34] sm:$0xf] %vm12347_vm4, %v4662_v34  ;;  %4946 = vst [vmem:[#allocation4 + $0x38] sm:$0x1] %v4945_v19  ;;  %v4645_v54 = vsel %vm10621_vm10, %v4637_v44, %v4644_v30  ;;  %v4938_v12 = vsel %vm11300_vm2, %v4646_v2, %v4937_v18  ;;  %v6256_v59 = vrot.slane %v6254_v5, 1  ;;  %v6259_v48 = vshll.u32 %v9411_v17, 16 }
 0x303   : > { %4936 = vst.msk [vmem:[#allocation4 + $0x28] sm:$0xf] %vm12348_vm6, %v4645_v54  ;;  %4939 = vst [vmem:[#allocation4 + $0x2c] sm:$0x1] %v4938_v12  ;;  %v4490_v50 = vsel %vm11314_vm5, 0, %v4489_v52  ;;  %v7157_v56 = vor.u32 %v7156_v47, %v7152_v58  ;;  %v7161_v60 = vrot.slane %v7159_v15, 1  ;;  %v5375_v62 = vsel %vm1673_vm7, %v5370_v53, %v5374_v10 }
 0x304   : > { %4494 = vst [vmem:[#allocation4 + $0x80] sm:$0x1] %v4493_v51  ;;  %4491 = vst [vmem:[#allocation4 + $0x74] sm:$0x1] %v4490_v50  ;;  %5546 = vrot.lane.b32.xlu1 %v5375_v62, %s9957_s28  ;;  %v6257_v61 = vor.u32 %v6256_v59, %v6252_v0  ;;  %v6261_v57 = vrot.slane %v6259_v48, 1 }
 0x305   : > { %v7162_v37 = vsel %vm1673_vm7, %v7157_v56, %v7161_v60  ;;  %v4954_v56 = vld [vmem:[#allocation4 + $0x48] sm:$0xf]  ;;  %vm12353_vm6 = vmmov %vm12347_vm4 }
 0x306   : > { %7343 = vrot.lane.b32.xlu0 %v7162_v37, %s9967_s22  ;;  %v6262_v40 = vsel %vm1673_vm7, %v6257_v61, %v6261_v57 }
 0x309   : > { %v9412_v8 = vld [vmem:[#allocation4 + $0x30] sm:$0xff]   ;;  %v9417_v11 = vld [vmem:[#allocation4 + $0x38] ss:$0 sps:$4 sm:$0x11]  }
 0x30a   : > { %v9416_v16 = vld [vmem:[#allocation4 + $0x30] sm:$0xfe]   ;;  %6016 = vrot.lane.b32.xlu1 %v9412_v8, %s9959_s9  ;;  %6443 = vrot.lane.b32.xlu0 %v6262_v40, %s9963_s14  ;;  %v9414_v18 = vld [vmem:[#allocation4 + $0x24] sm:$0xff]   ;;  %v6694_v3 = vrot.slane %v9417_v11, 1 }
 0x30b   : > { %v9413_v22 = vld [vmem:[#allocation4 + $0x30] sm:$0xff]   ;;  %v6693_v36 = vrot.slane %v9416_v16, 1  ;;  %v9419_v44 = vld [vmem:[#allocation4 + $0x38] ss:$0 sps:$4 sm:$0x11]   ;;  %v9415_v38 = vld [vmem:[#allocation4 + $0x24] sm:$0xff]  }
 0x30c   : > { %v9418_v49 = vld [vmem:[#allocation4 + $0x30] sm:$0xfe]   ;;  %v7591_v25 = vrot.slane %v9419_v44, 1  ;;  %v9420_v27 = vld [vmem:[#allocation4 + $0x24] sm:$0xfe]  }
 0x30d   : > { %v7590_v20 = vrot.slane %v9418_v49, 1  ;;  %v9424_v41 = vld [vmem:[#allocation4 + $0x30] sm:$0xff]   ;;  %v9421_v2 = vld [vmem:[#allocation4 + $0x2c] ss:$0 sps:$4 sm:$0x11]   ;;  %v5794_v31 = vrot.slane %v9420_v27, 1  ;;  %v6695_v12 = vsel %vm2107_vm9, %v6693_v36, %v6694_v3 }
 0x30e   : > { %6912 = vrot.lane.b32.xlu1 %v9414_v18, %s9964_s13  ;;  %6914 = vrot.lane.b32.xlu0 %v9413_v22, %s9964_s13  ;;  %v9422_v4 = vld [vmem:[#allocation4 + $0x30] sm:$0xfe]   ;;  %v5795_v14 = vrot.slane %v9421_v2, 1  ;;  %v9423_v23 = vld [vmem:[#allocation4 + $0x38] ss:$0 sps:$4 sm:$0x11]  }
 0x30f   : > { %v5797_v6 = vrot.slane %v9422_v4, 1  ;;  %v7592_v55 = vsel %vm2107_vm9, %v7590_v20, %v7591_v25  ;;  %v5798_v58 = vrot.slane %v9423_v23, 1  ;;  %v9425_v15 = vld [vmem:[#allocation4 + $0x38] ss:$0 sps:$4 sm:$0x11]   ;;  %v6288_v9 = vshrl.u32 %v9424_v41, 16 }
 0x310   : > { %v6290_v10 = vshll.u32 %v9424_v41, 16  ;;  %v5796_v51 = vsel %vm2107_vm9, %v5794_v31, %v5795_v14  ;;  %v6295_v52 = vshll.u32 %v9425_v15, 16  ;;  %v9426_v50 = vld [vmem:[#allocation4 + $0x24] sm:$0xfe]   ;;  %v9428_v22 = vld [vmem:[#allocation4 + $0x30] sm:$0xff]  }
 0x311   : > { %v5799_v48 = vsel %vm2107_vm9, %v5797_v6, %v5798_v58  ;;  %v9427_v61 = vld [vmem:[#allocation4 + $0x2c] ss:$0 sps:$4 sm:$0x11]   ;;  %v4958_v36 = vld [vmem:[#allocation4 + $0x50] sm:$0x1]  ;;  %v7587_v3 = vrot.slane %v9426_v50, 1 }
 0x312   : > { %6738 = vrot.lane.b32.xlu1 %v6695_v12, %s9965_s19  ;;  %6014 = vrot.lane.b32.xlu0 %v9415_v38, %s9959_s9  ;;  %v6297_v40 = vrot.slane %v6295_v52, 1  ;;  %v7588_v38 = vrot.slane %v9427_v61, 1  ;;  %v9434_v31 = vld [vmem:[#allocation4 + $0x30] sm:$0xff]   ;;  %v9430_v14 = vld [vmem:[#allocation4 + $0x24] sm:$0xfe]  }
 0x313   : > { %v9431_v23 = vld [vmem:[#allocation4 + $0x2c] ss:$0 sps:$4 sm:$0x11]   ;;  %v6690_v15 = vrot.slane %v9430_v14, 1  ;;  %v7176_v50 = vshrl.u32 %v9434_v31, 16 }
 0x314   : > { %v8953_v21 = vpop.f32.mrb[8].mxu0  ;;  %v7589_v12 = vsel %vm2107_vm9, %v7587_v3, %v7588_v38 }
 0x315   : > { %v4287_v46 = vmul.f32 %v8953_v21, %v11411_v63  ;;  %v4175_v29 = vpop.f32.mrb[9].mxu0 }
 0x316   : > { %v4285_v28 = vmul.f32 %v11411_v63, %v4175_v29  ;;  %v8954_v30 = vpop.f32.mrb[10].mxu0  ;;  %5839 = vrot.lane.b32.xlu1 %v5796_v51, %s9961_s17  ;;  %7636 = vrot.lane.b32.xlu0 %v7592_v55, %s9966_s21 }
 0x317   : > { %v4326_v43 = vadd.f32 %v11414_v7, %v4287_v46  ;;  %v4288_v34 = vmul.f32 %v8954_v30, %v11411_v63  ;;  %v4178_v19 = vpop.f32.mrb[11].mxu0  ;;  %v4951_v46 = vld [vmem:[#allocation4 + $0x44] sm:$0x1] }
 0x318   : > { %v4324_v1 = vadd.f32 %v11414_v7, %v4285_v28  ;;  %v4286_v54 = vmul.f32 %v11411_v63, %v4178_v19  ;;  %v9429_v28 = vld [vmem:[#allocation4 + $0x38] ss:$0 sps:$4 sm:$0x11]   ;;  %v9432_v30 = vld [vmem:[#allocation4 + $0x24] sm:$0xff]  }
 0x319   : > { %v4358_v13 = vmax.f32 %v4326_v43, 0.0  ;;  %v4327_v42 = vadd.f32 %v11414_v7, %v4288_v34  ;;  %v7164_v51 = vshrl.u32 %v9432_v30, 16  ;;  %v7166_v52 = vshll.u32 %v9432_v30, 16 }
 0x31a   : > { %v4356_v17 = vmax.f32 %v4324_v1, 0.0  ;;  %v4325_v33 = vadd.f32 %v11414_v7, %v4286_v54  ;;  %v6292_v7 = vrot.slane %v6290_v10, 1  ;;  %5841 = vrot.lane.b32.xlu0 %v5799_v48, %s9961_s17 }
 0x31b   : > { %v8874_v63 = vpack.c.bf16 %v4358_v13, %v4358_v13  ;;  %v4359_v5 = vmax.f32 %v4327_v42, 0.0  ;;  %v9436_v13 = vld [vmem:[#allocation4 + $0x24] sm:$0xff]  }
 0x31c   : > { %v8872_v47 = vpack.c.bf16 %v4356_v17, %v4356_v17  ;;  %v4357_v0 = vmax.f32 %v4325_v33, 0.0  ;;  %v6293_v16 = vor.u32 %v6292_v7, %v6288_v9  ;;  %v5403_v17 = vshll.u32 %v9428_v22, 16  ;;  %v9435_v7 = vld [vmem:[#allocation4 + $0x38] ss:$0 sps:$4 sm:$0x11]  }
 0x31d   : > { %v4682_v53 = vshrl.u32 %v8874_v63, 16  ;;  %v8875_v59 = vpack.c.bf16 %v4359_v5, %v4359_v5  ;;  %v4685_v45 = vshll.u32 %v8874_v63, 16  ;;  %v5408_v33 = vshll.u32 %v9429_v28, 16 }
 0x31e   : > { %v4665_v60 = vshrl.u32 %v8872_v47, 16  ;;  %v4668_v62 = vshll.u32 %v8872_v47, 16  ;;  %v8873_v37 = vpack.c.bf16 %v4357_v0, %v4357_v0  ;;  %v6298_v29 = vsel %vm1673_vm7, %v6293_v16, %v6297_v40  ;;  %7634 = vrot.lane.b32.xlu0 %v7589_v12, %s9966_s21  ;;  %v9433_v47 = vld [vmem:[#allocation4 + $0x2c] ss:$0 sps:$4 sm:$0x11]  }
 0x31f   : > { %v4684_v8 = vrot.slane %v4682_v53, 7  ;;  %v4690_v57 = vshrl.u32 %v8875_v59, 16  ;;  %v4693_v18 = vshll.u32 %v8875_v59, 16  ;;  %6449 = vrot.lane.b32.xlu1 %v6298_v29, %s9963_s14  ;;  %v6691_v63 = vrot.slane %v9431_v23, 1  ;;  %v9438_v53 = vld [vmem:[#allocation4 + $0x24] sm:$0xff]  }
 0x320   : > { %v4667_v11 = vrot.slane %v4665_v60, 7  ;;  %v4673_v49 = vshrl.u32 %v8873_v37, 16  ;;  %v4676_v20 = vshll.u32 %v8873_v37, 16  ;;  %v5401_v5 = vshrl.u32 %v9428_v22, 16 }
 0x321   : > { %v4687_v44 = vor.u32 %v4685_v45, %v4684_v8  ;;  %v4692_v21 = vrot.slane %v4690_v57, 7  ;;  %v4688_v25 = vrot.slane %v4684_v8, 4  ;;  %v5405_v9 = vrot.slane %v5403_v17, 1  ;;  %v9437_v16 = vld [vmem:[#allocation4 + $0x2c] ss:$0 sps:$4 sm:$0x11]  }
 0x322   : > { %v4670_v27 = vor.u32 %v4668_v62, %v4667_v11  ;;  %v4675_v41 = vrot.slane %v4673_v49, 7  ;;  %v4671_v43 = vrot.slane %v4667_v11, 4  ;;  %v5410_v10 = vrot.slane %v5408_v33, 1  ;;  %v9439_v49 = vld [vmem:[#allocation4 + $0x2c] ss:$0 sps:$4 sm:$0x11]  }
 0x323   : > { %v4955_v2 = vsel %vm11431_vm14, %v4687_v44, %v4954_v56  ;;  %v4695_v34 = vor.u32 %v4693_v18, %v4692_v21  ;;  %v4697_v19 = vrot.slane %v4692_v21, 4  ;;  %v6692_v0 = vsel %vm2107_vm9, %v6690_v15, %v6691_v63  ;;  %v11563_v63 = vld [vmem:[#allocation11] ss:$0 sm:$0xff] }
 0x324   : > { %4956 = vst [vmem:[#allocation4 + $0x48] sm:$0xf] %v4955_v2  ;;  %v4948_v4 = vsel %vm11431_vm14, %v4670_v27, %v4947_v39  ;;  %v4678_v1 = vor.u32 %v4676_v20, %v4675_v41  ;;  %v4680_v54 = vrot.slane %v4675_v41, 4  ;;  %v5406_v59 = vor.u32 %v5405_v9, %v5401_v5  ;;  %6736 = vrot.lane.b32.xlu0 %v6692_v0, %s9965_s19  ;;  %v9499_v39 = vld [vmem:[#allocation4 + $0x18] sm:$0xff]  }
 0x325   : > { %4949 = vst [vmem:[#allocation4 + $0x3c] sm:$0xf] %v4948_v4  ;;  %v4696_v42 = vsel %vm10621_vm10, %v4688_v25, %v4695_v34  ;;  %v4959_v6 = vsel %vm11300_vm2, %v4697_v19, %v4958_v36  ;;  %v7171_v48 = vshll.u32 %v9433_v47, 16  ;;  %v7178_v45 = vshll.u32 %v9434_v31, 16  ;;  %5162 = vst.msk [vmem:[#allocation5 + $0x10] sm:$0xff] %vm12307_vm1, %v9499_v39 }
 0x326   : > { %4957 = vst.msk [vmem:[#allocation4 + $0x4c] sm:$0xf] %vm12349_vm11, %v4696_v42  ;;  %4960 = vst [vmem:[#allocation4 + $0x50] sm:$0x1] %v4959_v6  ;;  %v4679_v55 = vsel %vm10621_vm10, %v4671_v43, %v4678_v1  ;;  %v4952_v58 = vsel %vm11300_vm2, %v4680_v54, %v4951_v46  ;;  %v7168_v56 = vrot.slane %v7166_v52, 1  ;;  %v5391_v60 = vshll.u32 %v9436_v13, 16 }
 0x327   : > { %4950 = vst.msk [vmem:[#allocation4 + $0x40] sm:$0xf] %vm12350_vm12, %v4679_v55  ;;  %4953 = vst [vmem:[#allocation4 + $0x44] sm:$0x1] %v4952_v58  ;;  %v5411_v62 = vsel %vm1673_vm7, %v5406_v59, %v5410_v10  ;;  %v7180_v37 = vrot.slane %v7178_v45, 1  ;;  %v7183_v61 = vshll.u32 %v9435_v7, 16 }
 0x328   : > { %v5389_v8 = vshrl.u32 %v9436_v13, 16  ;;  %5552 = vrot.lane.b32.xlu1 %v5411_v62, %s9957_s28  ;;  %v7169_v57 = vor.u32 %v7168_v56, %v7164_v51  ;;  %v5393_v40 = vrot.slane %v5391_v60, 1  ;;  %v7173_v22 = vrot.slane %v7171_v48, 1 }
 0x329   : > { %v7181_v11 = vor.u32 %v7180_v37, %v7176_v50  ;;  %v7185_v18 = vrot.slane %v7183_v61, 1  ;;  %v5396_v36 = vshll.u32 %v9437_v16, 16  ;;  %v6278_v3 = vshll.u32 %v9438_v53, 16 }
 0x32a   : > { %v7174_v44 = vsel %vm1673_vm7, %v7169_v57, %v7173_v22  ;;  %v5394_v20 = vor.u32 %v5393_v40, %v5389_v8  ;;  %v6276_v46 = vshrl.u32 %v9438_v53, 16  ;;  %v6283_v25 = vshll.u32 %v9439_v49, 16  ;;  %v11568_v53 = vld [vmem:[#allocation12] ss:$0 sm:$0xff] }
 0x32b   : > { %v7186_v21 = vsel %vm1673_vm7, %v7181_v11, %v7185_v18  ;;  %v6280_v29 = vrot.slane %v6278_v3, 1  ;;  %v5398_v27 = vrot.slane %v5396_v36, 1  ;;  %vm6491_vm11 = vcmask 326912  }
 0x32c   : > { %7345 = vrot.lane.b32.xlu1 %v7174_v44, %s9967_s22  ;;  %7347 = vrot.lane.b32.xlu0 %v7186_v21, %s9967_s22  ;;  %v6285_v38 = vrot.slane %v6283_v25, 1  ;;  %vm6780_vm12 = vcmask 392512  }
 0x32d   : > { %v6281_v41 = vor.u32 %v6280_v29, %v6276_v46  ;;  %v9440_v28 = vld [vmem:[#allocation4 + $0x48] sm:$0xff]   ;;  %v5399_v30 = vsel %vm1673_vm7, %v5394_v20, %v5398_v27  ;;  %v9445_v19 = vld [vmem:[#allocation4 + $0x50] ss:$0 sps:$4 sm:$0x11]  }
 0x32e   : > { %v9441_v2 = vld [vmem:[#allocation4 + $0x48] sm:$0xff]   ;;  %v6700_v1 = vrot.slane %v9445_v19, 1  ;;  %v9447_v12 = vld [vmem:[#allocation4 + $0x50] ss:$0 sps:$4 sm:$0x11]   ;;  %v9442_v23 = vld [vmem:[#allocation4 + $0x3c] sm:$0xff]  }
 0x32f   : > { %v6286_v43 = vsel %vm1673_vm7, %v6281_v41, %v6285_v38  ;;  %v9444_v34 = vld [vmem:[#allocation4 + $0x48] sm:$0xfe]   ;;  %v9448_v42 = vld [vmem:[#allocation4 + $0x3c] sm:$0xfe]   ;;  %v7597_v55 = vrot.slane %v9447_v12, 1 }
 0x330   : > { %5550 = vrot.lane.b32.xlu1 %v5399_v30, %s9957_s28  ;;  %v9452_v31 = vld [vmem:[#allocation4 + $0x48] sm:$0xff]   ;;  %6447 = vrot.lane.b32.xlu0 %v6286_v43, %s9963_s14  ;;  %v6699_v4 = vrot.slane %v9444_v34, 1  ;;  %v9443_v33 = vld [vmem:[#allocation4 + $0x3c] sm:$0xff]   ;;  %v9449_v58 = vld [vmem:[#allocation4 + $0x44] ss:$0 sps:$4 sm:$0x11]  }
 0x331   : > { %v9446_v54 = vld [vmem:[#allocation4 + $0x48] sm:$0xfe]   ;;  %v6312_v14 = vshrl.u32 %v9452_v31, 16  ;;  %v6314_v6 = vshll.u32 %v9452_v31, 16  ;;  %v5800_v10 = vrot.slane %v9448_v42, 1  ;;  %v5801_v51 = vrot.slane %v9449_v58, 1 }
 0x332   : > { %v7596_v13 = vrot.slane %v9446_v54, 1  ;;  %v11561_v15 = vld [vmem:[#allocation4 + $0x48] sm:$0xff]   ;;  %v6701_v50 = vsel %vm2107_vm9, %v6699_v4, %v6700_v1  ;;  %v9451_v45 = vld [vmem:[#allocation4 + $0x50] ss:$0 sps:$4 sm:$0x11]  }
 0x333   : > { %v9450_v52 = vld [vmem:[#allocation4 + $0x48] sm:$0xfe]   ;;  %v5804_v39 = vrot.slane %v9451_v45, 1  ;;  %v9453_v57 = vld [vmem:[#allocation4 + $0x50] ss:$0 sps:$4 sm:$0x11]   ;;  %v5802_v11 = vsel %vm2107_vm9, %v5800_v10, %v5801_v51 }
 0x334   : > { %6020 = vrot.lane.b32.xlu1 %v9440_v28, %s9959_s9  ;;  %6918 = vrot.lane.b32.xlu0 %v9441_v2, %s9964_s13  ;;  %v7598_v62 = vsel %vm2107_vm9, %v7596_v13, %v7597_v55  ;;  %v5803_v37 = vrot.slane %v9450_v52, 1  ;;  %v6316_v16 = vrot.slane %v6314_v6, 1  ;;  %v5425_v18 = vshrl.u32 %v11561_v15, 16  ;;  %v9454_v21 = vld [vmem:[#allocation4 + $0x3c] sm:$0xfe]  }
 0x335   : > { %v6319_v29 = vshll.u32 %v9453_v57, 16  ;;  %v9455_v25 = vld [vmem:[#allocation4 + $0x44] ss:$0 sps:$4 sm:$0x11]   ;;  %v5427_v27 = vshll.u32 %v11561_v15, 16  ;;  %v7593_v30 = vrot.slane %v9454_v21, 1 }
 0x336   : > { %v5805_v3 = vsel %vm2107_vm9, %v5803_v37, %v5804_v39  ;;  %v6317_v44 = vor.u32 %v6316_v16, %v6312_v14  ;;  %v4968_v2 = vld [vmem:[#allocation4 + $0x60] sm:$0xf]  ;;  %v4961_v1 = vld [vmem:[#allocation4 + $0x54] sm:$0xf]  ;;  %v7594_v14 = vrot.slane %v9455_v25, 1 }
 0x337   : > { %v8957_v17 = vpop.f32.mrb[12].mxu0  ;;  %v6321_v31 = vrot.slane %v6319_v29, 1  ;;  %v4972_v13 = vld [vmem:[#allocation4 + $0x68] sm:$0x1]  ;;  %v9460_v10 = vld [vmem:[#allocation4 + $0x3c] sm:$0xff]   ;;  %v5429_v52 = vrot.slane %v5427_v27, 1 }
 0x338   : > { %v4291_v5 = vmul.f32 %v11563_v63, %v8957_v17  ;;  %v4191_v9 = vpop.f32.mrb[13].mxu0  ;;  %6916 = vrot.lane.b32.xlu1 %v9442_v23, %s9964_s13  ;;  %6018 = vrot.lane.b32.xlu0 %v9443_v33, %s9959_s9  ;;  %v9457_v33 = vld [vmem:[#allocation4 + $0x50] ss:$0 sps:$4 sm:$0x11]   ;;  %v7190_v29 = vshll.u32 %v9460_v10, 16 }
 0x339   : > { %v4289_v47 = vmul.f32 %v11563_v63, %v4191_v9  ;;  %v8958_v0 = vpop.f32.mrb[14].mxu0  ;;  %v6322_v17 = vsel %vm1673_vm7, %v6317_v44, %v6321_v31  ;;  %v7595_v9 = vsel %vm2107_vm9, %v7593_v30, %v7594_v14  ;;  %v5430_v39 = vor.u32 %v5429_v52, %v5425_v18  ;;  %v9459_v57 = vld [vmem:[#allocation4 + $0x44] ss:$0 sps:$4 sm:$0x11]   ;;  %v9466_v44 = vld [vmem:[#allocation4 + $0x3c] sm:$0xff]   ;;  %v9527_v21 = vld [vmem:[#allocation14] sm:$0xff]  }
 0x33a   : > { %v4330_v59 = vadd.f32 %v11568_v53, %v4291_v5  ;;  %v4292_v48 = vmul.f32 %v11563_v63, %v8958_v0  ;;  %v4194_v7 = vpop.f32.mrb[15].mxu0  ;;  %v4965_v5 = vld [vmem:[#allocation4 + $0x5c] sm:$0x1]  ;;  %8975 = vmatprep.subr.bf16.mxu1 %v9527_v21  ;;  %v7192_v30 = vrot.slane %v7190_v29, 1 }
 0x33b   : > { %v4328_v56 = vadd.f32 %v11568_v53, %v4289_v47  ;;  %v4290_v60 = vmul.f32 %v11563_v63, %v4194_v7  ;;  %8976 = vmatpush3.bf16.msra.mxu1 %v9527_v21 }
 0x33c   : > { %v4362_v61 = vmax.f32 %v4330_v59, 0.0  ;;  %v4331_v8 = vadd.f32 %v11568_v53, %v4292_v48  ;;  %6742 = vrot.lane.b32.xlu1 %v6701_v50, %s9965_s19  ;;  %7640 = vrot.lane.b32.xlu0 %v7598_v62, %s9966_s21  ;;  %v9462_v59 = vld [vmem:[#allocation4 + $0x48] sm:$0xff]   ;;  %v9464_v62 = vld [vmem:[#allocation4 + $0x3c] sm:$0xff]  }
 0x33d   : > { %v4360_v40 = vmax.f32 %v4328_v56, 0.0  ;;  %v4329_v22 = vadd.f32 %v11568_v53, %v4290_v60  ;;  %v9502_v48 = vld [vmem:[#allocation4 + $0xc] sm:$0xff]   ;;  %v5432_v56 = vshll.u32 %v9457_v33, 16  ;;  %v9458_v60 = vld [vmem:[#allocation4 + $0x3c] sm:$0xfe]   ;;  %v5413_v31 = vshrl.u32 %v9464_v62, 16 }
 0x33e   : > { %v8878_v36 = vpack.c.bf16 %v4362_v61, %v4362_v61  ;;  %v4363_v49 = vmax.f32 %v4331_v8, 0.0  ;;  %5161 = vst.msk [vmem:[#allocation5 + $0x8] sm:$0xff] %vm12307_vm1, %v9502_v48 }
 0x33f   : > { %v8876_v20 = vpack.c.bf16 %v4360_v40, %v4360_v40  ;;  %v4361_v46 = vmax.f32 %v4329_v22, 0.0  ;;  %v5434_v22 = vrot.slane %v5432_v56, 1 }
 0x340   : > { %v4716_v41 = vshrl.u32 %v8878_v36, 16  ;;  %v4719_v38 = vshll.u32 %v8878_v36, 16  ;;  %v8879_v28 = vpack.c.bf16 %v4363_v49, %v4363_v49  ;;  %5843 = vrot.lane.b32.xlu1 %v5802_v11, %s9961_s17  ;;  %5845 = vrot.lane.b32.xlu0 %v5805_v3, %s9961_s17  ;;  %v6696_v11 = vrot.slane %v9458_v60, 1  ;;  %v9461_v3 = vld [vmem:[#allocation4 + $0x44] ss:$0 sps:$4 sm:$0x11]  }
 0x341   : > { %v4699_v43 = vshrl.u32 %v8876_v20, 16  ;;  %v4702_v34 = vshll.u32 %v8876_v20, 16  ;;  %v8877_v19 = vpack.c.bf16 %v4361_v46, %v4361_v46  ;;  %v6697_v49 = vrot.slane %v9459_v57, 1 }
 0x342   : > { %v4718_v4 = vrot.slane %v4716_v41, 7  ;;  %v4724_v54 = vshrl.u32 %v8879_v28, 16  ;;  %v4727_v12 = vshll.u32 %v8879_v28, 16  ;;  %v5435_v20 = vsel %vm1673_vm7, %v5430_v39, %v5434_v22  ;;  %v9463_v41 = vld [vmem:[#allocation4 + $0x50] ss:$0 sps:$4 sm:$0x11]  }
 0x343   : > { %v4701_v23 = vrot.slane %v4699_v43, 7  ;;  %v4707_v42 = vshrl.u32 %v8877_v19, 16  ;;  %v4710_v6 = vshll.u32 %v8877_v19, 16  ;;  %v7188_v46 = vshrl.u32 %v9460_v10, 16 }
 0x344   : > { %v4721_v55 = vor.u32 %v4719_v38, %v4718_v4  ;;  %v4722_v58 = vrot.slane %v4718_v4, 4  ;;  %v4726_v15 = vrot.slane %v4724_v54, 7  ;;  %6453 = vrot.lane.b32.xlu1 %v6322_v17, %s9963_s14  ;;  %7638 = vrot.lane.b32.xlu0 %v7595_v9, %s9966_s21  ;;  %v6698_v25 = vsel %vm2107_vm9, %v6696_v11, %v6697_v49  ;;  %v9467_v17 = vld [vmem:[#allocation4 + $0x44] ss:$0 sps:$4 sm:$0x11]  }
 0x345   : > { %v4704_v47 = vor.u32 %v4702_v34, %v4701_v23  ;;  %v4705_v0 = vrot.slane %v4701_v23, 4  ;;  %v4709_v51 = vrot.slane %v4707_v42, 7  ;;  %v7195_v27 = vshll.u32 %v9461_v3, 16 }
 0x346   : > { %v4969_v7 = vsel %vm11431_vm14, %v4721_v55, %v4968_v2  ;;  %v4729_v50 = vor.u32 %v4727_v12, %v4726_v15  ;;  %v4731_v45 = vrot.slane %v4726_v15, 4  ;;  %v7200_v38 = vshrl.u32 %v9462_v59, 16 }
 0x347   : > { %4970 = vst [vmem:[#allocation4 + $0x60] sm:$0xf] %v4969_v7  ;;  %v4962_v37 = vsel %vm11431_vm14, %v4704_v47, %v4961_v1  ;;  %v4712_v61 = vor.u32 %v4710_v6, %v4709_v51  ;;  %v4714_v8 = vrot.slane %v4709_v51, 4  ;;  %v7202_v28 = vshll.u32 %v9462_v59, 16 }
 0x348   : > { %4963 = vst [vmem:[#allocation4 + $0x54] sm:$0xf] %v4962_v37  ;;  %v4730_v16 = vsel %vm10621_vm10, %v4722_v58, %v4729_v50  ;;  %v4973_v40 = vsel %vm11300_vm2, %v4731_v45, %v4972_v13  ;;  %5556 = vrot.lane.b32.xlu1 %v5435_v20, %s9957_s28  ;;  %6740 = vrot.lane.b32.xlu0 %v6698_v25, %s9965_s19  ;;  %v5415_v2 = vshll.u32 %v9464_v62, 16  ;;  %v7197_v43 = vrot.slane %v7195_v27, 1 }
 0x349   : > { %4971 = vst.msk [vmem:[#allocation4 + $0x64] sm:$0xf] %vm12351_vm13, %v4730_v16  ;;  %4974 = vst [vmem:[#allocation4 + $0x68] sm:$0x1] %v4973_v40  ;;  %v4713_v36 = vsel %vm10621_vm10, %v4705_v0, %v4712_v61  ;;  %v4966_v18 = vsel %vm11300_vm2, %v4714_v8, %v4965_v5  ;;  %v7204_v34 = vrot.slane %v7202_v28, 1  ;;  %v7207_v19 = vshll.u32 %v9463_v41, 16 }
 0x34a   : > { %4964 = vst.msk [vmem:[#allocation4 + $0x58] sm:$0xf] %vm12352_vm15, %v4713_v36  ;;  %4967 = vst [vmem:[#allocation4 + $0x5c] sm:$0x1] %v4966_v18  ;;  %v7193_v4 = vor.u32 %v7192_v30, %v7188_v46  ;;  %v5417_v54 = vrot.slane %v5415_v2, 1  ;;  %v6302_v23 = vshll.u32 %v9466_v44, 16 }
 0x34b   : > { %v9465_v1 = vld [vmem:[#allocation4 + $0x44] ss:$0 sps:$4 sm:$0x11]   ;;  %v7205_v12 = vor.u32 %v7204_v34, %v7200_v38  ;;  %v7209_v14 = vrot.slane %v7207_v19, 1  ;;  %v6300_v55 = vshrl.u32 %v9466_v44, 16  ;;  %v6307_v5 = vshll.u32 %v9467_v17, 16 }
 0x34c   : > { %v7198_v13 = vsel %vm1673_vm7, %v7193_v4, %v7197_v43  ;;  %v5418_v42 = vor.u32 %v5417_v54, %v5413_v31  ;;  %v5420_v6 = vshll.u32 %v9465_v1, 16  ;;  %v6304_v58 = vrot.slane %v6302_v23, 1 }
 0x34d   : > { %7349 = vrot.lane.b32.xlu1 %v7198_v13, %s9967_s22  ;;  %v7210_v33 = vsel %vm1673_vm7, %v7205_v12, %v7209_v14  ;;  %v6309_v47 = vrot.slane %v6307_v5, 1  ;;  %vm6958_vm13 = vcmask 458112   ;;  %vm7391_vm15 = vcmask 523712  }
 0x34e   : > { %7351 = vrot.lane.b32.xlu0 %v7210_v33, %s9967_s22  ;;  %v5422_v15 = vrot.slane %v5420_v6, 1  ;;  %v6305_v9 = vor.u32 %v6304_v58, %v6300_v55  ;;  %v4982_v55 = vld [vmem:[#allocation4 + $0x78] sm:$0xf] }
 0x350   : > { %v5423_v10 = vsel %vm1673_vm7, %v5418_v42, %v5422_v15  ;;  %v9468_v0 = vld [vmem:[#allocation4 + $0x60] sm:$0xff]   ;;  %v6310_v52 = vsel %vm1673_vm7, %v6305_v9, %v6309_v47  ;;  %v9473_v48 = vld [vmem:[#allocation4 + $0x68] ss:$0 sps:$4 sm:$0x11]   ;;  %v4975_v47 = vld [vmem:[#allocation4 + $0x6c] sm:$0xf] }
 0x351   : > { %5554 = vrot.lane.b32.xlu1 %v5423_v10, %s9957_s28  ;;  %v9469_v51 = vld [vmem:[#allocation4 + $0x60] sm:$0xff]   ;;  %v9470_v60 = vld [vmem:[#allocation4 + $0x54] sm:$0xff]   ;;  %v6706_v61 = vrot.slane %v9473_v48, 1  ;;  %v9475_v8 = vld [vmem:[#allocation4 + $0x68] ss:$0 sps:$4 sm:$0x11]  }
 0x352   : > { %v9472_v59 = vld [vmem:[#allocation4 + $0x60] sm:$0xfe]   ;;  %6451 = vrot.lane.b32.xlu0 %v6310_v52, %s9963_s14  ;;  %v9471_v11 = vld [vmem:[#allocation4 + $0x54] sm:$0xff]   ;;  %v7603_v49 = vrot.slane %v9475_v8, 1  ;;  %v4986_v48 = vld [vmem:[#allocation4 + $0x80] sm:$0x1] }
 0x353   : > { %v11618_v7 = vld [vmem:[#allocation4 + $0x60] sm:$0xff]   ;;  %v6705_v45 = vrot.slane %v9472_v59, 1  ;;  %v9477_v3 = vld [vmem:[#allocation4 + $0x54] sm:$0xfe]  }
 0x354   : > { %v9474_v56 = vld [vmem:[#allocation4 + $0x60] sm:$0xfe]   ;;  %v6336_v39 = vshrl.u32 %v11618_v7, 16  ;;  %v9478_v20 = vld [vmem:[#allocation4 + $0x5c] ss:$0 sps:$4 sm:$0x11]  }
 0x355   : > { %6024 = vrot.lane.b32.xlu1 %v9468_v0, %s9959_s9  ;;  %v7602_v40 = vrot.slane %v9474_v56, 1  ;;  %v6338_v46 = vshll.u32 %v11618_v7, 16  ;;  %v5806_v27 = vrot.slane %v9477_v3, 1  ;;  %v5807_v28 = vrot.slane %v9478_v20, 1  ;;  %v9479_v30 = vld [vmem:[#allocation4 + $0x60] sm:$0xfe]  }
 0x356   : > { %6922 = vrot.lane.b32.xlu0 %v9469_v51, %s9964_s13  ;;  %v6707_v34 = vsel %vm2107_vm9, %v6705_v45, %v6706_v61  ;;  %v9480_v31 = vld [vmem:[#allocation4 + $0x68] ss:$0 sps:$4 sm:$0x11]   ;;  %v5809_v14 = vrot.slane %v9479_v30, 1  ;;  %v9483_v56 = vld [vmem:[#allocation4 + $0x54] sm:$0xfe]  }
 0x357   : > { %v8961_v50 = vpop.f32.mrb[16].mxu0  ;;  %v7604_v19 = vsel %vm2107_vm9, %v7602_v40, %v7603_v49  ;;  %v5808_v12 = vsel %vm2107_vm9, %v5806_v27, %v5807_v28  ;;  %v5810_v17 = vrot.slane %v9480_v31, 1  ;;  %v9482_v33 = vld [vmem:[#allocation4 + $0x68] ss:$0 sps:$4 sm:$0x11]   ;;  %v6340_v9 = vrot.slane %v6338_v46, 1 }
 0x358   : > { %v4295_v62 = vmul.f32 %v11563_v63, %v8961_v50  ;;  %v4207_v37 = vpop.f32.mrb[17].mxu0  ;;  %v11636_v4 = vpop.permute.xlu1 %6012  ;;  %v6343_v40 = vshll.u32 %v9482_v33, 16  ;;  %v7599_v49 = vrot.slane %v9483_v56, 1  ;;  %v9486_v27 = vld [vmem:[#allocation4 + $0x68] ss:$0 sps:$4 sm:$0x11]  }
 0x359   : > { %v4293_v57 = vmul.f32 %v11563_v63, %v4207_v37  ;;  %v8962_v16 = vpop.f32.mrb[18].mxu0  ;;  %6920 = vrot.lane.b32.xlu1 %v9470_v60, %s9964_s13  ;;  %v11639_v23 = vpop.permute.xlu0 %6910  ;;  %v5811_v52 = vsel %vm2107_vm9, %v5809_v14, %v5810_v17  ;;  %v6341_v45 = vor.u32 %v6340_v9, %v6336_v39  ;;  %v9485_v60 = vld [vmem:[#allocation4 + $0x60] sm:$0xff]   ;;  %v9493_v9 = vld [vmem:[#allocation4 + $0x54] sm:$0xff]  }
 0x35a   : > { %v4334_v22 = vadd.f32 %v11568_v53, %v4295_v62  ;;  %v4296_v36 = vmul.f32 %v11563_v63, %v8962_v16  ;;  %v4210_v18 = vpop.f32.mrb[19].mxu0  ;;  %6022 = vrot.lane.b32.xlu0 %v9471_v11, %s9959_s9  ;;  %v4979_v16 = vld [vmem:[#allocation4 + $0x74] sm:$0x1] }
 0x35b   : > { %v4332_v44 = vadd.f32 %v11568_v53, %v4293_v57  ;;  %v4294_v21 = vmul.f32 %v11563_v63, %v4210_v18 }
 0x35c   : > { %v4366_v29 = vmax.f32 %v4334_v22, 0.0  ;;  %v4335_v25 = vadd.f32 %v11568_v53, %v4296_v36  ;;  %v9484_v22 = vld [vmem:[#allocation4 + $0x5c] ss:$0 sps:$4 sm:$0x11]  }
 0x35d   : > { %v4364_v41 = vmax.f32 %v4332_v44, 0.0  ;;  %v4333_v38 = vadd.f32 %v11568_v53, %v4294_v21  ;;  %6746 = vrot.lane.b32.xlu1 %v6707_v34, %s9965_s19  ;;  %v11644_v62 = vpop.permute.xlu1 %6734  ;;  %v6011_v37 = vpop.permute.xlu0 %6010  ;;  %v6345_v21 = vrot.slane %v6343_v40, 1  ;;  %v9494_v40 = vld [vmem:[#allocation4 + $0x5c] ss:$0 sps:$4 sm:$0x11]  }
 0x35e   : > { %v8882_v2 = vpack.c.bf16 %v4366_v29, %v4366_v29  ;;  %v4367_v43 = vmax.f32 %v4335_v25, 0.0  ;;  %7644 = vrot.lane.b32.xlu0 %v7604_v19, %s9966_s21  ;;  %6059 = vst.msk [vmem:[#allocation5] sm:$0xff] %vm12308_vm0, %v6011_v37  ;;  %v7600_v25 = vrot.slane %v9484_v22, 1 }
 0x35f   : > { %v8880_v1 = vpack.c.bf16 %v4364_v41, %v4364_v41  ;;  %v4365_v54 = vmax.f32 %v4333_v38, 0.0  ;;  %v9489_v41 = vld [vmem:[#allocation4 + $0x54] sm:$0xff]   ;;  %v6346_v30 = vsel %vm1673_vm7, %v6341_v45, %v6345_v21 }
 0x360   : > { %v4750_v13 = vshrl.u32 %v8882_v2, 16  ;;  %v4753_v42 = vshll.u32 %v8882_v2, 16  ;;  %v8883_v6 = vpack.c.bf16 %v4367_v43, %v4367_v43  ;;  %v5449_v2 = vshrl.u32 %v9485_v60, 16  ;;  %v9530_v43 = vld [vmem:[#allocation14 + $0x8] sm:$0xff]  }
 0x361   : > { %v4733_v58 = vshrl.u32 %v8880_v1, 16  ;;  %v4736_v15 = vshll.u32 %v8880_v1, 16  ;;  %v8881_v5 = vpack.c.bf16 %v4365_v54, %v4365_v54  ;;  %5847 = vrot.lane.b32.xlu1 %v5808_v12, %s9961_s17  ;;  %v7601_v31 = vsel %vm2107_vm9, %v7599_v49, %v7600_v25  ;;  %v9487_v54 = vld [vmem:[#allocation4 + $0x54] sm:$0xfe]   ;;  %v9491_v12 = vld [vmem:[#allocation4 + $0x60] sm:$0xff]   ;;  %v11665_v14 = vpop.permute.xlu1 %5835  ;;  %8977 = vmatprep.subr.bf16.mxu1 %v9530_v43 }
 0x362   : > { %v4752_v10 = vrot.slane %v4750_v13, 7  ;;  %v4758_v0 = vshrl.u32 %v8883_v6, 16  ;;  %v4761_v51 = vshll.u32 %v8883_v6, 16  ;;  %5849 = vrot.lane.b32.xlu0 %v5811_v52, %s9961_s17  ;;  %v5451_v1 = vshll.u32 %v9485_v60, 16  ;;  %v9533_v13 = vld [vmem:[#allocation4 + $0x30] sm:$0xff]   ;;  %8978 = vmatpush3.bf16.msra.mxu1 %v9530_v43 }
 0x363   : > { %v4735_v59 = vrot.slane %v4733_v58, 7  ;;  %v4741_v7 = vshrl.u32 %v8881_v5, 16  ;;  %v4744_v50 = vshll.u32 %v8881_v5, 16  ;;  %v9488_v6 = vld [vmem:[#allocation4 + $0x5c] ss:$0 sps:$4 sm:$0x11]  }
 0x364   : > { %v4755_v61 = vor.u32 %v4753_v42, %v4752_v10  ;;  %v4756_v8 = vrot.slane %v4752_v10, 4  ;;  %v4760_v57 = vrot.slane %v4758_v0, 7  ;;  %v5456_v42 = vshll.u32 %v9486_v27, 16  ;;  %5164 = vst.msk [vmem:[#allocation5 + $0x20] sm:$0xff] %vm12307_vm1, %v9533_v13  ;;  %v4443_v43 = vld [vmem:[#allocation4 + $0x90] sm:$0x1]  ;;  %vm12354_vm1 = vmmov %vm12353_vm6 }
 0x365   : > { %v4738_v11 = vor.u32 %v4736_v15, %v4735_v59  ;;  %v4739_v36 = vrot.slane %v4735_v59, 4  ;;  %v4743_v18 = vrot.slane %v4741_v7, 7  ;;  %6457 = vrot.lane.b32.xlu1 %v6346_v30, %s9963_s14  ;;  %v5453_v17 = vrot.slane %v5451_v1, 1  ;;  %v9490_v5 = vld [vmem:[#allocation4 + $0x5c] ss:$0 sps:$4 sm:$0x11]   ;;  %v11675_v56 = vpop.permute.xlu1 %6445 }
 0x366   : > { %v4983_v39 = vsel %vm11431_vm14, %v4755_v61, %v4982_v55  ;;  %v4763_v3 = vor.u32 %v4761_v51, %v4760_v57  ;;  %v4765_v44 = vrot.slane %v4760_v57, 4  ;;  %7642 = vrot.lane.b32.xlu0 %v7601_v31, %s9966_s21  ;;  %v6702_v33 = vrot.slane %v9487_v54, 1  ;;  %v11669_v55 = vpop.permute.xlu0 %7632  ;;  %v9492_v59 = vld [vmem:[#allocation4 + $0x68] ss:$0 sps:$4 sm:$0x11]  }
 0x367   : > { %4984 = vst [vmem:[#allocation4 + $0x78] sm:$0xf] %v4983_v39  ;;  %v4976_v20 = vsel %vm11431_vm14, %v4738_v11, %v4975_v47  ;;  %v4746_v46 = vor.u32 %v4744_v50, %v4743_v18  ;;  %v4748_v29 = vrot.slane %v4743_v18, 4  ;;  %v5458_v58 = vrot.slane %v5456_v42, 1 }
 0x368   : > { %4977 = vst [vmem:[#allocation4 + $0x6c] sm:$0xf] %v4976_v20  ;;  %v4764_v38 = vsel %vm10621_vm10, %v4756_v8, %v4763_v3  ;;  %v4987_v28 = vsel %vm11300_vm2, %v4765_v44, %v4986_v48  ;;  %v6703_v15 = vrot.slane %v9488_v6, 1  ;;  %v5454_v10 = vor.u32 %v5453_v17, %v5449_v2  ;;  %v9495_v48 = vld [vmem:[#allocation4 + $0x54] sm:$0xff]  }
 0x369   : > { %4985 = vst.msk [vmem:[#allocation4 + $0x7c] sm:$0xf] %vm12347_vm4, %v4764_v38  ;;  %4988 = vst [vmem:[#allocation4 + $0x80] sm:$0x1] %v4987_v28  ;;  %v4747_v34 = vsel %vm10621_vm10, %v4739_v36, %v4746_v46  ;;  %v4980_v19 = vsel %vm11300_vm2, %v4748_v29, %v4979_v16  ;;  %v7212_v47 = vshrl.u32 %v9489_v41, 16  ;;  %v7214_v0 = vshll.u32 %v9489_v41, 16 }
 0x36a   : > { %4978 = vst.msk [vmem:[#allocation4 + $0x70] sm:$0xf] %vm12353_vm6, %v4747_v34  ;;  %4981 = vst [vmem:[#allocation4 + $0x74] sm:$0x1] %v4980_v19  ;;  %v6704_v51 = vsel %vm2107_vm9, %v6702_v33, %v6703_v15  ;;  %v7219_v52 = vshll.u32 %v9490_v5, 16  ;;  %v5459_v7 = vsel %vm1673_vm7, %v5454_v10, %v5458_v58  ;;  %v7226_v45 = vshll.u32 %v9491_v12, 16  ;;  %v5838_v22 = vpop.permute.xlu0 %5837 }
 0x36b   : > { %6744 = vrot.lane.b32.xlu0 %v6704_v51, %s9965_s19  ;;  %v7216_v50 = vrot.slane %v7214_v0, 1  ;;  %5560 = vrot.lane.b32.xlu1 %v5459_v7, %s9957_s28  ;;  %v7224_v37 = vshrl.u32 %v9491_v12, 16  ;;  %v7231_v61 = vshll.u32 %v9492_v59, 16  ;;  %v5439_v8 = vshll.u32 %v9493_v9, 16  ;;  %v5549_v27 = vpop.permute.xlu1 %5548  ;;  %v4440_v12 = vld [vmem:[#allocation4 + $0x84] sm:$0x1] }
 0x36c   : > { %v7221_v60 = vrot.slane %v7219_v52, 1  ;;  %v7228_v16 = vrot.slane %v7226_v45, 1  ;;  %v5437_v11 = vshrl.u32 %v9493_v9, 16  ;;  %v5444_v3 = vshll.u32 %v9494_v40, 16  ;;  %5595 = vst.msk [vmem:[#allocation5 + $0x10] sm:$0xff] %vm5592_vm8, %v5549_v27 }
 0x36d   : > { %v7217_v57 = vor.u32 %v7216_v50, %v7212_v47  ;;  %v5441_v36 = vrot.slane %v5439_v8, 1  ;;  %v7233_v39 = vrot.slane %v7231_v61, 1  ;;  %v9496_v44 = vld [vmem:[#allocation4 + $0x5c] ss:$0 sps:$4 sm:$0x11]   ;;  %v6326_v20 = vshll.u32 %v9495_v48, 16 }
 0x36e   : > { %v7229_v49 = vor.u32 %v7228_v16, %v7224_v37  ;;  %v5446_v29 = vrot.slane %v5444_v3, 1  ;;  %v6331_v25 = vshll.u32 %v9496_v44, 16  ;;  %v6324_v41 = vshrl.u32 %v9495_v48, 16  ;;  %5884 = vst.msk [vmem:[#allocation5 + $0x10] sm:$0xff] %vm12309_vm3, %v5838_v22  ;;  %v11685_v2 = vpop.permute.xlu0 %6732  ;;  %v4498_v33 = vld [vmem:[#allocation4 + $0x98] sm:$0x1] }
 0x36f   : > { %v7222_v18 = vsel %vm1673_vm7, %v7217_v57, %v7221_v60  ;;  %v5442_v21 = vor.u32 %v5441_v36, %v5437_v11  ;;  %v6328_v38 = vrot.slane %v6326_v20, 1  ;;  %v4444_v31 = vsel %vm11300_vm2, 0, %v4443_v43  ;;  %v4495_v9 = vld [vmem:[#allocation4 + $0x8c] sm:$0x1] }
 0x370   : > { %7353 = vrot.lane.b32.xlu1 %v7222_v18, %s9967_s22  ;;  %v7234_v46 = vsel %vm1673_vm7, %v7229_v49, %v7233_v39  ;;  %v9497_v30 = vld [vmem:[#allocation4 + $0x78] sm:$0xff]   ;;  %v6333_v19 = vrot.slane %v6331_v25, 1  ;;  %4445 = vst [vmem:[#allocation4 + $0x90] sm:$0x1] %v4444_v31  ;;  %v4441_v17 = vsel %vm11300_vm2, 0, %v4440_v12  ;;  %v4499_v5 = vsel %vm11314_vm5, 0, %v4498_v33 }
 0x371   : > { %7355 = vrot.lane.b32.xlu0 %v7234_v46, %s9967_s22  ;;  %v5447_v28 = vsel %vm1673_vm7, %v5442_v21, %v5446_v29  ;;  %v6329_v34 = vor.u32 %v6328_v38, %v6324_v41  ;;  %v9498_v1 = vld [vmem:[#allocation4 + $0x78] sm:$0xff]   ;;  %4442 = vst [vmem:[#allocation4 + $0x84] sm:$0x1] %v4441_v17  ;;  %v9500_v10 = vld [vmem:[#allocation4 + $0x6c] sm:$0xff]   ;;  %4500 = vst [vmem:[#allocation4 + $0x98] sm:$0x1] %v4499_v5 }
 0x372   : > { %v4496_v59 = vsel %vm11314_vm5, 0, %v4495_v9  ;;  %v9503_v45 = vld [vmem:[#allocation4 + $0x78] sm:$0xfe]   ;;  %v9504_v60 = vld [vmem:[#allocation4 + $0x80] ss:$0 sps:$4 sm:$0x11]  }
 0x373   : > { %v6334_v13 = vsel %vm1673_vm7, %v6329_v34, %v6333_v19  ;;  %4497 = vst [vmem:[#allocation4 + $0x8c] sm:$0x1] %v4496_v59  ;;  %v11709_v8 = vld [vmem:[#allocation4 + $0x78] sm:$0xff]   ;;  %v6711_v16 = vrot.slane %v9503_v45, 1  ;;  %v6712_v40 = vrot.slane %v9504_v60, 1  ;;  %v9501_v11 = vld [vmem:[#allocation4 + $0x6c] sm:$0xff]  }
 0x374   : > { %5558 = vrot.lane.b32.xlu1 %v5447_v28, %s9957_s28  ;;  %vm7680_vm4 = vcmask 589312   ;;  %v6360_v18 = vshrl.u32 %v11709_v8, 16  ;;  %v9506_v3 = vld [vmem:[#allocation4 + $0x80] ss:$0 sps:$4 sm:$0x11]   ;;  %v6362_v43 = vshll.u32 %v11709_v8, 16 }
 0x375   : > { %6455 = vrot.lane.b32.xlu0 %v6334_v13, %s9963_s14  ;;  %v6713_v20 = vsel %vm2107_vm9, %v6711_v16, %v6712_v40  ;;  %v7609_v41 = vrot.slane %v9506_v3, 1  ;;  %v11732_v34 = vld [vmem:[#allocation4 + $0x78] sm:$0xff]   ;;  %v9513_v3 = vld [vmem:[#allocation4 + $0x6c] sm:$0xfe]  }
 0x376   : > { %v5547_v0 = vpop.permute.xlu1 %5546  ;;  %v9509_v45 = vld [vmem:[#allocation4 + $0x78] sm:$0xfe]   ;;  %v5473_v16 = vshrl.u32 %v11732_v34, 16 }
 0x377   : > { %v8965_v54 = vpop.f32.mrb[20].mxu0  ;;  %5594 = vst.msk [vmem:[#allocation5 + $0x8] sm:$0xff] %vm5592_vm8, %v5547_v0 }
 0x378   : > { %v4299_v42 = vmul.f32 %v11563_v63, %v8965_v54  ;;  %v4223_v6 = vpop.f32.mrb[21].mxu0  ;;  %6028 = vrot.lane.b32.xlu1 %v9497_v30, %s9959_s9  ;;  %v7344_v7 = vpop.permute.xlu0 %7343  ;;  %5883 = vst.msk [vmem:[#allocation5 + $0x8] sm:$0xff] %vm12309_vm3, %v11665_v14  ;;  %v9505_v14 = vld [vmem:[#allocation4 + $0x78] sm:$0xfe]   ;;  %v5000_v54 = vld [vmem:[#allocation4 + $0x98] sm:$0x1] }
 0x379   : > { %v4297_v58 = vmul.f32 %v11563_v63, %v4223_v6  ;;  %v8966_v15 = vpop.f32.mrb[22].mxu0  ;;  %6926 = vrot.lane.b32.xlu0 %v9498_v1, %s9964_s13  ;;  %6060 = vst.msk [vmem:[#allocation5 + $0x8] sm:$0xff] %vm12308_vm0, %v11636_v4  ;;  %v7608_v46 = vrot.slane %v9505_v14, 1 }
 0x37a   : > { %v4338_v47 = vadd.f32 %v11568_v53, %v4299_v42  ;;  %v4300_v51 = vmul.f32 %v11563_v63, %v8966_v15  ;;  %v4226_v52 = vpop.f32.mrb[23].mxu0  ;;  %6493 = vst.msk [vmem:[#allocation5 + $0x8] sm:$0xff] %vm6491_vm11, %v11675_v56  ;;  %v4996_v56 = vld [vmem:[#allocation4 + $0x90] sm:$0xf] }
 0x37b   : > { %v4336_v48 = vadd.f32 %v11568_v53, %v4297_v58  ;;  %v4298_v50 = vmul.f32 %v11563_v63, %v4226_v52  ;;  %6782 = vst.msk [vmem:[#allocation5 + $0x8] sm:$0xff] %vm6780_vm12, %v11644_v62  ;;  %v4989_v62 = vld [vmem:[#allocation4 + $0x84] sm:$0xf]  ;;  %v7610_v33 = vsel %vm2107_vm9, %v7608_v46, %v7609_v41  ;;  %v9507_v58 = vld [vmem:[#allocation4 + $0x6c] sm:$0xfe]  }
 0x37c   : > { %v4370_v37 = vmax.f32 %v4338_v47, 0.0  ;;  %v4339_v61 = vadd.f32 %v11568_v53, %v4300_v51  ;;  %6924 = vrot.lane.b32.xlu1 %v9500_v10, %s9964_s13  ;;  %v11719_v49 = vpop.permute.xlu1 %6016  ;;  %v9508_v10 = vld [vmem:[#allocation4 + $0x74] ss:$0 sps:$4 sm:$0x11]   ;;  %v6364_v47 = vrot.slane %v6362_v43, 1  ;;  %v5812_v59 = vrot.slane %v9507_v58, 1 }
 0x37d   : > { %v4368_v57 = vmax.f32 %v4336_v48, 0.0  ;;  %v4337_v63 = vadd.f32 %v11568_v53, %v4298_v50  ;;  %v6444_v53 = vpop.permute.xlu0 %6443  ;;  %6026 = vrot.lane.b32.xlu0 %v9501_v11, %s9959_s9  ;;  %v5813_v50 = vrot.slane %v9508_v10, 1  ;;  %v9514_v46 = vld [vmem:[#allocation4 + $0x74] ss:$0 sps:$4 sm:$0x11]  }
 0x37e   : > { %v8886_v22 = vpack.c.bf16 %v4370_v37, %v4370_v37  ;;  %v4371_v36 = vmax.f32 %v4339_v61, 0.0  ;;  %6492 = vst.msk [vmem:[#allocation5] sm:$0xff] %vm6491_vm11, %v6444_v53 }
 0x37f   : > { %v8884_v39 = vpack.c.bf16 %v4368_v57, %v4368_v57  ;;  %v4369_v4 = vmax.f32 %v4337_v63, 0.0  ;;  %6781 = vst.msk [vmem:[#allocation5] sm:$0xff] %vm6780_vm12, %v11685_v2  ;;  %v9510_v63 = vld [vmem:[#allocation4 + $0x80] ss:$0 sps:$4 sm:$0x11]   ;;  %v5814_v11 = vsel %vm2107_vm9, %v5812_v59, %v5813_v50  ;;  %v9525_v59 = vld [vmem:[#allocation4 + $0x6c] sm:$0xff]  }
 0x380   : > { %v4784_v44 = vshrl.u32 %v8886_v22, 16  ;;  %v8887_v21 = vpack.c.bf16 %v4371_v36, %v4371_v36  ;;  %v4787_v29 = vshll.u32 %v8886_v22, 16  ;;  %6750 = vrot.lane.b32.xlu1 %v6713_v20, %s9965_s19  ;;  %6959 = vst.msk [vmem:[#allocation5] sm:$0xff] %vm6958_vm13, %v11639_v23  ;;  %v6913_v19 = vpop.permute.xlu1 %6912  ;;  %v4993_v23 = vld [vmem:[#allocation4 + $0x8c] sm:$0x1]  ;;  %v5815_v36 = vrot.slane %v9509_v45, 1 }
 0x381   : > { %v4767_v25 = vshrl.u32 %v8884_v39, 16  ;;  %v8885_v27 = vpack.c.bf16 %v4369_v4, %v4369_v4  ;;  %v4770_v28 = vshll.u32 %v8884_v39, 16  ;;  %7392 = vst.msk [vmem:[#allocation5] sm:$0xff] %vm7391_vm15, %v7344_v7  ;;  %v11735_v2 = vpop.permute.xlu0 %6914  ;;  %7648 = vrot.lane.b32.xlu0 %v7610_v33, %s9966_s21  ;;  %v5816_v14 = vrot.slane %v9510_v63, 1  ;;  %v9519_v4 = vld [vmem:[#allocation4 + $0x6c] sm:$0xff]  }
 0x382   : > { %v4786_v38 = vrot.slane %v4784_v44, 7  ;;  %v4792_v30 = vshrl.u32 %v8887_v21, 16  ;;  %v4795_v1 = vshll.u32 %v8887_v21, 16  ;;  %6960 = vst.msk [vmem:[#allocation5 + $0x8] sm:$0xff] %vm6958_vm13, %v6913_v19  ;;  %v6365_v21 = vor.u32 %v6364_v47, %v6360_v18 }
 0x383   : > { %v4769_v31 = vrot.slane %v4767_v25, 7  ;;  %v4775_v12 = vshrl.u32 %v8885_v27, 16  ;;  %v4778_v13 = vshll.u32 %v8885_v27, 16  ;;  %7681 = vst.msk [vmem:[#allocation5] sm:$0xff] %vm7680_vm4, %v11669_v55  ;;  %v5817_v44 = vsel %vm2107_vm9, %v5815_v36, %v5816_v14  ;;  %v9521_v25 = vld [vmem:[#allocation4 + $0x78] sm:$0xff]  }
 0x384   : > { %v4789_v42 = vor.u32 %v4787_v29, %v4786_v38  ;;  %v4790_v6 = vrot.slane %v4786_v38, 4  ;;  %v4794_v17 = vrot.slane %v4792_v30, 7  ;;  %v11746_v37 = vpop.permute.xlu1 %6738  ;;  %5851 = vrot.lane.b32.xlu1 %v5814_v11, %s9961_s17  ;;  %v9512_v39 = vld [vmem:[#allocation4 + $0x80] ss:$0 sps:$4 sm:$0x11]   ;;  %v7605_v29 = vrot.slane %v9513_v3, 1 }
 0x385   : > { %v4772_v15 = vor.u32 %v4770_v28, %v4769_v31  ;;  %v4773_v5 = vrot.slane %v4769_v31, 4  ;;  %v4777_v9 = vrot.slane %v4775_v12, 7  ;;  %v6015_v60 = vpop.permute.xlu0 %6014  ;;  %v6367_v20 = vshll.u32 %v9512_v39, 16  ;;  %5853 = vrot.lane.b32.xlu0 %v5817_v44, %s9961_s17  ;;  %v9516_v28 = vld [vmem:[#allocation4 + $0x80] ss:$0 sps:$4 sm:$0x11]  }
 0x386   : > { %v4997_v0 = vsel %vm11431_vm14, %v4789_v42, %v4996_v56  ;;  %v4797_v51 = vor.u32 %v4795_v1, %v4794_v17  ;;  %v4799_v52 = vrot.slane %v4794_v17, 4  ;;  %6061 = vst.msk [vmem:[#allocation5 + $0x10] sm:$0xff] %vm12308_vm0, %v6015_v60  ;;  %v5475_v56 = vshll.u32 %v11732_v34, 16  ;;  %v9517_v31 = vld [vmem:[#allocation4 + $0x6c] sm:$0xfe]  }
 0x387   : > { %4998 = vst [vmem:[#allocation4 + $0x90] sm:$0xf] %v4997_v0  ;;  %v4990_v48 = vsel %vm11431_vm14, %v4772_v15, %v4989_v62  ;;  %v4780_v7 = vor.u32 %v4778_v13, %v4777_v9  ;;  %v4782_v55 = vrot.slane %v4777_v9, 4  ;;  %v6369_v41 = vrot.slane %v6367_v20, 1 }
 0x388   : > { %4991 = vst [vmem:[#allocation4 + $0x84] sm:$0xf] %v4990_v48  ;;  %v4798_v61 = vsel %vm10621_vm10, %v4790_v6, %v4797_v51  ;;  %v5001_v57 = vsel %vm11300_vm2, %v4799_v52, %v5000_v54  ;;  %v11769_v27 = vpop.permute.xlu1 %5839  ;;  %v7606_v38 = vrot.slane %v9514_v46, 1  ;;  %v5477_v30 = vrot.slane %v5475_v56, 1  ;;  %v9523_v6 = vld [vmem:[#allocation4 + $0x6c] sm:$0xff]  }
 0x389   : > { %4999 = vst.msk [vmem:[#allocation4 + $0x94] sm:$0xf] %vm12353_vm6, %v4798_v61  ;;  %5002 = vst [vmem:[#allocation4 + $0x98] sm:$0x1] %v5001_v57  ;;  %v4781_v40 = vsel %vm10621_vm10, %v4773_v5, %v4780_v7  ;;  %v4994_v22 = vsel %vm11300_vm2, %v4782_v55, %v4993_v23  ;;  %v11762_v53 = vpop.permute.xlu0 %7636  ;;  %v6370_v8 = vsel %vm1673_vm7, %v6365_v21, %v6369_v41  ;;  %v5480_v19 = vshll.u32 %v9516_v28, 16 }
 0x38a   : > { %4992 = vst.msk [vmem:[#allocation4 + $0x88] sm:$0xf] %vm12354_vm1, %v4781_v40  ;;  %4995 = vst [vmem:[#allocation4 + $0x8c] sm:$0x1] %v4994_v22  ;;  %v7697_v62 = vld [vmem:[#allocation5] sm:$0xff]  ;;  %vm7749_vm1 = vcmask 588800   ;;  %v7607_v18 = vsel %vm2107_vm9, %v7605_v29, %v7606_v38  ;;  %6461 = vrot.lane.b32.xlu1 %v6370_v8, %s9963_s14  ;;  %v5478_v34 = vor.u32 %v5477_v30, %v5473_v16 }
 0x38b   : > { %8985 = vmatprep.mubr.msk.bf16.mxu1 %vm7749_vm1, %v7697_v62  ;;  %v7236_v1 = vshrl.u32 %v9519_v4, 16  ;;  %7646 = vrot.lane.b32.xlu0 %v7607_v18, %s9966_s21  ;;  %v9518_v54 = vld [vmem:[#allocation4 + $0x74] ss:$0 sps:$4 sm:$0x11]   ;;  %v7238_v12 = vshll.u32 %v9519_v4, 16  ;;  %v5482_v13 = vrot.slane %v5480_v19, 1 }
 0x38c   : > { %v6708_v42 = vrot.slane %v9517_v31, 1  ;;  %v6709_v17 = vrot.slane %v9518_v54, 1  ;;  %v9520_v23 = vld [vmem:[#allocation4 + $0x74] ss:$0 sps:$4 sm:$0x11]   ;;  %v7248_v58 = vshrl.u32 %v9521_v25, 16 }
 0x38d   : > { %v5842_v43 = vpop.permute.xlu0 %5841  ;;  %v7240_v33 = vrot.slane %v7238_v12, 1  ;;  %v5483_v9 = vsel %vm1673_vm7, %v5478_v34, %v5482_v13  ;;  %v7243_v0 = vshll.u32 %v9520_v23, 16  ;;  %v9522_v51 = vld [vmem:[#allocation4 + $0x80] ss:$0 sps:$4 sm:$0x11]   ;;  %v7250_v52 = vshll.u32 %v9521_v25, 16 }
 0x38e   : > { %5564 = vrot.lane.b32.xlu1 %v5483_v9, %s9957_s28  ;;  %v6710_v10 = vsel %vm2107_vm9, %v6708_v42, %v6709_v17  ;;  %v7255_v55 = vshll.u32 %v9522_v51, 16  ;;  %v9524_v50 = vld [vmem:[#allocation4 + $0x74] ss:$0 sps:$4 sm:$0x11]   ;;  %v5463_v45 = vshll.u32 %v9523_v6, 16  ;;  %v5461_v22 = vshrl.u32 %v9523_v6, 16 }
 0x38f   : > { %v7241_v47 = vor.u32 %v7240_v33, %v7236_v1  ;;  %6748 = vrot.lane.b32.xlu0 %v6710_v10, %s9965_s19  ;;  %v7245_v48 = vrot.slane %v7243_v0, 1  ;;  %v7252_v7 = vrot.slane %v7250_v52, 1  ;;  %v5468_v16 = vshll.u32 %v9524_v50, 16  ;;  %v9526_v36 = vld [vmem:[#allocation4 + $0x74] ss:$0 sps:$4 sm:$0x11]  }
 0x390   : > { %v7257_v63 = vrot.slane %v7255_v55, 1  ;;  %v5465_v11 = vrot.slane %v5463_v45, 1  ;;  %v6350_v14 = vshll.u32 %v9525_v59, 16  ;;  %v6348_v3 = vshrl.u32 %v9525_v59, 16  ;;  %v4449_v29 = vld [vmem:[#allocation4 + $0xa8] sm:$0x1] }
 0x391   : > { %v11776_v15 = vpop.permute.xlu1 %6449  ;;  %v7635_v5 = vpop.permute.xlu0 %7634  ;;  %v7246_v61 = vsel %vm1673_vm7, %v7241_v47, %v7245_v48  ;;  %v7253_v57 = vor.u32 %v7252_v7, %v7248_v58  ;;  %v5470_v4 = vrot.slane %v5468_v16, 1  ;;  %v6355_v20 = vshll.u32 %v9526_v36, 16  ;;  %v9528_v28 = vld [vmem:[#allocation4 + $0x90] sm:$0xff]   ;;  %v11791_v62 = vld [vmem:[#allocation11] ss:$0 sm:$0xff]  ;;  %v9531_v48 = vld [vmem:[#allocation4 + $0x84] sm:$0xff]  }
 0x392   : > { %7357 = vrot.lane.b32.xlu1 %v7246_v61, %s9967_s22  ;;  %v5466_v44 = vor.u32 %v5465_v11, %v5461_v22  ;;  %v6352_v21 = vrot.slane %v6350_v14, 1  ;;  %v9529_v8 = vld [vmem:[#allocation4 + $0x90] sm:$0xff]   ;;  %v4450_v18 = vsel %vm11300_vm2, 0, %v4449_v29  ;;  %v4446_v31 = vld [vmem:[#allocation4 + $0x9c] sm:$0x1]  ;;  %v9539_v9 = vld [vmem:[#allocation14 + $0x18] sm:$0xff]  }
 0x393   : > { %v7258_v39 = vsel %vm1673_vm7, %v7253_v57, %v7257_v63  ;;  %v6357_v38 = vrot.slane %v6355_v20, 1  ;;  %v11800_v34 = vld [vmem:[#allocation12] ss:$0 sm:$0xff]  ;;  %4451 = vst [vmem:[#allocation4 + $0xa8] sm:$0x1] %v4450_v18  ;;  %v4447_v13 = vsel %vm11300_vm2, 0, %v4446_v31 }
 0x394   : > { %7359 = vrot.lane.b32.xlu0 %v7258_v39, %s9967_s22  ;;  %v5471_v25 = vsel %vm1673_vm7, %v5466_v44, %v5470_v4  ;;  %v6353_v41 = vor.u32 %v6352_v21, %v6348_v3  ;;  %v4504_v6 = vld [vmem:[#allocation4 + $0xb0] sm:$0x1]  ;;  %4448 = vst [vmem:[#allocation4 + $0x9c] sm:$0x1] %v4447_v13  ;;  %v4501_v58 = vld [vmem:[#allocation4 + $0xa4] sm:$0x1] }
 0x395   : > { %v4505_v23 = vsel %vm11314_vm5, 0, %v4504_v6  ;;  %v4502_v52 = vsel %vm11314_vm5, 0, %v4501_v58  ;;  %v9535_v55 = vld [vmem:[#allocation4 + $0x90] sm:$0xfe]   ;;  %v9532_v3 = vld [vmem:[#allocation4 + $0x84] sm:$0xff]   ;;  %vm12355_vm6 = vcmask 64512  }
 0x396   : > { %v11782_v60 = vpop.permute.xlu0 %6736  ;;  %5562 = vrot.lane.b32.xlu1 %v5471_v25, %s9957_s28  ;;  %v6358_v1 = vsel %vm1673_vm7, %v6353_v41, %v6357_v38  ;;  %4506 = vst [vmem:[#allocation4 + $0xb0] sm:$0x1] %v4505_v23  ;;  %4503 = vst [vmem:[#allocation4 + $0xa4] sm:$0x1] %v4502_v52  ;;  %v6717_v16 = vrot.slane %v9535_v55, 1  ;;  %v9544_v41 = vld [vmem:[#allocation4 + $0x24] sm:$0xff]  }
 0x397   : > { %v8969_v46 = vpop.f32.mrb[24].mxu0  ;;  %v9536_v57 = vld [vmem:[#allocation4 + $0x98] ss:$0 sps:$4 sm:$0x11]   ;;  %5163 = vst.msk [vmem:[#allocation5 + $0x18] sm:$0xff] %vm12355_vm6, %v9544_v41  ;;  %v9546_v23 = vld [vmem:[#allocation4 + $0x90] sm:$0xff]  }
 0x398   : > { %v4303_v30 = vmul.f32 %v11791_v62, %v8969_v46  ;;  %v4239_v19 = vpop.f32.mrb[25].mxu0  ;;  %6459 = vrot.lane.b32.xlu0 %v6358_v1, %s9963_s14  ;;  %v9538_v39 = vld [vmem:[#allocation4 + $0x8c] ss:$0 sps:$4 sm:$0x11]   ;;  %v6718_v21 = vrot.slane %v9536_v57, 1  ;;  %vm12356_vm6 = vcmask 60416  }
 0x399   : > { %v4301_v12 = vmul.f32 %v11791_v62, %v4239_v19  ;;  %v8970_v42 = vpop.f32.mrb[26].mxu0  ;;  %v9541_v52 = vld [vmem:[#allocation4 + $0x8c] ss:$0 sps:$4 sm:$0x11]   ;;  %v9626_v32 = vld [vmem:[#allocation4 + $0x90] sm:$0xff]  }
 0x39a   : > { %v5553_v40 = vpop.permute.xlu1 %5552  ;;  %v4342_v54 = vadd.f32 %v11800_v34, %v4303_v30  ;;  %v4304_v17 = vmul.f32 %v11791_v62, %v8970_v42  ;;  %v4242_v33 = vpop.f32.mrb[27].mxu0  ;;  %6032 = vrot.lane.b32.xlu1 %v9528_v28, %s9959_s9  ;;  %v5010_v46 = vld [vmem:[#allocation4 + $0xa8] sm:$0xf]  ;;  %v5819_v57 = vrot.slane %v9541_v52, 1 }
 0x39b   : > { %5597 = vst.msk [vmem:[#allocation5 + $0x20] sm:$0xff] %vm5592_vm8, %v5553_v40  ;;  %v4340_v0 = vadd.f32 %v11800_v34, %v4301_v12  ;;  %v4302_v51 = vmul.f32 %v11791_v62, %v4242_v33  ;;  %v9537_v40 = vld [vmem:[#allocation4 + $0x84] sm:$0xfe]   ;;  %v5003_v38 = vld [vmem:[#allocation4 + $0x9c] sm:$0xf] }
 0x39c   : > { %5886 = vst.msk [vmem:[#allocation5 + $0x20] sm:$0xff] %vm12309_vm3, %v5842_v43  ;;  %v4374_v47 = vmax.f32 %v4342_v54, 0.0  ;;  %v4343_v7 = vadd.f32 %v11800_v34, %v4304_v17  ;;  %6930 = vrot.lane.b32.xlu0 %v9529_v8, %s9964_s13  ;;  %v7611_v20 = vrot.slane %v9537_v40, 1  ;;  %v7612_v8 = vrot.slane %v9538_v39, 1 }
 0x39d   : > { %v4372_v45 = vmax.f32 %v4340_v0, 0.0  ;;  %v4341_v61 = vadd.f32 %v11800_v34, %v4302_v51  ;;  %v5007_v6 = vld [vmem:[#allocation4 + $0xa4] sm:$0x1] }
 0x39e   : > { %v7346_v56 = vpop.permute.xlu1 %7345  ;;  %v7348_v43 = vpop.permute.xlu0 %7347  ;;  %v8890_v50 = vpack.c.bf16 %v4374_v47, %v4374_v47  ;;  %v4375_v63 = vmax.f32 %v4343_v7, 0.0  ;;  %6928 = vrot.lane.b32.xlu1 %v9531_v48, %s9964_s13  ;;  %v7613_v17 = vsel %vm2107_vm9, %v7611_v20, %v7612_v8  ;;  %v9540_v47 = vld [vmem:[#allocation4 + $0x84] sm:$0xfe]  }
 0x39f   : > { %7393 = vst.msk [vmem:[#allocation5 + $0x8] sm:$0xff] %vm7391_vm15, %v7346_v56  ;;  %v8888_v36 = vpack.c.bf16 %v4372_v45, %v4372_v45  ;;  %v4373_v14 = vmax.f32 %v4341_v61, 0.0  ;;  %v5818_v55 = vrot.slane %v9540_v47, 1  ;;  %v9552_v8 = vld [vmem:[#allocation4 + $0x84] sm:$0xff]  }
 0x3a0   : > { %7682 = vst.msk [vmem:[#allocation5 + $0x8] sm:$0xff] %vm7680_vm4, %v7635_v5  ;;  %v9534_v5 = vld [vmem:[#allocation14 + $0x10] sm:$0xff]   ;;  %v4818_v11 = vshrl.u32 %v8890_v50, 16  ;;  %v8891_v44 = vpack.c.bf16 %v4375_v63, %v4375_v63  ;;  %6030 = vrot.lane.b32.xlu0 %v9532_v3, %s9959_s9  ;;  %v9543_v63 = vld [vmem:[#allocation4 + $0x8c] ss:$0 sps:$4 sm:$0x11]  }
 0x3a1   : > { %8979 = vmatprep.subr.bf16.mxu1 %v9534_v5  ;;  %v4801_v29 = vshrl.u32 %v8888_v36, 16  ;;  %v4804_v56 = vshll.u32 %v8888_v36, 16  ;;  %v8889_v25 = vpack.c.bf16 %v4373_v14, %v4373_v14  ;;  %v5820_v36 = vsel %vm2107_vm9, %v5818_v55, %v5819_v57 }
 0x3a2   : > { %v11810_v10 = vpop.permute.xlu1 %5550  ;;  %v6448_v59 = vpop.permute.xlu0 %6447  ;;  %8980 = vmatpush3.bf16.msra.mxu1 %v9534_v5  ;;  %v4826_v28 = vshrl.u32 %v8891_v44, 16  ;;  %v4829_v30 = vshll.u32 %v8891_v44, 16  ;;  %v6384_v14 = vshrl.u32 %v9546_v23, 16  ;;  %v6386_v3 = vshll.u32 %v9546_v23, 16 }
 0x3a3   : > { %6494 = vst.msk [vmem:[#allocation5 + $0x10] sm:$0xff] %vm6491_vm11, %v6448_v59  ;;  %8981 = vmatprep.subr.bf16.mxu1 %v9539_v9  ;;  %v4803_v1 = vrot.slane %v4801_v29, 7  ;;  %v4809_v54 = vshrl.u32 %v8889_v25, 16  ;;  %v4812_v42 = vshll.u32 %v8889_v25, 16 }
 0x3a4   : > { %6783 = vst.msk [vmem:[#allocation5 + $0x10] sm:$0xff] %vm6780_vm12, %v11782_v60  ;;  %v4821_v60 = vshll.u32 %v8890_v50, 16  ;;  %v4828_v13 = vrot.slane %v4826_v28, 7  ;;  %7650 = vrot.lane.b32.xlu0 %v7613_v17, %s9966_s21  ;;  %v9542_v50 = vld [vmem:[#allocation4 + $0x84] sm:$0xfe]   ;;  %v6388_v20 = vrot.slane %v6386_v3, 1 }
 0x3a5   : > { %6961 = vst.msk [vmem:[#allocation5 + $0x10] sm:$0xff] %vm6958_vm13, %v11735_v2  ;;  %v4820_v2 = vrot.slane %v4818_v11, 7  ;;  %v4806_v58 = vor.u32 %v4804_v56, %v4803_v1  ;;  %v4807_v5 = vrot.slane %v4803_v1, 4  ;;  %v6714_v40 = vrot.slane %v9542_v50, 1  ;;  %v9545_v11 = vld [vmem:[#allocation14 + $0x20] ss:$0 sps:$4 sm:$0xff]  }
 0x3a6   : > { %v11825_v22 = vpop.permute.xlu1 %6020  ;;  %7394 = vst.msk [vmem:[#allocation5 + $0x10] sm:$0xff] %vm7391_vm15, %v7348_v43  ;;  %v11828_v4 = vpop.permute.xlu0 %6918  ;;  %8982 = vmatpush3.bf16.msra.mxu1 %v9539_v9  ;;  %v6719_v43 = vsel %vm2107_vm9, %v6717_v16, %v6718_v21  ;;  %v4811_v9 = vrot.slane %v4809_v54, 7  ;;  %v4831_v0 = vor.u32 %v4829_v30, %v4828_v13  ;;  %v4833_v51 = vrot.slane %v4828_v13, 4  ;;  %v9553_v17 = vld [vmem:[#allocation4 + $0x8c] ss:$0 sps:$4 sm:$0x11]  }
 0x3a7   : > { %7683 = vst.msk [vmem:[#allocation5 + $0x10] sm:$0xff] %vm7680_vm4, %v11762_v53  ;;  %v4823_v19 = vor.u32 %v4821_v60, %v4820_v2  ;;  %v4824_v31 = vrot.slane %v4820_v2, 4  ;;  %v5014_v53 = vld [vmem:[#allocation4 + $0xb0] sm:$0x1]  ;;  %6754 = vrot.lane.b32.xlu1 %v6719_v43, %s9965_s19  ;;  %v5004_v59 = vsel %vm11431_vm14, %v4806_v58, %v5003_v38  ;;  %v6389_v38 = vor.u32 %v6388_v20, %v6384_v14  ;;  %v9550_v43 = vld [vmem:[#allocation4 + $0x84] sm:$0xff]  }
 0x3a8   : > { %5596 = vst.msk [vmem:[#allocation5 + $0x18] sm:$0xff] %vm5592_vm8, %v11810_v10  ;;  %v4814_v48 = vor.u32 %v4812_v42, %v4811_v9  ;;  %v4816_v7 = vrot.slane %v4811_v9, 4  ;;  %5005 = vst [vmem:[#allocation4 + $0x9c] sm:$0xf] %v5004_v59  ;;  %v7260_v54 = vshrl.u32 %v9550_v43, 16  ;;  %v7698_v13 = vld [vmem:[#allocation5 + $0x8] sm:$0xff] }
 0x3a9   : > { %v5011_v33 = vsel %vm11431_vm14, %v4823_v19, %v5010_v46  ;;  %5885 = vst.msk [vmem:[#allocation5 + $0x18] sm:$0xff] %vm12309_vm3, %v11769_v27  ;;  %v9548_v27 = vld [vmem:[#allocation4 + $0x90] sm:$0xff]   ;;  %v4832_v61 = vsel %vm10621_vm10, %v4824_v31, %v4831_v0  ;;  %vm12357_vm3 = vmmov %vm12356_vm6  ;;  %v9547_v60 = vld [vmem:[#allocation4 + $0x98] ss:$0 sps:$4 sm:$0x11]   ;;  %v6374_v58 = vshll.u32 %v9552_v8, 16 }
 0x3aa   : > { %v6917_v18 = vpop.permute.xlu1 %6916  ;;  %v6019_v12 = vpop.permute.xlu0 %6018  ;;  %5012 = vst [vmem:[#allocation4 + $0xa8] sm:$0xf] %v5011_v33  ;;  %6062 = vst.msk [vmem:[#allocation5 + $0x18] sm:$0xff] %vm12308_vm0, %v11719_v49  ;;  %v5015_v49 = vsel %vm11300_vm2, %v4833_v51, %v5014_v53  ;;  %v5008_v16 = vsel %vm11300_vm2, %v4816_v7, %v5007_v6  ;;  %v6391_v2 = vshll.u32 %v9547_v60, 16  ;;  %v7272_v29 = vshrl.u32 %v9548_v27, 16 }
 0x3ab   : > { %6063 = vst.msk [vmem:[#allocation5 + $0x20] sm:$0xff] %vm12308_vm0, %v6019_v12  ;;  %5016 = vst [vmem:[#allocation4 + $0xb0] sm:$0x1] %v5015_v49  ;;  %vm7798_vm0 = vcmask 1043456   ;;  %5855 = vrot.lane.b32.xlu1 %v5820_v36, %s9961_s17  ;;  %v7274_v56 = vshll.u32 %v9548_v27, 16  ;;  %v7262_v12 = vshll.u32 %v9550_v43, 16 }
 0x3ac   : > { %6495 = vst.msk [vmem:[#allocation5 + $0x18] sm:$0xff] %vm6491_vm11, %v11776_v15  ;;  %v4815_v15 = vsel %vm10621_vm10, %v4807_v5, %v4814_v48  ;;  %5009 = vst [vmem:[#allocation4 + $0xa4] sm:$0x1] %v5008_v16  ;;  %9018 = vmatprep.subr.msk.bf16.mxu1 %vm7798_vm0, %v9545_v11  ;;  %v9549_v46 = vld [vmem:[#allocation4 + $0x98] ss:$0 sps:$4 sm:$0x11]  }
 0x3ad   : > { %6784 = vst.msk [vmem:[#allocation5 + $0x18] sm:$0xff] %vm6780_vm12, %v11746_v37  ;;  %v6715_v37 = vrot.slane %v9543_v63, 1  ;;  %v7800_v25 = vsel %vm7798_vm0, %v9545_v11, 0  ;;  %v6393_v28 = vrot.slane %v6391_v2, 1  ;;  %v7279_v30 = vshll.u32 %v9549_v46, 16  ;;  %v9554_v5 = vld [vmem:[#allocation4 + $0x84] sm:$0xff]  }
 0x3ae   : > { %v11848_v10 = vpop.permute.xlu1 %6742  ;;  %v11854_v45 = vpop.permute.xlu0 %7640  ;;  %5013 = vst.msk [vmem:[#allocation4 + $0xac] sm:$0xf] %vm12356_vm6, %v4832_v61  ;;  %8984 = vmatpush3.bf16.msra.mxu1 %v7800_v25  ;;  %v7276_v19 = vrot.slane %v7274_v56, 1  ;;  %v9551_v31 = vld [vmem:[#allocation4 + $0x8c] ss:$0 sps:$4 sm:$0x11]  }
 0x3af   : > { %6962 = vst.msk [vmem:[#allocation5 + $0x18] sm:$0xff] %vm6958_vm13, %v6917_v18  ;;  %v6716_v21 = vsel %vm2107_vm9, %v6714_v40, %v6715_v37  ;;  %v6394_v1 = vsel %vm1673_vm7, %v6389_v38, %v6393_v28  ;;  %v7281_v53 = vrot.slane %v7279_v30, 1  ;;  %v7267_v6 = vshll.u32 %v9551_v31, 16  ;;  %v9555_v7 = vld [vmem:[#allocation4 + $0x8c] ss:$0 sps:$4 sm:$0x11]  }
 0x3b0   : > { %5006 = vst.msk [vmem:[#allocation4 + $0xa0] sm:$0xf] %vm12357_vm3, %v4815_v15  ;;  %6752 = vrot.lane.b32.xlu0 %v6716_v21, %s9965_s19  ;;  %6465 = vrot.lane.b32.xlu1 %v6394_v1, %s9963_s14  ;;  %v7277_v42 = vor.u32 %v7276_v19, %v7272_v29  ;;  %v7264_v23 = vrot.slane %v7262_v12, 1  ;;  %v6372_v33 = vshrl.u32 %v9552_v8, 16  ;;  %v6379_v51 = vshll.u32 %v9553_v17, 16  ;;  %v7699_v61 = vld [vmem:[#allocation5 + $0x10] sm:$0xff] }
 0x3b1   : > { %8986 = vmatmul.mubr.msk.bf16.vlgmr.msra.gmra.mrb[0].mxu1 %vm7749_vm1, %v7698_v13  ;;  %v7269_v0 = vrot.slane %v7267_v6, 1  ;;  %v6376_v48 = vrot.slane %v6374_v58, 1  ;;  %v5485_v55 = vshrl.u32 %v9554_v5, 16  ;;  %v5487_v50 = vshll.u32 %v9554_v5, 16  ;;  %v9556_v16 = vld [vmem:[#allocation4 + $0x90] sm:$0xfe]  }
 0x3b2   : > { %v11870_v39 = vpop.permute.xlu1 %5843  ;;  %v11874_v44 = vpop.permute.xlu0 %5845  ;;  %v7282_v47 = vsel %vm1673_vm7, %v7277_v42, %v7281_v53  ;;  %v7265_v59 = vor.u32 %v7264_v23, %v7260_v54  ;;  %v6381_v27 = vrot.slane %v6379_v51, 1  ;;  %v5492_v15 = vshll.u32 %v9555_v7, 16  ;;  %8989 = vmatprep.mubr.msk.bf16.mxu1 %vm7749_vm1, %v7699_v61  ;;  %v9557_v40 = vld [vmem:[#allocation4 + $0x98] ss:$0 sps:$4 sm:$0x11]   ;;  %v9558_v11 = vld [vmem:[#allocation4 + $0x90] sm:$0xff]  }
 0x3b3   : > { %v6377_v57 = vor.u32 %v6376_v48, %v6372_v33  ;;  %v5489_v63 = vrot.slane %v5487_v50, 1  ;;  %v7614_v60 = vrot.slane %v9556_v16, 1  ;;  %v7615_v21 = vrot.slane %v9557_v40, 1  ;;  %v9559_v20 = vld [vmem:[#allocation4 + $0x98] ss:$0 sps:$4 sm:$0x11]  }
 0x3b4   : > { %7363 = vrot.lane.b32.xlu0 %v7282_v47, %s9967_s22  ;;  %v7270_v49 = vsel %vm1673_vm7, %v7265_v59, %v7269_v0  ;;  %v5494_v14 = vrot.slane %v5492_v15, 1  ;;  %v5499_v2 = vshll.u32 %v9558_v11, 16  ;;  %v5497_v56 = vshrl.u32 %v9558_v11, 16  ;;  %v9562_v53 = vld [vmem:[#allocation4 + $0xa4] ss:$0 sps:$4 sm:$0x11]  }
 0x3b5   : > { %7361 = vrot.lane.b32.xlu1 %v7270_v49, %s9967_s22  ;;  %v6382_v36 = vsel %vm1673_vm7, %v6377_v57, %v6381_v27  ;;  %v5490_v37 = vor.u32 %v5489_v63, %v5485_v55  ;;  %v5504_v28 = vshll.u32 %v9559_v20, 16  ;;  %v7616_v43 = vsel %vm2107_vm9, %v7614_v60, %v7615_v21  ;;  %v9563_v13 = vld [vmem:[#allocation4 + $0x48] sm:$0xff]   ;;  %v4455_v42 = vld [vmem:[#allocation4 + $0xc0] sm:$0x1]  ;;  %v4452_v50 = vld [vmem:[#allocation4 + $0xb4] sm:$0x1] }
 0x3b6   : > { %v11879_v41 = vpop.permute.xlu1 %6453  ;;  %v7639_v18 = vpop.permute.xlu0 %7638  ;;  %v5501_v38 = vrot.slane %v5499_v2, 1  ;;  %v7618_v23 = vrot.slane %v9562_v53, 1  ;;  %v4456_v58 = vsel %vm11300_vm2, 0, %v4455_v42  ;;  %vm12358_vm3 = vcmask 64512  }
 0x3b7   : > { %v5495_v29 = vsel %vm1673_vm7, %v5490_v37, %v5494_v14  ;;  %v9561_v8 = vld [vmem:[#allocation4 + $0x9c] sm:$0xfe]   ;;  %v5506_v1 = vrot.slane %v5504_v28, 1  ;;  %5166 = vst.msk [vmem:[#allocation5 + $0x30] sm:$0xff] %vm12358_vm3, %v9563_v13  ;;  %4457 = vst [vmem:[#allocation4 + $0xc0] sm:$0x1] %v4456_v58 }
 0x3b8   : > { %6463 = vrot.lane.b32.xlu0 %v6382_v36, %s9963_s14  ;;  %v5502_v31 = vor.u32 %v5501_v38, %v5497_v56  ;;  %v9560_v12 = vld [vmem:[#allocation4 + $0x9c] sm:$0xff]   ;;  %v9565_v47 = vld [vmem:[#allocation4 + $0xa4] ss:$0 sps:$4 sm:$0x11]   ;;  %vm12359_vm0 = vcmask 195712   ;;  %v4453_v61 = vsel %vm11300_vm2, 0, %v4452_v50 }
 0x3b9   : > { %5566 = vrot.lane.b32.xlu1 %v5495_v29, %s9957_s28  ;;  %v9564_v5 = vld [vmem:[#allocation4 + $0x9c] sm:$0xff]   ;;  %4454 = vst [vmem:[#allocation4 + $0xb4] sm:$0x1] %v4453_v61  ;;  %v9567_v40 = vld [vmem:[#allocation4 + $0x98] ss:$0 sps:$4 sm:$0x11]  }
 0x3ba   : > { %v11884_v9 = vpop.permute.xlu1 %5556  ;;  %v6741_v52 = vpop.permute.xlu0 %6740  ;;  %v5507_v17 = vsel %vm1673_vm7, %v5502_v31, %v5506_v1  ;;  %v7284_v7 = vshrl.u32 %v9564_v5, 16  ;;  %v7286_v55 = vshll.u32 %v9564_v5, 16  ;;  %v4510_v36 = vld [vmem:[#allocation4 + $0xc8] sm:$0x1]  ;;  %vm12360_vm6 = vcmask 261312   ;;  %v9571_v58 = vld [vmem:[#allocation4 + $0x3c] sm:$0xff]  }
 0x3bb   : > { %5599 = vst.msk [vmem:[#allocation5 + $0x30] sm:$0xff] %vm5592_vm8, %v11884_v9  ;;  %v4511_v21 = vsel %vm11314_vm5, 0, %v4510_v36  ;;  %v9580_v26 = vld [vmem:[#allocation4 + $0xb0] ss:$0 sps:$4 sm:$0x11]   ;;  %v9627_v35 = vld [vmem:[#allocation4 + $0x9c] sm:$0xff]  }
 0x3bc   : > { %v8973_v25 = vpop.f32.mrb[28].mxu0  ;;  %7652 = vrot.lane.b32.xlu0 %v7616_v43, %s9966_s21  ;;  %5888 = vst.msk [vmem:[#allocation5 + $0x30] sm:$0xff] %vm12359_vm0, %v11874_v44  ;;  %v7288_v63 = vrot.slane %v7286_v55, 1  ;;  %4512 = vst [vmem:[#allocation4 + $0xc8] sm:$0x1] %v4511_v21 }
 0x3bd   : > { %v4307_v30 = vmul.f32 %v11791_v62, %v8973_v25  ;;  %5568 = vrot.lane.b32.xlu1 %v5507_v17, %s9957_s28  ;;  %v4255_v0 = vpop.f32.mrb[29].mxu0  ;;  %5165 = vst.msk [vmem:[#allocation5 + $0x28] sm:$0xff] %vm12358_vm3, %v9571_v58 }
 0x3be   : > { %v4305_v27 = vmul.f32 %v11791_v62, %v4255_v0  ;;  %v8974_v15 = vpop.f32.mrb[30].mxu0  ;;  %v7289_v60 = vor.u32 %v7288_v63, %v7284_v7 }
 0x3bf   : > { %v7350_v3 = vpop.permute.xlu1 %7349  ;;  %v4346_v54 = vadd.f32 %v11800_v34, %v4307_v30  ;;  %v4308_v11 = vmul.f32 %v11791_v62, %v8974_v15  ;;  %v4258_v20 = vpop.f32.mrb[31].mxu0  ;;  %v5024_v30 = vld [vmem:[#allocation4 + $0xc0] sm:$0xf] }
 0x3c0   : > { %7395 = vst.msk [vmem:[#allocation5 + $0x18] sm:$0xff] %vm7391_vm15, %v7350_v3  ;;  %v7352_v46 = vpop.permute.xlu0 %7351  ;;  %v4344_v16 = vadd.f32 %v11800_v34, %v4305_v27  ;;  %v4306_v56 = vmul.f32 %v11791_v62, %v4258_v20 }
 0x3c1   : > { %7684 = vst.msk [vmem:[#allocation5 + $0x18] sm:$0xff] %vm7680_vm4, %v7639_v18  ;;  %v7617_v18 = vrot.slane %v9561_v8, 1  ;;  %v4378_v33 = vmax.f32 %v4346_v54, 0.0  ;;  %6932 = vrot.lane.b32.xlu1 %v9560_v12, %s9964_s13  ;;  %v4347_v29 = vadd.f32 %v11800_v34, %v4308_v11  ;;  %v9568_v54 = vld [vmem:[#allocation4 + $0x9c] sm:$0xff]  }
 0x3c2   : > { %v4376_v2 = vmax.f32 %v4344_v16, 0.0  ;;  %v4345_v62 = vadd.f32 %v11800_v34, %v4306_v56  ;;  %v9569_v12 = vld [vmem:[#allocation4 + $0xa4] ss:$0 sps:$4 sm:$0x11]   ;;  %v5017_v34 = vld [vmem:[#allocation4 + $0xb4] sm:$0xf] }
 0x3c3   : > { %v11899_v19 = vpop.permute.xlu1 %5554  ;;  %v7619_v59 = vsel %vm2107_vm9, %v7617_v18, %v7618_v23  ;;  %v8894_v48 = vpack.c.bf16 %v4378_v33, %v4378_v33  ;;  %v4379_v53 = vmax.f32 %v4347_v29, 0.0  ;;  %v9570_v33 = vld [vmem:[#allocation4 + $0x9c] sm:$0xff]   ;;  %v5511_v0 = vshll.u32 %v9568_v54, 16  ;;  %v5028_v61 = vld [vmem:[#allocation4 + $0xc8] sm:$0x1] }
 0x3c4   : > { %v6452_v6 = vpop.permute.xlu0 %6451  ;;  %7654 = vrot.lane.b32.xlu0 %v7619_v59, %s9966_s21  ;;  %v8892_v31 = vpack.c.bf16 %v4376_v2, %v4376_v2  ;;  %v4377_v23 = vmax.f32 %v4345_v62, 0.0  ;;  %v5516_v59 = vshll.u32 %v9569_v12, 16  ;;  %5598 = vst.msk [vmem:[#allocation5 + $0x28] sm:$0xff] %vm5592_vm8, %v11899_v19  ;;  %v9577_v62 = vld [vmem:[#allocation4 + $0x9c] sm:$0xfe]   ;;  %v9576_v12 = vld [vmem:[#allocation4 + $0xa8] sm:$0xff]  }
 0x3c5   : > { %6496 = vst.msk [vmem:[#allocation5 + $0x20] sm:$0xff] %vm6491_vm11, %v6452_v6  ;;  %v4852_v49 = vshrl.u32 %v8894_v48, 16  ;;  %v4855_v57 = vshll.u32 %v8894_v48, 16  ;;  %v8895_v17 = vpack.c.bf16 %v4379_v53, %v4379_v53  ;;  %v9574_v48 = vld [vmem:[#allocation4 + $0x9c] sm:$0xff]  }
 0x3c6   : > { %6785 = vst.msk [vmem:[#allocation5 + $0x20] sm:$0xff] %vm6780_vm12, %v6741_v52  ;;  %v7291_v52 = vshll.u32 %v9565_v47, 16  ;;  %v4835_v42 = vshrl.u32 %v8892_v31, 16  ;;  %v4838_v6 = vshll.u32 %v8892_v31, 16  ;;  %v5509_v47 = vshrl.u32 %v9568_v54, 16 }
 0x3c7   : > { %v11910_v51 = vpop.permute.xlu1 %6024  ;;  %6963 = vst.msk [vmem:[#allocation5 + $0x20] sm:$0xff] %vm6958_vm13, %v11828_v4  ;;  %v9566_v4 = vld [vmem:[#allocation4 + $0x90] sm:$0xfe]   ;;  %v11933_v14 = vrot.slane %v4852_v49, 7  ;;  %v4860_v55 = vshrl.u32 %v8895_v17, 16  ;;  %v4863_v50 = vshll.u32 %v8895_v17, 16 }
 0x3c8   : > { %7396 = vst.msk [vmem:[#allocation5 + $0x20] sm:$0xff] %vm7391_vm15, %v7352_v46  ;;  %v11924_v9 = vpop.permute.xlu0 %6922  ;;  %v7293_v44 = vrot.slane %v7291_v52, 1  ;;  %v5821_v3 = vrot.slane %v9566_v4, 1  ;;  %v5822_v46 = vrot.slane %v9567_v40, 1  ;;  %v4837_v7 = vrot.slane %v4835_v42, 7  ;;  %v7700_v16 = vld [vmem:[#allocation5 + $0x18] sm:$0xff] }
 0x3c9   : > { %7685 = vst.msk [vmem:[#allocation5 + $0x20] sm:$0xff] %vm7680_vm4, %v11854_v45  ;;  %v4507_v45 = vld [vmem:[#allocation4 + $0xbc] sm:$0x1]  ;;  %v4857_v38 = vor.u32 %v4855_v57, %v11933_v14  ;;  %v4858_v28 = vrot.slane %v11933_v14, 4  ;;  %v8893_v52 = vpack.c.bf16 %v4377_v23, %v4377_v23  ;;  %v5513_v49 = vrot.slane %v5511_v0, 1  ;;  %8990 = vmatmul.mubr.msk.bf16.gmra.mrb[4].mxu1 %vm7749_vm1, %v7700_v16 }
 0x3ca   : > { %v7294_v43 = vsel %vm1673_vm7, %v7289_v60, %v7293_v44  ;;  %v4508_v8 = vsel %vm11314_vm5, 0, %v4507_v45  ;;  %v5823_v1 = vsel %vm2107_vm9, %v5821_v3, %v5822_v46  ;;  %v5518_v57 = vrot.slane %v5516_v59, 1  ;;  %5887 = vst.msk [vmem:[#allocation5 + $0x28] sm:$0xff] %vm12359_vm0, %v11870_v39  ;;  %v9572_v3 = vld [vmem:[#allocation4 + $0x9c] sm:$0xfe]  }
 0x3cb   : > { %v11931_v37 = vpop.permute.xlu1 %6920  ;;  %7365 = vrot.lane.b32.xlu1 %v7294_v43, %s9967_s22  ;;  %4509 = vst [vmem:[#allocation4 + $0xbc] sm:$0x1] %v4508_v8  ;;  %v5025_v13 = vsel %vm11431_vm14, %v4857_v38, %v5024_v30  ;;  %5857 = vrot.lane.b32.xlu0 %v5823_v1, %s9961_s17  ;;  %v4840_v63 = vor.u32 %v4838_v6, %v4837_v7  ;;  %v4841_v4 = vrot.slane %v4837_v7, 4  ;;  %v4862_v15 = vrot.slane %v4860_v55, 7  ;;  %v9579_v1 = vld [vmem:[#allocation4 + $0xa8] sm:$0xff]  }
 0x3cc   : > { %v6023_v25 = vpop.permute.xlu0 %6022  ;;  %5026 = vst [vmem:[#allocation4 + $0xc0] sm:$0xf] %v5025_v13  ;;  %v4843_v44 = vshrl.u32 %v8893_v52, 16  ;;  %v4846_v11 = vshll.u32 %v8893_v52, 16  ;;  %v5514_v60 = vor.u32 %v5513_v49, %v5509_v47  ;;  %6064 = vst.msk [vmem:[#allocation5 + $0x28] sm:$0xff] %vm12360_vm6, %v11825_v22  ;;  %v6396_v21 = vshrl.u32 %v9574_v48, 16 }
 0x3cd   : > { %6065 = vst.msk [vmem:[#allocation5 + $0x30] sm:$0xff] %vm12360_vm6, %v6023_v25  ;;  %v5018_v19 = vsel %vm11431_vm14, %v4840_v63, %v5017_v34  ;;  %v4865_v20 = vor.u32 %v4863_v50, %v4862_v15  ;;  %v4867_v45 = vrot.slane %v4862_v15, 4  ;;  %v9573_v39 = vld [vmem:[#allocation4 + $0xa4] ss:$0 sps:$4 sm:$0x11]   ;;  %v5824_v22 = vrot.slane %v9572_v3, 1 }
 0x3ce   : > { %v4845_v2 = vrot.slane %v4843_v44, 7  ;;  %6497 = vst.msk [vmem:[#allocation5 + $0x28] sm:$0xff] %vm6491_vm11, %v11879_v41  ;;  %5019 = vst [vmem:[#allocation4 + $0xb4] sm:$0xf] %v5018_v19  ;;  %v5519_v46 = vsel %vm1673_vm7, %v5514_v60, %v5518_v57  ;;  %v6398_v29 = vshll.u32 %v9574_v48, 16  ;;  %vm12361_vm14 = vcmask 60416  }
 0x3cf   : > { %v11948_v18 = vpop.permute.xlu1 %6746  ;;  %6034 = vrot.lane.b32.xlu0 %v9570_v33, %s9959_s9  ;;  %6786 = vst.msk [vmem:[#allocation5 + $0x28] sm:$0xff] %vm6780_vm12, %v11848_v10  ;;  %v4866_v24 = vsel %vm10621_vm10, %v4858_v28, %v4865_v20  ;;  %v5029_v56 = vsel %vm11300_vm2, %v4867_v45, %v5028_v61  ;;  %5570 = vrot.lane.b32.xlu1 %v5519_v46, %s9957_s28  ;;  %v9575_v41 = vld [vmem:[#allocation4 + $0xa4] ss:$0 sps:$4 sm:$0x11]   ;;  %v5825_v14 = vrot.slane %v9573_v39, 1  ;;  %vm12362_vm3 = vmmov %vm12361_vm14  ;;  %v6720_v42 = vrot.slane %v9577_v62, 1 }
 0x3d0   : > { %v11953_v5 = vpop.permute.xlu0 %7644  ;;  %v4848_v25 = vor.u32 %v4846_v11, %v4845_v2  ;;  %v4850_v38 = vrot.slane %v4845_v2, 4  ;;  %6964 = vst.msk [vmem:[#allocation5 + $0x28] sm:$0xff] %vm6958_vm13, %v11931_v37  ;;  %5030 = vst [vmem:[#allocation4 + $0xc8] sm:$0x1] %v5029_v56  ;;  %v6400_v43 = vrot.slane %v6398_v29, 1  ;;  %v6403_v31 = vshll.u32 %v9575_v41, 16 }
 0x3d1   : > { %5027 = vst.msk [vmem:[#allocation4 + $0xc4] sm:$0xf] %vm12361_vm14, %v4866_v24  ;;  %v5826_v37 = vsel %vm2107_vm9, %v5824_v22, %v5825_v14  ;;  %v9578_v13 = vld [vmem:[#allocation4 + $0xa4] ss:$0 sps:$4 sm:$0x11]   ;;  %v6410_v23 = vshll.u32 %v9579_v1, 16  ;;  %vm12365_vm14 = vmmov %vm12359_vm0 }
 0x3d2   : > { %v5021_v36 = vld [vmem:[#allocation4 + $0xbc] sm:$0x1]  ;;  %v4849_v28 = vsel %vm10621_vm10, %v4841_v4, %v4848_v25  ;;  %v6401_v53 = vor.u32 %v6400_v43, %v6396_v21  ;;  %v6405_v54 = vrot.slane %v6403_v31, 1  ;;  %v6721_v17 = vrot.slane %v9578_v13, 1  ;;  %v9584_v48 = vld [vmem:[#allocation4 + $0xa8] sm:$0xff]   ;;  %v9589_v21 = vld [vmem:[#allocation4 + $0x60] sm:$0xff]  }
 0x3d3   : > { %v11956_v27 = vpop.permute.xlu1 %5847  ;;  %v5022_v8 = vsel %vm11300_vm2, %v4850_v38, %v5021_v36  ;;  %5020 = vst.msk [vmem:[#allocation4 + $0xb8] sm:$0xf] %vm12362_vm3, %v4849_v28  ;;  %5859 = vrot.lane.b32.xlu1 %v5826_v37, %s9961_s17  ;;  %v6408_v34 = vshrl.u32 %v9579_v1, 16  ;;  %v6415_v47 = vshll.u32 %v9580_v26, 16  ;;  %v7701_v0 = vld [vmem:[#allocation5 + $0x20] sm:$0xff]  ;;  %v6412_v59 = vrot.slane %v6410_v23, 1 }
 0x3d4   : > { %v11963_v40 = vpop.permute.xlu0 %5849  ;;  %5023 = vst [vmem:[#allocation4 + $0xbc] sm:$0x1] %v5022_v8  ;;  %v6406_v6 = vsel %vm1673_vm7, %v6401_v53, %v6405_v54  ;;  %8993 = vmatprep.mubr.msk.bf16.mxu1 %vm7749_vm1, %v7701_v0  ;;  %v9582_v55 = vld [vmem:[#allocation4 + $0xa8] sm:$0xfe]   ;;  %v6722_v52 = vsel %vm2107_vm9, %v6720_v42, %v6721_v17  ;;  %v7296_v16 = vshrl.u32 %v9584_v48, 16  ;;  %v7298_v11 = vshll.u32 %v9584_v48, 16 }
 0x3d5   : > { %6467 = vrot.lane.b32.xlu0 %v6406_v6, %s9963_s14  ;;  %v6417_v7 = vrot.slane %v6415_v47, 1  ;;  %v9583_v50 = vld [vmem:[#allocation4 + $0xb0] ss:$0 sps:$4 sm:$0x11]   ;;  %v6413_v61 = vor.u32 %v6412_v59, %v6408_v34  ;;  %v9581_v57 = vld [vmem:[#allocation4 + $0xa8] sm:$0xff]   ;;  %v6723_v63 = vrot.slane %v9582_v55, 1 }
 0x3d6   : > { %v6724_v4 = vrot.slane %v9583_v50, 1  ;;  %v9585_v15 = vld [vmem:[#allocation4 + $0xb0] ss:$0 sps:$4 sm:$0x11]   ;;  %v9586_v3 = vld [vmem:[#allocation4 + $0xa8] sm:$0xfe]  }
 0x3d7   : > { %v11984_v30 = vpop.permute.xlu1 %6457  ;;  %6036 = vrot.lane.b32.xlu1 %v9576_v12, %s9959_s9  ;;  %v6418_v44 = vsel %vm1673_vm7, %v6413_v61, %v6417_v7  ;;  %v7303_v60 = vshll.u32 %v9585_v15, 16  ;;  %v7300_v19 = vrot.slane %v7298_v11, 1  ;;  %v9587_v20 = vld [vmem:[#allocation4 + $0xb0] ss:$0 sps:$4 sm:$0x11]   ;;  %v7620_v39 = vrot.slane %v9586_v3, 1 }
 0x3d8   : > { %v7643_v10 = vpop.permute.xlu0 %7642  ;;  %vm12363_vm10 = vcmask 64512   ;;  %v6725_v22 = vsel %vm2107_vm9, %v6723_v63, %v6724_v4  ;;  %v7621_v24 = vrot.slane %v9587_v20, 1  ;;  %v9596_v37 = vld [vmem:[#allocation4 + $0x54] sm:$0xff]   ;;  %v9594_v12 = vld [vmem:[#allocation4 + $0xa8] sm:$0xfe]   ;;  %vm12366_vm3 = vcmask 261312  }
 0x3d9   : > { %6756 = vrot.lane.b32.xlu0 %v6722_v52, %s9965_s19  ;;  %v7305_v2 = vrot.slane %v7303_v60, 1  ;;  %5168 = vst.msk [vmem:[#allocation5 + $0x40] sm:$0xff] %vm12363_vm10, %v9589_v21  ;;  %v7301_v29 = vor.u32 %v7300_v19, %v7296_v16  ;;  %v9595_v13 = vld [vmem:[#allocation4 + $0xb0] ss:$0 sps:$4 sm:$0x11]   ;;  %vm12364_vm6 = vmmov %vm12363_vm10  ;;  %v5827_v17 = vrot.slane %v9594_v12, 1 }
 0x3da   : > { %v9588_v46 = vld [vmem:[#allocation4 + $0xb4] sm:$0xff]   ;;  %v7622_v62 = vsel %vm2107_vm9, %v7620_v39, %v7621_v24  ;;  %5167 = vst.msk [vmem:[#allocation5 + $0x38] sm:$0xff] %vm12364_vm6, %v9596_v37  ;;  %v9597_v23 = vld [vmem:[#allocation4 + $0xa8] sm:$0xff]   ;;  %vm12367_vm10 = vmmov %vm12366_vm3 }
 0x3db   : > { %6469 = vrot.lane.b32.xlu1 %v6418_v44, %s9963_s14  ;;  %v9592_v56 = vld [vmem:[#allocation4 + $0xb4] sm:$0xff]   ;;  %v7306_v41 = vsel %vm1673_vm7, %v7301_v29, %v7305_v2  ;;  %v9593_v1 = vld [vmem:[#allocation4 + $0xbc] ss:$0 sps:$4 sm:$0x11]   ;;  %v5521_v47 = vshrl.u32 %v9597_v23, 16  ;;  %v5523_v0 = vshll.u32 %v9597_v23, 16 }
 0x3dc   : > { %v9590_v25 = vld [vmem:[#allocation4 + $0xb4] sm:$0xfe]   ;;  %v7308_v14 = vshrl.u32 %v9592_v56, 16  ;;  %v7310_v8 = vshll.u32 %v9592_v56, 16  ;;  %v7315_v54 = vshll.u32 %v9593_v1, 16  ;;  %v9609_v23 = vld [vmem:[#allocation4 + $0xc0] sm:$0xff]  }
 0x3dd   : > { %v5561_v33 = vpop.permute.xlu1 %5560  ;;  %v6745_v58 = vpop.permute.xlu0 %6744  ;;  %6934 = vrot.lane.b32.xlu0 %v9581_v57, %s9964_s13  ;;  %v7623_v28 = vrot.slane %v9590_v25, 1  ;;  %v5525_v48 = vrot.slane %v5523_v0, 1  ;;  %v9601_v7 = vld [vmem:[#allocation4 + $0xbc] ss:$0 sps:$4 sm:$0x11]   ;;  %v9602_v50 = vld [vmem:[#allocation4 + $0xb4] sm:$0xff]  }
 0x3de   : > { %5601 = vst.msk [vmem:[#allocation5 + $0x40] sm:$0xff] %vm5592_vm8, %v5561_v33  ;;  %v7317_v6 = vrot.slane %v7315_v54, 1  ;;  %v5828_v33 = vrot.slane %v9595_v13, 1  ;;  %v5540_v57 = vshll.u32 %v9601_v7, 16  ;;  %v9599_v11 = vld [vmem:[#allocation4 + $0xb4] sm:$0xff]   ;;  %v9608_v54 = vld [vmem:[#allocation4 + $0xc0] sm:$0xff]  }
 0x3df   : > { %6758 = vrot.lane.b32.xlu1 %v6725_v22, %s9965_s19  ;;  %5890 = vst.msk [vmem:[#allocation5 + $0x40] sm:$0xff] %vm12359_vm0, %v11963_v40  ;;  %v7312_v40 = vrot.slane %v7310_v8, 1  ;;  %v9603_v15 = vld [vmem:[#allocation4 + $0xbc] ss:$0 sps:$4 sm:$0x11]   ;;  %v9610_v8 = vld [vmem:[#allocation4 + $0xc0] sm:$0xff]   ;;  %vm12368_vm0 = vmmov %vm12364_vm6 }
 0x3e0   : > { %v5829_v61 = vsel %vm2107_vm9, %v5827_v17, %v5828_v33  ;;  %v6427_v21 = vshll.u32 %v9603_v15, 16  ;;  %v9604_v19 = vld [vmem:[#allocation4 + $0xb4] sm:$0xfe]   ;;  %v5542_v20 = vrot.slane %v5540_v57, 1  ;;  %v6434_v37 = vshll.u32 %v9610_v8, 16  ;;  %vm12369_vm6 = vmmov %vm12365_vm14 }
 0x3e1   : > { %7367 = vrot.lane.b32.xlu0 %v7306_v41, %s9967_s22  ;;  %v7313_v42 = vor.u32 %v7312_v40, %v7308_v14  ;;  %v9606_v56 = vld [vmem:[#allocation4 + $0xb4] sm:$0xfe]   ;;  %v9607_v25 = vld [vmem:[#allocation4 + $0xbc] ss:$0 sps:$4 sm:$0x11]   ;;  %v6432_v40 = vshrl.u32 %v9610_v8, 16 }
 0x3e2   : > { %v7354_v49 = vpop.permute.xlu1 %7353  ;;  %v6429_v39 = vrot.slane %v6427_v21, 1  ;;  %v6727_v14 = vrot.slane %v9607_v25, 1  ;;  %v9611_v1 = vld [vmem:[#allocation4 + $0xc8] ss:$0 sps:$4 sm:$0x11]  }
 0x3e3   : > { %7397 = vst.msk [vmem:[#allocation5 + $0x28] sm:$0xff] %vm7391_vm15, %v7354_v49  ;;  %v7356_v36 = vpop.permute.xlu0 %7355  ;;  %6936 = vrot.lane.b32.xlu1 %v9588_v46, %s9964_s13  ;;  %v5526_v49 = vor.u32 %v5525_v48, %v5521_v47  ;;  %v5830_v46 = vrot.slane %v9604_v19, 1  ;;  %v9614_v0 = vld [vmem:[#allocation4 + $0xc0] sm:$0xfe]  }
 0x3e4   : > { %7686 = vst.msk [vmem:[#allocation5 + $0x28] sm:$0xff] %vm7680_vm4, %v7643_v10  ;;  %v9591_v10 = vld [vmem:[#allocation4 + $0xbc] ss:$0 sps:$4 sm:$0x11]   ;;  %v9625_v21 = vld [vmem:[#allocation4 + $0x84] sm:$0xff]  }
 0x3e5   : > { %v7624_v31 = vrot.slane %v9591_v10, 1  ;;  %7656 = vrot.lane.b32.xlu0 %v7622_v62, %s9966_s21  ;;  %v6726_v10 = vrot.slane %v9606_v56, 1  ;;  %v9612_v62 = vld [vmem:[#allocation4 + $0xc0] sm:$0xff]   ;;  %v9617_v57 = vld [vmem:[#allocation4 + $0xc8] ss:$0 sps:$4 sm:$0x11]  }
 0x3e6   : > { %v5559_v45 = vpop.permute.xlu1 %5558  ;;  %v7320_v17 = vshrl.u32 %v9612_v62, 16  ;;  %v7322_v33 = vshll.u32 %v9612_v62, 16  ;;  %v7627_v15 = vrot.slane %v9617_v57, 1 }
 0x3e7   : > { %v6456_v38 = vpop.permute.xlu0 %6455  ;;  %v7625_v26 = vsel %vm2107_vm9, %v7623_v28, %v7624_v31  ;;  %5600 = vst.msk [vmem:[#allocation5 + $0x38] sm:$0xff] %vm5592_vm8, %v5559_v45  ;;  %v9605_v45 = vld [vmem:[#allocation4 + $0xbc] ss:$0 sps:$4 sm:$0x11]  }
 0x3e8   : > { %6498 = vst.msk [vmem:[#allocation5 + $0x30] sm:$0xff] %vm6491_vm11, %v6456_v38  ;;  %v5831_v24 = vrot.slane %v9605_v45, 1 }
 0x3e9   : > { %6787 = vst.msk [vmem:[#allocation5 + $0x30] sm:$0xff] %vm6780_vm12, %v6745_v58  ;;  %v9598_v58 = vld [vmem:[#allocation4 + $0xb0] ss:$0 sps:$4 sm:$0x11]   ;;  %7658 = vrot.lane.b32.xlu0 %v7625_v26, %s9966_s21  ;;  %v6439_v26 = vshll.u32 %v9611_v1, 16 }
 0x3ea   : > { %v12013_v43 = vpop.permute.xlu1 %6028  ;;  %6965 = vst.msk [vmem:[#allocation5 + $0x30] sm:$0xff] %vm6958_vm13, %v11924_v9  ;;  %v5528_v59 = vshll.u32 %v9598_v58, 16  ;;  %v5832_v31 = vsel %vm2107_vm9, %v5830_v46, %v5831_v24  ;;  %v9618_v58 = vld [vmem:[#allocation4 + $0x78] sm:$0xff]  }
 0x3eb   : > { %7398 = vst.msk [vmem:[#allocation5 + $0x30] sm:$0xff] %vm7391_vm15, %v7356_v36  ;;  %v12021_v53 = vpop.permute.xlu0 %6926  ;;  %v7702_v63 = vld [vmem:[#allocation5 + $0x28] sm:$0xff]  ;;  %v6420_v36 = vshrl.u32 %v9602_v50, 16  ;;  %v9629_v46 = vld [vmem:[#allocation4 + $0xb4] sm:$0xff]  }
 0x3ec   : > { %7687 = vst.msk [vmem:[#allocation5 + $0x30] sm:$0xff] %vm7680_vm4, %v11953_v5  ;;  %v7318_v5 = vsel %vm1673_vm7, %v7313_v42, %v7317_v6  ;;  %v5530_v55 = vrot.slane %v5528_v59, 1  ;;  %8994 = vmatmul.mubr.msk.bf16.gmra.mrb[8].mxu1 %vm7749_vm1, %v7702_v63  ;;  %v6728_v42 = vsel %vm2107_vm9, %v6726_v10, %v6727_v14  ;;  %v9613_v6 = vld [vmem:[#allocation4 + $0xc8] ss:$0 sps:$4 sm:$0x11]   ;;  %v7324_v59 = vrot.slane %v7322_v33, 1 }
 0x3ed   : > { %5889 = vst.msk [vmem:[#allocation5 + $0x38] sm:$0xff] %vm12365_vm14, %v11956_v27  ;;  %7369 = vrot.lane.b32.xlu1 %v7318_v5, %s9967_s22  ;;  %v9600_v27 = vld [vmem:[#allocation4 + $0xb4] sm:$0xff]   ;;  %5861 = vrot.lane.b32.xlu0 %v5829_v61, %s9961_s17  ;;  %v6441_v5 = vrot.slane %v6439_v26, 1  ;;  %v7327_v47 = vshll.u32 %v9613_v6, 16  ;;  %vm12370_vm14 = vmmov %vm12368_vm0 }
 0x3ee   : > { %v6925_v9 = vpop.permute.xlu1 %6924  ;;  %6066 = vst.msk [vmem:[#allocation5 + $0x38] sm:$0xff] %vm12366_vm3, %v11910_v51  ;;  %v5535_v51 = vshll.u32 %v9600_v27, 16  ;;  %v5531_v16 = vsel %vm1673_vm7, %v5526_v49, %v5530_v55  ;;  %v6729_v55 = vrot.slane %v9614_v0, 1  ;;  %v9616_v49 = vld [vmem:[#allocation4 + $0xc0] sm:$0xfe]   ;;  %vm12373_vm3 = vmmov %vm12368_vm0 }
 0x3ef   : > { %v6027_v34 = vpop.permute.xlu0 %6026  ;;  %6499 = vst.msk [vmem:[#allocation5 + $0x38] sm:$0xff] %vm6491_vm11, %v11984_v30  ;;  %v5533_v30 = vshrl.u32 %v9600_v27, 16  ;;  %v9615_v27 = vld [vmem:[#allocation4 + $0xc8] ss:$0 sps:$4 sm:$0x11]   ;;  %v7329_v7 = vrot.slane %v7327_v47, 1 }
 0x3f0   : > { %6067 = vst.msk [vmem:[#allocation5 + $0x40] sm:$0xff] %vm12367_vm10, %v6027_v34  ;;  %v5537_v4 = vrot.slane %v5535_v51, 1  ;;  %v6730_v61 = vrot.slane %v9615_v27, 1  ;;  %vm12374_vm10 = vmmov %vm12368_vm0 }
 0x3f1   : > { %6788 = vst.msk [vmem:[#allocation5 + $0x38] sm:$0xff] %vm6780_vm12, %v11948_v18  ;;  %v6422_v18 = vshll.u32 %v9602_v50, 16  ;;  %5572 = vrot.lane.b32.xlu1 %v5531_v16, %s9957_s28  ;;  %6038 = vrot.lane.b32.xlu0 %v9599_v11, %s9959_s9  ;;  %v7325_v50 = vor.u32 %v7324_v59, %v7320_v17 }
 0x3f2   : > { %6966 = vst.msk [vmem:[#allocation5 + $0x38] sm:$0xff] %vm6958_vm13, %v6925_v9  ;;  %v12043_v52 = vpop.permute.xlu1 %6750  ;;  %v5538_v60 = vor.u32 %v5537_v4, %v5533_v30  ;;  %v6436_v9 = vrot.slane %v6434_v37, 1  ;;  %v4458_v30 = vld [vmem:[#allocation4 + $0xcc] sm:$0x1]  ;;  %v7626_v4 = vrot.slane %v9616_v49, 1  ;;  %v6731_v19 = vsel %vm2107_vm9, %v6729_v55, %v6730_v61 }
 0x3f3   : > { %v12048_v44 = vpop.permute.xlu0 %7648  ;;  %v6424_v3 = vrot.slane %v6422_v18, 1  ;;  %v7703_v28 = vld [vmem:[#allocation5 + $0x30] sm:$0xff]  ;;  %5170 = vst.msk [vmem:[#allocation5 + $0x50] sm:$0xff] %vm12368_vm0, %v9618_v58  ;;  %v4513_v18 = vld [vmem:[#allocation4 + $0xd4] sm:$0x1]  ;;  %v7330_v16 = vsel %vm1673_vm7, %v7325_v50, %v7329_v7  ;;  %v4459_v11 = vsel %vm11300_vm2, 0, %v4458_v30  ;;  %vm12371_vm2 = vmmov %vm12368_vm0 }
 0x3f4   : > { %v5543_v29 = vsel %vm1673_vm7, %v5538_v60, %v5542_v20  ;;  %8997 = vmatprep.mubr.msk.bf16.mxu1 %vm7749_vm1, %v7703_v28  ;;  %v6437_v34 = vor.u32 %v6436_v9, %v6432_v40  ;;  %v4514_v60 = vsel %vm11314_vm5, 0, %v4513_v18  ;;  %4460 = vst [vmem:[#allocation4 + $0xcc] sm:$0x1] %v4459_v11  ;;  %5171 = vst.msk [vmem:[#allocation5 + $0x58] sm:$0xff] %vm12371_vm2, %v9625_v21 }
 0x3f5   : > { %v6425_v2 = vor.u32 %v6424_v3, %v6420_v36  ;;  %5574 = vrot.lane.b32.xlu1 %v5543_v29, %s9957_s28  ;;  %v9622_v3 = vld [vmem:[#allocation4 + $0x6c] sm:$0xff]   ;;  %4515 = vst [vmem:[#allocation4 + $0xd4] sm:$0x1] %v4514_v60  ;;  %v7628_v45 = vsel %vm2107_vm9, %v7626_v4, %v7627_v15  ;;  %vm12372_vm5 = vmmov %vm12368_vm0  ;;  %s8154_s28 = sshll.u32 %s12228_s23, 4  ;;  %s12244_s28 = int_to_ptr.vmem [resolvable:$true] %s8154_s28 }
 0x3f6   : > { %v12053_v22 = vpop.permute.xlu1 %5851  ;;  %v6442_v63 = vsel %vm1673_vm7, %v6437_v34, %v6441_v5  ;;  %5169 = vst.msk [vmem:[#allocation5 + $0x48] sm:$0xff] %vm12370_vm14, %v9622_v3  ;;  %vm12375_vm0 = vmmov %vm12369_vm6  ;;  %vm12377_vm14 = vcmask 261312  }
 0x3f7   : > { %v5854_v38 = vpop.permute.xlu0 %5853  ;;  %v6430_v41 = vsel %vm1673_vm7, %v6425_v2, %v6429_v39  ;;  %5172 = vst.msk [vmem:[#allocation5 + $0x60] sm:$0xff] %vm12372_vm5, %v9626_v32  ;;  %v9628_v2 = vld [vmem:[#allocation4 + $0xa8] sm:$0xff]   ;;  %vm12381_vm5 = vmmov %vm12375_vm0 }
 0x3f8   : > { %6471 = vrot.lane.b32.xlu0 %v6430_v41, %s9963_s14  ;;  %5173 = vst.msk [vmem:[#allocation5 + $0x68] sm:$0xff] %vm12373_vm3, %v9627_v35 }
 0x3f9   : > { %5863 = vrot.lane.b32.xlu1 %v5832_v31, %s9961_s17  ;;  %5174 = vst.msk [vmem:[#allocation5 + $0x70] sm:$0xff] %vm12374_vm10, %v9628_v2  ;;  %vm12383_vm10 = vmmov %vm12375_vm0  ;;  %s12249_s17 = scalar_lea.hbm %s12299_s7, %s8896_s15 }
 0x3fb   : > { %v9619_v24 = vld [vmem:[#allocation4 + $0xcc] sm:$0xff]  }
 0x3fc   : > { %v12062_v12 = vpop.permute.xlu1 %6461  ;;  %6760 = vrot.lane.b32.xlu0 %v6728_v42, %s9965_s19  ;;  %v9620_v56 = vld [vmem:[#allocation4 + $0xcc] sm:$0xff]   ;;  %v9621_v25 = vld [vmem:[#allocation4 + $0xd4] ss:$0 sps:$4 sm:$0x11]  }
 0x3fd   : > { %v7647_v13 = vpop.permute.xlu0 %7646  ;;  %6040 = vrot.lane.b32.xlu1 %v9608_v54, %s9959_s9  ;;  %v7332_v41 = vshrl.u32 %v9620_v56, 16  ;;  %v7334_v10 = vshll.u32 %v9620_v56, 16  ;;  %v7339_v14 = vshll.u32 %v9621_v25, 16  ;;  %v9624_v28 = vld [vmem:[#allocation4 + $0xd4] ss:$0 sps:$4 sm:$0x11]  }
 0x3fe   : > { %v7630_v37 = vrot.slane %v9624_v28, 1 }
 0x3ff   : > { %v7336_v31 = vrot.slane %v7334_v10, 1  ;;  %v7341_v1 = vrot.slane %v7339_v14, 1  ;;  %v12169_v14 = vld [vmem:[#allocation17] ss:$0 sm:$0xff] }
 0x400   : > { %v5565_v48 = vpop.permute.xlu1 %5564  ;;  %6938 = vrot.lane.b32.xlu0 %v9609_v23, %s9964_s13 }
 0x401   : > { %5603 = vst.msk [vmem:[#allocation5 + $0x50] sm:$0xff] %vm5592_vm8, %v5565_v48  ;;  %v6749_v51 = vpop.permute.xlu0 %6748  ;;  %6473 = vrot.lane.b32.xlu1 %v6442_v63, %s9963_s14  ;;  %s9865_s14 = scalar_lea.vmem %s12244_s28, 256 }
 0x402   : > { %5892 = vst.msk [vmem:[#allocation5 + $0x50] sm:$0xff] %vm12369_vm6, %v5854_v38  ;;  %vm12376_vm6 = vmmov %vm12371_vm2  ;;  %p9866_p6 = scmp.ne.s32.totalorder %s12244_s28, %s9865_s14 }
 0x403   : > { %5175 = vst.msk [vmem:[#allocation5 + $0x78] sm:$0xff] %vm12376_vm6, %v9629_v46  ;;  %vm12378_vm2 = vmmov %vm12377_vm14 }
 0x404   : > { %v7358_v36 = vpop.permute.xlu1 %7357  ;;  %7371 = vrot.lane.b32.xlu0 %v7330_v16, %s9967_s22  ;;  %vm12382_vm3 = vmmov %vm12378_vm2  ;;  %p9867_p12 = pnand %p9866_p6, %p12389_p9 }
 0x405   : > { %7399 = vst.msk [vmem:[#allocation5 + $0x38] sm:$0xff] %vm7391_vm15, %v7358_v36  ;;  %6762 = vrot.lane.b32.xlu1 %v6731_v19, %s9965_s19  ;;  %vm12385_vm6 = vmmov %vm12381_vm5 }
 0x406   : > { %7688 = vst.msk [vmem:[#allocation5 + $0x38] sm:$0xff] %vm7680_vm4, %v7647_v13  ;;  %v7360_v20 = vpop.permute.xlu0 %7359  ;;  %p9868_p13 = pneg %p9867_p12 }
 0x408   : > { %7660 = vrot.lane.b32.xlu0 %v7628_v45, %s9966_s21  ;;  %v5563_v39 = vpop.permute.xlu1 %5562 }
 0x409   : > { %5602 = vst.msk [vmem:[#allocation5 + $0x48] sm:$0xff] %vm5592_vm8, %v5563_v39  ;;  %6940 = vrot.lane.b32.xlu1 %v9619_v24, %s9964_s13  ;;  %s9968_s13 = smov [#allocation18]  }
 0x40a   : > { %5891 = vst.msk [vmem:[#allocation5 + $0x48] sm:$0xff] %vm12375_vm0, %v12053_v22  ;;  %v6460_v29 = vpop.permute.xlu0 %6459  ;;  %v9623_v22 = vld [vmem:[#allocation4 + $0xcc] sm:$0xfe]   ;;  %s9869_s30 = sshll.u32 %s9968_s13, 4  ;;  %s9870_s30 = int_to_ptr.vmem [resolvable:$false] %s9869_s30 }
 0x40b   : > { %6068 = vst.msk [vmem:[#allocation5 + $0x48] sm:$0xff] %vm12377_vm14, %v12013_v43  ;;  %v7629_v40 = vrot.slane %v9623_v22, 1  ;;  %s9871_s19 = scalar_lea.vmem %s9870_s30, 512  ;;  %p9872_p1 = scmp.lt.s32.totalorder %s12244_s28, %s9870_s30 }
 0x40c   : > { %6500 = vst.msk [vmem:[#allocation5 + $0x40] sm:$0xff] %vm6491_vm11, %v6460_v29  ;;  %6501 = vst.msk [vmem:[#allocation5 + $0x48] sm:$0xff] %vm6491_vm11, %v12062_v12  ;;  %v6033_v38 = vpop.permute.xlu1 %6032  ;;  %p9873_p3 = scmp.lt.s32.totalorder %s9871_s19, %s9865_s14 }
 0x40d   : > { %6789 = vst.msk [vmem:[#allocation5 + $0x40] sm:$0xff] %vm6780_vm12, %v6749_v51  ;;  %6790 = vst.msk [vmem:[#allocation5 + $0x48] sm:$0xff] %vm6780_vm12, %v12043_v52  ;;  %v7704_v43 = vld [vmem:[#allocation5 + $0x38] sm:$0xff]  ;;  %v7337_v52 = vor.u32 %v7336_v31, %v7332_v41  ;;  %v7631_v12 = vsel %vm2107_vm9, %v7629_v40, %v7630_v37 }
 0x40e   : > { %6967 = vst.msk [vmem:[#allocation5 + $0x40] sm:$0xff] %vm6958_vm13, %v12021_v53  ;;  %v6931_v8 = vpop.permute.xlu0 %6930  ;;  %8998 = vmatmul.mubr.msk.bf16.gmra.mrb[12].mxu1 %vm7749_vm1, %v7704_v43  ;;  %vm12380_vm9 = vmmov %vm12378_vm2  ;;  %v12166_v41 = vld [vmem:[#allocation15] ss:$0 sm:$0xff]  ;;  %p9874_p2 = por %p9873_p3, %p9872_p1 }
 0x40f   : > { %7400 = vst.msk [vmem:[#allocation5 + $0x40] sm:$0xff] %vm7391_vm15, %v7360_v20  ;;  %v7342_v54 = vsel %vm1673_vm7, %v7337_v52, %v7341_v1  ;;  %vm12379_vm7 = vmmov %vm12375_vm0 }
 0x410   : > { %7689 = vst.msk [vmem:[#allocation5 + $0x40] sm:$0xff] %vm7680_vm4, %v12048_v44  ;;  %v6929_v53 = vpop.permute.xlu1 %6928  ;;  %7373 = vrot.lane.b32.xlu1 %v7342_v54, %s9967_s22  ;;  %vm12384_vm0 = vmmov %vm12378_vm2  ;;  %p9875_p8 = pnand %p9874_p2, %p9868_p13 }
 0x411   : > { %6968 = vst.msk [vmem:[#allocation5 + $0x48] sm:$0xff] %vm6958_vm13, %v6929_v53  ;;  %vm12386_vm14 = vmmov %vm12384_vm0 }
 0x412   : > { %v6031_v62 = vpop.permute.xlu0 %6030 }
 0x413   : > { %6069 = vst.msk [vmem:[#allocation5 + $0x50] sm:$0xff] %vm12378_vm2, %v6031_v62  ;;  %vm12387_vm2 = vmmov %vm12381_vm5 }
 0x414   : > { %7662 = vrot.lane.b32.xlu1 %v7631_v12, %s9966_s21 }
 0x416   : > { %v7651_v44 = vpop.permute.xlu0 %7650 }
 0x417   : > { %v7705_v42 = vld [vmem:[#allocation5 + $0x40] sm:$0xff] }
 0x418   : > { %9001 = vmatprep.mubr.msk.bf16.mxu1 %vm7749_vm1, %v7705_v42 }
 0x419   : > { %v6755_v13 = vpop.permute.xlu1 %6754 }
 0x41d   : > { %v5856_v9 = vpop.permute.xlu1 %5855 }
 0x422   : > { %v6753_v26 = vpop.permute.xlu0 %6752  ;;  %v6466_v6 = vpop.permute.xlu1 %6465 }
 0x426   : > { %v7364_v17 = vpop.permute.xlu0 %7363 }
 0x427   : > { %v7362_v23 = vpop.permute.xlu1 %7361 }
 0x428   : > { %7401 = vst.msk [vmem:[#allocation5 + $0x48] sm:$0xff] %vm7391_vm15, %v7362_v23 }
 0x429   : > { %7690 = vst.msk [vmem:[#allocation5 + $0x48] sm:$0xff] %vm7680_vm4, %v7651_v44 }
 0x42a   : > { %v6464_v33 = vpop.permute.xlu0 %6463 }
 0x42b   : > { %6502 = vst.msk [vmem:[#allocation5 + $0x50] sm:$0xff] %vm6491_vm11, %v6464_v33  ;;  %v5567_v58 = vpop.permute.xlu1 %5566 }
 0x42c   : > { %6791 = vst.msk [vmem:[#allocation5 + $0x50] sm:$0xff] %vm6780_vm12, %v6753_v26 }
 0x42d   : > { %6969 = vst.msk [vmem:[#allocation5 + $0x50] sm:$0xff] %vm6958_vm13, %v6931_v8 }
 0x42e   : > { %5604 = vst.msk [vmem:[#allocation5 + $0x58] sm:$0xff] %vm5592_vm8, %v5567_v58  ;;  %v7653_v34 = vpop.permute.xlu0 %7652 }
 0x42f   : > { %5893 = vst.msk [vmem:[#allocation5 + $0x58] sm:$0xff] %vm12379_vm7, %v5856_v9  ;;  %v5569_v5 = vpop.permute.xlu1 %5568  ;;  %vm12388_vm7 = vmmov %vm12384_vm0 }
 0x430   : > { %7402 = vst.msk [vmem:[#allocation5 + $0x50] sm:$0xff] %vm7391_vm15, %v7364_v17  ;;  %v7706_v47 = vld [vmem:[#allocation5 + $0x48] sm:$0xff] }
 0x431   : > { %6070 = vst.msk [vmem:[#allocation5 + $0x58] sm:$0xff] %vm12380_vm9, %v6033_v38  ;;  %9002 = vmatmul.mubr.msk.bf16.gmra.mrb[16].mxu1 %vm7749_vm1, %v7706_v47 }
 0x432   : > { %7691 = vst.msk [vmem:[#allocation5 + $0x50] sm:$0xff] %vm7680_vm4, %v7653_v34 }
 0x433   : > { %6503 = vst.msk [vmem:[#allocation5 + $0x58] sm:$0xff] %vm6491_vm11, %v6466_v6  ;;  %v6933_v59 = vpop.permute.xlu1 %6932 }
 0x434   : > { %6792 = vst.msk [vmem:[#allocation5 + $0x58] sm:$0xff] %vm6780_vm12, %v6755_v13 }
 0x435   : > { %5605 = vst.msk [vmem:[#allocation5 + $0x60] sm:$0xff] %vm5592_vm8, %v5569_v5 }
 0x436   : > { %v7655_v0 = vpop.permute.xlu0 %7654  ;;  %6970 = vst.msk [vmem:[#allocation5 + $0x58] sm:$0xff] %vm6958_vm13, %v6933_v59 }
 0x439   : > { %v7707_v27 = vld [vmem:[#allocation5 + $0x50] sm:$0xff] }
 0x43a   : > { %9005 = vmatprep.mubr.msk.bf16.mxu1 %vm7749_vm1, %v7707_v27 }
 0x43d   : > { %v7366_v48 = vpop.permute.xlu1 %7365  ;;  %v5858_v7 = vpop.permute.xlu0 %5857 }
 0x43e   : > { %7403 = vst.msk [vmem:[#allocation5 + $0x58] sm:$0xff] %vm7391_vm15, %v7366_v48 }
 0x43f   : > { %7692 = vst.msk [vmem:[#allocation5 + $0x58] sm:$0xff] %vm7680_vm4, %v7655_v0 }
 0x440   : > { %5894 = vst.msk [vmem:[#allocation5 + $0x60] sm:$0xff] %vm12381_vm5, %v5858_v7 }
 0x441   : > { %v6035_v55 = vpop.permute.xlu0 %6034  ;;  %v5571_v50 = vpop.permute.xlu1 %5570 }
 0x442   : > { %6071 = vst.msk [vmem:[#allocation5 + $0x60] sm:$0xff] %vm12382_vm3, %v6035_v55 }
 0x443   : > { %5606 = vst.msk [vmem:[#allocation5 + $0x68] sm:$0xff] %vm5592_vm8, %v5571_v50 }
 0x445   : > { %v5860_v61 = vpop.permute.xlu1 %5859 }
 0x446   : > { %v7708_v51 = vld [vmem:[#allocation5 + $0x58] sm:$0xff]  ;;  %5895 = vst.msk [vmem:[#allocation5 + $0x68] sm:$0xff] %vm12383_vm10, %v5860_v61 }
 0x447   : > { %9006 = vmatmul.mubr.msk.bf16.gmra.mrb[20].mxu1 %vm7749_vm1, %v7708_v51  ;;  %v6468_v49 = vpop.permute.xlu0 %6467 }
 0x448   : > { %6504 = vst.msk [vmem:[#allocation5 + $0x60] sm:$0xff] %vm6491_vm11, %v6468_v49 }
 0x449   : > { %v6037_v57 = vpop.permute.xlu1 %6036 }
 0x44a   : > { %6072 = vst.msk [vmem:[#allocation5 + $0x68] sm:$0xff] %vm12384_vm0, %v6037_v57 }
 0x44b   : > { %v6757_v63 = vpop.permute.xlu0 %6756 }
 0x44c   : > { %6793 = vst.msk [vmem:[#allocation5 + $0x60] sm:$0xff] %vm6780_vm12, %v6757_v63 }
 0x44d   : > { %v6470_v30 = vpop.permute.xlu1 %6469 }
 0x44e   : > { %6505 = vst.msk [vmem:[#allocation5 + $0x68] sm:$0xff] %vm6491_vm11, %v6470_v30 }
 0x44f   : > { %v6935_v4 = vpop.permute.xlu0 %6934 }
 0x450   : > { %6971 = vst.msk [vmem:[#allocation5 + $0x60] sm:$0xff] %vm6958_vm13, %v6935_v4 }
 0x451   : > { %v6759_v15 = vpop.permute.xlu1 %6758 }
 0x452   : > { %6794 = vst.msk [vmem:[#allocation5 + $0x68] sm:$0xff] %vm6780_vm12, %v6759_v15 }
 0x453   : > { %v7368_v18 = vpop.permute.xlu0 %7367 }
 0x454   : > { %7404 = vst.msk [vmem:[#allocation5 + $0x60] sm:$0xff] %vm7391_vm15, %v7368_v18 }
 0x455   : > { %v6937_v16 = vpop.permute.xlu1 %6936 }
 0x456   : > { %6972 = vst.msk [vmem:[#allocation5 + $0x68] sm:$0xff] %vm6958_vm13, %v6937_v16 }
 0x457   : > { %v7657_v11 = vpop.permute.xlu0 %7656 }
 0x458   : > { %7693 = vst.msk [vmem:[#allocation5 + $0x60] sm:$0xff] %vm7680_vm4, %v7657_v11 }
 0x45b   : > { %v7659_v36 = vpop.permute.xlu0 %7658 }
 0x45f   : > { %v7370_v60 = vpop.permute.xlu1 %7369  ;;  %v7709_v3 = vld [vmem:[#allocation5 + $0x60] sm:$0xff]  ;;  %v5862_v21 = vpop.permute.xlu0 %5861 }
 0x460   : > { %7405 = vst.msk [vmem:[#allocation5 + $0x68] sm:$0xff] %vm7391_vm15, %v7370_v60  ;;  %9009 = vmatprep.mubr.msk.bf16.mxu1 %vm7749_vm1, %v7709_v3 }
 0x461   : > { %7694 = vst.msk [vmem:[#allocation5 + $0x68] sm:$0xff] %vm7680_vm4, %v7659_v36 }
 0x463   : > { %v5573_v19 = vpop.permute.xlu1 %5572  ;;  %v6039_v20 = vpop.permute.xlu0 %6038 }
 0x464   : > { %5607 = vst.msk [vmem:[#allocation5 + $0x70] sm:$0xff] %vm5592_vm8, %v5573_v19 }
 0x465   : > { %5896 = vst.msk [vmem:[#allocation5 + $0x70] sm:$0xff] %vm12385_vm6, %v5862_v21 }
 0x466   : > { %6073 = vst.msk [vmem:[#allocation5 + $0x70] sm:$0xff] %vm12386_vm14, %v6039_v20 }
 0x467   : > { %v5575_v35 = vpop.permute.xlu1 %5574 }
 0x468   : > { %v7710_v32 = vld [vmem:[#allocation5 + $0x68] sm:$0xff]  ;;  %5608 = vst.msk [vmem:[#allocation5 + $0x78] sm:$0xff] %vm5592_vm8, %v5575_v35 }
 0x469   : > { %9010 = vmatmul.mubr.msk.bf16.gmra.mrb[24].mxu1 %vm7749_vm1, %v7710_v32 }
 0x46a   : > { %v6472_v45 = vpop.permute.xlu0 %6471 }
 0x46b   : > { %6506 = vst.msk [vmem:[#allocation5 + $0x70] sm:$0xff] %vm6491_vm11, %v6472_v45  ;;  %v5864_v2 = vpop.permute.xlu1 %5863 }
 0x46c   : > { %5897 = vst.msk [vmem:[#allocation5 + $0x78] sm:$0xff] %vm12387_vm2, %v5864_v2 }
 0x46e   : > { %v6761_v39 = vpop.permute.xlu0 %6760 }
 0x46f   : > { %6795 = vst.msk [vmem:[#allocation5 + $0x70] sm:$0xff] %vm6780_vm12, %v6761_v39  ;;  %v6041_v46 = vpop.permute.xlu1 %6040 }
 0x470   : > { %6074 = vst.msk [vmem:[#allocation5 + $0x78] sm:$0xff] %vm12388_vm7, %v6041_v46 }
 0x472   : > { %v6939_v29 = vpop.permute.xlu0 %6938 }
 0x473   : > { %6973 = vst.msk [vmem:[#allocation5 + $0x70] sm:$0xff] %vm6958_vm13, %v6939_v29  ;;  %v6474_v24 = vpop.permute.xlu1 %6473 }
 0x474   : > { %6507 = vst.msk [vmem:[#allocation5 + $0x78] sm:$0xff] %vm6491_vm11, %v6474_v24 }
 0x476   : > { %v7372_v56 = vpop.permute.xlu0 %7371 }
 0x477   : > { %7406 = vst.msk [vmem:[#allocation5 + $0x70] sm:$0xff] %vm7391_vm15, %v7372_v56  ;;  %v6763_v25 = vpop.permute.xlu1 %6762 }
 0x478   : > { %6796 = vst.msk [vmem:[#allocation5 + $0x78] sm:$0xff] %vm6780_vm12, %v6763_v25 }
 0x47a   : > { %v7661_v38 = vpop.permute.xlu0 %7660 }
 0x47b   : > { %7695 = vst.msk [vmem:[#allocation5 + $0x70] sm:$0xff] %vm7680_vm4, %v7661_v38  ;;  %v6941_v22 = vpop.permute.xlu1 %6940 }
 0x47c   : > { %6974 = vst.msk [vmem:[#allocation5 + $0x78] sm:$0xff] %vm6958_vm13, %v6941_v22 }
 0x482   : > { %v7711_v43 = vld [vmem:[#allocation5 + $0x70] sm:$0xff]  ;;  %v7374_v53 = vpop.permute.xlu1 %7373 }
 0x483   : > { %9013 = vmatprep.mubr.msk.bf16.mxu1 %vm7749_vm1, %v7711_v43  ;;  %7407 = vst.msk [vmem:[#allocation5 + $0x78] sm:$0xff] %vm7391_vm15, %v7374_v53 }
 0x484   : > { %v8987_v10 = vpop.f32.mrb[0].mxu1 }
 0x485   : > { %v7836_v28 = vpop.f32.mrb[1].mxu1  ;;  %v7972_v37 = vmul.f32 %v8987_v10, %v12166_v41 }
 0x486   : > { %v7970_v8 = vmul.f32 %v12166_v41, %v7836_v28  ;;  %v8988_v31 = vpop.f32.mrb[2].mxu1  ;;  %v7663_v12 = vpop.permute.xlu1 %7662 }
 0x487   : > { %v7839_v1 = vpop.f32.mrb[3].mxu1  ;;  %7696 = vst.msk [vmem:[#allocation5 + $0x78] sm:$0xff] %vm7680_vm4, %v7663_v12  ;;  %v8011_v13 = vadd.f32 %v12169_v14, %v7972_v37  ;;  %v7973_v42 = vmul.f32 %v8988_v31, %v12166_v41 }
 0x488   : > { %v8009_v52 = vadd.f32 %v12169_v14, %v7970_v8  ;;  %v7971_v40 = vmul.f32 %v12166_v41, %v7839_v1 }
 0x489   : > { %v8043_v9 = vmax.f32 %v8011_v13, 0.0  ;;  %v8012_v26 = vadd.f32 %v12169_v14, %v7973_v42 }
 0x48a   : > { %v8041_v62 = vmax.f32 %v8009_v52, 0.0  ;;  %v8010_v54 = vadd.f32 %v12169_v14, %v7971_v40 }
 0x48b   : > { %v8044_v17 = vmax.f32 %v8012_v26, 0.0 }
 0x48c   : > { %8073 = vxpose.xlu0.b32.start [1/16] (narrow) %v8041_v62, 8  ;;  %v8042_v44 = vmax.f32 %v8010_v54, 0.0 }
 0x48e   : > { %v7712_v6 = vld [vmem:[#allocation5 + $0x78] sm:$0xff] }
 0x48f   : > { %9014 = vmatmul.mubr.msk.bf16.gmra.mrb[28].mxu1 %vm7749_vm1, %v7712_v6 }
 0x490   : > { %8074 = vxpose.xlu0.b32.cont [2/16] (narrow) %v8042_v44, 8 }
 0x494   : > { %8075 = vxpose.xlu0.b32.cont [3/16] (narrow) %v8043_v9, 8 }
 0x498   : > { %8076 = vxpose.xlu0.b32.cont [4/16] (narrow) %v8044_v17, 8 }
 0x49c   : > { %v8991_v23 = vpop.f32.mrb[4].mxu1 }
 0x49d   : > { %v7852_v33 = vpop.f32.mrb[5].mxu1  ;;  %v7976_v59 = vmul.f32 %v8991_v23, %v12166_v41 }
 0x49e   : > { %v7974_v58 = vmul.f32 %v12166_v41, %v7852_v33  ;;  %v8992_v34 = vpop.f32.mrb[6].mxu1 }
 0x49f   : > { %v7855_v5 = vpop.f32.mrb[7].mxu1  ;;  %v8015_v7 = vadd.f32 %v12169_v14, %v7976_v59  ;;  %v7977_v55 = vmul.f32 %v8992_v34, %v12166_v41 }
 0x4a0   : > { %v8013_v47 = vadd.f32 %v12169_v14, %v7974_v58  ;;  %v7975_v0 = vmul.f32 %v12166_v41, %v7855_v5 }
 0x4a1   : > { %v8047_v50 = vmax.f32 %v8015_v7, 0.0  ;;  %v8016_v61 = vadd.f32 %v12169_v14, %v7977_v55 }
 0x4a2   : > { %v8045_v27 = vmax.f32 %v8013_v47, 0.0  ;;  %v8014_v48 = vadd.f32 %v12169_v14, %v7975_v0 }
 0x4a3   : > { %v8048_v49 = vmax.f32 %v8016_v61, 0.0 }
 0x4a4   : > { %8077 = vxpose.xlu0.b32.cont [5/16] (narrow) %v8045_v27, 8  ;;  %v8046_v51 = vmax.f32 %v8014_v48, 0.0 }
 0x4a8   : > { %8078 = vxpose.xlu0.b32.cont [6/16] (narrow) %v8046_v51, 8 }
 0x4ac   : > { %8079 = vxpose.xlu0.b32.cont [7/16] (narrow) %v8047_v50, 8 }
 0x4b0   : > { %8080 = vxpose.xlu0.b32.cont [8/16] (narrow) %v8048_v49, 8 }
 0x4bf   : > { %v8995_v57 = vpop.f32.mrb[8].mxu1 }
 0x4c0   : > { %v7868_v63 = vpop.f32.mrb[9].mxu1  ;;  %v7980_v11 = vmul.f32 %v8995_v57, %v12166_v41 }
 0x4c1   : > { %v7978_v30 = vmul.f32 %v12166_v41, %v7868_v63  ;;  %v8996_v4 = vpop.f32.mrb[10].mxu1 }
 0x4c2   : > { %v7871_v15 = vpop.f32.mrb[11].mxu1  ;;  %v8019_v3 = vadd.f32 %v12169_v14, %v7980_v11  ;;  %v7981_v21 = vmul.f32 %v8996_v4, %v12166_v41 }
 0x4c3   : > { %v8017_v18 = vadd.f32 %v12169_v14, %v7978_v30  ;;  %v7979_v16 = vmul.f32 %v12166_v41, %v7871_v15 }
 0x4c4   : > { %v8051_v20 = vmax.f32 %v8019_v3, 0.0  ;;  %v8020_v32 = vadd.f32 %v12169_v14, %v7981_v21 }
 0x4c5   : > { %v8049_v36 = vmax.f32 %v8017_v18, 0.0  ;;  %v8018_v60 = vadd.f32 %v12169_v14, %v7979_v16 }
 0x4c6   : > { %v8052_v35 = vmax.f32 %v8020_v32, 0.0 }
 0x4c7   : > { %8081 = vxpose.xlu0.b32.cont [9/16] (narrow) %v8049_v36, 8  ;;  %v8050_v19 = vmax.f32 %v8018_v60, 0.0 }
 0x4cb   : > { %8082 = vxpose.xlu0.b32.cont [10/16] (narrow) %v8050_v19, 8 }
 0x4cf   : > { %8083 = vxpose.xlu0.b32.cont [11/16] (narrow) %v8051_v20, 8 }
 0x4d3   : > { %8084 = vxpose.xlu0.b32.cont [12/16] (narrow) %v8052_v35, 8 }
 0x4e1   : > { %v8999_v45 = vpop.f32.mrb[12].mxu1 }
 0x4e2   : > { %v7884_v2 = vpop.f32.mrb[13].mxu1  ;;  %v7984_v25 = vmul.f32 %v8999_v45, %v12166_v41 }
 0x4e3   : > { %v7982_v39 = vmul.f32 %v12166_v41, %v7884_v2  ;;  %v9000_v46 = vpop.f32.mrb[14].mxu1 }
 0x4e4   : > { %v7887_v29 = vpop.f32.mrb[15].mxu1  ;;  %v8023_v43 = vadd.f32 %v12169_v14, %v7984_v25  ;;  %v7985_v10 = vmul.f32 %v9000_v46, %v12166_v41 }
 0x4e5   : > { %v8021_v24 = vadd.f32 %v12169_v14, %v7982_v39  ;;  %v7983_v56 = vmul.f32 %v12166_v41, %v7887_v29 }
 0x4e6   : > { %v8055_v8 = vmax.f32 %v8023_v43, 0.0  ;;  %v8024_v31 = vadd.f32 %v12169_v14, %v7985_v10 }
 0x4e7   : > { %v8053_v38 = vmax.f32 %v8021_v24, 0.0  ;;  %v8022_v22 = vadd.f32 %v12169_v14, %v7983_v56 }
 0x4e8   : > { %v8056_v1 = vmax.f32 %v8024_v31, 0.0 }
 0x4e9   : > { %8085 = vxpose.xlu0.b32.cont [13/16] (narrow) %v8053_v38, 8  ;;  %v8054_v28 = vmax.f32 %v8022_v22, 0.0 }
 0x4ed   : > { %8086 = vxpose.xlu0.b32.cont [14/16] (narrow) %v8054_v28, 8 }
 0x4f1   : > { %8087 = vxpose.xlu0.b32.cont [15/16] (narrow) %v8055_v8, 8 }
 0x4f5   : > { %8088 = vxpose.xlu0.b32.end [16/16] (narrow) %v8056_v1, 8 }
 0x504   : > { %v9003_v53 = vpop.f32.mrb[16].mxu1 }
 0x505   : > { %v7900_v52 = vpop.f32.mrb[17].mxu1  ;;  %v7988_v13 = vmul.f32 %v9003_v53, %v12166_v41 }
 0x506   : > { %v7986_v40 = vmul.f32 %v12166_v41, %v7900_v52  ;;  %v9004_v37 = vpop.f32.mrb[18].mxu1 }
 0x507   : > { %v7903_v62 = vpop.f32.mrb[19].mxu1  ;;  %v8027_v9 = vadd.f32 %v12169_v14, %v7988_v13  ;;  %v7989_v26 = vmul.f32 %v9004_v37, %v12166_v41 }
 0x508   : > { %v8025_v54 = vadd.f32 %v12169_v14, %v7986_v40  ;;  %v7987_v12 = vmul.f32 %v12166_v41, %v7903_v62 }
 0x509   : > { %v8059_v17 = vmax.f32 %v8027_v9, 0.0  ;;  %v8028_v23 = vadd.f32 %v12169_v14, %v7989_v26 }
 0x50a   : > { %v8057_v42 = vmax.f32 %v8025_v54, 0.0  ;;  %v8026_v44 = vadd.f32 %v12169_v14, %v7987_v12 }
 0x50b   : > { %v8060_v58 = vmax.f32 %v8028_v23, 0.0 }
 0x50c   : > { %8105 = vxpose.xlu1.b32.start [1/16] (narrow) %v8057_v42, 8  ;;  %v8058_v6 = vmax.f32 %v8026_v44, 0.0 }
 0x510   : > { %8106 = vxpose.xlu1.b32.cont [2/16] (narrow) %v8058_v6, 8 }
 0x514   : > { %8107 = vxpose.xlu1.b32.cont [3/16] (narrow) %v8059_v17, 8 }
 0x518   : > { %8108 = vxpose.xlu1.b32.cont [4/16] (narrow) %v8060_v58, 8 }
 0x51a   : > { %v9007_v33 = vpop.f32.mrb[20].mxu1 }
 0x51b   : > { %v7916_v34 = vpop.f32.mrb[21].mxu1  ;;  %v7992_v48 = vmul.f32 %v9007_v33, %v12166_v41 }
 0x51c   : > { %v7990_v5 = vmul.f32 %v12166_v41, %v7916_v34  ;;  %v9008_v47 = vpop.f32.mrb[22].mxu1 }
 0x51d   : > { %v7919_v0 = vpop.f32.mrb[23].mxu1  ;;  %v8031_v51 = vadd.f32 %v12169_v14, %v7992_v48  ;;  %v7993_v50 = vmul.f32 %v9008_v47, %v12166_v41 }
 0x51e   : > { %v8029_v59 = vadd.f32 %v12169_v14, %v7990_v5  ;;  %v7991_v27 = vmul.f32 %v12166_v41, %v7919_v0 }
 0x51f   : > { %v8063_v49 = vmax.f32 %v8031_v51, 0.0  ;;  %v8032_v57 = vadd.f32 %v12169_v14, %v7993_v50 }
 0x520   : > { %v8061_v7 = vmax.f32 %v8029_v59, 0.0  ;;  %v8030_v55 = vadd.f32 %v12169_v14, %v7991_v27 }
 0x521   : > { %v8064_v63 = vmax.f32 %v8032_v57, 0.0 }
 0x522   : > { %8109 = vxpose.xlu1.b32.cont [5/16] (narrow) %v8061_v7, 8  ;;  %v8062_v61 = vmax.f32 %v8030_v55, 0.0 }
 0x526   : > { %8110 = vxpose.xlu1.b32.cont [6/16] (narrow) %v8062_v61, 8 }
 0x52a   : > { %8111 = vxpose.xlu1.b32.cont [7/16] (narrow) %v8063_v49, 8 }
 0x52e   : > { %8112 = vxpose.xlu1.b32.cont [8/16] (narrow) %v8064_v63, 8 }
 0x539   : > { %v8089_v60 = vpop.trf.xlu0 }
 0x53a   : > { %8137 = vst [vmem:[%s12228_s23] sm:$0xff] %v8089_v60 }
 0x53c   : > { %v9011_v30 = vpop.f32.mrb[24].mxu1 }
 0x53d   : > { %v7932_v4 = vpop.f32.mrb[25].mxu1  ;;  %v7996_v3 = vmul.f32 %v9011_v30, %v12166_v41 }
 0x53e   : > { %v7994_v15 = vmul.f32 %v12166_v41, %v7932_v4  ;;  %v9012_v18 = vpop.f32.mrb[26].mxu1 }
 0x53f   : > { %v7935_v16 = vpop.f32.mrb[27].mxu1  ;;  %v8035_v20 = vadd.f32 %v12169_v14, %v7996_v3  ;;  %v7997_v32 = vmul.f32 %v9012_v18, %v12166_v41 }
 0x540   : > { %v8033_v11 = vadd.f32 %v12169_v14, %v7994_v15  ;;  %v7995_v36 = vmul.f32 %v12166_v41, %v7935_v16 }
 0x541   : > { %v8067_v45 = vmax.f32 %v8035_v20, 0.0  ;;  %v8036_v2 = vadd.f32 %v12169_v14, %v7997_v32 }
 0x542   : > { %v8065_v21 = vmax.f32 %v8033_v11, 0.0  ;;  %v8034_v19 = vadd.f32 %v12169_v14, %v7995_v36 }
 0x543   : > { %v8068_v39 = vmax.f32 %v8036_v2, 0.0 }
 0x544   : > { %8113 = vxpose.xlu1.b32.cont [9/16] (narrow) %v8065_v21, 8  ;;  %v8066_v35 = vmax.f32 %v8034_v19, 0.0 }
 0x548   : > { %8114 = vxpose.xlu1.b32.cont [10/16] (narrow) %v8066_v35, 8 }
 0x54c   : > { %8115 = vxpose.xlu1.b32.cont [11/16] (narrow) %v8067_v45, 8 }
 0x550   : > { %8116 = vxpose.xlu1.b32.cont [12/16] (narrow) %v8068_v39, 8 }
 0x562   : > { %v9015_v46 = vpop.f32.mrb[28].mxu1 }
 0x563   : > { %v7948_v29 = vpop.f32.mrb[29].mxu1  ;;  %v8000_v43 = vmul.f32 %v9015_v46, %v12166_v41 }
 0x564   : > { %v7998_v24 = vmul.f32 %v12166_v41, %v7948_v29  ;;  %v9016_v56 = vpop.f32.mrb[30].mxu1 }
 0x565   : > { %v7951_v25 = vpop.f32.mrb[31].mxu1  ;;  %v8039_v8 = vadd.f32 %v12169_v14, %v8000_v43  ;;  %v8001_v31 = vmul.f32 %v9016_v56, %v12166_v41 }
 0x566   : > { %v8037_v38 = vadd.f32 %v12169_v14, %v7998_v24  ;;  %v7999_v22 = vmul.f32 %v12166_v41, %v7951_v25 }
 0x567   : > { %v8071_v53 = vmax.f32 %v8039_v8, 0.0  ;;  %v8040_v52 = vadd.f32 %v12169_v14, %v8001_v31 }
 0x568   : > { %v8069_v10 = vmax.f32 %v8037_v38, 0.0  ;;  %v8038_v28 = vadd.f32 %v12169_v14, %v7999_v22 }
 0x569   : > { %v8072_v40 = vmax.f32 %v8040_v52, 0.0 }
 0x56a   : > { %8117 = vxpose.xlu1.b32.cont [13/16] (narrow) %v8069_v10, 8  ;;  %v8070_v1 = vmax.f32 %v8038_v28, 0.0 }
 0x56e   : > { %8118 = vxpose.xlu1.b32.cont [14/16] (narrow) %v8070_v1, 8 }
 0x572   : > { %8119 = vxpose.xlu1.b32.cont [15/16] (narrow) %v8071_v53, 8 }
 0x576   : > { %8120 = vxpose.xlu1.b32.end [16/16] (narrow) %v8072_v40, 8 }
 0x5ba   : > { %v8121_v41 = vpop.trf.xlu1 }
 0x5bb   : > { %8138 = vst [vmem:[%s12228_s23 + $0x8] sm:$0xff] %v8121_v41 }
 0x5bc   : > { %9878 = shalt.err (!%p9875_p8)
}
 0x5bd   : > { %s9879_s20 = scalar_lea.hbm %s12249_s17, 256  ;;  %s9883_s8 = scalar_lea.hbm %s12299_s7, 512 }
 0x5be   : > { %p9880_p4 = scmp.ne.s32.totalorder %s12249_s17, %s9879_s20  ;;  %p9884_p0 = scmp.lt.u32.totalorder %s12249_s17, %s12299_s7 }
 0x5bf   : > { %p9885_p5 = scmp.lt.u32.totalorder %s9883_s8, %s9879_s20  ;;  %p9887_p6 = scmp.lt.u32.totalorder %s9879_s20, %s12249_s17 }
 0x5c0   : > { %p9881_p10 = pnand %p9880_p4, %p12389_p9 }
 0x5c1   : > { %p9886_p7 = por %p9885_p5, %p9884_p0 }
 0x5c2   : > { %p9882_p11 = pneg %p9881_p10 }
 0x5c3   : > { %p9888_p12 = por %p9887_p6, %p9886_p7 }
 0x5c5   : > { %p9889_p13 = pnand %p9888_p12, %p9882_p11 }
 0x5c7   : > { %9892 = shalt.err (!%p9889_p13)
}
 0x5c8   : > { %9045 = dma.vmem_to_hbm [thread:$0]  (%p12389_p9), %s12244_s28, 256, %s12249_s17, %s8140_s16  }
 0x5c9 PF: > { %s8166_s9 = sand.u32 1, %s9931_s24   ;;  %p12390_p1 = scmp.ne.s32.totalorder %s12317_s29, 0 }
 0x5ca   : > { %p12391_p3 = scmp.ge.s32.totalorder %s9943_s27, 2  ;;  %s8167_s12 = scalar_lea.sflag [#allocation8], %s8166_s9 }
 0x5cc   : > { %p9071_p2 = pnand %p12391_p3, %p12390_p1 }
 0x5ce   : > { %9926 = dma.done.wait (!%p9071_p2), %s8167_s12, 256  }
 0x5cf   : > { %9928 = vsyncadd (!%p9071_p2), %s8167_s12, 4294967040  ;;  %p23_p8 = scmp.ge.s32.totalorder %s10193_s11, 4   ;;  %s12392_s24 = smov %s9935_s25 }
 0x5d0   : > { %s12393_s25 = smov %s9939_s26  ;;  %s12394_s26 = smov %s10204_s18 }
 0x5d1   : > { %s12395_s27 = smov %s10193_s11  ;;  %25 = sbr.rel (!%p23_p8) target bundleno = 8 (0x8), region = 123 }
 0x5d8   :  { %8172 = vsyncpa [#allocation7], 1 }
 0x5d9   :  { %8174 = vsyncpa [#allocation7 + $0x1], 1 }
 0x5da   :  { %8175 = vsyncpa [#allocation10], 1 }
 0x5db   :  { %8176 = vsyncpa [#allocation13], 1 }
 0x5dc   :  { %8177 = vsyncpa [#allocation16], 1 }
 0x5dd   :  { %8178 = vsyncpa [#allocation8], 1 }
 0x5de   :  { %8180 = vsyncpa [#allocation8 + $0x1], 1 }

</bundles_post_ra>
